<compile_context>
chip_gen: v6e
topology: v6e:2x2x1
jax: 0.10.0
libtpu: 0.0.40
codegen_flags: <defaults>
</compile_context>

<pallas_src>
import functools

import jax
import jax.numpy as jnp
from jax import lax
from jax.experimental import pallas as pl
from jax.experimental.pallas import tpu as pltpu

EPS = 1e-5     # nn.BatchNorm2d default eps
LANE = 128


def _round_up(x, m):
    return (x + m - 1) // m * m


def _convblock_kernel(xcol_ref, w1_ref, g1_ref, b1_ref, w2_ref, g2_ref, b2_ref,
                      out_ref, h1_ref, *, N, H, W, CP):
    """Fused ConvBlock, fully resident in VMEM.

    xcol_ref : (M, K1P)            bf16 im2col slab of the input, M = N*H*W
    w1_ref   : (K1P, CP)           bf16 stage-1 weight (rows = tap*Cin + cin)
    g1_ref, b1_ref : (1, CP)       f32 stage-1 BN gamma / beta (channel-padded)
    w2_ref   : (9*CP, CP)          bf16 stage-2 taps stacked on rows (tap = 3*dy+dx)
    g2_ref, b2_ref : (1, CP)       f32 stage-2 BN gamma / beta
    out_ref  : (N, H, W, CP)       f32 output (channel-padded, lane-dense)
    h1_ref   : (N, H+2, W+2, CP)   bf16 scratch: spatially padded stage-1 act
    """
    M = N * H * W
    inv_m = 1.0 / float(M)

    def bn_relu(acc, g_ref, b_ref):
        # Training-mode BatchNorm batch stats (biased variance) in f32,
        # fused with the scale/shift + ReLU epilogue on the traced accumulator.
        mean = jnp.sum(acc, axis=0, keepdims=True) * inv_m
        ex2 = jnp.sum(acc * acc, axis=0, keepdims=True) * inv_m
        var = ex2 - mean * mean
        scale = g_ref[...] * lax.rsqrt(var + EPS)
        shift = b_ref[...] - mean * scale
        return jnp.maximum(acc * scale + shift, 0.0)

    # ---- stage 1: single im2col matmul (bf16 operands, f32 acc) -> BN -> ReLU
    acc1 = jnp.dot(xcol_ref[...], w1_ref[...],
                   preferred_element_type=jnp.float32)
    y1 = bn_relu(acc1, g1_ref, b1_ref)

    # ---- stage-1 activation into the spatially padded bf16 buffer.
    # Only the 1-wide halo strips are zeroed; the interior is written directly.
    zrow = jnp.zeros((N, 1, W + 2, CP), dtype=h1_ref.dtype)
    zcol = jnp.zeros((N, H, 1, CP), dtype=h1_ref.dtype)
    h1_ref[:, pl.ds(0, 1), :, :] = zrow
    h1_ref[:, pl.ds(H + 1, 1), :, :] = zrow
    h1_ref[:, pl.ds(1, H), pl.ds(0, 1), :] = zcol
    h1_ref[:, pl.ds(1, H), pl.ds(W + 1, 1), :] = zcol
    h1_ref[:, pl.ds(1, H), pl.ds(1, W), :] = (
        y1.astype(h1_ref.dtype).reshape(N, H, W, CP))

    # ---- stage 2: 9 tap matmuls (bf16 operands, f32 acc) accumulated in a
    # traced value (no VMEM accumulator scratch) -> BN -> ReLU.
    acc2 = None
    for t in range(9):
        dy, dx = divmod(t, 3)
        lhs = h1_ref[:, pl.ds(dy, H), pl.ds(dx, W), :].reshape(M, CP)
        contrib = jnp.dot(lhs, w2_ref[pl.ds(t * CP, CP), :],
                          preferred_element_type=jnp.float32)
        acc2 = contrib if acc2 is None else acc2 + contrib

    out_ref[...] = bn_relu(acc2, g2_ref, b2_ref).reshape(N, H, W, CP)


def _conv_block_pallas(x_col, w1p, g1p, be1p, w2p, g2p, be2p, *, N, H, W, CP):
    M = N * H * W
    # VMEM budget from the actual footprint (+ headroom for traced f32 temps).
    budget = (x_col.size * 2 + w1p.size * 2 + w2p.size * 2        # bf16 inputs
              + 4 * CP * 4                                         # BN vectors
              + M * CP * 4                                         # f32 output
              + N * (H + 2) * (W + 2) * CP * 2                     # bf16 h1
              + 6 * M * CP * 4                                     # f32 temps
              + (2 << 20))
    vmem_limit = int(min(max(budget, 16 << 20), 96 << 20))

    kern = functools.partial(_convblock_kernel, N=N, H=H, W=W, CP=CP)
    return pl.pallas_call(
        kern,
        out_shape=jax.ShapeDtypeStruct((N, H, W, CP), jnp.float32),
        in_specs=[pl.BlockSpec(memory_space=pltpu.MemorySpace.VMEM)] * 7,
        out_specs=pl.BlockSpec(memory_space=pltpu.MemorySpace.VMEM),
        scratch_shapes=[
            pltpu.VMEM((N, H + 2, W + 2, CP), jnp.bfloat16),   # padded stage-1 act
        ],
        compiler_params=pltpu.CompilerParams(vmem_limit_bytes=vmem_limit),
    )(x_col, w1p, g1p, be1p, w2p, g2p, be2p)


@jax.jit
def conv_block(x_nchw, params):
    """Forward pass of ConvBlock.  Input/output are NCHW like PyTorch."""
    cout = params["w1"].shape[0]
    cin = params["w1"].shape[1]
    N, _, H, W = x_nchw.shape
    CP = _round_up(cout, LANE)
    K1P = _round_up(9 * cin, LANE)   # stage-1 im2col contraction dim (lane-dense)

    def prep_w1(w):
        # (Co, Ci, 3, 3) -> (K1P, CP); row index = tap*Ci + ci, tap = 3*dy+dx.
        co, ci = w.shape[0], w.shape[1]
        wk = jnp.transpose(w, (2, 3, 1, 0)).reshape(9 * ci, co)
        wk = jnp.pad(wk, ((0, K1P - 9 * ci), (0, CP - co)))
        return wk.astype(jnp.bfloat16)

    def prep_w2(w):
        # (Co, Ci, 3, 3) -> (9*CP, CP); taps stacked on rows, both dims padded
        # so padded channels contribute 0.
        co, ci = w.shape[0], w.shape[1]
        wk = jnp.transpose(w, (2, 3, 1, 0)).reshape(9, ci, co)
        wk = jnp.pad(wk, ((0, 0), (0, CP - ci), (0, CP - co)))
        return wk.reshape(9 * CP, CP).astype(jnp.bfloat16)

    def prep_v(v):
        return jnp.pad(v, (0, CP - cout)).reshape(1, CP).astype(jnp.float32)

    # NCHW -> NHWC, then host-side im2col (layout plumbing) so stage-1 is one
    # lane-dense MXU matmul with K = K1P instead of 9 K=Cin matmuls.
    x = jnp.transpose(x_nchw, (0, 2, 3, 1)).astype(jnp.float32)
    xpad = jnp.pad(x, ((0, 0), (1, 1), (1, 1), (0, 0)))
    cols = [xpad[:, dy:dy + H, dx:dx + W, :]
            for dy in range(3) for dx in range(3)]
    x_col = jnp.concatenate(cols, axis=-1).reshape(N * H * W, 9 * cin)
    x_col = jnp.pad(x_col, ((0, 0), (0, K1P - 9 * cin))).astype(jnp.bfloat16)

    # Conv biases (b1, b2) are intentionally not passed: training-mode BN
    # cancels them exactly.
    y = _conv_block_pallas(
        x_col,
        prep_w1(params["w1"]), prep_v(params["g1"]), prep_v(params["be1"]),
        prep_w2(params["w2"]), prep_v(params["g2"]), prep_v(params["be2"]),
        N=N, H=H, W=W, CP=CP)
    y = y[..., :cout]
    return jnp.transpose(y, (0, 3, 1, 2))                          # NHWC -> NCHW


# ----------------------------- pure-JAX reference ---------------------------
def conv_block_ref(x_nchw, params):
    def conv(xn, w, b):
        wh = jnp.transpose(w, (2, 3, 1, 0))                        # HWIO
        y = lax.conv_general_dilated(
            xn, wh, window_strides=(1, 1), padding="SAME",
            dimension_numbers=("NHWC", "HWIO", "NHWC"))
        return y + b.reshape(1, 1, 1, -1)

    def bn_relu(y, g, be):
        mean = jnp.mean(y, axis=(0, 1, 2), keepdims=True)
        var = jnp.mean((y - mean) ** 2, axis=(0, 1, 2), keepdims=True)
        yh = (y - mean) * lax.rsqrt(var + EPS)
        yh = yh * g.reshape(1, 1, 1, -1) + be.reshape(1, 1, 1, -1)
        return jnp.maximum(yh, 0.0)

    x = jnp.transpose(x_nchw, (0, 2, 3, 1))
    y = bn_relu(conv(x, params["w1"], params["b1"]), params["g1"], params["be1"])
    y = bn_relu(conv(y, params["w2"], params["b2"]), params["g2"], params["be2"])
    return jnp.transpose(y, (0, 3, 1, 2))


# ---------------------------------- main -------------------------------------
def init_params(key, in_channels, out_channels):
    """Deterministic init mirroring nn.Conv2d / nn.BatchNorm2d defaults."""
    k1, k2, k3, k4 = jax.random.split(key, 4)
    fan1 = in_channels * 9
    fan2 = out_channels * 9
    lim1 = 1.0 / jnp.sqrt(fan1)
    lim2 = 1.0 / jnp.sqrt(fan2)
    return {
        "w1": jax.random.uniform(k1, (out_channels, in_channels, 3, 3),
                                 jnp.float32, -lim1, lim1),
        "b1": jax.random.uniform(k2, (out_channels,), jnp.float32, -lim1, lim1),
        "g1": jnp.ones((out_channels,), jnp.float32),
        "be1": jnp.zeros((out_channels,), jnp.float32),
        "w2": jax.random.uniform(k3, (out_channels, out_channels, 3, 3),
                                 jnp.float32, -lim2, lim2),
        "b2": jax.random.uniform(k4, (out_channels,), jnp.float32, -lim2, lim2),
        "g2": jnp.ones((out_channels,), jnp.float32),
        "be2": jnp.zeros((out_channels,), jnp.float32),
    }


if __name__ == "__main__":
    key = jax.random.PRNGKey(0)
    kx, kp = jax.random.split(key)

    N, Cin, Cout, H, W = 2, 4, 8, 16, 16
    x = jax.random.normal(kx, (N, Cin, H, W), jnp.float32)
    params = init_params(kp, Cin, Cout)

    out = conv_block(x, params)
    out = jax.block_until_ready(out)

    ref = conv_block_ref(x, params)
    assert out.shape == (N, Cout, H, W), out.shape
    # Tolerance sized for bf16 MXU operands (f32 accumulation / BN stats).
    max_err = float(jnp.max(jnp.abs(out - ref)))
    assert jnp.allclose(out, ref, atol=4e-2, rtol=4e-2), max_err

    print("KERNEL_OK")
</pallas_src>

<mosaic_0001>
module attributes {stable_mosaic.version = 11 : i64} {
  func.func @_convblock_kernel(%arg0: memref<512x128xbf16, #tpu.memory_space<vmem>>, %arg1: memref<128x128xbf16, #tpu.memory_space<vmem>>, %arg2: memref<1x128xf32, #tpu.memory_space<vmem>>, %arg3: memref<1x128xf32, #tpu.memory_space<vmem>>, %arg4: memref<1152x128xbf16, #tpu.memory_space<vmem>>, %arg5: memref<1x128xf32, #tpu.memory_space<vmem>>, %arg6: memref<1x128xf32, #tpu.memory_space<vmem>>, %arg7: memref<2x16x16x128xf32, #tpu.memory_space<vmem>>, %arg8: memref<2x18x18x128xbf16, #tpu.memory_space<vmem>>) attributes {dimension_semantics = [], scalar_prefetch = 0 : i64, scratch_operands = 1 : i64, tpu.core_type = #tpu.core_type<tc>} {
    %c0 = arith.constant 0 : index
    %c0_0 = arith.constant 0 : index
    %0 = vector.load %arg0[%c0, %c0_0] : memref<512x128xbf16, #tpu.memory_space<vmem>>, vector<512x128xbf16>
    %c0_1 = arith.constant 0 : index
    %c0_2 = arith.constant 0 : index
    %1 = vector.load %arg1[%c0_1, %c0_2] : memref<128x128xbf16, #tpu.memory_space<vmem>>, vector<128x128xbf16>
    %cst = arith.constant dense<0.000000e+00> : vector<512x128xf32>
    %2 = tpu.matmul %0, %1, %cst {dimension_numbers = #tpu.dot_dimension_numbers<[1], [0], [0], [1], [0, 0, 1, 1], [], []>} : vector<512x128xbf16>, vector<128x128xbf16>, vector<512x128xf32> -> vector<512x128xf32>
    %cst_3 = arith.constant dense<0.000000e+00> : vector<128xf32>
    %3 = vector.multi_reduction <add>, %2, %cst_3 [0] : vector<512x128xf32> to vector<128xf32>
    %4 = vector.shape_cast %3 : vector<128xf32> to vector<1x128xf32>
    %cst_4 = arith.constant 0.001953125 : f32
    %5 = vector.broadcast %cst_4 : f32 to vector<1x128xf32>
    %6 = arith.mulf %4, %5 : vector<1x128xf32>
    %7 = arith.mulf %2, %2 : vector<512x128xf32>
    %cst_5 = arith.constant dense<0.000000e+00> : vector<128xf32>
    %8 = vector.multi_reduction <add>, %7, %cst_5 [0] : vector<512x128xf32> to vector<128xf32>
    %9 = vector.shape_cast %8 : vector<128xf32> to vector<1x128xf32>
    %cst_6 = arith.constant 0.001953125 : f32
    %10 = vector.broadcast %cst_6 : f32 to vector<1x128xf32>
    %11 = arith.mulf %9, %10 : vector<1x128xf32>
    %12 = arith.mulf %6, %6 : vector<1x128xf32>
    %13 = arith.subf %11, %12 : vector<1x128xf32>
    %c0_7 = arith.constant 0 : index
    %c0_8 = arith.constant 0 : index
    %14 = vector.load %arg2[%c0_7, %c0_8] : memref<1x128xf32, #tpu.memory_space<vmem>>, vector<1x128xf32>
    %cst_9 = arith.constant 9.99999974E-6 : f32
    %15 = vector.broadcast %cst_9 : f32 to vector<1x128xf32>
    %16 = arith.addf %13, %15 : vector<1x128xf32>
    %17 = math.rsqrt %16 : vector<1x128xf32>
    %18 = arith.mulf %14, %17 : vector<1x128xf32>
    %c0_10 = arith.constant 0 : index
    %c0_11 = arith.constant 0 : index
    %19 = vector.load %arg3[%c0_10, %c0_11] : memref<1x128xf32, #tpu.memory_space<vmem>>, vector<1x128xf32>
    %20 = arith.mulf %6, %18 : vector<1x128xf32>
    %21 = arith.subf %19, %20 : vector<1x128xf32>
    %22 = vector.broadcast %18 : vector<1x128xf32> to vector<512x128xf32>
    %23 = arith.mulf %2, %22 : vector<512x128xf32>
    %24 = vector.broadcast %21 : vector<1x128xf32> to vector<512x128xf32>
    %25 = arith.addf %23, %24 : vector<512x128xf32>
    %cst_12 = arith.constant 0.000000e+00 : f32
    %26 = vector.broadcast %cst_12 : f32 to vector<512x128xf32>
    %27 = arith.maximumf %25, %26 : vector<512x128xf32>
    %cst_13 = arith.constant 0.000000e+00 : bf16
    %28 = vector.broadcast %cst_13 : bf16 to vector<2x1x18x128xbf16>
    %cst_14 = arith.constant 0.000000e+00 : bf16
    %29 = vector.broadcast %cst_14 : bf16 to vector<2x16x1x128xbf16>
    %c0_15 = arith.constant 0 : index
    %c0_16 = arith.constant 0 : index
    %c0_17 = arith.constant 0 : index
    %c0_18 = arith.constant 0 : index
    %30 = vector.load %arg8[%c0_15, %c0_16, %c0_17, %c0_18] : memref<2x18x18x128xbf16, #tpu.memory_space<vmem>>, vector<2x1x18x128xbf16>
    tpu.vector_store %arg8[%c0_15, %c0_16, %c0_17, %c0_18], %28 {strides = array<i32>} : memref<2x18x18x128xbf16, #tpu.memory_space<vmem>>, vector<2x1x18x128xbf16>,
    %c0_19 = arith.constant 0 : index
    %c17 = arith.constant 17 : index
    %c0_20 = arith.constant 0 : index
    %c0_21 = arith.constant 0 : index
    %31 = vector.load %arg8[%c0_19, %c17, %c0_20, %c0_21] : memref<2x18x18x128xbf16, #tpu.memory_space<vmem>>, vector<2x1x18x128xbf16>
    tpu.vector_store %arg8[%c0_19, %c17, %c0_20, %c0_21], %28 {strides = array<i32>} : memref<2x18x18x128xbf16, #tpu.memory_space<vmem>>, vector<2x1x18x128xbf16>,
    %c0_22 = arith.constant 0 : index
    %c1 = arith.constant 1 : index
    %c0_23 = arith.constant 0 : index
    %c0_24 = arith.constant 0 : index
    %32 = vector.load %arg8[%c0_22, %c1, %c0_23, %c0_24] : memref<2x18x18x128xbf16, #tpu.memory_space<vmem>>, vector<2x16x1x128xbf16>
    tpu.vector_store %arg8[%c0_22, %c1, %c0_23, %c0_24], %29 {strides = array<i32>} : memref<2x18x18x128xbf16, #tpu.memory_space<vmem>>, vector<2x16x1x128xbf16>,
    %c0_25 = arith.constant 0 : index
    %c1_26 = arith.constant 1 : index
    %c17_27 = arith.constant 17 : index
    %c0_28 = arith.constant 0 : index
    %33 = vector.load %arg8[%c0_25, %c1_26, %c17_27, %c0_28] : memref<2x18x18x128xbf16, #tpu.memory_space<vmem>>, vector<2x16x1x128xbf16>
    tpu.vector_store %arg8[%c0_25, %c1_26, %c17_27, %c0_28], %29 {strides = array<i32>} : memref<2x18x18x128xbf16, #tpu.memory_space<vmem>>, vector<2x16x1x128xbf16>,
    %34 = arith.truncf %27 : vector<512x128xf32> to vector<512x128xbf16>
    %35 = vector.shape_cast %34 : vector<512x128xbf16> to vector<2x16x16x128xbf16>
    %c0_29 = arith.constant 0 : index
    %c1_30 = arith.constant 1 : index
    %c1_31 = arith.constant 1 : index
    %c0_32 = arith.constant 0 : index
    %36 = vector.load %arg8[%c0_29, %c1_30, %c1_31, %c0_32] : memref<2x18x18x128xbf16, #tpu.memory_space<vmem>>, vector<2x16x16x128xbf16>
    tpu.vector_store %arg8[%c0_29, %c1_30, %c1_31, %c0_32], %35 {strides = array<i32>} : memref<2x18x18x128xbf16, #tpu.memory_space<vmem>>, vector<2x16x16x128xbf16>,
    %c0_33 = arith.constant 0 : index
    %c0_34 = arith.constant 0 : index
    %c0_35 = arith.constant 0 : index
    %c0_36 = arith.constant 0 : index
    %37 = vector.load %arg8[%c0_33, %c0_34, %c0_35, %c0_36] : memref<2x18x18x128xbf16, #tpu.memory_space<vmem>>, vector<2x16x16x128xbf16>
    %38 = vector.shape_cast %37 : vector<2x16x16x128xbf16> to vector<512x128xbf16>
    %c0_37 = arith.constant 0 : index
    %c0_38 = arith.constant 0 : index
    %39 = vector.load %arg4[%c0_37, %c0_38] : memref<1152x128xbf16, #tpu.memory_space<vmem>>, vector<128x128xbf16>
    %cst_39 = arith.constant dense<0.000000e+00> : vector<512x128xf32>
    %40 = tpu.matmul %38, %39, %cst_39 {dimension_numbers = #tpu.dot_dimension_numbers<[1], [0], [0], [1], [0, 0, 1, 1], [], []>} : vector<512x128xbf16>, vector<128x128xbf16>, vector<512x128xf32> -> vector<512x128xf32>
    %c0_40 = arith.constant 0 : index
    %c0_41 = arith.constant 0 : index
    %c1_42 = arith.constant 1 : index
    %c0_43 = arith.constant 0 : index
    %41 = vector.load %arg8[%c0_40, %c0_41, %c1_42, %c0_43] : memref<2x18x18x128xbf16, #tpu.memory_space<vmem>>, vector<2x16x16x128xbf16>
    %42 = vector.shape_cast %41 : vector<2x16x16x128xbf16> to vector<512x128xbf16>
    %c128 = arith.constant 128 : index
    %c0_44 = arith.constant 0 : index
    %43 = vector.load %arg4[%c128, %c0_44] : memref<1152x128xbf16, #tpu.memory_space<vmem>>, vector<128x128xbf16>
    %cst_45 = arith.constant dense<0.000000e+00> : vector<512x128xf32>
    %44 = tpu.matmul %42, %43, %cst_45 {dimension_numbers = #tpu.dot_dimension_numbers<[1], [0], [0], [1], [0, 0, 1, 1], [], []>} : vector<512x128xbf16>, vector<128x128xbf16>, vector<512x128xf32> -> vector<512x128xf32>
    %45 = arith.addf %40, %44 : vector<512x128xf32>
    %c0_46 = arith.constant 0 : index
    %c0_47 = arith.constant 0 : index
    %c2 = arith.constant 2 : index
    %c0_48 = arith.constant 0 : index
    %46 = vector.load %arg8[%c0_46, %c0_47, %c2, %c0_48] : memref<2x18x18x128xbf16, #tpu.memory_space<vmem>>, vector<2x16x16x128xbf16>
    %47 = vector.shape_cast %46 : vector<2x16x16x128xbf16> to vector<512x128xbf16>
    %c256 = arith.constant 256 : index
    %c0_49 = arith.constant 0 : index
    %48 = vector.load %arg4[%c256, %c0_49] : memref<1152x128xbf16, #tpu.memory_space<vmem>>, vector<128x128xbf16>
    %cst_50 = arith.constant dense<0.000000e+00> : vector<512x128xf32>
    %49 = tpu.matmul %47, %48, %cst_50 {dimension_numbers = #tpu.dot_dimension_numbers<[1], [0], [0], [1], [0, 0, 1, 1], [], []>} : vector<512x128xbf16>, vector<128x128xbf16>, vector<512x128xf32> -> vector<512x128xf32>
    %50 = arith.addf %45, %49 : vector<512x128xf32>
    %c0_51 = arith.constant 0 : index
    %c1_52 = arith.constant 1 : index
    %c0_53 = arith.constant 0 : index
    %c0_54 = arith.constant 0 : index
    %51 = vector.load %arg8[%c0_51, %c1_52, %c0_53, %c0_54] : memref<2x18x18x128xbf16, #tpu.memory_space<vmem>>, vector<2x16x16x128xbf16>
    %52 = vector.shape_cast %51 : vector<2x16x16x128xbf16> to vector<512x128xbf16>
    %c384 = arith.constant 384 : index
    %c0_55 = arith.constant 0 : index
    %53 = vector.load %arg4[%c384, %c0_55] : memref<1152x128xbf16, #tpu.memory_space<vmem>>, vector<128x128xbf16>
    %cst_56 = arith.constant dense<0.000000e+00> : vector<512x128xf32>
    %54 = tpu.matmul %52, %53, %cst_56 {dimension_numbers = #tpu.dot_dimension_numbers<[1], [0], [0], [1], [0, 0, 1, 1], [], []>} : vector<512x128xbf16>, vector<128x128xbf16>, vector<512x128xf32> -> vector<512x128xf32>
    %55 = arith.addf %50, %54 : vector<512x128xf32>
    %c0_57 = arith.constant 0 : index
    %c1_58 = arith.constant 1 : index
    %c1_59 = arith.constant 1 : index
    %c0_60 = arith.constant 0 : index
    %56 = vector.load %arg8[%c0_57, %c1_58, %c1_59, %c0_60] : memref<2x18x18x128xbf16, #tpu.memory_space<vmem>>, vector<2x16x16x128xbf16>
    %57 = vector.shape_cast %56 : vector<2x16x16x128xbf16> to vector<512x128xbf16>
    %c512 = arith.constant 512 : index
    %c0_61 = arith.constant 0 : index
    %58 = vector.load %arg4[%c512, %c0_61] : memref<1152x128xbf16, #tpu.memory_space<vmem>>, vector<128x128xbf16>
    %cst_62 = arith.constant dense<0.000000e+00> : vector<512x128xf32>
    %59 = tpu.matmul %57, %58, %cst_62 {dimension_numbers = #tpu.dot_dimension_numbers<[1], [0], [0], [1], [0, 0, 1, 1], [], []>} : vector<512x128xbf16>, vector<128x128xbf16>, vector<512x128xf32> -> vector<512x128xf32>
    %60 = arith.addf %55, %59 : vector<512x128xf32>
    %c0_63 = arith.constant 0 : index
    %c1_64 = arith.constant 1 : index
    %c2_65 = arith.constant 2 : index
    %c0_66 = arith.constant 0 : index
    %61 = vector.load %arg8[%c0_63, %c1_64, %c2_65, %c0_66] : memref<2x18x18x128xbf16, #tpu.memory_space<vmem>>, vector<2x16x16x128xbf16>
    %62 = vector.shape_cast %61 : vector<2x16x16x128xbf16> to vector<512x128xbf16>
    %c640 = arith.constant 640 : index
    %c0_67 = arith.constant 0 : index
    %63 = vector.load %arg4[%c640, %c0_67] : memref<1152x128xbf16, #tpu.memory_space<vmem>>, vector<128x128xbf16>
    %cst_68 = arith.constant dense<0.000000e+00> : vector<512x128xf32>
    %64 = tpu.matmul %62, %63, %cst_68 {dimension_numbers = #tpu.dot_dimension_numbers<[1], [0], [0], [1], [0, 0, 1, 1], [], []>} : vector<512x128xbf16>, vector<128x128xbf16>, vector<512x128xf32> -> vector<512x128xf32>
    %65 = arith.addf %60, %64 : vector<512x128xf32>
    %c0_69 = arith.constant 0 : index
    %c2_70 = arith.constant 2 : index
    %c0_71 = arith.constant 0 : index
    %c0_72 = arith.constant 0 : index
    %66 = vector.load %arg8[%c0_69, %c2_70, %c0_71, %c0_72] : memref<2x18x18x128xbf16, #tpu.memory_space<vmem>>, vector<2x16x16x128xbf16>
    %67 = vector.shape_cast %66 : vector<2x16x16x128xbf16> to vector<512x128xbf16>
    %c768 = arith.constant 768 : index
    %c0_73 = arith.constant 0 : index
    %68 = vector.load %arg4[%c768, %c0_73] : memref<1152x128xbf16, #tpu.memory_space<vmem>>, vector<128x128xbf16>
    %cst_74 = arith.constant dense<0.000000e+00> : vector<512x128xf32>
    %69 = tpu.matmul %67, %68, %cst_74 {dimension_numbers = #tpu.dot_dimension_numbers<[1], [0], [0], [1], [0, 0, 1, 1], [], []>} : vector<512x128xbf16>, vector<128x128xbf16>, vector<512x128xf32> -> vector<512x128xf32>
    %70 = arith.addf %65, %69 : vector<512x128xf32>
    %c0_75 = arith.constant 0 : index
    %c2_76 = arith.constant 2 : index
    %c1_77 = arith.constant 1 : index
    %c0_78 = arith.constant 0 : index
    %71 = vector.load %arg8[%c0_75, %c2_76, %c1_77, %c0_78] : memref<2x18x18x128xbf16, #tpu.memory_space<vmem>>, vector<2x16x16x128xbf16>
    %72 = vector.shape_cast %71 : vector<2x16x16x128xbf16> to vector<512x128xbf16>
    %c896 = arith.constant 896 : index
    %c0_79 = arith.constant 0 : index
    %73 = vector.load %arg4[%c896, %c0_79] : memref<1152x128xbf16, #tpu.memory_space<vmem>>, vector<128x128xbf16>
    %cst_80 = arith.constant dense<0.000000e+00> : vector<512x128xf32>
    %74 = tpu.matmul %72, %73, %cst_80 {dimension_numbers = #tpu.dot_dimension_numbers<[1], [0], [0], [1], [0, 0, 1, 1], [], []>} : vector<512x128xbf16>, vector<128x128xbf16>, vector<512x128xf32> -> vector<512x128xf32>
    %75 = arith.addf %70, %74 : vector<512x128xf32>
    %c0_81 = arith.constant 0 : index
    %c2_82 = arith.constant 2 : index
    %c2_83 = arith.constant 2 : index
    %c0_84 = arith.constant 0 : index
    %76 = vector.load %arg8[%c0_81, %c2_82, %c2_83, %c0_84] : memref<2x18x18x128xbf16, #tpu.memory_space<vmem>>, vector<2x16x16x128xbf16>
    %77 = vector.shape_cast %76 : vector<2x16x16x128xbf16> to vector<512x128xbf16>
    %c1024 = arith.constant 1024 : index
    %c0_85 = arith.constant 0 : index
    %78 = vector.load %arg4[%c1024, %c0_85] : memref<1152x128xbf16, #tpu.memory_space<vmem>>, vector<128x128xbf16>
    %cst_86 = arith.constant dense<0.000000e+00> : vector<512x128xf32>
    %79 = tpu.matmul %77, %78, %cst_86 {dimension_numbers = #tpu.dot_dimension_numbers<[1], [0], [0], [1], [0, 0, 1, 1], [], []>} : vector<512x128xbf16>, vector<128x128xbf16>, vector<512x128xf32> -> vector<512x128xf32>
    %80 = arith.addf %75, %79 : vector<512x128xf32>
    %cst_87 = arith.constant dense<0.000000e+00> : vector<128xf32>
    %81 = vector.multi_reduction <add>, %80, %cst_87 [0] : vector<512x128xf32> to vector<128xf32>
    %82 = vector.shape_cast %81 : vector<128xf32> to vector<1x128xf32>
    %cst_88 = arith.constant 0.001953125 : f32
    %83 = vector.broadcast %cst_88 : f32 to vector<1x128xf32>
    %84 = arith.mulf %82, %83 : vector<1x128xf32>
    %85 = arith.mulf %80, %80 : vector<512x128xf32>
    %cst_89 = arith.constant dense<0.000000e+00> : vector<128xf32>
    %86 = vector.multi_reduction <add>, %85, %cst_89 [0] : vector<512x128xf32> to vector<128xf32>
    %87 = vector.shape_cast %86 : vector<128xf32> to vector<1x128xf32>
    %cst_90 = arith.constant 0.001953125 : f32
    %88 = vector.broadcast %cst_90 : f32 to vector<1x128xf32>
    %89 = arith.mulf %87, %88 : vector<1x128xf32>
    %90 = arith.mulf %84, %84 : vector<1x128xf32>
    %91 = arith.subf %89, %90 : vector<1x128xf32>
    %c0_91 = arith.constant 0 : index
    %c0_92 = arith.constant 0 : index
    %92 = vector.load %arg5[%c0_91, %c0_92] : memref<1x128xf32, #tpu.memory_space<vmem>>, vector<1x128xf32>
    %cst_93 = arith.constant 9.99999974E-6 : f32
    %93 = vector.broadcast %cst_93 : f32 to vector<1x128xf32>
    %94 = arith.addf %91, %93 : vector<1x128xf32>
    %95 = math.rsqrt %94 : vector<1x128xf32>
    %96 = arith.mulf %92, %95 : vector<1x128xf32>
    %c0_94 = arith.constant 0 : index
    %c0_95 = arith.constant 0 : index
    %97 = vector.load %arg6[%c0_94, %c0_95] : memref<1x128xf32, #tpu.memory_space<vmem>>, vector<1x128xf32>
    %98 = arith.mulf %84, %96 : vector<1x128xf32>
    %99 = arith.subf %97, %98 : vector<1x128xf32>
    %100 = vector.broadcast %96 : vector<1x128xf32> to vector<512x128xf32>
    %101 = arith.mulf %80, %100 : vector<512x128xf32>
    %102 = vector.broadcast %99 : vector<1x128xf32> to vector<512x128xf32>
    %103 = arith.addf %101, %102 : vector<512x128xf32>
    %cst_96 = arith.constant 0.000000e+00 : f32
    %104 = vector.broadcast %cst_96 : f32 to vector<512x128xf32>
    %105 = arith.maximumf %103, %104 : vector<512x128xf32>
    %106 = vector.shape_cast %105 : vector<512x128xf32> to vector<2x16x16x128xf32>
    %c0_97 = arith.constant 0 : index
    %c0_98 = arith.constant 0 : index
    %c0_99 = arith.constant 0 : index
    %c0_100 = arith.constant 0 : index
    %107 = vector.load %arg7[%c0_97, %c0_98, %c0_99, %c0_100] : memref<2x16x16x128xf32, #tpu.memory_space<vmem>>, vector<2x16x16x128xf32>
    tpu.vector_store %arg7[%c0_97, %c0_98, %c0_99, %c0_100], %106 {strides = array<i32>} : memref<2x16x16x128xf32, #tpu.memory_space<vmem>>, vector<2x16x16x128xf32>,
    return
  }
}

</mosaic_0001>

<bundles_post_ra>
// kernel: conv_block.1
= control target key start
LH: loop header
LB: loop body
LE: loop exit
PB: predicated region body
PF: predicated region fallthrough
CT: control target
= control target key end

     0   :  { %vm1067_vm0 = vcmask 1040384   ;;  %vm1068_vm1 = vsmask.f32 256  ;;  %v1073_v27 = vld [vmem:[#allocation2 + $0x18] sm:$0x1]  ;;  %v21413_v28 = vmov 0  ;;  %s21255_s1 = inlined_call_operand.vmem [shape: bf16[128,128], index: 1, kind: input, shape index: {}]   ;;  %s21256_s0 = inlined_call_operand.vmem [shape: bf16[512,128], index: 0, kind: input, shape index: {}]   ;;  %s21257_s4 = inlined_call_operand.vmem [shape: bf16[1152,128], index: 4, kind: input, shape index: {}]   ;;  %s21258_s2 = inlined_call_operand.vmem [shape: f32[1,128], index: 2, kind: input, shape index: {}]   ;;  %s21259_s3 = inlined_call_operand.vmem [shape: f32[1,128], index: 3, kind: input, shape index: {}]   ;;  %s21260_s5 = inlined_call_operand.vmem [shape: f32[1,128], index: 5, kind: input, shape index: {}]   ;;  %s21261_s6 = inlined_call_operand.vmem [shape: f32[1,128], index: 6, kind: input, shape index: {}]   ;;  %s21262_s7 = inlined_call_operand.vmem [shape: f32[2,16,16,128], index: 7, kind: output, shape index: {}]  }
   0x1   :  { %v13354_v0 = vld [vmem:[%s21255_s1 + $0x38] sm:$0xff]   ;;  %v13355_v1 = vld [vmem:[%s21255_s1 + $0x30] sm:$0xff]   ;;  %v13356_v2 = vld [vmem:[%s21255_s1 + $0x28] sm:$0xff]   ;;  %vm1166_vm3 = vsmask.f32 7938  ;;  %vm2098_vm7 = vcmask 1043456  }
   0x2   :  { %12553 = vmatprep.subr.bf16.mxu0 %v13354_v0  ;;  %v13357_v3 = vld [vmem:[%s21255_s1 + $0x20] sm:$0xff]   ;;  %v13358_v5 = vld [vmem:[%s21255_s1 + $0x18] sm:$0xff]   ;;  %v13359_v6 = vld [vmem:[%s21255_s1 + $0x10] sm:$0xff]   ;;  %vm1456_vm5 = vsmask.f32 4368  ;;  %vm4313_vm12 = vcmask 1042432  }
   0x3   :  { %12554 = vmatpush3.bf16.msra.mxu0 %v13354_v0  ;;  %v13362_v4 = vld [vmem:[%s21256_s0] sm:$0xff]   ;;  %v13360_v7 = vld [vmem:[%s21255_s1 + $0x8] sm:$0xff]   ;;  %v13364_v10 = vld [vmem:[%s21256_s0 + $0x10] sm:$0xff]   ;;  %vm2436_vm9 = vsmask.f32 3328  ;;  %vm4314_vm13 = vcmask 1046532  }
   0x4   :  { %12555 = vmatprep.subr.bf16.mxu0 %v13355_v1  ;;  %12569 = vmatprep.mubr.bf16.mxu0 %v13362_v4  ;;  %v13361_v8 = vld [vmem:[%s21255_s1] sm:$0xff]   ;;  %v13363_v9 = vld [vmem:[%s21256_s0 + $0x8] sm:$0xff]   ;;  %v13365_v11 = vld [vmem:[%s21256_s0 + $0x18] sm:$0xff]   ;;  %vm2437_vm10 = vsmask.f32 7440 }
   0x5   :  { %v13366_v12 = vld [vmem:[%s21256_s0 + $0x20] sm:$0xff]   ;;  %v13367_v13 = vld [vmem:[%s21256_s0 + $0x28] sm:$0xff]   ;;  %v13368_v14 = vld [vmem:[%s21256_s0 + $0x30] sm:$0xff]  }
   0x6   :  { %v13369_v15 = vld [vmem:[%s21256_s0 + $0x38] sm:$0xff]   ;;  %v13370_v16 = vld [vmem:[%s21256_s0 + $0x40] sm:$0xff]   ;;  %v13371_v17 = vld [vmem:[%s21256_s0 + $0x48] sm:$0xff]  }
   0x7   :  { %12556 = vmatpush3.bf16.msra.mxu0 %v13355_v1  ;;  %v13372_v18 = vld [vmem:[%s21256_s0 + $0x50] sm:$0xff]   ;;  %v13373_v19 = vld [vmem:[%s21256_s0 + $0x58] sm:$0xff]   ;;  %v13374_v20 = vld [vmem:[%s21256_s0 + $0x60] sm:$0xff]  }
   0x8   :  { %12557 = vmatprep.subr.bf16.mxu0 %v13356_v2  ;;  %v13375_v21 = vld [vmem:[%s21256_s0 + $0x68] sm:$0xff]   ;;  %v13376_v22 = vld [vmem:[%s21256_s0 + $0x70] sm:$0xff]   ;;  %v13377_v23 = vld [vmem:[%s21256_s0 + $0x78] sm:$0xff]  }
   0x9   :  { %v13378_v24 = vld [vmem:[%s21256_s0 + $0x80] sm:$0xff]   ;;  %v13379_v25 = vld [vmem:[%s21256_s0 + $0x88] sm:$0xff]   ;;  %v13380_v26 = vld [vmem:[%s21256_s0 + $0x90] sm:$0xff]  }
   0xa   :  { %vm13803_vm2 = vmand %vm1067_vm0, %vm1068_vm1  ;;  %v1070_v30 = vld [vmem:[#allocation2 + $0xc] sm:$0x1]  ;;  %v13381_v31 = vld [vmem:[%s21256_s0 + $0x98] sm:$0xff]  }
   0xb   :  { %12558 = vmatpush3.bf16.msra.mxu0 %v13356_v2  ;;  %v21414_v28 = vsel %vm13803_vm2, 4294967295, %v21413_v28  ;;  %v1074_v29 = vsel %vm13803_vm2, 0, %v1073_v27  ;;  %v1071_v32 = vsel %vm13803_vm2, 0, %v1070_v30  ;;  %v13382_v33 = vld [vmem:[%s21256_s0 + $0xa0] sm:$0xff]   ;;  %vm13818_vm4 = vmand %vm1067_vm0, %vm1166_vm3  ;;  %v1168_v37 = vld [vmem:[#allocation2 + $0x14] sm:$0x1] }
   0xc   :  { %12559 = vmatprep.subr.bf16.mxu0 %v13357_v3  ;;  %21415 = vst [vmem:[#allocation3_spill] sm:$0xff] %v21414_v28  ;;  %1075 = vst [vmem:[#allocation2 + $0x18] sm:$0x1] %v1074_v29  ;;  %v1171_v35 = vld [vmem:[#allocation2 + $0x20] sm:$0x1]  ;;  %v1169_v39 = vsel %vm13818_vm4, 0, %v1168_v37 }
   0xd   :  { %1072 = vst [vmem:[#allocation2 + $0xc] sm:$0x1] %v1071_v32  ;;  %v1172_v36 = vsel %vm13818_vm4, 0, %v1171_v35  ;;  %v1079_v38 = vld [vmem:[#allocation2 + $0x30] sm:$0x1]  ;;  %v13383_v41 = vld [vmem:[%s21256_s0 + $0xa8] sm:$0xff]   ;;  %vm14468_vm6 = vmor %vm1068_vm1, %vm1456_vm5 }
   0xe   :  { %1173 = vst [vmem:[#allocation2 + $0x20] sm:$0x1] %v1172_v36  ;;  %v1080_v40 = vsel %vm13803_vm2, 0, %v1079_v38  ;;  %1170 = vst [vmem:[#allocation2 + $0x14] sm:$0x1] %v1169_v39  ;;  %v13384_v42 = vld [vmem:[%s21256_s0 + $0xb0] sm:$0xff]  }
   0xf   :  { %12560 = vmatpush3.bf16.msra.mxu0 %v13357_v3  ;;  %1081 = vst [vmem:[#allocation2 + $0x30] sm:$0x1] %v1080_v40  ;;  %v1076_v43 = vld [vmem:[#allocation2 + $0x24] sm:$0x1]  ;;  %v1177_v44 = vld [vmem:[#allocation2 + $0x38] sm:$0x1]  ;;  %vm14919_vm8 = vmand %vm2098_vm7, %vm1166_vm3 }
  0x10   :  { %12561 = vmatprep.subr.bf16.mxu0 %v13358_v5  ;;  %v1077_v45 = vsel %vm13803_vm2, 0, %v1076_v43  ;;  %v1178_v46 = vsel %vm13818_vm4, 0, %v1177_v44  ;;  %v1174_v47 = vld [vmem:[#allocation2 + $0x2c] sm:$0x1]  ;;  %v1085_v48 = vld [vmem:[#allocation2 + $0x48] sm:$0x1]  ;;  %vm16257_vm11 = vmor %vm2436_vm9, %vm2437_vm10 }
  0x11   :  { %1078 = vst [vmem:[#allocation2 + $0x24] sm:$0x1] %v1077_v45  ;;  %1179 = vst [vmem:[#allocation2 + $0x38] sm:$0x1] %v1178_v46  ;;  %v1175_v49 = vsel %vm13818_vm4, 0, %v1174_v47  ;;  %v1086_v50 = vsel %vm13803_vm2, 0, %v1085_v48 }
  0x12   :  { %1176 = vst [vmem:[#allocation2 + $0x2c] sm:$0x1] %v1175_v49  ;;  %1087 = vst [vmem:[#allocation2 + $0x48] sm:$0x1] %v1086_v50  ;;  %v13385_v51 = vld [vmem:[%s21256_s0 + $0xb8] sm:$0xff]   ;;  %v13386_v52 = vld [vmem:[%s21256_s0 + $0xc0] sm:$0xff]  }
  0x13   :  { %12562 = vmatpush3.bf16.msra.mxu0 %v13358_v5  ;;  %v1082_v53 = vld [vmem:[#allocation2 + $0x3c] sm:$0x1]  ;;  %v1183_v54 = vld [vmem:[#allocation2 + $0x50] sm:$0x1]  ;;  %v1180_v57 = vld [vmem:[#allocation2 + $0x44] sm:$0x1] }
  0x14   :  { %12563 = vmatprep.subr.bf16.mxu0 %v13359_v6  ;;  %v1083_v55 = vsel %vm13803_vm2, 0, %v1082_v53  ;;  %v1184_v56 = vsel %vm13818_vm4, 0, %v1183_v54  ;;  %v1091_v58 = vld [vmem:[#allocation2 + $0x60] sm:$0x1]  ;;  %v1181_v59 = vsel %vm13818_vm4, 0, %v1180_v57  ;;  %v13387_v61 = vld [vmem:[%s21256_s0 + $0xc8] sm:$0xff]   ;;  %vm16746_vm14 = vmor %vm4313_vm12, %vm4314_vm13 }
  0x15   :  { %1084 = vst [vmem:[#allocation2 + $0x3c] sm:$0x1] %v1083_v55  ;;  %1185 = vst [vmem:[#allocation2 + $0x50] sm:$0x1] %v1184_v56  ;;  %v1092_v60 = vsel %vm13803_vm2, 0, %v1091_v58  ;;  %v13388_v62 = vld [vmem:[%s21256_s0 + $0xd0] sm:$0xff]  }
  0x16   :  { %1182 = vst [vmem:[#allocation2 + $0x44] sm:$0x1] %v1181_v59  ;;  %1093 = vst [vmem:[#allocation2 + $0x60] sm:$0x1] %v1092_v60  ;;  %v1088_v63 = vld [vmem:[#allocation2 + $0x54] sm:$0x1] }
  0x17   :  { %12564 = vmatpush3.bf16.msra.mxu0 %v13359_v6  ;;  %v1189_v0 = vld [vmem:[#allocation2 + $0x68] sm:$0x1]  ;;  %v1089_v1 = vsel %vm13803_vm2, 0, %v1088_v63  ;;  %v1186_v3 = vld [vmem:[#allocation2 + $0x5c] sm:$0x1] }
  0x18   :  { %12565 = vmatprep.subr.bf16.mxu0 %v13360_v7  ;;  %v1190_v2 = vsel %vm13818_vm4, 0, %v1189_v0  ;;  %1090 = vst [vmem:[#allocation2 + $0x54] sm:$0x1] %v1089_v1  ;;  %v1097_v4 = vld [vmem:[#allocation2 + $0x78] sm:$0x1]  ;;  %v1187_v5 = vsel %vm13818_vm4, 0, %v1186_v3 }
  0x19   :  { %1191 = vst [vmem:[#allocation2 + $0x68] sm:$0x1] %v1190_v2  ;;  %v1098_v6 = vsel %vm13803_vm2, 0, %v1097_v4  ;;  %1188 = vst [vmem:[#allocation2 + $0x5c] sm:$0x1] %v1187_v5  ;;  %v13393_v27 = vld [vmem:[%s21256_s0 + $0xf8] sm:$0xff]  }
  0x1a   :  { %1099 = vst [vmem:[#allocation2 + $0x78] sm:$0x1] %v1098_v6  ;;  %v1106_v29 = vld [vmem:[#allocation2 + $0x9c] sm:$0x1]  ;;  %v1207_v30 = vld [vmem:[#allocation2 + $0xb0] sm:$0x1] }
  0x1b   :  { %12566 = vmatpush3.bf16.msra.mxu0 %v13360_v7  ;;  %v13389_v7 = vld [vmem:[%s21256_s0 + $0xd8] sm:$0xff]   ;;  %v1208_v32 = vsel %vm13818_vm4, 0, %v1207_v30  ;;  %v1115_v35 = vld [vmem:[#allocation2 + $0xc0] sm:$0x1]  ;;  %v1112_v38 = vld [vmem:[#allocation2 + $0xb4] sm:$0x1] }
  0x1c   :  { %12567 = vmatprep.subr.bf16.mxu0 %v13361_v8  ;;  %1209 = vst [vmem:[#allocation2 + $0xb0] sm:$0x1] %v1208_v32  ;;  %v1116_v37 = vsel %vm13803_vm2, 0, %v1115_v35  ;;  %v1213_v39 = vld [vmem:[#allocation2 + $0xc8] sm:$0x1]  ;;  %v1113_v40 = vsel %vm13803_vm2, 0, %v1112_v38 }
  0x1d   :  { %1117 = vst [vmem:[#allocation2 + $0xc0] sm:$0x1] %v1116_v37  ;;  %1114 = vst [vmem:[#allocation2 + $0xb4] sm:$0x1] %v1113_v40  ;;  %v1121_v43 = vld [vmem:[#allocation2 + $0xf0] sm:$0x1] }
  0x1e   :  { %v1122_v45 = vsel %vm13803_vm2, 0, %v1121_v43  ;;  %v1118_v46 = vld [vmem:[#allocation2 + $0xe4] sm:$0x1]  ;;  %v1219_v47 = vld [vmem:[#allocation2 + $0xf8] sm:$0x1] }
  0x1f   :  { %12568 = vmatpush3.bf16.msra.mxu0 %v13361_v8  ;;  %v13390_v8 = vld [vmem:[%s21256_s0 + $0xe0] sm:$0xff]   ;;  %1123 = vst [vmem:[#allocation2 + $0xf0] sm:$0x1] %v1122_v45  ;;  %v1119_v48 = vsel %vm13803_vm2, 0, %v1118_v46  ;;  %v1220_v49 = vsel %vm13818_vm4, 0, %v1219_v47 }
  0x20   :  { %1120 = vst [vmem:[#allocation2 + $0xe4] sm:$0x1] %v1119_v48  ;;  %1221 = vst [vmem:[#allocation2 + $0xf8] sm:$0x1] %v1220_v49  ;;  %v1216_v50 = vld [vmem:[#allocation2 + $0xec] sm:$0x1] }
  0x21   :  { %v1124_v54 = vld [vmem:[#allocation2 + $0xfc] sm:$0x1]  ;;  %v1225_v55 = vld [vmem:[#allocation2 + $0x110] sm:$0x1]  ;;  %v1222_v58 = vld [vmem:[#allocation2 + $0x104] sm:$0x1] }
  0x22   :  { %12570 = vmatmul.mubr.bf16.vlgmr.msra.gmra.mxu0 %v13363_v9  ;;  %v1094_v9 = vld [vmem:[#allocation2 + $0x6c] sm:$0x1]  ;;  %v1125_v56 = vsel %vm13803_vm2, 0, %v1124_v54  ;;  %v1226_v57 = vsel %vm13818_vm4, 0, %v1225_v55  ;;  %v1133_v59 = vld [vmem:[#allocation2 + $0x120] sm:$0x1] }
  0x23   :  { %12573 = vmatprep.mubr.bf16.mxu0 %v13364_v10  ;;  %v1195_v10 = vld [vmem:[#allocation2 + $0x80] sm:$0x1]  ;;  %1126 = vst [vmem:[#allocation2 + $0xfc] sm:$0x1] %v1125_v56  ;;  %1227 = vst [vmem:[#allocation2 + $0x110] sm:$0x1] %v1226_v57 }
  0x24   :  { %v1223_v60 = vsel %vm13818_vm4, 0, %v1222_v58  ;;  %v1231_v63 = vld [vmem:[#allocation2 + $0x128] sm:$0x1]  ;;  %v1228_v2 = vld [vmem:[#allocation2 + $0x11c] sm:$0x1] }
  0x25   :  { %1224 = vst [vmem:[#allocation2 + $0x104] sm:$0x1] %v1223_v60  ;;  %v1232_v1 = vsel %vm13818_vm4, 0, %v1231_v63  ;;  %v1139_v3 = vld [vmem:[#allocation2 + $0x138] sm:$0x1]  ;;  %v1229_v4 = vsel %vm13818_vm4, 0, %v1228_v2 }
  0x26   :  { %1233 = vst [vmem:[#allocation2 + $0x128] sm:$0x1] %v1232_v1  ;;  %v1140_v5 = vsel %vm13803_vm2, 0, %v1139_v3  ;;  %1230 = vst [vmem:[#allocation2 + $0x11c] sm:$0x1] %v1229_v4 }
  0x27   :  { %1141 = vst [vmem:[#allocation2 + $0x138] sm:$0x1] %v1140_v5  ;;  %v1136_v6 = vld [vmem:[#allocation2 + $0x12c] sm:$0x1]  ;;  %v1255_v32 = vld [vmem:[#allocation2 + $0x188] sm:$0x1] }
  0x28   :  { %v1256_v35 = vsel %vm13818_vm4, 0, %v1255_v32  ;;  %v1163_v37 = vld [vmem:[#allocation2 + $0x198] sm:$0x1]  ;;  %v1160_v40 = vld [vmem:[#allocation2 + $0x18c] sm:$0x1] }
  0x29   :  { %1257 = vst [vmem:[#allocation2 + $0x188] sm:$0x1] %v1256_v35  ;;  %v1161_v43 = vsel %vm13803_vm2, 0, %v1160_v40 }
  0x2a   :  { %12574 = vmatmul.mubr.bf16.gmra.mxu0 %v13365_v11  ;;  %v1095_v11 = vsel %vm13803_vm2, 0, %v1094_v9  ;;  %1162 = vst [vmem:[#allocation2 + $0x18c] sm:$0x1] %v1161_v43 }
  0x2b   :  { %12577 = vmatprep.mubr.bf16.mxu0 %v13366_v12  ;;  %v1196_v12 = vsel %vm13818_vm4, 0, %v1195_v10  ;;  %1096 = vst [vmem:[#allocation2 + $0x6c] sm:$0x1] %v1095_v11  ;;  %v1234_v10 = vld [vmem:[#allocation2 + $0x134] sm:$0x1] }
  0x2c   :  { %1197 = vst [vmem:[#allocation2 + $0x80] sm:$0x1] %v1196_v12  ;;  %v1145_v11 = vld [vmem:[#allocation2 + $0x150] sm:$0x1]  ;;  %v1235_v12 = vsel %vm13818_vm4, 0, %v1234_v10 }
  0x2d   :  { %1236 = vst [vmem:[#allocation2 + $0x134] sm:$0x1] %v1235_v12 }
  0x32   :  { %12578 = vmatmul.mubr.bf16.gmra.mxu0 %v13367_v13  ;;  %v1192_v13 = vld [vmem:[#allocation2 + $0x74] sm:$0x1] }
  0x33   :  { %12581 = vmatprep.mubr.bf16.mxu0 %v13368_v14  ;;  %v1103_v14 = vld [vmem:[#allocation2 + $0x90] sm:$0x1] }
  0x3a   :  { %12582 = vmatmul.mubr.bf16.gmra.mxu0 %v13369_v15  ;;  %v1193_v15 = vsel %vm13818_vm4, 0, %v1192_v13  ;;  %v1146_v13 = vsel %vm13803_vm2, 0, %v1145_v11 }
  0x3b   :  { %12585 = vmatprep.mubr.bf16.mxu0 %v13370_v16  ;;  %v1104_v16 = vsel %vm13803_vm2, 0, %v1103_v14  ;;  %1194 = vst [vmem:[#allocation2 + $0x74] sm:$0x1] %v1193_v15  ;;  %1147 = vst [vmem:[#allocation2 + $0x150] sm:$0x1] %v1146_v13 }
  0x3c   :  { %1105 = vst [vmem:[#allocation2 + $0x90] sm:$0x1] %v1104_v16  ;;  %v1142_v14 = vld [vmem:[#allocation2 + $0x144] sm:$0x1]  ;;  %v1243_v15 = vld [vmem:[#allocation2 + $0x158] sm:$0x1] }
  0x3d   :  { %v1143_v16 = vsel %vm13803_vm2, 0, %v1142_v14 }
  0x3e   :  { %1144 = vst [vmem:[#allocation2 + $0x144] sm:$0x1] %v1143_v16 }
  0x42   :  { %12586 = vmatmul.mubr.bf16.gmra.mxu0 %v13371_v17  ;;  %v13391_v17 = vld [vmem:[%s21256_s0 + $0xe8] sm:$0xff]  }
  0x43   :  { %12589 = vmatprep.mubr.bf16.mxu0 %v13372_v18  ;;  %v13392_v18 = vld [vmem:[%s21256_s0 + $0xf0] sm:$0xff]  }
  0x4a   :  { %12590 = vmatmul.mubr.bf16.gmra.mxu0 %v13373_v19  ;;  %v1100_v19 = vld [vmem:[#allocation2 + $0x84] sm:$0x1] }
  0x4b   :  { %12593 = vmatprep.mubr.bf16.mxu0 %v13374_v20  ;;  %v1201_v20 = vld [vmem:[#allocation2 + $0x98] sm:$0x1] }
  0x52   :  { %12594 = vmatmul.mubr.bf16.gmra.mxu0 %v13375_v21  ;;  %v1101_v21 = vsel %vm13803_vm2, 0, %v1100_v19  ;;  %v1151_v19 = vld [vmem:[#allocation2 + $0x168] sm:$0x1] }
  0x53   :  { %12597 = vmatprep.mubr.bf16.mxu0 %v13376_v22  ;;  %v1202_v22 = vsel %vm13818_vm4, 0, %v1201_v20  ;;  %1102 = vst [vmem:[#allocation2 + $0x84] sm:$0x1] %v1101_v21  ;;  %v1152_v21 = vsel %vm13803_vm2, 0, %v1151_v19 }
  0x54   :  { %1203 = vst [vmem:[#allocation2 + $0x98] sm:$0x1] %v1202_v22  ;;  %1153 = vst [vmem:[#allocation2 + $0x168] sm:$0x1] %v1152_v21  ;;  %v1148_v22 = vld [vmem:[#allocation2 + $0x15c] sm:$0x1] }
  0x5a   :  { %12598 = vmatmul.mubr.bf16.gmra.mxu0 %v13377_v23  ;;  %v1198_v23 = vld [vmem:[#allocation2 + $0x8c] sm:$0x1] }
  0x5b   :  { %12601 = vmatprep.mubr.bf16.mxu0 %v13378_v24  ;;  %v1109_v24 = vld [vmem:[#allocation2 + $0xa8] sm:$0x1] }
  0x62   :  { %12602 = vmatmul.mubr.bf16.gmra.mxu0 %v13379_v25  ;;  %v1199_v25 = vsel %vm13818_vm4, 0, %v1198_v23  ;;  %v1249_v23 = vld [vmem:[#allocation2 + $0x170] sm:$0x1] }
  0x63   :  { %12605 = vmatprep.mubr.bf16.mxu0 %v13380_v26  ;;  %v1110_v26 = vsel %vm13803_vm2, 0, %v1109_v24  ;;  %1200 = vst [vmem:[#allocation2 + $0x8c] sm:$0x1] %v1199_v25  ;;  %v1149_v24 = vsel %vm13803_vm2, 0, %v1148_v22  ;;  %v1250_v25 = vsel %vm13818_vm4, 0, %v1249_v23 }
  0x64   :  { %1111 = vst [vmem:[#allocation2 + $0xa8] sm:$0x1] %v1110_v26  ;;  %1150 = vst [vmem:[#allocation2 + $0x15c] sm:$0x1] %v1149_v24  ;;  %v1246_v26 = vld [vmem:[#allocation2 + $0x164] sm:$0x1] }
  0x65   :  { %1251 = vst [vmem:[#allocation2 + $0x170] sm:$0x1] %v1250_v25 }
  0x6a   :  { %12606 = vmatmul.mubr.bf16.gmra.mxu0 %v13381_v31  ;;  %v1107_v31 = vsel %vm13803_vm2, 0, %v1106_v29  ;;  %v1247_v29 = vsel %vm13818_vm4, 0, %v1246_v26 }
  0x6b   :  { %12609 = vmatprep.mubr.bf16.mxu0 %v13382_v33  ;;  %1108 = vst [vmem:[#allocation2 + $0x9c] sm:$0x1] %v1107_v31  ;;  %v1204_v33 = vld [vmem:[#allocation2 + $0xa4] sm:$0x1]  ;;  %1248 = vst [vmem:[#allocation2 + $0x164] sm:$0x1] %v1247_v29 }
  0x6c   :  { %v1205_v36 = vsel %vm13818_vm4, 0, %v1204_v33  ;;  %v1154_v31 = vld [vmem:[#allocation2 + $0x174] sm:$0x1] }
  0x6d   :  { %1206 = vst [vmem:[#allocation2 + $0xa4] sm:$0x1] %v1205_v36  ;;  %v1155_v33 = vsel %vm13803_vm2, 0, %v1154_v31  ;;  %v1252_v36 = vld [vmem:[#allocation2 + $0x17c] sm:$0x1] }
  0x6e   :  { %1156 = vst [vmem:[#allocation2 + $0x174] sm:$0x1] %v1155_v33  ;;  %v1253_v38 = vsel %vm13818_vm4, 0, %v1252_v36 }
  0x6f   :  { %1254 = vst [vmem:[#allocation2 + $0x17c] sm:$0x1] %v1253_v38 }
  0x72   :  { %12610 = vmatmul.mubr.bf16.gmra.mxu0 %v13383_v41  ;;  %v1214_v41 = vsel %vm13818_vm4, 0, %v1213_v39  ;;  %v1164_v39 = vsel %vm13803_vm2, 0, %v1163_v37 }
  0x73   :  { %12613 = vmatprep.mubr.bf16.mxu0 %v13384_v42  ;;  %1215 = vst [vmem:[#allocation2 + $0xc8] sm:$0x1] %v1214_v41  ;;  %v1210_v42 = vld [vmem:[#allocation2 + $0xbc] sm:$0x1]  ;;  %1165 = vst [vmem:[#allocation2 + $0x198] sm:$0x1] %v1164_v39 }
  0x74   :  { %v1211_v44 = vsel %vm13818_vm4, 0, %v1210_v42  ;;  %v1261_v41 = vld [vmem:[#allocation2 + $0x1a0] sm:$0x1] }
  0x75   :  { %1212 = vst [vmem:[#allocation2 + $0xbc] sm:$0x1] %v1211_v44  ;;  %v1262_v44 = vsel %vm13818_vm4, 0, %v1261_v41 }
  0x76   :  { %1263 = vst [vmem:[#allocation2 + $0x1a0] sm:$0x1] %v1262_v44 }
  0x7a   :  { %12614 = vmatmul.mubr.bf16.gmra.mxu0 %v13385_v51  ;;  %v1127_v51 = vld [vmem:[#allocation2 + $0x108] sm:$0x1] }
  0x7b   :  { %12617 = vmatprep.mubr.bf16.mxu0 %v13386_v52  ;;  %v1217_v52 = vsel %vm13818_vm4, 0, %v1216_v50  ;;  %v1128_v53 = vsel %vm13803_vm2, 0, %v1127_v51 }
  0x7c   :  { %1218 = vst [vmem:[#allocation2 + $0xec] sm:$0x1] %v1217_v52  ;;  %1129 = vst [vmem:[#allocation2 + $0x108] sm:$0x1] %v1128_v53 }
  0x82   :  { %12618 = vmatmul.mubr.bf16.gmra.mxu0 %v13387_v61  ;;  %v1134_v61 = vsel %vm13803_vm2, 0, %v1133_v59 }
  0x83   :  { %12621 = vmatprep.mubr.bf16.mxu0 %v13388_v62  ;;  %1135 = vst [vmem:[#allocation2 + $0x120] sm:$0x1] %v1134_v61  ;;  %v1130_v62 = vld [vmem:[#allocation2 + $0x114] sm:$0x1] }
  0x84   :  { %v1131_v0 = vsel %vm13803_vm2, 0, %v1130_v62 }
  0x85   :  { %1132 = vst [vmem:[#allocation2 + $0x114] sm:$0x1] %v1131_v0 }
  0x8a   :  { %12622 = vmatmul.mubr.bf16.gmra.mxu0 %v13389_v7  ;;  %v1237_v7 = vld [vmem:[#allocation2 + $0x140] sm:$0x1] }
  0x8b   :  { %12625 = vmatprep.mubr.bf16.mxu0 %v13390_v8  ;;  %v1137_v8 = vsel %vm13803_vm2, 0, %v1136_v6  ;;  %v1238_v9 = vsel %vm13818_vm4, 0, %v1237_v7 }
  0x8c   :  { %1138 = vst [vmem:[#allocation2 + $0x12c] sm:$0x1] %v1137_v8  ;;  %1239 = vst [vmem:[#allocation2 + $0x140] sm:$0x1] %v1238_v9 }
  0x92   :  { %12626 = vmatmul.mubr.bf16.gmra.mxu0 %v13391_v17  ;;  %v1244_v17 = vsel %vm13818_vm4, 0, %v1243_v15 }
  0x93   :  { %12629 = vmatprep.mubr.bf16.mxu0 %v13392_v18  ;;  %1245 = vst [vmem:[#allocation2 + $0x158] sm:$0x1] %v1244_v17  ;;  %v1240_v18 = vld [vmem:[#allocation2 + $0x14c] sm:$0x1] }
  0x94   :  { %v1241_v20 = vsel %vm13818_vm4, 0, %v1240_v18 }
  0x95   :  { %1242 = vst [vmem:[#allocation2 + $0x14c] sm:$0x1] %v1241_v20 }
  0x9a   :  { %12630 = vmatmul.mubr.bf16.gmra.mxu0 %v13393_v27  ;;  %v1157_v27 = vld [vmem:[#allocation2 + $0x180] sm:$0x1] }
  0x9b   :  { %v1158_v30 = vsel %vm13803_vm2, 0, %v1157_v27 }
  0x9c   :  { %1159 = vst [vmem:[#allocation2 + $0x180] sm:$0x1] %v1158_v30 }
  0xe2   :  { %v13973_v42 = vpop.f32.mrf.mxu0 }
  0xe3   :  { %v708_v52 = vmul.f32 %v13973_v42, %v13973_v42 }
  0xe4   :  { %v13979_v45 = vpop.f32.mrf.mxu0 }
  0xe5   :  { %v706_v48 = vmul.f32 %v13979_v45, %v13979_v45 }
  0xe6   :  { %v13981_v46 = vpop.f32.mrf.mxu0 }
  0xe7   :  { %v709_v56 = vmul.f32 %v13981_v46, %v13981_v46 }
  0xe8   :  { %v13983_v47 = vpop.f32.mrf.mxu0 }
  0xe9   :  { %v636_v49 = vadd.f32 %v13983_v47, %v13979_v45  ;;  %v707_v50 = vmul.f32 %v13983_v47, %v13983_v47 }
  0xea   :  { %v13991_v51 = vpop.f32.mrf.mxu0 }
  0xeb   :  { %v770_v53 = vadd.f32 %v707_v50, %v706_v48  ;;  %v637_v54 = vadd.f32 %v13973_v42, %v636_v49  ;;  %v712_v4 = vmul.f32 %v13991_v51, %v13991_v51 }
  0xec   :  { %v13996_v55 = vpop.f32.mrf.mxu0 }
  0xed   :  { %v638_v57 = vadd.f32 %v13981_v46, %v637_v54  ;;  %v771_v58 = vadd.f32 %v770_v53, %v708_v52  ;;  %v710_v61 = vmul.f32 %v13996_v55, %v13996_v55 }
  0xee   :  { %v14001_v59 = vpop.f32.mrf.mxu0 }
  0xef   :  { %v639_v60 = vadd.f32 %v638_v57, %v13996_v55  ;;  %v772_v62 = vadd.f32 %v771_v58, %v709_v56  ;;  %v713_v8 = vmul.f32 %v14001_v59, %v14001_v59 }
  0xf0   :  { %v14006_v63 = vpop.f32.mrf.mxu0 }
  0xf1   :  { %v773_v0 = vadd.f32 %v772_v62, %v710_v61  ;;  %v640_v1 = vadd.f32 %v639_v60, %v14006_v63  ;;  %v711_v2 = vmul.f32 %v14006_v63, %v14006_v63 }
  0xf2   :  { %v14011_v3 = vpop.f32.mrf.mxu0 }
  0xf3   :  { %v774_v5 = vadd.f32 %v773_v0, %v711_v2  ;;  %v641_v6 = vadd.f32 %v13991_v51, %v640_v1  ;;  %v716_v20 = vmul.f32 %v14011_v3, %v14011_v3 }
  0xf4   :  { %v14016_v7 = vpop.f32.mrf.mxu0 }
  0xf5   :  { %v642_v9 = vadd.f32 %v14001_v59, %v641_v6  ;;  %v775_v10 = vadd.f32 %v774_v5, %v712_v4  ;;  %v714_v13 = vmul.f32 %v14016_v7, %v14016_v7 }
  0xf6   :  { %v14021_v11 = vpop.f32.mrf.mxu0 }
  0xf7   :  { %v643_v12 = vadd.f32 %v642_v9, %v14016_v7  ;;  %v776_v14 = vadd.f32 %v775_v10, %v713_v8  ;;  %v717_v24 = vmul.f32 %v14021_v11, %v14021_v11 }
  0xf8   :  { %v14026_v15 = vpop.f32.mrf.mxu0 }
  0xf9   :  { %v777_v16 = vadd.f32 %v776_v14, %v714_v13  ;;  %v644_v17 = vadd.f32 %v643_v12, %v14026_v15  ;;  %v715_v18 = vmul.f32 %v14026_v15, %v14026_v15 }
  0xfa   :  { %v14031_v19 = vpop.f32.mrf.mxu0 }
  0xfb   :  { %v778_v21 = vadd.f32 %v777_v16, %v715_v18  ;;  %v645_v22 = vadd.f32 %v14011_v3, %v644_v17  ;;  %v720_v38 = vmul.f32 %v14031_v19, %v14031_v19 }
  0xfc   :  { %v14036_v23 = vpop.f32.mrf.mxu0 }
  0xfd   :  { %v646_v25 = vadd.f32 %v14021_v11, %v645_v22  ;;  %v779_v26 = vadd.f32 %v778_v21, %v716_v20  ;;  %v718_v30 = vmul.f32 %v14036_v23, %v14036_v23  ;;  %v1258_v22 = vld [vmem:[#allocation2 + $0x194] sm:$0x1] }
  0xfe   :  { %v14041_v27 = vpop.f32.mrf.mxu0 }
  0xff   :  { %v647_v29 = vadd.f32 %v646_v25, %v14036_v23  ;;  %v780_v31 = vadd.f32 %v779_v26, %v717_v24  ;;  %v721_v43 = vmul.f32 %v14041_v27, %v14041_v27  ;;  %v1259_v25 = vsel %vm13818_vm4, 0, %v1258_v22 }
 0x100   :  { %v14046_v32 = vpop.f32.mrf.mxu0  ;;  %1260 = vst [vmem:[#allocation2 + $0x194] sm:$0x1] %v1259_v25 }
 0x101   :  { %v781_v33 = vadd.f32 %v780_v31, %v718_v30  ;;  %v648_v35 = vadd.f32 %v647_v29, %v14046_v32  ;;  %v719_v36 = vmul.f32 %v14046_v32, %v14046_v32 }
 0x102   :  { %v14051_v37 = vpop.f32.mrf.mxu0 }
 0x103   :  { %v782_v39 = vadd.f32 %v781_v33, %v719_v36  ;;  %v649_v40 = vadd.f32 %v14031_v19, %v648_v35  ;;  %v724_v61 = vmul.f32 %v14051_v37, %v14051_v37 }
 0x104   :  { %v14056_v41 = vpop.f32.mrf.mxu0 }
 0x105   :  { %v650_v44 = vadd.f32 %v14041_v27, %v649_v40  ;;  %v783_v48 = vadd.f32 %v782_v39, %v720_v38  ;;  %v722_v52 = vmul.f32 %v14056_v41, %v14056_v41 }
 0x106   :  { %v14061_v49 = vpop.f32.mrf.mxu0 }
 0x107   :  { %v651_v50 = vadd.f32 %v650_v44, %v14056_v41  ;;  %v784_v53 = vadd.f32 %v783_v48, %v721_v43  ;;  %v725_v2 = vmul.f32 %v14061_v49, %v14061_v49  ;;  %v13394_v44 = vld [vmem:[%s21257_s4 + $0x38] sm:$0xff]  }
 0x108   :  { %v14066_v54 = vpop.f32.mrf.mxu0  ;;  %12713 = vmatprep.subr.bf16.mxu0 %v13394_v44 }
 0x109   :  { %v785_v56 = vadd.f32 %v784_v53, %v722_v52  ;;  %v652_v57 = vadd.f32 %v651_v50, %v14066_v54  ;;  %v723_v58 = vmul.f32 %v14066_v54, %v14066_v54  ;;  %12714 = vmatpush3.bf16.msra.mxu0 %v13394_v44 }
 0x10a   :  { %v14071_v60 = vpop.f32.mrf.mxu0 }
 0x10b   :  { %v786_v62 = vadd.f32 %v785_v56, %v723_v58  ;;  %v653_v0 = vadd.f32 %v14051_v37, %v652_v57  ;;  %v728_v18 = vmul.f32 %v14071_v60, %v14071_v60 }
 0x10c   :  { %v14076_v1 = vpop.f32.mrf.mxu0 }
 0x10d   :  { %v654_v4 = vadd.f32 %v14061_v49, %v653_v0  ;;  %v787_v5 = vadd.f32 %v786_v62, %v724_v61  ;;  %v726_v9 = vmul.f32 %v14076_v1, %v14076_v1 }
 0x10e   :  { %v14081_v6 = vpop.f32.mrf.mxu0 }
 0x10f   :  { %v655_v8 = vadd.f32 %v654_v4, %v14076_v1  ;;  %v788_v10 = vadd.f32 %v787_v5, %v725_v2  ;;  %v729_v26 = vmul.f32 %v14081_v6, %v14081_v6 }
 0x110   :  { %v14086_v12 = vpop.f32.mrf.mxu0 }
 0x111   :  { %v789_v13 = vadd.f32 %v788_v10, %v726_v9  ;;  %v656_v14 = vadd.f32 %v655_v8, %v14086_v12  ;;  %v727_v16 = vmul.f32 %v14086_v12, %v14086_v12 }
 0x112   :  { %v14091_v17 = vpop.f32.mrf.mxu0 }
 0x113   :  { %v790_v20 = vadd.f32 %v789_v13, %v727_v16  ;;  %v657_v21 = vadd.f32 %v14071_v60, %v656_v14  ;;  %v732_v48 = vmul.f32 %v14091_v17, %v14091_v17 }
 0x114   :  { %v14096_v24 = vpop.f32.mrf.mxu0 }
 0x115   :  { %v658_v29 = vadd.f32 %v14081_v6, %v657_v21  ;;  %v791_v30 = vadd.f32 %v790_v20, %v728_v18  ;;  %v730_v35 = vmul.f32 %v14096_v24, %v14096_v24 }
 0x116   :  { %v14103_v31 = vpop.f32.mrf.mxu0 }
 0x117   :  { %v659_v33 = vadd.f32 %v658_v29, %v14096_v24  ;;  %v792_v36 = vadd.f32 %v791_v30, %v729_v26  ;;  %v733_v56 = vmul.f32 %v14103_v31, %v14103_v31 }
 0x118   :  { %v14108_v38 = vpop.f32.mrf.mxu0 }
 0x119   :  { %v793_v39 = vadd.f32 %v792_v36, %v730_v35  ;;  %v660_v34 = vadd.f32 %v659_v33, %v14108_v38  ;;  %v731_v40 = vmul.f32 %v14108_v38, %v14108_v38 }
 0x11a   :  { %v14113_v43 = vpop.f32.mrf.mxu0 }
 0x11b   :  { %v794_v50 = vadd.f32 %v793_v39, %v731_v40  ;;  %v661_v52 = vadd.f32 %v14091_v17, %v660_v34  ;;  %v736_v13 = vmul.f32 %v14113_v43, %v14113_v43 }
 0x11c   :  { %v14121_v53 = vpop.f32.mrf.mxu0 }
 0x11d   :  { %v662_v57 = vadd.f32 %v14103_v31, %v661_v52  ;;  %v795_v58 = vadd.f32 %v794_v50, %v732_v48  ;;  %v734_v0 = vmul.f32 %v14121_v53, %v14121_v53 }
 0x11e   :  { %v14126_v61 = vpop.f32.mrf.mxu0 }
 0x11f   :  { %v663_v62 = vadd.f32 %v662_v57, %v14121_v53  ;;  %v796_v2 = vadd.f32 %v795_v58, %v733_v56  ;;  %v737_v20 = vmul.f32 %v14126_v61, %v14126_v61 }
 0x120   :  { %v14131_v4 = vpop.f32.mrf.mxu0 }
 0x121   :  { %v797_v5 = vadd.f32 %v796_v2, %v734_v0  ;;  %v664_v8 = vadd.f32 %v663_v62, %v14131_v4  ;;  %v735_v9 = vmul.f32 %v14131_v4, %v14131_v4 }
 0x122   :  { %v14136_v10 = vpop.f32.mrf.mxu0 }
 0x123   :  { %v798_v14 = vadd.f32 %v797_v5, %v735_v9  ;;  %v665_v16 = vadd.f32 %v14113_v43, %v664_v8  ;;  %v740_v40 = vmul.f32 %v14136_v10, %v14136_v10 }
 0x124   :  { %v14141_v18 = vpop.f32.mrf.mxu0 }
 0x125   :  { %v666_v21 = vadd.f32 %v14126_v61, %v665_v16  ;;  %v799_v22 = vadd.f32 %v798_v14, %v736_v13  ;;  %v738_v29 = vmul.f32 %v14141_v18, %v14141_v18 }
 0x126   :  { %v14146_v25 = vpop.f32.mrf.mxu0 }
 0x127   :  { %v667_v26 = vadd.f32 %v666_v21, %v14141_v18  ;;  %v800_v30 = vadd.f32 %v799_v22, %v737_v20  ;;  %v741_v52 = vmul.f32 %v14146_v25, %v14146_v25 }
 0x128   :  { %v14151_v33 = vpop.f32.mrf.mxu0 }
 0x129   :  { %v801_v35 = vadd.f32 %v800_v30, %v738_v29  ;;  %v668_v36 = vadd.f32 %v667_v26, %v14151_v33  ;;  %v739_v39 = vmul.f32 %v14151_v33, %v14151_v33 }
 0x12a   :  { %v14156_v34 = vpop.f32.mrf.mxu0 }
 0x12b   :  { %21418 = vst [vmem:[#allocation4_spill] sm:$0xff] %v14156_v34  ;;  %v802_v44 = vadd.f32 %v801_v35, %v739_v39  ;;  %v669_v48 = vadd.f32 %v14136_v10, %v668_v36  ;;  %v744_v16 = vmul.f32 %v14156_v34, %v14156_v34 }
 0x12c   :  { %v14161_v50 = vpop.f32.mrf.mxu0 }
 0x12d   :  { %v670_v56 = vadd.f32 %v14146_v25, %v669_v48  ;;  %v803_v57 = vadd.f32 %v802_v44, %v740_v40  ;;  %v742_v0 = vmul.f32 %v14161_v50, %v14161_v50  ;;  %v13395_v44 = vld [vmem:[%s21257_s4 + $0x30] sm:$0xff]  }
 0x12e   :  { %v14166_v58 = vpop.f32.mrf.mxu0  ;;  %12715 = vmatprep.subr.bf16.mxu0 %v13395_v44 }
 0x12f   :  { %21419 = vst [vmem:[#allocation5_spill] sm:$0xff] %v14166_v58  ;;  %v671_v62 = vadd.f32 %v670_v56, %v14161_v50  ;;  %v804_v2 = vadd.f32 %v803_v57, %v741_v52  ;;  %v745_v26 = vmul.f32 %v14166_v58, %v14166_v58  ;;  %12716 = vmatpush3.bf16.msra.mxu0 %v13395_v44 }
 0x130   :  { %v14171_v5 = vpop.f32.mrf.mxu0 }
 0x131   :  { %21420 = vst [vmem:[#allocation6_spill] sm:$0xff] %v14171_v5  ;;  %v805_v8 = vadd.f32 %v804_v2, %v742_v0  ;;  %v672_v9 = vadd.f32 %v671_v62, %v14171_v5  ;;  %v743_v13 = vmul.f32 %v14171_v5, %v14171_v5 }
 0x132   :  { %v14176_v14 = vpop.f32.mrf.mxu0 }
 0x133   :  { %21421 = vst [vmem:[#allocation7_spill] sm:$0xff] %v14176_v14  ;;  %v806_v20 = vadd.f32 %v805_v8, %v743_v13  ;;  %v673_v21 = vadd.f32 %v14156_v34, %v672_v9  ;;  %v748_v0 = vmul.f32 %v14176_v14, %v14176_v14 }
 0x134   :  { %v14181_v22 = vpop.f32.mrf.mxu0 }
 0x135   :  { %21422 = vst [vmem:[#allocation8_spill] sm:$0xff] %v14181_v22  ;;  %v674_v29 = vadd.f32 %v14166_v58, %v673_v21  ;;  %v807_v30 = vadd.f32 %v806_v20, %v744_v16  ;;  %v746_v39 = vmul.f32 %v14181_v22, %v14181_v22 }
 0x136   :  { %v14186_v35 = vpop.f32.mrf.mxu0 }
 0x137   :  { %21423 = vst [vmem:[#allocation9_spill] sm:$0xff] %v14186_v35  ;;  %v675_v36 = vadd.f32 %v674_v29, %v14181_v22  ;;  %v808_v40 = vadd.f32 %v807_v30, %v745_v26  ;;  %v749_v13 = vmul.f32 %v14186_v35, %v14186_v35 }
 0x138   :  { %v14194_v48 = vpop.f32.mrf.mxu0 }
 0x139   :  { %21424 = vst [vmem:[#allocation10_spill] sm:$0xff] %v14194_v48  ;;  %v809_v52 = vadd.f32 %v808_v40, %v746_v39  ;;  %v676_v56 = vadd.f32 %v675_v36, %v14194_v48  ;;  %v747_v57 = vmul.f32 %v14194_v48, %v14194_v48 }
 0x13a   :  { %v14199_v62 = vpop.f32.mrf.mxu0 }
 0x13b   :  { %21425 = vst [vmem:[#allocation11_spill] sm:$0xff] %v14199_v62  ;;  %v810_v2 = vadd.f32 %v809_v52, %v747_v57  ;;  %v677_v8 = vadd.f32 %v14176_v14, %v676_v56  ;;  %v752_v56 = vmul.f32 %v14199_v62, %v14199_v62 }
 0x13c   :  { %v14204_v9 = vpop.f32.mrf.mxu0 }
 0x13d   :  { %21426 = vst [vmem:[#allocation12_spill] sm:$0xff] %v14204_v9  ;;  %v678_v16 = vadd.f32 %v14186_v35, %v677_v8  ;;  %v811_v20 = vadd.f32 %v810_v2, %v748_v0  ;;  %v750_v29 = vmul.f32 %v14204_v9, %v14204_v9 }
 0x13e   :  { %v14209_v21 = vpop.f32.mrf.mxu0 }
 0x13f   :  { %21427 = vst [vmem:[#allocation13_spill] sm:$0xff] %v14209_v21  ;;  %v679_v26 = vadd.f32 %v678_v16, %v14204_v9  ;;  %v812_v30 = vadd.f32 %v811_v20, %v749_v13  ;;  %v753_v8 = vmul.f32 %v14209_v21, %v14209_v21 }
 0x140   :  { %v14214_v36 = vpop.f32.mrf.mxu0 }
 0x141   :  { %21428 = vst [vmem:[#allocation14_spill] sm:$0xff] %v14214_v36  ;;  %v813_v39 = vadd.f32 %v812_v30, %v750_v29  ;;  %v680_v40 = vadd.f32 %v679_v26, %v14214_v36  ;;  %v751_v44 = vmul.f32 %v14214_v36, %v14214_v36 }
 0x142   :  { %v14219_v52 = vpop.f32.mrf.mxu0 }
 0x143   :  { %21429 = vst [vmem:[#allocation15_spill] sm:$0xff] %v14219_v52  ;;  %v814_v57 = vadd.f32 %v813_v39, %v751_v44  ;;  %v681_v0 = vadd.f32 %v14199_v62, %v680_v40 }
 0x144   :  { %v14224_v2 = vpop.f32.mrf.mxu0 }
 0x145   :  { %21430 = vst [vmem:[#allocation16_spill] sm:$0xff] %v14224_v2  ;;  %v682_v13 = vadd.f32 %v14209_v21, %v681_v0  ;;  %v815_v16 = vadd.f32 %v814_v57, %v752_v56  ;;  %v754_v29 = vmul.f32 %v14224_v2, %v14224_v2  ;;  %v756_v56 = vmul.f32 %v14219_v52, %v14219_v52 }
 0x146   :  { %v14229_v20 = vpop.f32.mrf.mxu0 }
 0x147   :  { %21431 = vst [vmem:[#allocation17_spill] sm:$0xff] %v14229_v20  ;;  %v683_v26 = vadd.f32 %v682_v13, %v14224_v2  ;;  %v816_v30 = vadd.f32 %v815_v16, %v753_v8  ;;  %v757_v8 = vmul.f32 %v14229_v20, %v14229_v20 }
 0x148   :  { %v14234_v28 = vpop.f32.mrf.mxu0 }
 0x149   :  { %21432 = vst [vmem:[#allocation18_spill] sm:$0xff] %v14234_v28  ;;  %v817_v39 = vadd.f32 %v816_v30, %v754_v29  ;;  %v684_v40 = vadd.f32 %v683_v26, %v14234_v28  ;;  %v755_v44 = vmul.f32 %v14234_v28, %v14234_v28 }
 0x14a   :  { %v14239_v62 = vpop.f32.mrf.mxu0 }
 0x14b   :  { %21433 = vst [vmem:[#allocation19_spill] sm:$0xff] %v14239_v62  ;;  %v818_v57 = vadd.f32 %v817_v39, %v755_v44  ;;  %v685_v0 = vadd.f32 %v14219_v52, %v684_v40 }
 0x14c   :  { %v14244_v13 = vpop.f32.mrf.mxu0 }
 0x14d   :  { %21434 = vst [vmem:[#allocation20_spill] sm:$0xff] %v14244_v13  ;;  %v686_v16 = vadd.f32 %v14229_v20, %v685_v0  ;;  %v819_v29 = vadd.f32 %v818_v57, %v756_v56  ;;  %v758_v28 = vmul.f32 %v14244_v13, %v14244_v13  ;;  %v760_v56 = vmul.f32 %v14239_v62, %v14239_v62 }
 0x14e   :  { %v14249_v26 = vpop.f32.mrf.mxu0 }
 0x14f   :  { %21435 = vst [vmem:[#allocation21_spill] sm:$0xff] %v14249_v26  ;;  %v687_v30 = vadd.f32 %v686_v16, %v14244_v13  ;;  %v820_v2 = vadd.f32 %v819_v29, %v757_v8  ;;  %v761_v8 = vmul.f32 %v14249_v26, %v14249_v26 }
 0x150   :  { %v14254_v21 = vpop.f32.mrf.mxu0 }
 0x151   :  { %21436 = vst [vmem:[#allocation22_spill] sm:$0xff] %v14254_v21  ;;  %v821_v39 = vadd.f32 %v820_v2, %v758_v28  ;;  %v688_v40 = vadd.f32 %v687_v30, %v14254_v21  ;;  %v759_v44 = vmul.f32 %v14254_v21, %v14254_v21 }
 0x152   :  { %v14259_v52 = vpop.f32.mrf.mxu0 }
 0x153   :  { %21437 = vst [vmem:[#allocation23_spill] sm:$0xff] %v14259_v52  ;;  %v822_v57 = vadd.f32 %v821_v39, %v759_v44  ;;  %v689_v0 = vadd.f32 %v14239_v62, %v688_v40 }
 0x154   :  { %v14264_v16 = vpop.f32.mrf.mxu0 }
 0x155   :  { %21438 = vst [vmem:[#allocation24_spill] sm:$0xff] %v14264_v16  ;;  %v690_v28 = vadd.f32 %v14249_v26, %v689_v0  ;;  %v823_v2 = vadd.f32 %v822_v57, %v760_v56  ;;  %v762_v21 = vmul.f32 %v14264_v16, %v14264_v16  ;;  %v764_v56 = vmul.f32 %v14259_v52, %v14259_v52 }
 0x156   :  { %v14269_v29 = vpop.f32.mrf.mxu0 }
 0x157   :  { %21439 = vst [vmem:[#allocation25_spill] sm:$0xff] %v14269_v29  ;;  %v691_v30 = vadd.f32 %v690_v28, %v14264_v16  ;;  %v824_v13 = vadd.f32 %v823_v2, %v761_v8  ;;  %v765_v8 = vmul.f32 %v14269_v29, %v14269_v29 }
 0x158   :  { %v14274_v20 = vpop.f32.mrf.mxu0 }
 0x159   :  { %21440 = vst [vmem:[#allocation26_spill] sm:$0xff] %v14274_v20  ;;  %v825_v39 = vadd.f32 %v824_v13, %v762_v21  ;;  %v692_v40 = vadd.f32 %v691_v30, %v14274_v20  ;;  %v763_v44 = vmul.f32 %v14274_v20, %v14274_v20 }
 0x15a   :  { %v14279_v62 = vpop.f32.mrf.mxu0 }
 0x15b   :  { %21441 = vst [vmem:[#allocation27_spill] sm:$0xff] %v14279_v62  ;;  %v826_v57 = vadd.f32 %v825_v39, %v763_v44  ;;  %v693_v0 = vadd.f32 %v14259_v52, %v692_v40  ;;  %v768_v39 = vmul.f32 %v14279_v62, %v14279_v62 }
 0x15c   :  { %v621_v28 = vpop.f32.mrf.mxu0 }
 0x15d   :  { %v694_v2 = vadd.f32 %v14269_v29, %v693_v0  ;;  %v827_v21 = vadd.f32 %v826_v57, %v764_v56  ;;  %v766_v16 = vmul.f32 %v621_v28, %v621_v28 }
 0x15e   :  { %v14287_v13 = vpop.f32.mrf.mxu0 }
 0x15f   :  { %v695_v30 = vadd.f32 %v694_v2, %v621_v28  ;;  %v828_v20 = vadd.f32 %v827_v21, %v765_v8  ;;  %v769_v52 = vmul.f32 %v14287_v13, %v14287_v13 }
 0x160   :  { %v624_v26 = vpop.f32.mrf.mxu0 }
 0x161   :  { %v829_v36 = vadd.f32 %v828_v20, %v766_v16  ;;  %v696_v9 = vadd.f32 %v695_v30, %v624_v26  ;;  %v767_v35 = vmul.f32 %v624_v26, %v624_v26 }
 0x163   :  { %v697_v40 = vadd.f32 %v14279_v62, %v696_v9  ;;  %v830_v44 = vadd.f32 %v829_v36, %v767_v35 }
 0x165   :  { %v698_v56 = vadd.f32 %v14287_v13, %v697_v40  ;;  %v831_v57 = vadd.f32 %v830_v44, %v768_v39  ;;  %v850_v39 = vlaneseq }
 0x167   :  { %v699_v0 = vrot.slane %v698_v56, 4  ;;  %v832_v2 = vadd.f32 %v831_v57, %v769_v52  ;;  %v851_v40 = vshrl.u32 %v850_v39, 7  ;;  %v842_v52 = vld [vmem:[%s21258_s2] sm:$0x1] }
 0x169   :  { %v700_v29 = vadd.f32 %v699_v0, %v698_v56  ;;  %v833_v8 = vrot.slane %v832_v2, 4  ;;  %v14298_v44 = vsub.s32 0, %v851_v40 }
 0x16b   :  { %v701_v21 = vrot.slane %v700_v29, 2  ;;  %v834_v20 = vadd.f32 %v833_v8, %v832_v2  ;;  %21442 = vst [vmem:[#allocation28_spill] sm:$0xff] %v14298_v44 }
 0x16d   :  { %v702_v16 = vadd.f32 %v701_v21, %v700_v29  ;;  %v835_v30 = vrot.slane %v834_v20, 2 }
 0x16f   :  { %v703_v14 = vrot.slane %v702_v16, 1  ;;  %v836_v48 = vadd.f32 %v835_v30, %v834_v20 }
 0x171   :  { %v704_v22 = vadd.f32 %v703_v14, %v702_v16  ;;  %v837_v58 = vrot.slane %v836_v48, 1  ;;  %v846_v14 = vld [vmem:[%s21259_s3] sm:$0x1] }
 0x173   :  { %v705_v9 = vmul.f32 0.001953125, %v704_v22  ;;  %v838_v35 = vadd.f32 %v837_v58, %v836_v48 }
 0x175   :  { %v839_v36 = vmul.f32 0.001953125, %v838_v35  ;;  %v840_v62 = vmul.f32 %v705_v9, %v705_v9 }
 0x177   :  { %v841_v34 = vsub.f32 %v839_v36, %v840_v62 }
 0x179   :  { %v843_v5 = vadd.f32 1e-05, %v841_v34 }
 0x17b   :  { %13562 = vrsqrt.f32 %v843_v5 }
 0x188   :  { %v13563_v29 = vpop.eup %13562 }
 0x189   :  { %v845_v56 = vmul.f32 %v13563_v29, %v842_v52 }
 0x18b   :  { %v847_v58 = vmul.f32 %v845_v56, %v705_v9  ;;  %v14304_v22 = vrot.slane %v845_v56, %v14298_v44  ;;  %v21448_v56 = vld [vmem:[#allocation4_spill] sm:$0xff] }
 0x18d   :  { %v848_v34 = vsub.f32 %v846_v14, %v847_v58  ;;  %v915_v5 = vmul.f32 %v14304_v22, %v621_v28  ;;  %v916_v48 = vmul.f32 %v14304_v22, %v624_v26  ;;  %v14310_v62 = vmul.f32 %v14304_v22, %v13979_v45 }
 0x18e   :  { %v14314_v57 = vmul.f32 %v14304_v22, %v13983_v47  ;;  %v14318_v0 = vmul.f32 %v13973_v42, %v14304_v22  ;;  %v14322_v2 = vmul.f32 %v13981_v46, %v14304_v22  ;;  %v14326_v28 = vmul.f32 %v14304_v22, %v13996_v55 }
 0x18f   :  { %v14329_v45 = vrot.slane %v848_v34, %v14298_v44  ;;  %v14333_v47 = vmul.f32 %v14304_v22, %v14006_v63  ;;  %v14337_v42 = vmul.f32 %v13991_v51, %v14304_v22  ;;  %v14341_v46 = vmul.f32 %v14001_v59, %v14304_v22 }
 0x190   :  { %v14345_v55 = vmul.f32 %v14304_v22, %v14016_v7  ;;  %v14349_v26 = vmul.f32 %v14304_v22, %v14026_v15  ;;  %v14353_v63 = vmul.f32 %v14011_v3, %v14304_v22  ;;  %v14357_v51 = vmul.f32 %v14021_v11, %v14304_v22 }
 0x191   :  { %v985_v8 = vadd.f32 %v14329_v45, %v915_v5  ;;  %v986_v59 = vadd.f32 %v14329_v45, %v916_v48  ;;  %v14363_v7 = vmul.f32 %v14304_v22, %v14036_v23  ;;  %v14367_v15 = vmul.f32 %v14304_v22, %v14046_v32 }
 0x192   :  { %v14371_v3 = vmul.f32 %v14031_v19, %v14304_v22  ;;  %v14375_v11 = vmul.f32 %v14041_v27, %v14304_v22  ;;  %v14379_v21 = vmul.f32 %v14304_v22, %v14056_v41  ;;  %v14383_v23 = vmul.f32 %v14304_v22, %v14066_v54 }
 0x193   :  { %v1049_v20 = vmax.f32 %v985_v8, 0.0  ;;  %v1050_v16 = vmax.f32 %v986_v59, 0.0  ;;  %v14387_v32 = vmul.f32 %v14051_v37, %v14304_v22  ;;  %v14391_v19 = vmul.f32 %v14061_v49, %v14304_v22  ;;  %v21451_v59 = vld [vmem:[#allocation10_spill] sm:$0xff] }
 0x194   :  { %v14395_v27 = vmul.f32 %v14304_v22, %v14076_v1  ;;  %v14399_v41 = vmul.f32 %v14304_v22, %v14086_v12  ;;  %v14403_v54 = vmul.f32 %v14071_v60, %v14304_v22  ;;  %v14407_v37 = vmul.f32 %v14081_v6, %v14304_v22 }
 0x195   :  { %v14409_v30 = vpack.c.bf16 %v1049_v20, %v1049_v20  ;;  %v12150_v49 = vpack.c.bf16 %v1050_v16, %v1050_v16  ;;  %v14413_v9 = vmul.f32 %v14304_v22, %v14096_v24  ;;  %v14417_v1 = vmul.f32 %v14304_v22, %v14108_v38  ;;  %v21452_v16 = vld [vmem:[#allocation7_spill] sm:$0xff] }
 0x196   :  { %v14421_v12 = vmul.f32 %v14091_v17, %v14304_v22  ;;  %v14425_v60 = vmul.f32 %v14103_v31, %v14304_v22  ;;  %v14429_v6 = vmul.f32 %v14304_v22, %v14121_v53  ;;  %v14433_v24 = vmul.f32 %v14304_v22, %v14131_v4 }
 0x197   :  { %v1969_v35 = vshrl.u32 %v14409_v30, 16  ;;  %v1977_v38 = vshrl.u32 %v12150_v49, 16  ;;  %v1980_v36 = vshll.u32 %v12150_v49, 16  ;;  %v14438_v17 = vmul.f32 %v14113_v43, %v14304_v22 }
 0x198   :  { %v14442_v31 = vmul.f32 %v14126_v61, %v14304_v22  ;;  %v14446_v53 = vmul.f32 %v14304_v22, %v14141_v18  ;;  %v14450_v4 = vmul.f32 %v14304_v22, %v14151_v33  ;;  %v14454_v39 = vmul.f32 %v14136_v10, %v14304_v22  ;;  %v2314_v33 = vld [vmem:[#allocation2 + $0x194] sm:$0x1]  ;;  %v21447_v10 = vld [vmem:[#allocation6_spill] sm:$0xff] }
 0x199   :  { %v14456_v40 = vrot.slane %v1969_v35, 7  ;;  %v1979_v43 = vrot.slane %v1977_v38, 7  ;;  %v14460_v52 = vmul.f32 %v14146_v25, %v14304_v22  ;;  %v14464_v61 = vmul.f32 %v14304_v22, %v14161_v50  ;;  %v21449_v25 = vld [vmem:[#allocation5_spill] sm:$0xff]  ;;  %v21450_v50 = vld [vmem:[#allocation8_spill] sm:$0xff] }
 0x19a   :  { %v21444_v18 = vmov 0  ;;  %v14474_v29 = vmul.f32 %v14304_v22, %v21447_v10  ;;  %v14478_v14 = vmul.f32 %v21448_v56, %v14304_v22  ;;  %v14482_v58 = vmul.f32 %v21449_v25, %v14304_v22  ;;  %v21453_v35 = vld [vmem:[#allocation9_spill] sm:$0xff]  ;;  %v21454_v10 = vld [vmem:[#allocation12_spill] sm:$0xff]  ;;  %v21455_v25 = vld [vmem:[#allocation14_spill] sm:$0xff] }
 0x19b   :  { %21443 = vst [vmem:[#allocation29_spill] sm:$0xff] %v14456_v40  ;;  %v21445_v18 = vsel %vm14468_vm6, 4294967295, %v21444_v18  ;;  %v14486_v34 = vmul.f32 %v14304_v22, %v21450_v50  ;;  %v1975_v5 = vrot.slane %v14456_v40, 4  ;;  %v1982_v48 = vor.u32 %v1980_v36, %v1979_v43  ;;  %v21470_v50 = vld [vmem:[#allocation19_spill] sm:$0xff] }
 0x19c   :  { %21446 = vst [vmem:[#allocation30_spill] sm:$0xff] %v21445_v18  ;;  %v1984_v8 = vrot.slane %v1979_v43, 4  ;;  %v14491_v20 = vmul.f32 %v14304_v22, %v21451_v59  ;;  %v14495_v49 = vmul.f32 %v21452_v16, %v14304_v22  ;;  %v14499_v38 = vmul.f32 %v21453_v35, %v14304_v22  ;;  %v21458_v16 = vld [vmem:[#allocation11_spill] sm:$0xff]  ;;  %v21459_v35 = vld [vmem:[#allocation13_spill] sm:$0xff] }
 0x19d   :  { %v14503_v56 = vmul.f32 %v14304_v22, %v21454_v10  ;;  %v14507_v36 = vmul.f32 %v14304_v22, %v21455_v25  ;;  %v1983_v43 = vsel %vm14468_vm6, %v1975_v5, %v1982_v48  ;;  %v14515_v44 = vmul.f32 %v21458_v16, %v14304_v22  ;;  %v21460_v10 = vld [vmem:[#allocation16_spill] sm:$0xff]  ;;  %v21472_v18 = vld [vmem:[#allocation21_spill] sm:$0xff] }
 0x19e   :  { %v2315_v59 = vsel %vm13803_vm2, %v1984_v8, %v2314_v33  ;;  %v14519_v40 = vmul.f32 %v21459_v35, %v14304_v22  ;;  %2313 = vst [vmem:[#allocation2 + $0x190] sm:$0xf] %v1983_v43  ;;  %v14523_v25 = vmul.f32 %v14304_v22, %v21460_v10  ;;  %v21462_v33 = vld [vmem:[#allocation15_spill] sm:$0xff]  ;;  %v21464_v8 = vld [vmem:[#allocation17_spill] sm:$0xff]  ;;  %v21466_v35 = vld [vmem:[#allocation20_spill] sm:$0xff] }
 0x19f   :  { %21456 = vst [vmem:[#allocation6_spill] sm:$0xff] %v14507_v36  ;;  %2316 = vst [vmem:[#allocation2 + $0x194] sm:$0x1] %v2315_v59  ;;  %v21461_v36 = vld [vmem:[#allocation18_spill] sm:$0xff]  ;;  %v14531_v48 = vmul.f32 %v21462_v33, %v14304_v22  ;;  %v14535_v16 = vmul.f32 %v21464_v8, %v14304_v22  ;;  %v14539_v43 = vmul.f32 %v14304_v22, %v21466_v35 }
 0x1a0   :  { %v14527_v5 = vmul.f32 %v14304_v22, %v21461_v36  ;;  %v21468_v59 = vld [vmem:[#allocation22_spill] sm:$0xff]  ;;  %v14547_v36 = vmul.f32 %v21470_v50, %v14304_v22  ;;  %v14551_v33 = vmul.f32 %v21472_v18, %v14304_v22 }
 0x1a1   :  { %21463 = vst [vmem:[#allocation4_spill] sm:$0xff] %v14531_v48  ;;  %21465 = vst [vmem:[#allocation5_spill] sm:$0xff] %v14535_v16  ;;  %v14543_v10 = vmul.f32 %v14304_v22, %v21468_v59  ;;  %v21473_v48 = vld [vmem:[#allocation24_spill] sm:$0xff]  ;;  %v21475_v16 = vld [vmem:[#allocation26_spill] sm:$0xff] }
 0x1a2   :  { %21467 = vst [vmem:[#allocation8_spill] sm:$0xff] %v14539_v43  ;;  %21471 = vst [vmem:[#allocation7_spill] sm:$0xff] %v14547_v36  ;;  %v14555_v8 = vmul.f32 %v14304_v22, %v21473_v48  ;;  %v14559_v35 = vmul.f32 %v14304_v22, %v21475_v16  ;;  %v21476_v43 = vld [vmem:[#allocation23_spill] sm:$0xff]  ;;  %v14575_v48 = vmul.f32 %v14287_v13, %v14304_v22 }
 0x1a3   :  { %21469 = vst [vmem:[#allocation10_spill] sm:$0xff] %v14543_v10  ;;  %v14563_v59 = vmul.f32 %v21476_v43, %v14304_v22  ;;  %v21477_v10 = vld [vmem:[#allocation25_spill] sm:$0xff]  ;;  %v21478_v36 = vld [vmem:[#allocation27_spill] sm:$0xff]  ;;  %v14580_v16 = vadd.f32 %v14329_v45, %v14310_v62  ;;  %v14584_v43 = vadd.f32 %v14329_v45, %v14314_v57  ;;  %v14596_v13 = vadd.f32 %v14329_v45, %v14326_v28 }
 0x1a4   :  { %21474 = vst [vmem:[#allocation9_spill] sm:$0xff] %v14555_v8  ;;  %v14567_v50 = vmul.f32 %v21477_v10, %v14304_v22  ;;  %v14571_v18 = vmul.f32 %v21478_v36, %v14304_v22  ;;  %v14588_v10 = vadd.f32 %v14329_v45, %v14318_v0  ;;  %v14592_v36 = vadd.f32 %v14329_v45, %v14322_v2 }
 0x1a5   :  { %v14600_v22 = vadd.f32 %v14329_v45, %v14333_v47  ;;  %v14604_v62 = vadd.f32 %v14329_v45, %v14337_v42  ;;  %v14608_v57 = vadd.f32 %v14329_v45, %v14341_v46  ;;  %v14612_v0 = vadd.f32 %v14329_v45, %v14345_v55 }
 0x1a6   :  { %v14616_v2 = vadd.f32 %v14329_v45, %v14349_v26  ;;  %v14620_v28 = vadd.f32 %v14329_v45, %v14353_v63  ;;  %v14624_v47 = vadd.f32 %v14329_v45, %v14357_v51  ;;  %v14628_v42 = vadd.f32 %v14329_v45, %v14363_v7 }
 0x1a7   :  { %v14632_v46 = vadd.f32 %v14329_v45, %v14367_v15  ;;  %v14636_v55 = vadd.f32 %v14329_v45, %v14371_v3  ;;  %v14640_v26 = vadd.f32 %v14329_v45, %v14375_v11  ;;  %v14644_v63 = vadd.f32 %v14329_v45, %v14379_v21  ;;  %v13397_v11 = vld [vmem:[%s21257_s4 + $0x28] sm:$0xff]  }
 0x1a8   :  { %v14648_v51 = vadd.f32 %v14329_v45, %v14383_v23  ;;  %v14652_v7 = vadd.f32 %v14329_v45, %v14387_v32  ;;  %v14656_v15 = vadd.f32 %v14329_v45, %v14391_v19  ;;  %v14660_v3 = vadd.f32 %v14329_v45, %v14395_v27  ;;  %v13396_v27 = vld [vmem:[%s21257_s4 + $0x78] sm:$0xff]   ;;  %12717 = vmatprep.subr.bf16.mxu0 %v13397_v11 }
 0x1a9   :  { %v14667_v21 = vadd.f32 %v14329_v45, %v14399_v41  ;;  %v14671_v23 = vadd.f32 %v14329_v45, %v14403_v54  ;;  %v14675_v32 = vadd.f32 %v14329_v45, %v14407_v37  ;;  %v14679_v19 = vadd.f32 %v14329_v45, %v14413_v9  ;;  %12633 = vmatprep.subr.bf16.mxu1 %v13396_v27 }
 0x1aa   :  { %v14686_v41 = vadd.f32 %v14329_v45, %v14417_v1  ;;  %v14690_v54 = vadd.f32 %v14329_v45, %v14421_v12  ;;  %v14694_v37 = vadd.f32 %v14329_v45, %v14425_v60  ;;  %v14698_v9 = vadd.f32 %v14329_v45, %v14429_v6  ;;  %12634 = vmatpush3.bf16.msra.mxu1 %v13396_v27  ;;  %v13398_v27 = vld [vmem:[%s21257_s4 + $0x70] sm:$0xff]  }
 0x1ab   :  { %v14702_v8 = vadd.f32 %v14329_v45, %v14433_v24  ;;  %v14706_v1 = vadd.f32 %v14329_v45, %v14438_v17  ;;  %v14710_v12 = vadd.f32 %v14329_v45, %v14442_v31  ;;  %v14714_v60 = vadd.f32 %v14329_v45, %v14446_v53  ;;  %v13399_v53 = vld [vmem:[%s21257_s4 + $0x20] sm:$0xff]   ;;  %12718 = vmatpush3.bf16.msra.mxu0 %v13397_v11  ;;  %v21485_v11 = vld [vmem:[#allocation6_spill] sm:$0xff] }
 0x1ac   :  { %v14718_v6 = vadd.f32 %v14329_v45, %v14450_v4  ;;  %v14722_v24 = vadd.f32 %v14329_v45, %v14454_v39  ;;  %v14726_v17 = vadd.f32 %v14329_v45, %v14460_v52  ;;  %v14730_v31 = vadd.f32 %v14329_v45, %v14464_v61  ;;  %12719 = vmatprep.subr.bf16.mxu0 %v13399_v53 }
 0x1ad   :  { %21479 = vst [vmem:[#allocation12_spill] sm:$0xff] %v14702_v8  ;;  %21480 = vst [vmem:[#allocation14_spill] sm:$0xff] %v14706_v1  ;;  %v14737_v4 = vadd.f32 %v14329_v45, %v14474_v29  ;;  %v14741_v39 = vadd.f32 %v14329_v45, %v14478_v14  ;;  %v14745_v52 = vadd.f32 %v14329_v45, %v14482_v58  ;;  %12635 = vmatprep.subr.bf16.mxu1 %v13398_v27 }
 0x1ae   :  { %21481 = vst [vmem:[#allocation11_spill] sm:$0xff] %v14730_v31  ;;  %v14749_v61 = vadd.f32 %v14329_v45, %v14486_v34  ;;  %v14756_v29 = vadd.f32 %v14329_v45, %v14491_v20  ;;  %v14760_v14 = vadd.f32 %v14329_v45, %v14495_v49  ;;  %v14764_v58 = vadd.f32 %v14329_v45, %v14499_v38 }
 0x1af   :  { %21482 = vst [vmem:[#allocation13_spill] sm:$0xff] %v14745_v52  ;;  %v14768_v34 = vadd.f32 %v14329_v45, %v14503_v56  ;;  %v14776_v20 = vadd.f32 %v14329_v45, %v14515_v44  ;;  %v14780_v49 = vadd.f32 %v14329_v45, %v14519_v40  ;;  %v14784_v38 = vadd.f32 %v14329_v45, %v14523_v25  ;;  %v13401_v25 = vld [vmem:[%s21257_s4 + $0x18] sm:$0xff]  }
 0x1b0   :  { %21483 = vst [vmem:[#allocation16_spill] sm:$0xff] %v14749_v61  ;;  %v14772_v61 = vadd.f32 %v14329_v45, %v21485_v11  ;;  %v14788_v56 = vadd.f32 %v14329_v45, %v14527_v5  ;;  %12636 = vmatpush3.bf16.msra.mxu1 %v13398_v27  ;;  %12720 = vmatpush3.bf16.msra.mxu0 %v13399_v53  ;;  %v13400_v27 = vld [vmem:[%s21257_s4 + $0x68] sm:$0xff]   ;;  %v21521_v1 = vmax.f32 %v14580_v16, 0.0  ;;  %v21525_v16 = vmax.f32 %v14596_v13, 0.0 }
 0x1b1   :  { %21484 = vst [vmem:[#allocation18_spill] sm:$0xff] %v14768_v34  ;;  %21487 = vst [vmem:[#allocation17_spill] sm:$0xff] %v14776_v20  ;;  %v21491_v34 = vld [vmem:[#allocation4_spill] sm:$0xff]  ;;  %12721 = vmatprep.subr.bf16.mxu0 %v13401_v25  ;;  %v14842_v53 = vadd.f32 %v14329_v45, %v14575_v48  ;;  %12637 = vmatprep.subr.bf16.mxu1 %v13400_v27  ;;  %v21528_v13 = vmax.f32 %v14608_v57, 0.0  ;;  %v21532_v57 = vmax.f32 %v14624_v47, 0.0  ;;  %v21536_v47 = vmax.f32 %v14640_v26, 0.0 }
 0x1b2   :  { %21486 = vst [vmem:[#allocation15_spill] sm:$0xff] %v14772_v61  ;;  %21488 = vst [vmem:[#allocation20_spill] sm:$0xff] %v14780_v49  ;;  %v14792_v11 = vadd.f32 %v14329_v45, %v21491_v34  ;;  %v21493_v61 = vld [vmem:[#allocation5_spill] sm:$0xff]  ;;  %v21495_v20 = vld [vmem:[#allocation8_spill] sm:$0xff]  ;;  %v21524_v49 = vmax.f32 %v14592_v36, 0.0  ;;  %v21540_v26 = vmax.f32 %v14656_v15, 0.0 }
 0x1b3   :  { %21489 = vst [vmem:[#allocation22_spill] sm:$0xff] %v14784_v38  ;;  %21490 = vst [vmem:[#allocation19_spill] sm:$0xff] %v14788_v56  ;;  %v14796_v44 = vadd.f32 %v14329_v45, %v21493_v61  ;;  %v14800_v40 = vadd.f32 %v14329_v45, %v21495_v20  ;;  %v21496_v38 = vld [vmem:[#allocation10_spill] sm:$0xff]  ;;  %v21497_v56 = vld [vmem:[#allocation7_spill] sm:$0xff]  ;;  %v14815_v61 = vadd.f32 %v14329_v45, %v14551_v33  ;;  %v21544_v15 = vmax.f32 %v14675_v32, 0.0 }
 0x1b4   :  { %21492 = vst [vmem:[#allocation21_spill] sm:$0xff] %v14792_v11  ;;  %v14807_v5 = vadd.f32 %v14329_v45, %v21496_v38  ;;  %v14811_v34 = vadd.f32 %v14329_v45, %v21497_v56  ;;  %v14826_v38 = vadd.f32 %v14329_v45, %v14559_v35  ;;  %v14830_v56 = vadd.f32 %v14329_v45, %v14563_v59  ;;  %v13404_v48 = vld [vmem:[%s21257_s4 + $0x58] sm:$0xff]   ;;  %v13412_v36 = vld [vmem:[%s21257_s4 + $0x40] sm:$0xff]  }
 0x1b5   :  { %21494 = vst [vmem:[#allocation24_spill] sm:$0xff] %v14796_v44  ;;  %v21498_v44 = vld [vmem:[#allocation9_spill] sm:$0xff]  ;;  %v14834_v33 = vadd.f32 %v14329_v45, %v14567_v50  ;;  %v21505_v35 = vshll.u32 %v14409_v30, 16  ;;  %12638 = vmatpush3.bf16.msra.mxu1 %v13400_v27  ;;  %12722 = vmatpush3.bf16.msra.mxu0 %v13401_v25  ;;  %v21523_v27 = vmax.f32 %v14588_v10, 0.0  ;;  %v14959_v52 = vpack.c.bf16 %v21524_v49, %v21524_v49 }
 0x1b6   :  { %v14819_v20 = vadd.f32 %v14329_v45, %v21498_v44  ;;  %21500 = vst [vmem:[#allocation23_spill] sm:$0xff] %v14826_v38  ;;  %21501 = vst [vmem:[#allocation25_spill] sm:$0xff] %v14830_v56  ;;  %v14838_v44 = vadd.f32 %v14329_v45, %v14571_v18  ;;  %v13403_v45 = vld [vmem:[%s21257_s4 + $0x10] sm:$0xff]   ;;  %v13407_v30 = vld [vmem:[%s21257_s4] sm:$0xff]   ;;  %v21522_v56 = vmax.f32 %v14584_v43, 0.0  ;;  %v21526_v43 = vmax.f32 %v14600_v22, 0.0 }
 0x1b7   :  { %21502 = vst [vmem:[#allocation27_spill] sm:$0xff] %v14834_v33  ;;  %12723 = vmatprep.subr.bf16.mxu0 %v13403_v45  ;;  %v2310_v33 = vld [vmem:[#allocation2 + $0x18c] sm:$0xf]  ;;  %v14954_v31 = vpack.c.bf16 %v21523_v27, %v21523_v27  ;;  %v21527_v10 = vmax.f32 %v14604_v62, 0.0  ;;  %v14982_v49 = vpack.c.bf16 %v21528_v13, %v21528_v13  ;;  %v21529_v22 = vmax.f32 %v14612_v0, 0.0 }
 0x1b8   :  { %21499 = vst [vmem:[#allocation26_spill] sm:$0xff] %v14819_v20  ;;  %21503 = vst [vmem:[#allocation6_spill] sm:$0xff] %v14838_v44  ;;  %v21504_v20 = vld [vmem:[#allocation29_spill] sm:$0xff]  ;;  %v21530_v62 = vmax.f32 %v14616_v2, 0.0  ;;  %v21533_v0 = vmax.f32 %v14628_v42, 0.0  ;;  %v21534_v2 = vmax.f32 %v14632_v46, 0.0 }
 0x1b9   :  { %v14847_v38 = vor.u32 %v21505_v35, %v21504_v20  ;;  %v13402_v44 = vld [vmem:[%s21257_s4 + $0x60] sm:$0xff]   ;;  %v13405_v35 = vld [vmem:[%s21257_s4 + $0x8] sm:$0xff]   ;;  %12724 = vmatpush3.bf16.msra.mxu0 %v13403_v45  ;;  %v14949_v20 = vpack.c.bf16 %v21522_v56, %v21522_v56  ;;  %v14974_v56 = vpack.c.bf16 %v21527_v10, %v21527_v10  ;;  %v21537_v42 = vmax.f32 %v14644_v63, 0.0 }
 0x1ba   :  { %12639 = vmatprep.subr.bf16.mxu1 %v13402_v44  ;;  %12725 = vmatprep.subr.bf16.mxu0 %v13405_v35  ;;  %v14992_v27 = vpack.c.bf16 %v21530_v62, %v21530_v62  ;;  %v15007_v10 = vpack.c.bf16 %v21533_v0, %v21533_v0  ;;  %v15012_v13 = vpack.c.bf16 %v21534_v2, %v21534_v2  ;;  %v21538_v46 = vmax.f32 %v14648_v51, 0.0 }
 0x1bb   :  { %12640 = vmatpush3.bf16.msra.mxu1 %v13402_v44  ;;  %v13406_v44 = vld [vmem:[%s21257_s4 + $0x50] sm:$0xff]   ;;  %v2311_v45 = vsel %vm14919_vm8, %v14847_v38, %v2310_v33  ;;  %v14969_v38 = vpack.c.bf16 %v21526_v43, %v21526_v43  ;;  %v14987_v33 = vpack.c.bf16 %v21529_v22, %v21529_v22  ;;  %v15002_v43 = vpack.c.bf16 %v21532_v57, %v21532_v57 }
 0x1bc   :  { %12641 = vmatprep.subr.bf16.mxu1 %v13404_v48  ;;  %v21515_v18 = vld [vmem:[#allocation24_spill] sm:$0xff]  ;;  %2312 = vst [vmem:[#allocation2 + $0x18c] sm:$0xf] %v2311_v45  ;;  %v21531_v45 = vmax.f32 %v14620_v28, 0.0  ;;  %v21535_v28 = vmax.f32 %v14636_v55, 0.0  ;;  %v15027_v62 = vpack.c.bf16 %v21537_v42, %v21537_v42  ;;  %v21539_v55 = vmax.f32 %v14652_v7, 0.0 }
 0x1bd   :  { %12726 = vmatpush3.bf16.msra.mxu0 %v13405_v35  ;;  %v21512_v35 = vmov 0  ;;  %v21517_v8 = vld [vmem:[#allocation23_spill] sm:$0xff]  ;;  %v15042_v0 = vpack.c.bf16 %v21540_v26, %v21540_v26  ;;  %v21541_v63 = vmax.f32 %v14660_v3, 0.0  ;;  %v21542_v51 = vmax.f32 %v14667_v21, 0.0 }
 0x1be   :  { %12727 = vmatprep.subr.bf16.mxu0 %v13407_v30  ;;  %v21513_v35 = vsel %vm14919_vm8, 4294967295, %v21512_v35  ;;  %v21519_v50 = vld [vmem:[#allocation27_spill] sm:$0xff]  ;;  %v15017_v22 = vpack.c.bf16 %v21535_v28, %v21535_v28  ;;  %v15037_v57 = vpack.c.bf16 %v21539_v55, %v21539_v55  ;;  %v21543_v7 = vmax.f32 %v14671_v23, 0.0 }
 0x1bf   :  { %12642 = vmatpush3.bf16.msra.mxu1 %v13404_v48  ;;  %21514 = vst [vmem:[#allocation4_spill] sm:$0xff] %v21513_v35  ;;  %v21516_v59 = vld [vmem:[#allocation26_spill] sm:$0xff]  ;;  %v21518_v48 = vld [vmem:[#allocation25_spill] sm:$0xff]  ;;  %v15047_v2 = vpack.c.bf16 %v21541_v63, %v21541_v63  ;;  %v15052_v28 = vpack.c.bf16 %v21542_v51, %v21542_v51  ;;  %v15062_v42 = vpack.c.bf16 %v21544_v15, %v21544_v15  ;;  %v21545_v3 = vmax.f32 %v14679_v19, 0.0 }
 0x1c0   :  { %12643 = vmatprep.subr.bf16.mxu1 %v13406_v44  ;;  %v21520_v11 = vld [vmem:[#allocation6_spill] sm:$0xff]  ;;  %v21546_v21 = vmax.f32 %v14686_v41, 0.0  ;;  %v21547_v23 = vmax.f32 %v14690_v54, 0.0  ;;  %v21548_v32 = vmax.f32 %v14694_v37, 0.0  ;;  %v21549_v19 = vmax.f32 %v14698_v9, 0.0  ;;  %v21550_v41 = vld [vmem:[#allocation12_spill] sm:$0xff] }
 0x1c1   :  { %12728 = vmatpush3.bf16.msra.mxu0 %v13407_v30  ;;  %v14944_v30 = vpack.c.bf16 %v21521_v1, %v21521_v1  ;;  %v14964_v1 = vpack.c.bf16 %v21525_v16, %v21525_v16  ;;  %v14997_v16 = vpack.c.bf16 %v21531_v45, %v21531_v45  ;;  %v15032_v45 = vpack.c.bf16 %v21538_v46, %v21538_v46  ;;  %v21552_v54 = vld [vmem:[#allocation14_spill] sm:$0xff] }
 0x1c2   :  { %v15067_v46 = vpack.c.bf16 %v21545_v3, %v21545_v3  ;;  %v15072_v55 = vpack.c.bf16 %v21546_v21, %v21546_v21  ;;  %v15077_v26 = vpack.c.bf16 %v21547_v23, %v21547_v23  ;;  %v15082_v63 = vpack.c.bf16 %v21548_v32, %v21548_v32 }
 0x1c3   :  { %12644 = vmatpush3.bf16.msra.mxu1 %v13406_v44  ;;  %v13409_v44 = vld [vmem:[%s21257_s4 + $0x48] sm:$0xff]   ;;  %v15087_v51 = vpack.c.bf16 %v21549_v19, %v21549_v19  ;;  %v21553_v3 = vmax.f32 %v21552_v54, 0.0  ;;  %v21554_v37 = vmax.f32 %v14710_v12, 0.0  ;;  %v21555_v9 = vmax.f32 %v14714_v60, 0.0 }
 0x1c4   :  { %12645 = vmatprep.subr.bf16.mxu1 %v13409_v44  ;;  %v21556_v32 = vmax.f32 %v14718_v6, 0.0  ;;  %v21560_v12 = vmax.f32 %v14726_v17, 0.0  ;;  %v21565_v6 = vmax.f32 %v14737_v4, 0.0  ;;  %v13414_v17 = vld [vmem:[%s21257_s4 + $0xb8] sm:$0xff]  }
 0x1c5   :  { %v15097_v21 = vpack.c.bf16 %v21553_v3, %v21553_v3  ;;  %v15107_v23 = vpack.c.bf16 %v21555_v9, %v21555_v9  ;;  %v21562_v3 = vld [vmem:[#allocation11_spill] sm:$0xff] }
 0x1c6   :  { %v15112_v19 = vpack.c.bf16 %v21556_v32, %v21556_v32  ;;  %v15122_v54 = vpack.c.bf16 %v21560_v12, %v21560_v12  ;;  %v21563_v60 = vmax.f32 %v21562_v3, 0.0  ;;  %v15132_v9 = vpack.c.bf16 %v21565_v6, %v21565_v6 }
 0x1c7   :  { %12646 = vmatpush3.bf16.msra.mxu1 %v13409_v44  ;;  %v15022_v44 = vpack.c.bf16 %v21536_v47, %v21536_v47  ;;  %v15057_v47 = vpack.c.bf16 %v21543_v7, %v21543_v7  ;;  %v21551_v7 = vmax.f32 %v21550_v41, 0.0  ;;  %v21558_v41 = vmax.f32 %v14722_v24, 0.0 }
 0x1c8   :  { %12647 = vmatprep.subr.bf16.mxu1 %v13412_v36  ;;  %21557 = vst [vmem:[#allocation5_spill] sm:$0xff] %v15112_v19  ;;  %21561 = vst [vmem:[#allocation10_spill] sm:$0xff] %v15122_v54  ;;  %v21567_v24 = vmax.f32 %v14741_v39, 0.0  ;;  %v21575_v6 = vmax.f32 %v14756_v29, 0.0 }
 0x1c9   :  { %v15092_v15 = vpack.c.bf16 %v21551_v7, %v21551_v7  ;;  %v15117_v7 = vpack.c.bf16 %v21558_v41, %v21558_v41  ;;  %21566 = vst [vmem:[#allocation9_spill] sm:$0xff] %v15132_v9  ;;  %v21569_v41 = vld [vmem:[#allocation13_spill] sm:$0xff] }
 0x1ca   :  { %v15137_v32 = vpack.c.bf16 %v21567_v24, %v21567_v24  ;;  %v21570_v12 = vmax.f32 %v21569_v41, 0.0  ;;  %v15155_v39 = vpack.c.bf16 %v21575_v6, %v21575_v6  ;;  %v21577_v24 = vmax.f32 %v14760_v14, 0.0 }
 0x1cb   :  { %12648 = vmatpush3.bf16.msra.mxu1 %v13412_v36  ;;  %v15102_v36 = vpack.c.bf16 %v21554_v37, %v21554_v37  ;;  %21559 = vst [vmem:[#allocation8_spill] sm:$0xff] %v15117_v7  ;;  %v15127_v37 = vpack.c.bf16 %v21563_v60, %v21563_v60  ;;  %v21572_v60 = vld [vmem:[#allocation16_spill] sm:$0xff]  ;;  %v21579_v41 = vmax.f32 %v14764_v58, 0.0 }
 0x1cc   :  { %21568 = vst [vmem:[#allocation29_spill] sm:$0xff] %v15137_v32  ;;  %v15145_v3 = vpack.c.bf16 %v21570_v12, %v21570_v12  ;;  %v21573_v25 = vmax.f32 %v21572_v60, 0.0  ;;  %21576 = vst [vmem:[#allocation23_spill] sm:$0xff] %v15155_v39  ;;  %v15160_v35 = vpack.c.bf16 %v21577_v24, %v21577_v24  ;;  %v21587_v39 = vld [vmem:[#allocation17_spill] sm:$0xff]  ;;  %12793 = vmatprep.subr.bf16.mxu1 %v13414_v17  ;;  %v21589_v58 = vld [vmem:[#allocation20_spill] sm:$0xff]  ;;  %v21597_v17 = vmax.f32 %v21515_v18, 0.0 }
 0x1cd   :  { %21564 = vst [vmem:[#allocation7_spill] sm:$0xff] %v15127_v37  ;;  %v15165_v12 = vpack.c.bf16 %v21579_v41, %v21579_v41  ;;  %v21588_v14 = vmax.f32 %v21587_v39, 0.0  ;;  %v21595_v39 = vld [vmem:[#allocation21_spill] sm:$0xff]  ;;  %v21603_v18 = vmax.f32 %v14815_v61, 0.0  ;;  %v21611_v61 = vmax.f32 %v21519_v50, 0.0 }
 0x1ce   :  { %21571 = vst [vmem:[#allocation24_spill] sm:$0xff] %v15145_v3  ;;  %v15150_v4 = vpack.c.bf16 %v21573_v25, %v21573_v25  ;;  %21578 = vst [vmem:[#allocation25_spill] sm:$0xff] %v15160_v35  ;;  %v21581_v3 = vld [vmem:[#allocation18_spill] sm:$0xff]  ;;  %v21590_v35 = vmax.f32 %v21589_v58, 0.0  ;;  %v21598_v58 = vmax.f32 %v14800_v40, 0.0  ;;  %v21605_v40 = vmax.f32 %v21516_v59, 0.0 }
 0x1cf   :  { %21580 = vst [vmem:[#allocation27_spill] sm:$0xff] %v15165_v12  ;;  %v21582_v60 = vmax.f32 %v21581_v3, 0.0  ;;  %v15180_v24 = vpack.c.bf16 %v21588_v14, %v21588_v14  ;;  %v21591_v3 = vld [vmem:[#allocation22_spill] sm:$0xff]  ;;  %v21613_v59 = vmax.f32 %v21520_v11, 0.0  ;;  %v21626_v11 = vshrl.u32 %v14949_v20, 16 }
 0x1d0   :  { %21574 = vst [vmem:[#allocation26_spill] sm:$0xff] %v15150_v4  ;;  %v21584_v4 = vld [vmem:[#allocation15_spill] sm:$0xff]  ;;  %v15185_v41 = vpack.c.bf16 %v21590_v35, %v21590_v35  ;;  %v21592_v12 = vmax.f32 %v21591_v3, 0.0  ;;  %v15205_v35 = vpack.c.bf16 %v21597_v17, %v21597_v17  ;;  %v21599_v3 = vmax.f32 %v14807_v5, 0.0 }
 0x1d1   :  { %v15170_v25 = vpack.c.bf16 %v21582_v60, %v21582_v60  ;;  %v21585_v29 = vmax.f32 %v21584_v4, 0.0  ;;  %v21593_v4 = vld [vmem:[#allocation19_spill] sm:$0xff]  ;;  %v15230_v17 = vpack.c.bf16 %v21605_v40, %v21605_v40  ;;  %v21607_v5 = vmax.f32 %v21517_v8, 0.0 }
 0x1d2   :  { %v15190_v60 = vpack.c.bf16 %v21592_v12, %v21592_v12  ;;  %v15210_v12 = vpack.c.bf16 %v21598_v58, %v21598_v58  ;;  %v21615_v8 = vmax.f32 %v14842_v53, 0.0 }
 0x1d3   :  { %21583 = vst [vmem:[#allocation6_spill] sm:$0xff] %v15170_v25  ;;  %v15175_v6 = vpack.c.bf16 %v21585_v29, %v21585_v29  ;;  %v21594_v25 = vmax.f32 %v21593_v4, 0.0  ;;  %v21601_v4 = vmax.f32 %v14811_v34, 0.0  ;;  %21606 = vst [vmem:[#allocation16_spill] sm:$0xff] %v15230_v17  ;;  %v15235_v58 = vpack.c.bf16 %v21607_v5, %v21607_v5  ;;  %v21619_v54 = vld [vmem:[#allocation23_spill] sm:$0xff] }
 0x1d4   :  { %v21609_v34 = vmax.f32 %v21518_v48, 0.0  ;;  %v15255_v40 = vpack.c.bf16 %v21615_v8, %v21615_v8  ;;  %v21628_v8 = vshrl.u32 %v14959_v52, 16  ;;  %v21629_v5 = vshrl.u32 %v14964_v1, 16 }
 0x1d5   :  { %21586 = vst [vmem:[#allocation12_spill] sm:$0xff] %v15175_v6  ;;  %v15195_v29 = vpack.c.bf16 %v21594_v25, %v21594_v25  ;;  %v21596_v6 = vmax.f32 %v21595_v39, 0.0  ;;  %v15215_v25 = vpack.c.bf16 %v21599_v3, %v21599_v3  ;;  %v15225_v39 = vpack.c.bf16 %v21603_v18, %v21603_v18  ;;  %21608 = vst [vmem:[#allocation18_spill] sm:$0xff] %v15235_v58  ;;  %v21620_v37 = vld [vmem:[#allocation25_spill] sm:$0xff] }
 0x1d6   :  { %v15240_v3 = vpack.c.bf16 %v21609_v34, %v21609_v34  ;;  %v15250_v18 = vpack.c.bf16 %v21613_v59, %v21613_v59  ;;  %21616 = vst [vmem:[#allocation22_spill] sm:$0xff] %v15255_v40  ;;  %v21621_v9 = vld [vmem:[#allocation27_spill] sm:$0xff]  ;;  %v15385_v59 = vrot.slane %v21626_v11, 7  ;;  %v1495_v48 = vrot.slane %v21629_v5, 7 }
 0x1d7   :  { %v15200_v14 = vpack.c.bf16 %v21596_v6, %v21596_v6  ;;  %21600 = vst [vmem:[#allocation14_spill] sm:$0xff] %v15215_v25  ;;  %v15220_v6 = vpack.c.bf16 %v21601_v4, %v21601_v4  ;;  %21604 = vst [vmem:[#allocation13_spill] sm:$0xff] %v15225_v39  ;;  %v15245_v4 = vpack.c.bf16 %v21611_v61, %v21611_v61  ;;  %v21618_v7 = vld [vmem:[#allocation26_spill] sm:$0xff]  ;;  %v21625_v61 = vshrl.u32 %v14944_v30, 16 }
 0x1d8   :  { %21610 = vst [vmem:[#allocation15_spill] sm:$0xff] %v15240_v3  ;;  %21614 = vst [vmem:[#allocation20_spill] sm:$0xff] %v15250_v18  ;;  %v21627_v18 = vshrl.u32 %v14954_v31, 16  ;;  %v21630_v34 = vshll.u32 %v14944_v30, 16  ;;  %v21633_v11 = vshrl.u32 %v14974_v56, 16  ;;  %v21635_v5 = vshll.u32 %v14954_v31, 16 }
 0x1d9   :  { %21602 = vst [vmem:[#allocation11_spill] sm:$0xff] %v15220_v6  ;;  %21612 = vst [vmem:[#allocation17_spill] sm:$0xff] %v15245_v4  ;;  %v1461_v17 = vrot.slane %v21625_v61, 7  ;;  %v15391_v4 = vrot.slane %v21628_v8, 7  ;;  %v21632_v61 = vshrl.u32 %v14969_v38, 16  ;;  %v1499_v25 = vrot.slane %v1495_v48, 4 }
 0x1da   :  { %v21622_v32 = vld [vmem:[#allocation6_spill] sm:$0xff]  ;;  %v1478_v53 = vrot.slane %v21627_v18, 7  ;;  %v1512_v3 = vrot.slane %v21633_v11, 7  ;;  %v21634_v18 = vshll.u32 %v14949_v20, 16  ;;  %v21639_v31 = vshll.u32 %v14969_v38, 16 }
 0x1db   :  { %v15397_v50 = vor.u32 %v21630_v34, %v1461_v17  ;;  %v1465_v40 = vrot.slane %v1461_v17, 4  ;;  %v15401_v6 = vrot.slane %v21632_v61, 7  ;;  %v21636_v17 = vshll.u32 %v14959_v52, 16 }
 0x1dc   :  { %v21623_v19 = vld [vmem:[#allocation12_spill] sm:$0xff]  ;;  %v1472_v8 = vor.u32 %v21634_v18, %v15385_v59  ;;  %v15411_v39 = vor.u32 %v21635_v5, %v1478_v53  ;;  %v1482_v30 = vrot.slane %v1478_v53, 4  ;;  %v21640_v58 = vshll.u32 %v14974_v56, 16 }
 0x1dd   :  { %21631 = vst [vmem:[#allocation19_spill] sm:$0xff] %v15397_v50  ;;  %v1489_v34 = vor.u32 %v21636_v17, %v15391_v4  ;;  %v21637_v50 = vshll.u32 %v14964_v1, 16  ;;  %v1506_v5 = vor.u32 %v21639_v31, %v15401_v6  ;;  %v1516_v1 = vrot.slane %v1512_v3, 4 }
 0x1de   :  { %v1473_v18 = vsel %vm14468_vm6, %v1465_v40, %v1472_v8  ;;  %v15429_v52 = vor.u32 %v21640_v58, %v1512_v3  ;;  %v21642_v40 = vshrl.u32 %v14987_v33, 16  ;;  %v21643_v31 = vshrl.u32 %v14992_v27, 16 }
 0x1df   :  { %v15419_v11 = vor.u32 %v21637_v50, %v1495_v48  ;;  %v1490_v17 = vsel %vm14468_vm6, %v1482_v30, %v1489_v34  ;;  %v21641_v50 = vshrl.u32 %v14982_v49, 16  ;;  %2103 = vst [vmem:[#allocation2 + $0x10] sm:$0xf] %v1473_v18  ;;  %v1507_v38 = vsel %vm14468_vm6, %v1499_v25, %v1506_v5 }
 0x1e0   :  { %v1529_v8 = vrot.slane %v21642_v40, 7  ;;  %v15443_v56 = vrot.slane %v21643_v31, 7  ;;  %v21644_v58 = vshrl.u32 %v14997_v16, 16  ;;  %v21645_v3 = vshrl.u32 %v15002_v43, 16  ;;  %2110 = vst [vmem:[#allocation2 + $0x1c] sm:$0xf] %v1490_v17 }
 0x1e1   :  { %v15435_v48 = vrot.slane %v21641_v50, 7  ;;  %v21646_v34 = vshll.u32 %v14982_v49, 16  ;;  %v21647_v25 = vshll.u32 %v14987_v33, 16  ;;  %2117 = vst [vmem:[#allocation2 + $0x28] sm:$0xf] %v1507_v38  ;;  %v21648_v31 = vshll.u32 %v14992_v27, 16 }
 0x1e2   :  { %v1546_v53 = vrot.slane %v21644_v58, 7  ;;  %v15449_v30 = vrot.slane %v21645_v3, 7  ;;  %v1533_v40 = vrot.slane %v1529_v8, 4  ;;  %v21649_v17 = vshll.u32 %v14997_v16, 16 }
 0x1e3   :  { %v1523_v50 = vor.u32 %v21646_v34, %v15435_v48  ;;  %v15457_v5 = vor.u32 %v21647_v25, %v1529_v8  ;;  %v1540_v58 = vor.u32 %v21648_v31, %v15443_v56  ;;  %v21650_v33 = vshll.u32 %v15002_v43, 16 }
 0x1e4   :  { %v15465_v61 = vor.u32 %v21649_v17, %v1546_v53  ;;  %v1550_v49 = vrot.slane %v1546_v53, 4  ;;  %v21651_v38 = vshrl.u32 %v15007_v10, 16  ;;  %v21652_v16 = vshrl.u32 %v15012_v13, 16 }
 0x1e5   :  { %v1524_v34 = vsel %vm14468_vm6, %v1516_v1, %v1523_v50  ;;  %v1557_v25 = vor.u32 %v21650_v33, %v15449_v30  ;;  %v1541_v31 = vsel %vm14468_vm6, %v1533_v40, %v1540_v58  ;;  %v21653_v53 = vshrl.u32 %v15017_v22, 16 }
 0x1e6   :  { %v1563_v27 = vrot.slane %v21651_v38, 7  ;;  %v15479_v17 = vrot.slane %v21652_v16, 7  ;;  %v21654_v1 = vshrl.u32 %v15022_v44, 16  ;;  %2124 = vst [vmem:[#allocation2 + $0x34] sm:$0xf] %v1524_v34  ;;  %v21655_v33 = vshll.u32 %v15007_v10, 16 }
 0x1e7   :  { %v1580_v3 = vrot.slane %v21653_v53, 7  ;;  %v1558_v43 = vsel %vm14468_vm6, %v1550_v49, %v1557_v25  ;;  %v21656_v58 = vshrl.u32 %v15027_v62, 16  ;;  %2131 = vst [vmem:[#allocation2 + $0x40] sm:$0xf] %v1541_v31  ;;  %v21657_v53 = vshll.u32 %v15012_v13, 16 }
 0x1e8   :  { %v15485_v50 = vrot.slane %v21654_v1, 7  ;;  %v15491_v38 = vor.u32 %v21655_v33, %v1563_v27  ;;  %v1567_v40 = vrot.slane %v1563_v27, 4  ;;  %v21658_v34 = vshll.u32 %v15017_v22, 16  ;;  %2138 = vst [vmem:[#allocation2 + $0x4c] sm:$0xf] %v1558_v43 }
 0x1e9   :  { %v1597_v16 = vrot.slane %v21656_v58, 7  ;;  %v1574_v8 = vor.u32 %v21657_v53, %v15479_v17  ;;  %v1584_v49 = vrot.slane %v1580_v3, 4  ;;  %v21659_v10 = vshll.u32 %v15022_v44, 16 }
 0x1ea   :  { %v15501_v18 = vor.u32 %v21658_v34, %v1580_v3  ;;  %v21660_v31 = vshll.u32 %v15027_v62, 16  ;;  %v21662_v22 = vshrl.u32 %v15032_v45, 16  ;;  %v21663_v3 = vshrl.u32 %v15037_v57, 16 }
 0x1eb   :  { %v1591_v25 = vor.u32 %v21659_v10, %v15485_v50  ;;  %v1601_v13 = vrot.slane %v1597_v16, 4  ;;  %v1575_v58 = vsel %vm14468_vm6, %v1567_v40, %v1574_v8  ;;  %v21664_v44 = vshrl.u32 %v15042_v0, 16 }
 0x1ec   :  { %v15509_v33 = vor.u32 %v21660_v31, %v1597_v16  ;;  %v15515_v53 = vrot.slane %v21662_v22, 7  ;;  %v1614_v43 = vrot.slane %v21663_v3, 7  ;;  %v21665_v10 = vshrl.u32 %v15047_v2, 16  ;;  %2145 = vst [vmem:[#allocation2 + $0x58] sm:$0xf] %v1575_v58 }
 0x1ed   :  { %v15521_v34 = vrot.slane %v21664_v44, 7  ;;  %v1592_v62 = vsel %vm14468_vm6, %v1584_v49, %v1591_v25  ;;  %v21666_v31 = vshrl.u32 %v15052_v28, 16  ;;  %v21667_v40 = vshrl.u32 %v15057_v47, 16  ;;  %v21704_v44 = vld [vmem:[#allocation10_spill] sm:$0xff] }
 0x1ee   :  { %21661 = vst [vmem:[#allocation21_spill] sm:$0xff] %v15509_v33  ;;  %v1631_v16 = vrot.slane %v21665_v10, 7  ;;  %v21668_v3 = vshll.u32 %v15032_v45, 16  ;;  %v21669_v1 = vshll.u32 %v15037_v57, 16  ;;  %v1618_v25 = vrot.slane %v1614_v43, 4 }
 0x1ef   :  { %v15529_v8 = vrot.slane %v21666_v31, 7  ;;  %v1648_v22 = vrot.slane %v21667_v40, 7  ;;  %2152 = vst [vmem:[#allocation2 + $0x64] sm:$0xf] %v1592_v62  ;;  %v21670_v10 = vshll.u32 %v15042_v0, 16  ;;  %v21671_v58 = vshll.u32 %v15047_v2, 16 }
 0x1f0   :  { %v1608_v27 = vor.u32 %v21668_v3, %v15515_v53  ;;  %v15539_v49 = vor.u32 %v21669_v1, %v1614_v43  ;;  %v1635_v45 = vrot.slane %v1631_v16, 4  ;;  %v21672_v57 = vshll.u32 %v15052_v28, 16 }
 0x1f1   :  { %v1625_v31 = vor.u32 %v21670_v10, %v15521_v34  ;;  %v15547_v40 = vor.u32 %v21671_v58, %v1631_v16  ;;  %v21673_v62 = vshll.u32 %v15057_v47, 16  ;;  %v1652_v2 = vrot.slane %v1648_v22, 4 }
 0x1f2   :  { %v1609_v3 = vsel %vm14468_vm6, %v1601_v13, %v1608_v27  ;;  %v1642_v1 = vor.u32 %v21672_v57, %v15529_v8  ;;  %v21674_v58 = vshrl.u32 %v15062_v42, 16  ;;  %v21675_v27 = vshrl.u32 %v15067_v46, 16 }
 0x1f3   :  { %v15557_v0 = vor.u32 %v21673_v62, %v1648_v22  ;;  %v1626_v10 = vsel %vm14468_vm6, %v1618_v25, %v1625_v31  ;;  %2159 = vst [vmem:[#allocation2 + $0x70] sm:$0xf] %v1609_v3  ;;  %v21676_v57 = vshrl.u32 %v15072_v55, 16  ;;  %v21677_v62 = vshrl.u32 %v15077_v26, 16 }
 0x1f4   :  { %v15563_v16 = vrot.slane %v21674_v58, 7  ;;  %v1665_v13 = vrot.slane %v21675_v27, 7  ;;  %v1643_v28 = vsel %vm14468_vm6, %v1635_v45, %v1642_v1  ;;  %v21678_v22 = vshrl.u32 %v15082_v63, 16  ;;  %2166 = vst [vmem:[#allocation2 + $0x7c] sm:$0xf] %v1626_v10 }
 0x1f5   :  { %v15571_v47 = vrot.slane %v21676_v57, 7  ;;  %v1682_v43 = vrot.slane %v21677_v62, 7  ;;  %v21680_v31 = vshll.u32 %v15062_v42, 16  ;;  %v21681_v45 = vshll.u32 %v15067_v46, 16  ;;  %2173 = vst [vmem:[#allocation2 + $0x88] sm:$0xf] %v1643_v28 }
 0x1f6   :  { %v15577_v25 = vrot.slane %v21678_v22, 7  ;;  %v1669_v27 = vrot.slane %v1665_v13, 4  ;;  %v21682_v57 = vshll.u32 %v15072_v55, 16  ;;  %v21683_v10 = vshll.u32 %v15077_v26, 16 }
 0x1f7   :  { %v1659_v58 = vor.u32 %v21680_v31, %v15563_v16  ;;  %v15585_v1 = vor.u32 %v21681_v45, %v1665_v13  ;;  %v1686_v42 = vrot.slane %v1682_v43, 4  ;;  %v21684_v46 = vshll.u32 %v15082_v63, 16 }
 0x1f8   :  { %21679 = vst [vmem:[#allocation26_spill] sm:$0xff] %v15577_v25  ;;  %v1676_v62 = vor.u32 %v21682_v57, %v15571_v47  ;;  %v15593_v33 = vor.u32 %v21683_v10, %v1682_v43  ;;  %v21685_v28 = vshrl.u32 %v15087_v51, 16  ;;  %v21686_v26 = vshrl.u32 %v15092_v15, 16 }
 0x1f9   :  { %v1660_v31 = vsel %vm14468_vm6, %v1652_v2, %v1659_v58  ;;  %v1693_v45 = vor.u32 %v21684_v46, %v15577_v25  ;;  %v21688_v43 = vshrl.u32 %v15097_v21, 16  ;;  %v21689_v2 = vshrl.u32 %v15102_v36, 16 }
 0x1fa   :  { %v1699_v55 = vrot.slane %v21685_v28, 7  ;;  %v1677_v57 = vsel %vm14468_vm6, %v1669_v27, %v1676_v62  ;;  %v15607_v10 = vrot.slane %v21686_v26, 7  ;;  %2180 = vst [vmem:[#allocation2 + $0x94] sm:$0xf] %v1660_v31  ;;  %v21691_v46 = vshll.u32 %v15087_v51, 16 }
 0x1fb   :  { %v1716_v22 = vrot.slane %v21688_v43, 7  ;;  %v15613_v58 = vrot.slane %v21689_v2, 7  ;;  %v1694_v63 = vsel %vm14468_vm6, %v1686_v42, %v1693_v45  ;;  %v21693_v62 = vshrl.u32 %v15107_v23, 16  ;;  %2187 = vst [vmem:[#allocation2 + $0xa0] sm:$0xf] %v1677_v57 }
 0x1fc   :  { %21687 = vst [vmem:[#allocation23_spill] sm:$0xff] %v15607_v10  ;;  %v15619_v28 = vor.u32 %v21691_v46, %v1699_v55  ;;  %v1703_v27 = vrot.slane %v1699_v55, 4  ;;  %v21694_v43 = vshll.u32 %v15092_v15, 16  ;;  %v21695_v31 = vshll.u32 %v15097_v21, 16  ;;  %2194 = vst [vmem:[#allocation2 + $0xac] sm:$0xf] %v1694_v63 }
 0x1fd   :  { %21690 = vst [vmem:[#allocation25_spill] sm:$0xff] %v15613_v58  ;;  %v1733_v26 = vrot.slane %v21693_v62, 7  ;;  %v1720_v42 = vrot.slane %v1716_v22, 4  ;;  %v21697_v51 = vshll.u32 %v15102_v36, 16  ;;  %v21698_v57 = vshll.u32 %v15107_v23, 16 }
 0x1fe   :  { %21692 = vst [vmem:[#allocation27_spill] sm:$0xff] %v15619_v28  ;;  %v1710_v13 = vor.u32 %v21694_v43, %v15607_v10  ;;  %v15629_v3 = vor.u32 %v21695_v31, %v1716_v22  ;;  %v21700_v43 = vld [vmem:[#allocation5_spill] sm:$0xff]  ;;  %v21702_v22 = vld [vmem:[#allocation8_spill] sm:$0xff]  ;;  %v21705_v36 = vshrl.u32 %v21704_v44, 16 }
 0x1ff   :  { %v1727_v45 = vor.u32 %v21697_v51, %v15613_v58  ;;  %v15637_v46 = vor.u32 %v21698_v57, %v1733_v26  ;;  %v1737_v15 = vrot.slane %v1733_v26, 4  ;;  %v21701_v21 = vshrl.u32 %v21700_v43, 16  ;;  %v21707_v57 = vld [vmem:[#allocation7_spill] sm:$0xff] }
 0x200   :  { %21696 = vst [vmem:[#allocation6_spill] sm:$0xff] %v15629_v3  ;;  %v1711_v62 = vsel %vm14468_vm6, %v1703_v27, %v1710_v13  ;;  %v21703_v63 = vshrl.u32 %v21702_v22, 16  ;;  %v15649_v51 = vrot.slane %v21705_v36, 7  ;;  %v21708_v55 = vshrl.u32 %v21707_v57, 16  ;;  %v21712_v27 = vld [vmem:[#allocation29_spill] sm:$0xff] }
 0x201   :  { %21699 = vst [vmem:[#allocation12_spill] sm:$0xff] %v15637_v46  ;;  %v15643_v31 = vrot.slane %v21701_v21, 7  ;;  %v1728_v23 = vsel %vm14468_vm6, %v1720_v42, %v1727_v45  ;;  %v21709_v46 = vld [vmem:[#allocation9_spill] sm:$0xff]  ;;  %v21713_v21 = vshrl.u32 %v21712_v27, 16  ;;  %2201 = vst [vmem:[#allocation2 + $0xb8] sm:$0xf] %v1711_v62 }
 0x202   :  { %v1750_v2 = vrot.slane %v21703_v63, 7  ;;  %21706 = vst [vmem:[#allocation30_spill] sm:$0xff] %v15649_v51  ;;  %v1767_v26 = vrot.slane %v21708_v55, 7  ;;  %v21710_v58 = vshrl.u32 %v21709_v46, 16  ;;  %v21714_v63 = vshll.u32 %v21700_v43, 16 }
 0x203   :  { %v1784_v3 = vrot.slane %v21713_v21, 7  ;;  %v21715_v28 = vshll.u32 %v21702_v22, 16  ;;  %2208 = vst [vmem:[#allocation2 + $0xc4] sm:$0xf] %v1728_v23  ;;  %v21718_v62 = vshll.u32 %v21707_v57, 16  ;;  %v21721_v23 = vshll.u32 %v21712_v27, 16 }
 0x204   :  { %v15657_v13 = vrot.slane %v21710_v58, 7  ;;  %v1744_v10 = vor.u32 %v21714_v63, %v15643_v31  ;;  %v1754_v45 = vrot.slane %v1750_v2, 4  ;;  %v21717_v58 = vshll.u32 %v21704_v44, 16 }
 0x205   :  { %v15667_v42 = vor.u32 %v21715_v28, %v1750_v2  ;;  %v15675_v21 = vor.u32 %v21718_v62, %v1767_v26  ;;  %v1771_v43 = vrot.slane %v1767_v26, 4  ;;  %v21720_v28 = vshll.u32 %v21709_v46, 16  ;;  %v21723_v62 = vld [vmem:[#allocation24_spill] sm:$0xff] }
 0x206   :  { %21711 = vst [vmem:[#allocation5_spill] sm:$0xff] %v15657_v13  ;;  %v1761_v55 = vor.u32 %v21717_v58, %v15649_v51  ;;  %v1745_v63 = vsel %vm14468_vm6, %v1737_v15, %v1744_v10  ;;  %v15685_v44 = vor.u32 %v21721_v23, %v1784_v3  ;;  %v1788_v57 = vrot.slane %v1784_v3, 4  ;;  %v15882_v51 = vld [vmem:[#allocation2 + $0x80] sm:$0x1] }
 0x207   :  { %21716 = vst [vmem:[#allocation8_spill] sm:$0xff] %v15667_v42  ;;  %21719 = vst [vmem:[#allocation10_spill] sm:$0xff] %v15675_v21  ;;  %v1778_v22 = vor.u32 %v21720_v28, %v15657_v13  ;;  %v21724_v25 = vshrl.u32 %v21723_v62, 16  ;;  %v21726_v10 = vshrl.u32 %v21618_v7, 16  ;;  %v21727_v28 = vshrl.u32 %v21619_v54, 16 }
 0x208   :  { %21722 = vst [vmem:[#allocation7_spill] sm:$0xff] %v15685_v44  ;;  %v1762_v58 = vsel %vm14468_vm6, %v1754_v45, %v1761_v55  ;;  %2215 = vst [vmem:[#allocation2 + $0xe8] sm:$0xf] %v1745_v63  ;;  %v21729_v23 = vshrl.u32 %v21620_v37, 16  ;;  %v21730_v3 = vshrl.u32 %v21621_v9, 16 }
 0x209   :  { %v15691_v26 = vrot.slane %v21724_v25, 7  ;;  %v1801_v15 = vrot.slane %v21726_v10, 7  ;;  %v1779_v46 = vsel %vm14468_vm6, %v1771_v43, %v1778_v22  ;;  %v15699_v27 = vrot.slane %v21727_v28, 7  ;;  %2222 = vst [vmem:[#allocation2 + $0xf4] sm:$0xf] %v1762_v58 }
 0x20a   :  { %v1818_v2 = vrot.slane %v21729_v23, 7  ;;  %v15705_v45 = vrot.slane %v21730_v3, 7  ;;  %v21732_v25 = vshll.u32 %v21723_v62, 16  ;;  %v21733_v43 = vshll.u32 %v21618_v7, 16  ;;  %2229 = vst [vmem:[#allocation2 + $0x100] sm:$0xf] %v1779_v46 }
 0x20b   :  { %21725 = vst [vmem:[#allocation9_spill] sm:$0xff] %v15691_v26  ;;  %21728 = vst [vmem:[#allocation29_spill] sm:$0xff] %v15699_v27  ;;  %v1805_v10 = vrot.slane %v1801_v15, 4  ;;  %v21735_v28 = vshll.u32 %v21619_v54, 16  ;;  %v21736_v58 = vshll.u32 %v21620_v37, 16  ;;  %v21738_v7 = vshll.u32 %v21621_v9, 16 }
 0x20c   :  { %21731 = vst [vmem:[#allocation24_spill] sm:$0xff] %v15705_v45  ;;  %v1795_v55 = vor.u32 %v21732_v25, %v15691_v26  ;;  %v15713_v22 = vor.u32 %v21733_v43, %v1801_v15  ;;  %v1822_v62 = vrot.slane %v1818_v2, 4  ;;  %v21739_v46 = vshrl.u32 %v21622_v32, 16  ;;  %v21796_v26 = vld [vmem:[#allocation22_spill] sm:$0xff]  ;;  %v15878_v13 = vld [vmem:[#allocation2 + $0x78] sm:$0xf] }
 0x20d   :  { %v1812_v23 = vor.u32 %v21735_v28, %v15699_v27  ;;  %v15721_v36 = vor.u32 %v21736_v58, %v1818_v2  ;;  %v1829_v43 = vor.u32 %v21738_v7, %v15705_v45  ;;  %v21740_v37 = vshrl.u32 %v21623_v19, 16  ;;  %v2118_v45 = vld [vmem:[#allocation2 + $0x2c] sm:$0x1] }
 0x20e   :  { %21734 = vst [vmem:[#allocation31_spill] sm:$0xff] %v15713_v22  ;;  %v1796_v25 = vsel %vm14468_vm6, %v1788_v57, %v1795_v55  ;;  %v1835_v54 = vrot.slane %v21739_v46, 7  ;;  %v21742_v2 = vshrl.u32 %v15180_v24, 16  ;;  %v21743_v57 = vshrl.u32 %v15185_v41, 16  ;;  %v15880_v21 = vld [vmem:[#allocation2 + $0x6c] sm:$0xf] }
 0x20f   :  { %21737 = vst [vmem:[#allocation32_spill] sm:$0xff] %v15721_v36  ;;  %v1813_v28 = vsel %vm14468_vm6, %v1805_v10, %v1812_v23  ;;  %v15735_v58 = vrot.slane %v21740_v37, 7  ;;  %2236 = vst [vmem:[#allocation2 + $0x10c] sm:$0xf] %v1796_v25  ;;  %v1830_v9 = vsel %vm14468_vm6, %v1822_v62, %v1829_v43  ;;  %v21745_v7 = vshll.u32 %v21622_v32, 16 }
 0x210   :  { %v1852_v3 = vrot.slane %v21742_v2, 7  ;;  %v15741_v55 = vrot.slane %v21743_v57, 7  ;;  %v1839_v10 = vrot.slane %v1835_v54, 4  ;;  %v21747_v23 = vshrl.u32 %v15190_v60, 16  ;;  %2243 = vst [vmem:[#allocation2 + $0x118] sm:$0xf] %v1813_v28 }
 0x211   :  { %21741 = vst [vmem:[#allocation33_spill] sm:$0xff] %v15735_v58  ;;  %v15747_v46 = vor.u32 %v21745_v7, %v1835_v54  ;;  %v21748_v2 = vshll.u32 %v21623_v19, 16  ;;  %v21749_v25 = vshll.u32 %v15180_v24, 16  ;;  %2250 = vst [vmem:[#allocation2 + $0x124] sm:$0xf] %v1830_v9  ;;  %v21751_v32 = vshll.u32 %v15185_v41, 16 }
 0x212   :  { %21744 = vst [vmem:[#allocation34_spill] sm:$0xff] %v15741_v55  ;;  %v1869_v37 = vrot.slane %v21747_v23, 7  ;;  %v1856_v62 = vrot.slane %v1852_v3, 4  ;;  %v21752_v28 = vshll.u32 %v15190_v60, 16  ;;  %v21754_v24 = vshrl.u32 %v15195_v29, 16 }
 0x213   :  { %21746 = vst [vmem:[#allocation35_spill] sm:$0xff] %v15747_v46  ;;  %v1846_v15 = vor.u32 %v21748_v2, %v15735_v58  ;;  %v15757_v63 = vor.u32 %v21749_v25, %v1852_v3  ;;  %v1863_v43 = vor.u32 %v21751_v32, %v15741_v55  ;;  %v21756_v3 = vshrl.u32 %v15200_v14, 16  ;;  %v2125_v46 = vld [vmem:[#allocation2 + $0x38] sm:$0x1]  ;;  %v15901_v42 = vld [vmem:[#allocation2 + $0x8c] sm:$0x1] }
 0x214   :  { %v15765_v7 = vor.u32 %v21752_v28, %v1869_v37  ;;  %v1873_v19 = vrot.slane %v1869_v37, 4  ;;  %v15771_v2 = vrot.slane %v21754_v24, 7  ;;  %v21757_v41 = vshrl.u32 %v15205_v35, 16  ;;  %v21760_v28 = vld [vmem:[#allocation14_spill] sm:$0xff] }
 0x215   :  { %21750 = vst [vmem:[#allocation36_spill] sm:$0xff] %v15757_v63  ;;  %v1847_v23 = vsel %vm14468_vm6, %v1839_v10, %v1846_v15  ;;  %v1886_v9 = vrot.slane %v21756_v3, 7  ;;  %v1864_v60 = vsel %vm14468_vm6, %v1856_v62, %v1863_v43  ;;  %v21759_v32 = vshrl.u32 %v15210_v12, 16  ;;  %v21763_v10 = vld [vmem:[#allocation11_spill] sm:$0xff] }
 0x216   :  { %21753 = vst [vmem:[#allocation37_spill] sm:$0xff] %v15765_v7  ;;  %21755 = vst [vmem:[#allocation38_spill] sm:$0xff] %v15771_v2  ;;  %v15777_v25 = vrot.slane %v21757_v41, 7  ;;  %v21761_v54 = vshrl.u32 %v21760_v28, 16  ;;  %v21764_v24 = vshrl.u32 %v21763_v10, 16  ;;  %v21765_v3 = vshll.u32 %v15195_v29, 16 }
 0x217   :  { %v1903_v37 = vrot.slane %v21759_v32, 7  ;;  %2257 = vst [vmem:[#allocation2 + $0x130] sm:$0xf] %v1847_v23  ;;  %v21766_v55 = vshll.u32 %v15200_v14, 16  ;;  %v1890_v43 = vrot.slane %v1886_v9, 4  ;;  %v21769_v23 = vshll.u32 %v15210_v12, 16 }
 0x218   :  { %21758 = vst [vmem:[#allocation39_spill] sm:$0xff] %v15777_v25  ;;  %v15785_v15 = vrot.slane %v21761_v54, 7  ;;  %v1920_v57 = vrot.slane %v21764_v24, 7  ;;  %v1880_v7 = vor.u32 %v21765_v3, %v15771_v2  ;;  %2264 = vst [vmem:[#allocation2 + $0x13c] sm:$0xf] %v1864_v60  ;;  %v21768_v54 = vshll.u32 %v15205_v35, 16 }
 0x219   :  { %v15795_v62 = vor.u32 %v21766_v55, %v1886_v9  ;;  %v15803_v24 = vor.u32 %v21769_v23, %v1903_v37  ;;  %v1907_v29 = vrot.slane %v1903_v37, 4  ;;  %v21771_v14 = vshll.u32 %v21760_v28, 16  ;;  %v2104_v63 = vld [vmem:[#allocation2 + $0x14] sm:$0x1]  ;;  %v21774_v37 = vld [vmem:[#allocation13_spill] sm:$0xff] }
 0x21a   :  { %21762 = vst [vmem:[#allocation14_spill] sm:$0xff] %v15785_v15  ;;  %v1897_v32 = vor.u32 %v21768_v54, %v15777_v25  ;;  %v1881_v3 = vsel %vm14468_vm6, %v1873_v19, %v1880_v7  ;;  %v21772_v60 = vshll.u32 %v21763_v10, 16  ;;  %v2100_v54 = vld [vmem:[#allocation2 + $0xc] sm:$0xf]  ;;  %v1924_v23 = vrot.slane %v1920_v57, 4  ;;  %v21777_v7 = vld [vmem:[#allocation16_spill] sm:$0xff] }
 0x21b   :  { %21767 = vst [vmem:[#allocation11_spill] sm:$0xff] %v15795_v62  ;;  %21770 = vst [vmem:[#allocation40_spill] sm:$0xff] %v15803_v24  ;;  %v1914_v55 = vor.u32 %v21771_v14, %v15785_v15  ;;  %v21775_v41 = vshrl.u32 %v21774_v37, 16  ;;  %v21778_v19 = vshrl.u32 %v21777_v7, 16  ;;  %v2107_v14 = vld [vmem:[#allocation2 + $0x18] sm:$0xf] }
 0x21c   :  { %v15813_v35 = vor.u32 %v21772_v60, %v1920_v57  ;;  %v1898_v12 = vsel %vm14468_vm6, %v1890_v43, %v1897_v32  ;;  %2271 = vst [vmem:[#allocation2 + $0x148] sm:$0xf] %v1881_v3  ;;  %v21779_v60 = vld [vmem:[#allocation18_spill] sm:$0xff]  ;;  %v21782_v15 = vld [vmem:[#allocation15_spill] sm:$0xff]  ;;  %v21784_v57 = vld [vmem:[#allocation17_spill] sm:$0xff]  ;;  %v21787_v3 = vshll.u32 %v21774_v37, 16 }
 0x21d   :  { %v15819_v24 = vrot.slane %v21775_v41, 7  ;;  %v1937_v28 = vrot.slane %v21778_v19, 7  ;;  %v1915_v10 = vsel %vm14468_vm6, %v1907_v29, %v1914_v55  ;;  %v21780_v9 = vshrl.u32 %v21779_v60, 16  ;;  %2278 = vst [vmem:[#allocation2 + $0x154] sm:$0xf] %v1898_v12 }
 0x21e   :  { %21773 = vst [vmem:[#allocation41_spill] sm:$0xff] %v15813_v35  ;;  %v21783_v25 = vshrl.u32 %v21782_v15, 16  ;;  %v21785_v32 = vshrl.u32 %v21784_v57, 16  ;;  %v2111_v41 = vld [vmem:[#allocation2 + $0x20] sm:$0x1]  ;;  %v21788_v55 = vshll.u32 %v21777_v7, 16 }
 0x21f   :  { %21776 = vst [vmem:[#allocation13_spill] sm:$0xff] %v15819_v24  ;;  %v15827_v35 = vrot.slane %v21780_v9, 7  ;;  %v2114_v2 = vld [vmem:[#allocation2 + $0x24] sm:$0xf]  ;;  %v1931_v19 = vor.u32 %v21787_v3, %v15819_v24  ;;  %v1941_v58 = vrot.slane %v1937_v28, 4  ;;  %v21790_v12 = vshll.u32 %v21779_v60, 16 }
 0x220   :  { %v1954_v43 = vrot.slane %v21783_v25, 7  ;;  %v15833_v62 = vrot.slane %v21785_v32, 7  ;;  %v15841_v9 = vor.u32 %v21788_v55, %v1937_v28  ;;  %2285 = vst [vmem:[#allocation2 + $0x160] sm:$0xf] %v1915_v10  ;;  %v2121_v25 = vld [vmem:[#allocation2 + $0x30] sm:$0xf] }
 0x221   :  { %21781 = vst [vmem:[#allocation16_spill] sm:$0xff] %v15827_v35  ;;  %v2128_v32 = vld [vmem:[#allocation2 + $0x3c] sm:$0xf]  ;;  %v1948_v36 = vor.u32 %v21790_v12, %v15827_v35  ;;  %v21791_v37 = vshll.u32 %v21782_v15, 16  ;;  %v15851_v7 = vld [vmem:[#allocation2 + $0x48] sm:$0xf]  ;;  %v1932_v10 = vsel %vm14468_vm6, %v1924_v23, %v1931_v19 }
 0x222   :  { %21786 = vst [vmem:[#allocation18_spill] sm:$0xff] %v15833_v62  ;;  %21789 = vst [vmem:[#allocation15_spill] sm:$0xff] %v15841_v9  ;;  %v1958_v29 = vrot.slane %v1954_v43, 4  ;;  %v2139_v55 = vld [vmem:[#allocation2 + $0x50] sm:$0x1]  ;;  %v21793_v9 = vshll.u32 %v21784_v57, 16 }
 0x223   :  { %v15849_v3 = vor.u32 %v21791_v37, %v1954_v43  ;;  %v2132_v28 = vld [vmem:[#allocation2 + $0x44] sm:$0x1]  ;;  %v21794_v12 = vld [vmem:[#allocation20_spill] sm:$0xff]  ;;  %v15861_v15 = vld [vmem:[#allocation2 + $0x60] sm:$0xf]  ;;  %v1949_v22 = vsel %vm14468_vm6, %v1941_v58, %v1948_v36  ;;  %v21797_v23 = vshrl.u32 %v21796_v26, 16 }
 0x224   :  { %v1965_v24 = vor.u32 %v21793_v9, %v15833_v62  ;;  %v21795_v27 = vshrl.u32 %v21794_v12, 16  ;;  %v15863_v37 = vld [vmem:[#allocation2 + $0x54] sm:$0xf]  ;;  %v2153_v43 = vld [vmem:[#allocation2 + $0x68] sm:$0x1]  ;;  %v21800_v62 = vrot.slane %v15385_v59, 4 }
 0x225   :  { %21792 = vst [vmem:[#allocation17_spill] sm:$0xff] %v15849_v3  ;;  %v2146_v3 = vld [vmem:[#allocation2 + $0x5c] sm:$0x1]  ;;  %v15869_v19 = vrot.slane %v21797_v23, 7  ;;  %v21798_v57 = vld [vmem:[#allocation19_spill] sm:$0xff]  ;;  %v21802_v23 = vshll.u32 %v21794_v12, 16 }
 0x226   :  { %v1988_v35 = vrot.slane %v21795_v27, 7  ;;  %v2101_v60 = vsel %vm14919_vm8, %v21798_v57, %v2100_v54  ;;  %v2105_v44 = vsel %vm13803_vm2, %v21800_v62, %v2104_v63  ;;  %2292 = vst [vmem:[#allocation2 + $0x16c] sm:$0xf] %v1932_v10  ;;  %v15884_v36 = vld [vmem:[#allocation2 + $0x74] sm:$0x1]  ;;  %v1966_v58 = vsel %vm14468_vm6, %v1958_v29, %v1965_v24 }
 0x227   :  { %2102 = vst [vmem:[#allocation2 + $0xc] sm:$0xf] %v2101_v60  ;;  %2106 = vst [vmem:[#allocation2 + $0x14] sm:$0x1] %v2105_v44  ;;  %v2108_v63 = vsel %vm14919_vm8, %v15411_v39, %v2107_v14  ;;  %v15895_v62 = vld [vmem:[#allocation2 + $0x90] sm:$0xf] }
 0x228   :  { %v15890_v54 = vor.u32 %v21802_v23, %v1988_v35  ;;  %v1992_v59 = vrot.slane %v1988_v35, 4  ;;  %2299 = vst [vmem:[#allocation2 + $0x178] sm:$0xf] %v1949_v22  ;;  %v15897_v10 = vld [vmem:[#allocation2 + $0x84] sm:$0xf]  ;;  %v21803_v24 = vshll.u32 %v21796_v26, 16  ;;  %v2115_v22 = vsel %vm14919_vm8, %v15419_v11, %v2114_v2 }
 0x229   :  { %v15899_v57 = vld [vmem:[#allocation2 + $0x98] sm:$0x1]  ;;  %v2001_v35 = vrot.slane %v15869_v19, 4  ;;  %2109 = vst [vmem:[#allocation2 + $0x18] sm:$0xf] %v2108_v63  ;;  %v21804_v44 = vrot.slane %v15391_v4, 4  ;;  %v2122_v11 = vsel %vm14919_vm8, %v15429_v52, %v2121_v25  ;;  %v2129_v23 = vsel %vm14919_vm8, %v15457_v5, %v2128_v32 }
 0x22a   :  { %v1999_v29 = vor.u32 %v21803_v24, %v15869_v19  ;;  %2306 = vst [vmem:[#allocation2 + $0x184] sm:$0xf] %v1966_v58  ;;  %v15914_v14 = vld [vmem:[#allocation2 + $0xa8] sm:$0xf]  ;;  %v15916_v60 = vld [vmem:[#allocation2 + $0x9c] sm:$0xf] }
 0x22b   :  { %v2112_v39 = vsel %vm13803_vm2, %v21804_v44, %v2111_v41  ;;  %v15918_v12 = vld [vmem:[#allocation2 + $0xb0] sm:$0x1]  ;;  %v15920_v26 = vld [vmem:[#allocation2 + $0xa4] sm:$0x1]  ;;  %2116 = vst [vmem:[#allocation2 + $0x24] sm:$0xf] %v2115_v22  ;;  %v2164_v22 = vsel %vm14919_vm8, %v15539_v49, %v15878_v13  ;;  %v2171_v49 = vsel %vm14919_vm8, %v15547_v40, %v15897_v10  ;;  %v2178_v13 = vsel %vm14919_vm8, %v15557_v0, %v15895_v62 }
 0x22c   :  { %2113 = vst [vmem:[#allocation2 + $0x20] sm:$0x1] %v2112_v39  ;;  %v21805_v4 = vrot.slane %v15401_v6, 4  ;;  %v21806_v2 = vrot.slane %v15435_v48, 4  ;;  %v15936_v63 = vld [vmem:[#allocation2 + $0xc0] sm:$0xf]  ;;  %v2000_v52 = vsel %vm14468_vm6, %v1992_v59, %v1999_v29  ;;  %v2185_v0 = vsel %vm14919_vm8, %v15585_v1, %v15916_v60 }
 0x22d   :  { %v15938_v24 = vld [vmem:[#allocation2 + $0xb4] sm:$0xf]  ;;  %v15940_v6 = vld [vmem:[#allocation2 + $0xc8] sm:$0x1]  ;;  %2123 = vst [vmem:[#allocation2 + $0x30] sm:$0xf] %v2122_v11 }
 0x22e   :  { %v2119_v41 = vsel %vm13803_vm2, %v21805_v4, %v2118_v45  ;;  %v2126_v58 = vsel %vm13803_vm2, %v21806_v2, %v2125_v46  ;;  %v15942_v45 = vld [vmem:[#allocation2 + $0xbc] sm:$0x1]  ;;  %2130 = vst [vmem:[#allocation2 + $0x3c] sm:$0xf] %v2129_v23  ;;  %v21807_v48 = vrot.slane %v15443_v56, 4  ;;  %v2136_v46 = vsel %vm14919_vm8, %v15465_v61, %v15851_v7  ;;  %v21817_v23 = vld [vmem:[#allocation26_spill] sm:$0xff] }
 0x22f   :  { %2120 = vst [vmem:[#allocation2 + $0x2c] sm:$0x1] %v2119_v41  ;;  %2127 = vst [vmem:[#allocation2 + $0x38] sm:$0x1] %v2126_v58  ;;  %v21808_v25 = vrot.slane %v15449_v30, 4  ;;  %v2143_v61 = vsel %vm14919_vm8, %v15491_v38, %v15863_v37  ;;  %v21809_v30 = vrot.slane %v15479_v17, 4 }
 0x230   :  { %v2133_v5 = vsel %vm13803_vm2, %v21807_v48, %v2132_v28  ;;  %v15958_v32 = vld [vmem:[#allocation2 + $0xf0] sm:$0xf]  ;;  %v15960_v59 = vld [vmem:[#allocation2 + $0xe4] sm:$0xf]  ;;  %v15962_v29 = vld [vmem:[#allocation2 + $0xf8] sm:$0x1] }
 0x231   :  { %v2140_v20 = vsel %vm13803_vm2, %v21808_v25, %v2139_v55  ;;  %v15964_v56 = vld [vmem:[#allocation2 + $0xec] sm:$0x1]  ;;  %2134 = vst [vmem:[#allocation2 + $0x44] sm:$0x1] %v2133_v5  ;;  %2137 = vst [vmem:[#allocation2 + $0x48] sm:$0xf] %v2136_v46  ;;  %v2147_v7 = vsel %vm13803_vm2, %v21809_v30, %v2146_v3  ;;  %v2150_v55 = vsel %vm14919_vm8, %v15501_v18, %v15861_v15 }
 0x232   :  { %2141 = vst [vmem:[#allocation2 + $0x50] sm:$0x1] %v2140_v20  ;;  %v21810_v28 = vrot.slane %v15485_v50, 4  ;;  %2320 = vst [vmem:[#allocation2 + $0x19c] sm:$0xf] %v2000_v52  ;;  %v15985_v38 = vld [vmem:[%s21257_s4 + $0xf8] sm:$0xff]  }
 0x233   :  { %v15987_v17 = vld [vmem:[#allocation2 + $0x108] sm:$0xf]  ;;  %v15989_v37 = vld [vmem:[#allocation2 + $0xfc] sm:$0xf]  ;;  %v15991_v3 = vld [vmem:[#allocation2 + $0x110] sm:$0x1]  ;;  %12873 = vmatprep.subr.bf16.mxu0 %v15985_v38 }
 0x234   :  { %v2154_v44 = vsel %vm13803_vm2, %v21810_v28, %v2153_v43  ;;  %v15993_v39 = vld [vmem:[#allocation2 + $0x104] sm:$0x1]  ;;  %2144 = vst [vmem:[#allocation2 + $0x54] sm:$0xf] %v2143_v61  ;;  %2148 = vst [vmem:[#allocation2 + $0x5c] sm:$0x1] %v2147_v7 }
 0x235   :  { %2151 = vst [vmem:[#allocation2 + $0x60] sm:$0xf] %v2150_v55  ;;  %2155 = vst [vmem:[#allocation2 + $0x68] sm:$0x1] %v2154_v44  ;;  %v21811_v18 = vld [vmem:[#allocation21_spill] sm:$0xff]  ;;  %v21812_v15 = vrot.slane %v15515_v53, 4 }
 0x236   :  { %v2157_v50 = vsel %vm14919_vm8, %v21811_v18, %v15880_v21  ;;  %v21813_v4 = vrot.slane %v15521_v34, 4  ;;  %v16013_v11 = vld [vmem:[#allocation2 + $0x120] sm:$0xf]  ;;  %v16015_v21 = vld [vmem:[#allocation2 + $0x114] sm:$0xf]  ;;  %v21814_v34 = vrot.slane %v15529_v8, 4 }
 0x237   :  { %v2161_v43 = vsel %vm13803_vm2, %v21812_v15, %v15884_v36  ;;  %v16017_v2 = vld [vmem:[#allocation2 + $0x128] sm:$0x1]  ;;  %v2244_v53 = vld [vmem:[#allocation2 + $0x11c] sm:$0x1]  ;;  %2158 = vst [vmem:[#allocation2 + $0x6c] sm:$0xf] %v2157_v50 }
 0x238   :  { %v2168_v41 = vsel %vm13803_vm2, %v21813_v4, %v15882_v51  ;;  %2162 = vst [vmem:[#allocation2 + $0x74] sm:$0x1] %v2161_v43  ;;  %2165 = vst [vmem:[#allocation2 + $0x78] sm:$0xf] %v2164_v22  ;;  %v2175_v51 = vsel %vm13803_vm2, %v21814_v34, %v15901_v42  ;;  %v21815_v36 = vrot.slane %v15563_v16, 4  ;;  %v21816_v16 = vrot.slane %v15571_v47, 4 }
 0x239   :  { %2169 = vst [vmem:[#allocation2 + $0x80] sm:$0x1] %v2168_v41  ;;  %v16038_v40 = vld [vmem:[#allocation2 + $0x138] sm:$0xf]  ;;  %v16040_v10 = vld [vmem:[#allocation2 + $0x12c] sm:$0xf] }
 0x23a   :  { %v2182_v58 = vsel %vm13803_vm2, %v21815_v36, %v15899_v57  ;;  %v16042_v8 = vld [vmem:[#allocation2 + $0x140] sm:$0x1]  ;;  %v2258_v42 = vld [vmem:[#allocation2 + $0x134] sm:$0x1]  ;;  %2172 = vst [vmem:[#allocation2 + $0x84] sm:$0xf] %v2171_v49  ;;  %v2189_v62 = vsel %vm13803_vm2, %v21816_v16, %v15920_v26  ;;  %v2192_v57 = vsel %vm14919_vm8, %v15593_v33, %v15914_v14 }
 0x23b   :  { %2176 = vst [vmem:[#allocation2 + $0x8c] sm:$0x1] %v2175_v51  ;;  %2179 = vst [vmem:[#allocation2 + $0x90] sm:$0xf] %v2178_v13  ;;  %v21818_v52 = vrot.slane %v21817_v23, 4  ;;  %v21819_v47 = vld [vmem:[#allocation27_spill] sm:$0xff] }
 0x23c   :  { %2183 = vst [vmem:[#allocation2 + $0x98] sm:$0x1] %v2182_v58  ;;  %v16062_v5 = vld [vmem:[#allocation2 + $0x150] sm:$0xf]  ;;  %2186 = vst [vmem:[#allocation2 + $0x9c] sm:$0xf] %v2185_v0  ;;  %v2199_v1 = vsel %vm14919_vm8, %v21819_v47, %v15938_v24 }
 0x23d   :  { %v2196_v48 = vsel %vm13803_vm2, %v21818_v52, %v15918_v12  ;;  %2190 = vst [vmem:[#allocation2 + $0xa4] sm:$0x1] %v2189_v62  ;;  %2193 = vst [vmem:[#allocation2 + $0xa8] sm:$0xf] %v2192_v57  ;;  %v21820_v60 = vld [vmem:[#allocation23_spill] sm:$0xff]  ;;  %v21822_v26 = vld [vmem:[#allocation6_spill] sm:$0xff] }
 0x23e   :  { %2197 = vst [vmem:[#allocation2 + $0xb0] sm:$0x1] %v2196_v48  ;;  %v21821_v33 = vrot.slane %v21820_v60, 4  ;;  %v2206_v12 = vsel %vm14919_vm8, %v21822_v26, %v15936_v63  ;;  %v21823_v46 = vld [vmem:[#allocation25_spill] sm:$0xff]  ;;  %v2279_v30 = vld [vmem:[#allocation2 + $0x158] sm:$0x1] }
 0x23f   :  { %v21824_v25 = vrot.slane %v21823_v46, 4  ;;  %v2268_v61 = vld [vmem:[#allocation2 + $0x144] sm:$0xf]  ;;  %v2272_v24 = vld [vmem:[#allocation2 + $0x14c] sm:$0x1]  ;;  %v21826_v63 = vrot.slane %v15643_v31, 4 }
 0x240   :  { %v2203_v14 = vsel %vm13803_vm2, %v21821_v33, %v15942_v45  ;;  %2200 = vst [vmem:[#allocation2 + $0xb4] sm:$0xf] %v2199_v1  ;;  %2207 = vst [vmem:[#allocation2 + $0xc0] sm:$0xf] %v2206_v12  ;;  %v21825_v45 = vld [vmem:[#allocation12_spill] sm:$0xff]  ;;  %v21828_v44 = vld [vmem:[#allocation30_spill] sm:$0xff] }
 0x241   :  { %v2210_v20 = vsel %vm13803_vm2, %v21824_v25, %v15940_v6  ;;  %2204 = vst [vmem:[#allocation2 + $0xbc] sm:$0x1] %v2203_v14  ;;  %v2213_v7 = vsel %vm14919_vm8, %v21825_v45, %v15960_v59  ;;  %v2217_v55 = vsel %vm13803_vm2, %v21826_v63, %v15964_v56  ;;  %v21827_v6 = vld [vmem:[#allocation8_spill] sm:$0xff]  ;;  %v21829_v18 = vrot.slane %v21828_v44, 4  ;;  %v2289_v15 = vld [vmem:[#allocation2 + $0x168] sm:$0xf] }
 0x242   :  { %2211 = vst [vmem:[#allocation2 + $0xc8] sm:$0x1] %v2210_v20  ;;  %v2220_v28 = vsel %vm14919_vm8, %v21827_v6, %v15958_v32  ;;  %v2282_v43 = vld [vmem:[#allocation2 + $0x15c] sm:$0xf]  ;;  %v2293_v59 = vld [vmem:[#allocation2 + $0x170] sm:$0x1] }
 0x243   :  { %v2224_v50 = vsel %vm13803_vm2, %v21829_v18, %v15962_v29  ;;  %2214 = vst [vmem:[#allocation2 + $0xe4] sm:$0xf] %v2213_v7  ;;  %2218 = vst [vmem:[#allocation2 + $0xec] sm:$0x1] %v2217_v55  ;;  %v21830_v31 = vld [vmem:[#allocation10_spill] sm:$0xff]  ;;  %v21831_v32 = vld [vmem:[#allocation5_spill] sm:$0xff] }
 0x244   :  { %2221 = vst [vmem:[#allocation2 + $0xf0] sm:$0xf] %v2220_v28  ;;  %2225 = vst [vmem:[#allocation2 + $0xf8] sm:$0x1] %v2224_v50  ;;  %v2227_v56 = vsel %vm14919_vm8, %v21830_v31, %v15989_v37  ;;  %v21832_v22 = vrot.slane %v21831_v32, 4  ;;  %v21833_v29 = vld [vmem:[#allocation7_spill] sm:$0xff] }
 0x245   :  { %v2234_v41 = vsel %vm14919_vm8, %v21833_v29, %v15987_v17  ;;  %v21834_v49 = vld [vmem:[#allocation9_spill] sm:$0xff]  ;;  %v2296_v37 = vld [vmem:[#allocation2 + $0x174] sm:$0xf]  ;;  %2228 = vst [vmem:[#allocation2 + $0xfc] sm:$0xf] %v2227_v56  ;;  %v21839_v62 = vld [vmem:[#allocation32_spill] sm:$0xff] }
 0x246   :  { %v2231_v4 = vsel %vm13803_vm2, %v21832_v22, %v15993_v39  ;;  %v21835_v34 = vrot.slane %v21834_v49, 4  ;;  %v2286_v13 = vld [vmem:[#allocation2 + $0x164] sm:$0x1]  ;;  %v2303_v36 = vld [vmem:[#allocation2 + $0x180] sm:$0xf]  ;;  %v21836_v39 = vld [vmem:[#allocation31_spill] sm:$0xff] }
 0x247   :  { %2232 = vst [vmem:[#allocation2 + $0x104] sm:$0x1] %v2231_v4  ;;  %2235 = vst [vmem:[#allocation2 + $0x108] sm:$0xf] %v2234_v41  ;;  %v2241_v58 = vsel %vm14919_vm8, %v21836_v39, %v16015_v21  ;;  %v21837_v0 = vld [vmem:[#allocation29_spill] sm:$0xff]  ;;  %v21840_v57 = vld [vmem:[#allocation24_spill] sm:$0xff] }
 0x248   :  { %v2238_v51 = vsel %vm13803_vm2, %v21835_v34, %v15991_v3  ;;  %v21838_v17 = vrot.slane %v21837_v0, 4  ;;  %v2248_v3 = vsel %vm14919_vm8, %v21839_v62, %v16013_v11  ;;  %v21841_v23 = vrot.slane %v21840_v57, 4  ;;  %v2307_v48 = vld [vmem:[#allocation2 + $0x188] sm:$0x1]  ;;  %v2300_v47 = vld [vmem:[#allocation2 + $0x17c] sm:$0x1] }
 0x249   :  { %2239 = vst [vmem:[#allocation2 + $0x110] sm:$0x1] %v2238_v51  ;;  %v2317_v1 = vld [vmem:[#allocation2 + $0x198] sm:$0xf]  ;;  %2242 = vst [vmem:[#allocation2 + $0x114] sm:$0xf] %v2241_v58 }
 0x24a   :  { %v2245_v16 = vsel %vm13803_vm2, %v21838_v17, %v2244_v53  ;;  %v2252_v52 = vsel %vm13803_vm2, %v21841_v23, %v16017_v2  ;;  %2249 = vst [vmem:[#allocation2 + $0x120] sm:$0xf] %v2248_v3  ;;  %v21842_v21 = vld [vmem:[#allocation35_spill] sm:$0xff]  ;;  %v21843_v60 = vld [vmem:[#allocation33_spill] sm:$0xff]  ;;  %v21845_v14 = vld [vmem:[#allocation36_spill] sm:$0xff]  ;;  %v13680_v62 = vmov 0  }
 0x24b   :  { %2246 = vst [vmem:[#allocation2 + $0x11c] sm:$0x1] %v2245_v16  ;;  %2253 = vst [vmem:[#allocation2 + $0x128] sm:$0x1] %v2252_v52  ;;  %v2255_v53 = vsel %vm14919_vm8, %v21842_v21, %v16040_v10  ;;  %v21844_v11 = vrot.slane %v21843_v60, 4  ;;  %v2262_v2 = vsel %vm14919_vm8, %v21845_v14, %v16038_v40  ;;  %v21846_v26 = vld [vmem:[#allocation34_spill] sm:$0xff] }
 0x24c   :  { %v21847_v12 = vrot.slane %v21846_v26, 4  ;;  %v2321_v25 = vld [vmem:[#allocation2 + $0x1a0] sm:$0x1]  ;;  %2256 = vst [vmem:[#allocation2 + $0x12c] sm:$0xf] %v2255_v53  ;;  %v21849_v20 = vld [vmem:[#allocation38_spill] sm:$0xff] }
 0x24d   :  { %v2259_v33 = vsel %vm13803_vm2, %v21844_v11, %v2258_v42  ;;  %2263 = vst [vmem:[#allocation2 + $0x138] sm:$0xf] %v2262_v2  ;;  %v21848_v10 = vld [vmem:[#allocation37_spill] sm:$0xff]  ;;  %v21850_v45 = vrot.slane %v21849_v20, 4  ;;  %v21851_v7 = vld [vmem:[#allocation11_spill] sm:$0xff]  ;;  %v21855_v18 = vld [vmem:[#allocation14_spill] sm:$0xff] }
 0x24e   :  { %v2266_v46 = vsel %vm13803_vm2, %v21847_v12, %v16042_v8  ;;  %2260 = vst [vmem:[#allocation2 + $0x134] sm:$0x1] %v2259_v33  ;;  %v2269_v42 = vsel %vm14919_vm8, %v21848_v10, %v2268_v61  ;;  %v2276_v63 = vsel %vm14919_vm8, %v21851_v7, %v16062_v5  ;;  %v21852_v8 = vld [vmem:[#allocation39_spill] sm:$0xff]  ;;  %v16167_v28 = vld [vmem:[#allocation2 + $0xc] sm:$0xf]  ;;  %v21854_v61 = vld [vmem:[#allocation40_spill] sm:$0xff] }
 0x24f   :  { %2267 = vst [vmem:[#allocation2 + $0x140] sm:$0x1] %v2266_v46  ;;  %v2273_v40 = vsel %vm13803_vm2, %v21850_v45, %v2272_v24  ;;  %v21853_v55 = vrot.slane %v21852_v8, 4  ;;  %v16169_v44 = vld [vmem:[#allocation2 + $0x10] sm:$0xf]  ;;  %v2283_v24 = vsel %vm14919_vm8, %v21854_v61, %v2282_v43  ;;  %v21856_v50 = vrot.slane %v21855_v18, 4 }
 0x250   :  { %2270 = vst [vmem:[#allocation2 + $0x144] sm:$0xf] %v2269_v42  ;;  %2274 = vst [vmem:[#allocation2 + $0x14c] sm:$0x1] %v2273_v40  ;;  %v21857_v31 = vld [vmem:[#allocation41_spill] sm:$0xff]  ;;  %v21860_v43 = vld [vmem:[#allocation15_spill] sm:$0xff]  ;;  %v11674_v17 = vcombine.low %v16167_v28, %v16169_v44 }
 0x251   :  { %v2280_v6 = vsel %vm13803_vm2, %v21853_v55, %v2279_v30  ;;  %2277 = vst [vmem:[#allocation2 + $0x150] sm:$0xf] %v2276_v63  ;;  %v2287_v5 = vsel %vm13803_vm2, %v21856_v50, %v2286_v13  ;;  %v2290_v30 = vsel %vm14919_vm8, %v21857_v31, %v2289_v15  ;;  %v21858_v56 = vld [vmem:[#allocation13_spill] sm:$0xff]  ;;  %v16185_v4 = vld [vmem:[#allocation2 + $0x18] sm:$0xf]  ;;  %v2297_v41 = vsel %vm14919_vm8, %v21860_v43, %v2296_v37  ;;  %v21864_v13 = vld [vmem:[#allocation18_spill] sm:$0xff] }
 0x252   :  { %2281 = vst [vmem:[#allocation2 + $0x158] sm:$0x1] %v2280_v6  ;;  %v21859_v32 = vrot.slane %v21858_v56, 4  ;;  %v16187_v29 = vld [vmem:[#allocation2 + $0x1c] sm:$0xf]  ;;  %v21863_v51 = vld [vmem:[#allocation17_spill] sm:$0xff]  ;;  %v2318_v37 = vsel %vm14919_vm8, %v15890_v54, %v2317_v1 }
 0x253   :  { %2284 = vst [vmem:[#allocation2 + $0x15c] sm:$0xf] %v2283_v24  ;;  %2288 = vst [vmem:[#allocation2 + $0x164] sm:$0x1] %v2287_v5  ;;  %v21861_v49 = vld [vmem:[#allocation16_spill] sm:$0xff]  ;;  %v21865_v39 = vrot.slane %v21864_v13, 4  ;;  %v11675_v54 = vcombine.low %v16185_v4, %v16187_v29 }
 0x254   :  { %v2294_v22 = vsel %vm13803_vm2, %v21859_v32, %v2293_v59  ;;  %2291 = vst [vmem:[#allocation2 + $0x168] sm:$0xf] %v2290_v30  ;;  %v21862_v34 = vrot.slane %v21861_v49, 4  ;;  %v2304_v59 = vsel %vm14919_vm8, %v21863_v51, %v2303_v36  ;;  %v16203_v0 = vld [vmem:[#allocation2 + $0x24] sm:$0xf]  ;;  %v2322_v36 = vsel %vm13803_vm2, %v2001_v35, %v2321_v25 }
 0x255   :  { %2295 = vst [vmem:[#allocation2 + $0x170] sm:$0x1] %v2294_v22  ;;  %v2308_v58 = vsel %vm13803_vm2, %v21865_v39, %v2307_v48  ;;  %2298 = vst [vmem:[#allocation2 + $0x174] sm:$0xf] %v2297_v41  ;;  %v16214_v16 = vld [vmem:[#allocation2 + $0x28] sm:$0xf] }
 0x256   :  { %v2301_v15 = vsel %vm13803_vm2, %v21862_v34, %v2300_v47  ;;  %2305 = vst [vmem:[#allocation2 + $0x180] sm:$0xf] %v2304_v59  ;;  %2309 = vst [vmem:[#allocation2 + $0x188] sm:$0x1] %v2308_v58  ;;  %v2488_v19 = vshrl.u32 %v16185_v4, 16  ;;  %v2491_v9 = vshll.u32 %v16185_v4, 16  ;;  %v11676_v1 = vcombine.low %v16203_v0, %v16214_v16 }
 0x257   :  { %2302 = vst [vmem:[#allocation2 + $0x17c] sm:$0x1] %v2301_v15  ;;  %2319 = vst [vmem:[#allocation2 + $0x198] sm:$0xf] %v2318_v37  ;;  %v2501_v27 = vshrl.u32 %v16187_v29, 16  ;;  %v2512_v3 = vshrl.u32 %v16203_v0, 16 }
 0x258   :  { %2323 = vst [vmem:[#allocation2 + $0x1a0] sm:$0x1] %v2322_v36  ;;  %1053 = vst [vmem:[#allocation2] sm:$0xf] %v13680_v62  ;;  %v16221_v35 = vld [vmem:[#allocation2 + $0x14] sm:$0x1] }
 0x259   :  { %1054 = vst [vmem:[#allocation2 + $0x4] sm:$0xf] %v13680_v62  ;;  %1055 = vst [vmem:[#allocation2 + $0x8] sm:$0x1] %v13680_v62  ;;  %v2515_v57 = vshll.u32 %v16203_v0, 16  ;;  %v2490_v52 = vrot.slane %v2488_v19, 4 }
 0x25a   :  { %1056 = vst [vmem:[#allocation2 + $0xd8] sm:$0xf] %v13680_v62  ;;  %1057 = vst [vmem:[#allocation2 + $0xdc] sm:$0xf] %v13680_v62  ;;  %v16225_v23 = vld [vmem:[#allocation2 + $0x34] sm:$0xf] }
 0x25b   :  { %1058 = vst [vmem:[#allocation2 + $0xe0] sm:$0x1] %v13680_v62  ;;  %1060 = vst [vmem:[#allocation2 + $0xcc] sm:$0xf] %v13680_v62  ;;  %v2493_v48 = vrot.slane %v2491_v9, 5  ;;  %v2525_v47 = vshrl.u32 %v16214_v16, 16 }
 0x25c   :  { %1061 = vst [vmem:[#allocation2 + $0xd0] sm:$0xf] %v13680_v62  ;;  %1062 = vst [vmem:[#allocation2 + $0xd4] sm:$0x1] %v13680_v62  ;;  %v16230_v21 = vld [vmem:[#allocation2 + $0x30] sm:$0xf] }
 0x25d   :  { %1063 = vst [vmem:[#allocation2 + $0x1a4] sm:$0xf] %v13680_v62  ;;  %1064 = vst [vmem:[#allocation2 + $0x1a8] sm:$0xf] %v13680_v62  ;;  %v16232_v53 = vrot.slane %v2512_v3, 4  ;;  %v16234_v60 = vrot.slane %v2515_v57, 5  ;;  %v11677_v18 = vcombine.low %v16230_v21, %v16225_v23  ;;  %v2494_v50 = vor.u32 %v2493_v48, %v2490_v52 }
 0x25e   :  { %1065 = vst [vmem:[#allocation2 + $0x1ac] sm:$0x1] %v13680_v62  ;;  %v2464_v11 = vshrl.u32 %v16167_v28, 16  ;;  %v2467_v33 = vshll.u32 %v16167_v28, 16  ;;  %v16238_v14 = vld [vmem:[#allocation2 + $0x40] sm:$0xf] }
 0x25f   :  { %v2473_v2 = vshll.u32 %v16169_v44, 16  ;;  %v2477_v26 = vshrl.u32 %v16169_v44, 16  ;;  %v2483_v12 = vshll.u32 %v16221_v35, 16  ;;  %v4328_v46 = vrot.slane %v16221_v35, 5  ;;  %v16244_v25 = vld [vmem:[#allocation2 + $0x3c] sm:$0xf] }
 0x260   :  { %v2466_v10 = vrot.slane %v2464_v11, 4  ;;  %v2469_v42 = vrot.slane %v2467_v33, 5  ;;  %v2536_v20 = vshrl.u32 %v16230_v21, 16  ;;  %v2539_v45 = vshll.u32 %v16230_v21, 16  ;;  %v2324_v55 = vld [vmem:[#allocation2] sm:$0xf] }
 0x261   :  { %v2475_v40 = vrot.slane %v2473_v2, 5  ;;  %v2479_v7 = vrot.slane %v2477_v26, 4  ;;  %v2485_v63 = vrot.slane %v2483_v12, 5  ;;  %v2549_v8 = vshrl.u32 %v16225_v23, 16  ;;  %v2325_v6 = vld [vmem:[#allocation2 + $0x4] sm:$0xf] }
 0x262   :  { %v16249_v61 = vld [vmem:[#allocation2 + $0x8] sm:$0x1]  ;;  %v2470_v24 = vor.u32 %v2469_v42, %v2466_v10  ;;  %v11678_v5 = vcombine.low %v16244_v25, %v16238_v14  ;;  %v11673_v31 = vcombine.low %v2324_v55, %v2325_v6  ;;  %v2440_v56 = vshrl.u32 %v2324_v55, 16  ;;  %v13444_v34 = vld [vmem:[%s21257_s4 + $0xf0] sm:$0xff]   ;;  %v2406_v39 = vld [vmem:[#allocation2 + $0x20] sm:$0x1] }
 0x263   :  { %v2443_v32 = vshll.u32 %v2324_v55, 16  ;;  %v2449_v22 = vshll.u32 %v2325_v6, 16  ;;  %v2453_v4 = vshrl.u32 %v2325_v6, 16  ;;  %v2459_v43 = vshll.u32 %v16249_v61, 16 }
 0x264   :  { %v4321_v41 = vrot.slane %v16249_v61, 5  ;;  %v2471_v49 = vrot.slane %v2470_v24, 4  ;;  %12729 = vmatprep.mubr.bf16.mxu0 %v11673_v31  ;;  %v2442_v15 = vrot.slane %v2440_v56, 4  ;;  %v2480_v13 = vor.u32 %v2479_v7, %v2475_v40  ;;  %v16301_v24 = vld [vmem:[#allocation2 + $0x4c] sm:$0xf] }
 0x265   :  { %v2445_v51 = vrot.slane %v2443_v32, 5  ;;  %v2451_v59 = vrot.slane %v2449_v22, 5  ;;  %12730 = vmatmul.mubr.bf16.vlgmr.msra.gmra.mxu0 %v11674_v17  ;;  %v2455_v58 = vrot.slane %v2453_v4, 4  ;;  %v2461_v37 = vrot.slane %v2459_v43, 5  ;;  %v13447_v17 = vld [vmem:[%s21257_s4 + $0xe8] sm:$0xff]   ;;  %v13419_v22 = vld [vmem:[%s21257_s4 + $0xb0] sm:$0xff]  }
 0x266   :  { %v2476_v36 = vsel %vm16257_vm11, %v2471_v49, %v2475_v40  ;;  %v16271_v62 = vrot.slane %v2536_v20, 4  ;;  %12733 = vmatprep.mubr.bf16.mxu0 %v11675_v54  ;;  %v2481_v9 = vrot.slane %v2480_v13, 4  ;;  %v16273_v3 = vrot.slane %v2539_v45, 5  ;;  %12874 = vmatpush3.bf16.msra.mxu0 %v15985_v38  ;;  %v16293_v40 = vld [vmem:[#allocation2 + $0x48] sm:$0xf]  ;;  %v13449_v4 = vld [vmem:[%s21257_s4 + $0xe0] sm:$0xff]  }
 0x267   :  { %v2446_v19 = vor.u32 %v2445_v51, %v2442_v15  ;;  %v2495_v57 = vrot.slane %v2494_v50, 4  ;;  %v2456_v52 = vor.u32 %v2455_v58, %v2451_v59  ;;  %v2497_v48 = vshll.u32 %v16187_v29, 16  ;;  %12875 = vmatprep.subr.bf16.mxu0 %v13444_v34  ;;  %v2407_v29 = vld [vmem:[#allocation2 + $0x2c] sm:$0x1] }
 0x268   :  { %v2503_v28 = vrot.slane %v2501_v27, 4  ;;  %v2507_v44 = vshll.u32 %v2406_v39, 16  ;;  %v2486_v11 = vsel %vm16257_vm11, %v2481_v9, %v2485_v63  ;;  %v2560_v33 = vshrl.u32 %v16244_v25, 16  ;;  %v13566_v39 = vld [vmem:[%s21257_s4 + $0xb8] sm:$0xff]  }
 0x269   :  { %v2447_v54 = vrot.slane %v2446_v19, 4  ;;  %v2563_v38 = vshll.u32 %v16244_v25, 16  ;;  %v2457_v2 = vrot.slane %v2456_v52, 4  ;;  %v11634_v26 = vcombine.low %v2476_v36, %v2486_v11 }
 0x26a   :  { %v2499_v12 = vrot.slane %v2497_v48, 5  ;;  %v2509_v10 = vrot.slane %v2507_v44, 5  ;;  %v16288_v42 = vrot.slane %v2560_v33, 4  ;;  %v2573_v45 = vshrl.u32 %v16238_v14, 16  ;;  %12876 = vmatpush3.bf16.msra.mxu0 %v13444_v34  ;;  %v13424_v48 = vld [vmem:[%s21257_s4 + $0xa8] sm:$0xff]  }
 0x26b   :  { %v2452_v27 = vsel %vm16257_vm11, %v2447_v54, %v2451_v59  ;;  %v16290_v20 = vrot.slane %v2563_v38, 5  ;;  %v2462_v7 = vsel %vm16257_vm11, %v2457_v2, %v2461_v37  ;;  %v2518_v6 = vor.u32 %v16234_v60, %v16232_v53  ;;  %12877 = vmatprep.subr.bf16.mxu0 %v13447_v17  ;;  %v16358_v2 = vld [vmem:[#allocation2 + $0x60] sm:$0xf] }
 0x26c   :  { %v2500_v63 = vsel %vm16257_vm11, %v2495_v57, %v2499_v12  ;;  %v2504_v55 = vor.u32 %v2503_v28, %v2499_v12  ;;  %v11633_v50 = vcombine.low %v2452_v27, %v2462_v7  ;;  %v2521_v31 = vshll.u32 %v16214_v16, 16  ;;  %v16323_v16 = vld [vmem:[#allocation2 + $0x54] sm:$0xf]  ;;  %v16366_v27 = vld [vmem:[#allocation2 + $0x64] sm:$0xf] }
 0x26d   :  { %v2527_v56 = vrot.slane %v2525_v47, 4  ;;  %v2531_v32 = vshll.u32 %v2407_v29, 16  ;;  %12734 = vmatmul.mubr.bf16.gmra.mxu0 %v11676_v1  ;;  %v2519_v60 = vrot.slane %v2518_v6, 4  ;;  %v2584_v43 = vshrl.u32 %v16293_v40, 16  ;;  %v2408_v47 = vld [vmem:[#allocation2 + $0x38] sm:$0x1] }
 0x26e   :  { %v2505_v53 = vrot.slane %v2504_v55, 4  ;;  %v2587_v49 = vshll.u32 %v16293_v40, 16  ;;  %12649 = vmatprep.mubr.bf16.mxu1 %v11633_v50  ;;  %12737 = vmatprep.mubr.bf16.mxu0 %v11677_v18  ;;  %v2523_v34 = vrot.slane %v2521_v31, 5  ;;  %v2597_v51 = vshrl.u32 %v16301_v24, 16  ;;  %v16333_v18 = vld [vmem:[#allocation2 + $0x58] sm:$0xf] }
 0x26f   :  { %v2533_v15 = vrot.slane %v2531_v32, 5  ;;  %v11679_v0 = vcombine.low %v16293_v40, %v16301_v24  ;;  %12650 = vmatmul.mubr.bf16.vlgmr.msra.gmra.mxu1 %v11634_v26  ;;  %v16327_v59 = vrot.slane %v2584_v43, 4  ;;  %v2542_v21 = vor.u32 %v16273_v3, %v16271_v62  ;;  %12878 = vmatpush3.bf16.msra.mxu0 %v13447_v17  ;;  %v13451_v62 = vld [vmem:[%s21257_s4 + $0xd8] sm:$0xff]   ;;  %v13429_v55 = vld [vmem:[%s21257_s4 + $0xa0] sm:$0xff]  }
 0x270   :  { %v2510_v1 = vsel %vm16257_vm11, %v2505_v53, %v2509_v10  ;;  %v16329_v13 = vrot.slane %v2587_v49, 5  ;;  %12794 = vmatpush3.bf16.msra.mxu1 %v13566_v39  ;;  %v2524_v37 = vsel %vm16257_vm11, %v2519_v60, %v2523_v34  ;;  %v2528_v36 = vor.u32 %v2527_v56, %v2523_v34  ;;  %12879 = vmatprep.subr.bf16.mxu0 %v13449_v4  ;;  %v16395_v49 = vld [vmem:[#allocation2 + $0x70] sm:$0xf] }
 0x271   :  { %v11635_v58 = vcombine.low %v2500_v63, %v2510_v1  ;;  %v2545_v19 = vshll.u32 %v16225_v23, 16  ;;  %v2543_v9 = vrot.slane %v2542_v21, 4  ;;  %v2551_v3 = vrot.slane %v2549_v8, 4  ;;  %12795 = vmatprep.subr.bf16.mxu1 %v13419_v22  ;;  %v2409_v8 = vld [vmem:[#allocation2 + $0x44] sm:$0x1] }
 0x272   :  { %v2555_v57 = vshll.u32 %v2408_v47, 16  ;;  %v2608_v52 = vshrl.u32 %v16323_v16, 16  ;;  %v2529_v28 = vrot.slane %v2528_v36, 4  ;;  %v2611_v17 = vshll.u32 %v16323_v16, 16  ;;  %v13456_v47 = vld [vmem:[%s21257_s4 + $0xc8] sm:$0xff]  }
 0x273   :  { %12653 = vmatprep.mubr.bf16.mxu1 %v11635_v58  ;;  %v2547_v44 = vrot.slane %v2545_v19, 5  ;;  %v2621_v54 = vshrl.u32 %v16333_v18, 16  ;;  %v11680_v23 = vcombine.low %v16323_v16, %v16333_v18  ;;  %v2566_v38 = vor.u32 %v16290_v20, %v16288_v42  ;;  %12880 = vmatpush3.bf16.msra.mxu0 %v13449_v4  ;;  %v13453_v42 = vld [vmem:[%s21257_s4 + $0xd0] sm:$0xff]  }
 0x274   :  { %v2557_v11 = vrot.slane %v2555_v57, 5  ;;  %v16352_v33 = vrot.slane %v2608_v52, 4  ;;  %v2534_v26 = vsel %vm16257_vm11, %v2529_v28, %v2533_v15  ;;  %v16364_v29 = vrot.slane %v2611_v17, 5  ;;  %12796 = vmatpush3.bf16.msra.mxu1 %v13419_v22  ;;  %12881 = vmatprep.subr.bf16.mxu0 %v13451_v62  ;;  %v16387_v22 = vld [vmem:[#allocation2 + $0x6c] sm:$0xf] }
 0x275   :  { %v2548_v12 = vsel %vm16257_vm11, %v2543_v9, %v2547_v44  ;;  %v2552_v10 = vor.u32 %v2551_v3, %v2547_v44  ;;  %12738 = vmatmul.mubr.bf16.gmra.mxu0 %v11678_v5  ;;  %v11636_v20 = vcombine.low %v2524_v37, %v2534_v26  ;;  %v2567_v40 = vrot.slane %v2566_v38, 4  ;;  %12797 = vmatprep.subr.bf16.mxu1 %v13424_v48  ;;  %v2411_v37 = vld [vmem:[#allocation2 + $0x5c] sm:$0x1]  ;;  %v16413_v3 = vld [vmem:[#allocation2 + $0x78] sm:$0xf] }
 0x276   :  { %v2569_v7 = vshll.u32 %v16238_v14, 16  ;;  %v2575_v63 = vrot.slane %v2573_v45, 4  ;;  %12741 = vmatprep.mubr.bf16.mxu0 %v11679_v0  ;;  %v2579_v50 = vshll.u32 %v2409_v8, 16  ;;  %v2632_v31 = vshrl.u32 %v16358_v2, 16  ;;  %v2410_v45 = vld [vmem:[#allocation2 + $0x50] sm:$0x1] }
 0x277   :  { %v2553_v6 = vrot.slane %v2552_v10, 4  ;;  %v2635_v25 = vshll.u32 %v16358_v2, 16  ;;  %12654 = vmatmul.mubr.bf16.gmra.mxu1 %v11636_v20  ;;  %v2645_v56 = vshrl.u32 %v16366_v27, 16  ;;  %v11681_v14 = vcombine.low %v16358_v2, %v16366_v27  ;;  %12882 = vmatpush3.bf16.msra.mxu0 %v13451_v62 }
 0x278   :  { %v2571_v5 = vrot.slane %v2569_v7, 5  ;;  %v2590_v32 = vor.u32 %v16329_v13, %v16327_v59  ;;  %v2581_v53 = vrot.slane %v2579_v50, 5  ;;  %v16391_v60 = vrot.slane %v2632_v31, 4  ;;  %12798 = vmatpush3.bf16.msra.mxu1 %v13424_v48  ;;  %12883 = vmatprep.subr.bf16.mxu0 %v13453_v42  ;;  %v13434_v59 = vld [vmem:[%s21257_s4 + $0x98] sm:$0xff]   ;;  %v13458_v48 = vld [vmem:[%s21257_s4 + $0xc0] sm:$0xff]  }
 0x279   :  { %v2558_v4 = vsel %vm16257_vm11, %v2553_v6, %v2557_v11  ;;  %v16393_v43 = vrot.slane %v2635_v25, 5  ;;  %12799 = vmatprep.subr.bf16.mxu1 %v13429_v55  ;;  %v2593_v13 = vshll.u32 %v16301_v24, 16  ;;  %v2599_v21 = vrot.slane %v2597_v51, 4  ;;  %v16448_v31 = vld [vmem:[#allocation2 + $0x84] sm:$0xf] }
 0x27a   :  { %v11637_v34 = vcombine.low %v2548_v12, %v2558_v4  ;;  %v2572_v15 = vsel %vm16257_vm11, %v2567_v40, %v2571_v5  ;;  %v2576_v0 = vor.u32 %v2575_v63, %v2571_v5  ;;  %v2591_v1 = vrot.slane %v2590_v32, 4  ;;  %v2412_v40 = vld [vmem:[#allocation2 + $0x68] sm:$0x1] }
 0x27b   :  { %v2603_v39 = vshll.u32 %v2410_v45, 16  ;;  %v2656_v58 = vshrl.u32 %v16387_v22, 16  ;;  %v2659_v19 = vshll.u32 %v16387_v22, 16  ;;  %v2669_v62 = vshrl.u32 %v16395_v49, 16  ;;  %12884 = vmatpush3.bf16.msra.mxu0 %v13453_v42 }
 0x27c   :  { %12657 = vmatprep.mubr.bf16.mxu1 %v11637_v34  ;;  %v2577_v36 = vrot.slane %v2576_v0, 4  ;;  %v11682_v9 = vcombine.low %v16387_v22, %v16395_v49  ;;  %v2595_v57 = vrot.slane %v2593_v13, 5  ;;  %v2614_v51 = vor.u32 %v16364_v29, %v16352_v33  ;;  %12800 = vmatpush3.bf16.msra.mxu1 %v13429_v55  ;;  %v16430_v33 = vld [vmem:[#allocation2 + $0x7c] sm:$0xf]  ;;  %v2413_v0 = vld [vmem:[#allocation2 + $0x74] sm:$0x1] }
 0x27d   :  { %v2605_v52 = vrot.slane %v2603_v39, 5  ;;  %v16415_v24 = vrot.slane %v2656_v58, 4  ;;  %12885 = vmatprep.subr.bf16.mxu0 %v13456_v47  ;;  %12742 = vmatmul.mubr.bf16.gmra.mxu0 %v11680_v23  ;;  %v2661_v44 = vrot.slane %v2659_v19, 5  ;;  %v2617_v17 = vshll.u32 %v16333_v18, 16  ;;  %v13439_v23 = vld [vmem:[%s21257_s4 + $0x90] sm:$0xff]  }
 0x27e   :  { %v2582_v28 = vsel %vm16257_vm11, %v2577_v36, %v2581_v53  ;;  %v2623_v11 = vrot.slane %v2621_v54, 4  ;;  %12801 = vmatprep.subr.bf16.mxu1 %v13434_v59  ;;  %12745 = vmatprep.mubr.bf16.mxu0 %v11681_v14  ;;  %v2596_v38 = vsel %vm16257_vm11, %v2591_v1, %v2595_v57  ;;  %v2600_v2 = vor.u32 %v2599_v21, %v2595_v57  ;;  %v16439_v54 = vld [vmem:[#allocation2 + $0x88] sm:$0xf]  ;;  %v2348_v13 = vld [vmem:[#allocation2 + $0x90] sm:$0xf] }
 0x27f   :  { %v11638_v8 = vcombine.low %v2572_v15, %v2582_v28  ;;  %v2615_v16 = vrot.slane %v2614_v51, 4  ;;  %v2619_v26 = vrot.slane %v2617_v17, 5  ;;  %v2627_v12 = vshll.u32 %v2411_v37, 16  ;;  %12886 = vmatpush3.bf16.msra.mxu0 %v13456_v47  ;;  %v16468_v36 = vld [vmem:[#allocation2 + $0x94] sm:$0xf] }
 0x280   :  { %v2680_v10 = vshrl.u32 %v16413_v3, 16  ;;  %v2683_v18 = vshll.u32 %v16413_v3, 16  ;;  %v2601_v29 = vrot.slane %v2600_v2, 4  ;;  %v2693_v42 = vshrl.u32 %v16430_v33, 16  ;;  %12887 = vmatprep.subr.bf16.mxu0 %v13458_v48  ;;  %12802 = vmatpush3.bf16.msra.mxu1 %v13434_v59  ;;  %v2350_v2 = vld [vmem:[#allocation2 + $0x9c] sm:$0xf] }
 0x281   :  { %12658 = vmatmul.mubr.bf16.gmra.mxu1 %v11638_v8  ;;  %v11683_v20 = vcombine.low %v16413_v3, %v16430_v33  ;;  %v2638_v7 = vor.u32 %v16393_v43, %v16391_v60  ;;  %v2620_v63 = vsel %vm16257_vm11, %v2615_v16, %v2619_v26  ;;  %v2624_v55 = vor.u32 %v2623_v11, %v2619_v26  ;;  %v13446_v60 = vld [vmem:[%s21257_s4 + $0x88] sm:$0xff]   ;;  %v16480_v26 = vld [vmem:[#allocation2 + $0xa0] sm:$0xf] }
 0x282   :  { %v2629_v6 = vrot.slane %v2627_v12, 5  ;;  %v2682_v50 = vrot.slane %v2680_v10, 4  ;;  %v2606_v25 = vsel %vm16257_vm11, %v2601_v29, %v2605_v52  ;;  %v2685_v5 = vrot.slane %v2683_v18, 5  ;;  %12803 = vmatprep.subr.bf16.mxu1 %v13439_v23  ;;  %v2414_v52 = vld [vmem:[#allocation2 + $0x80] sm:$0x1] }
 0x283   :  { %v2639_v14 = vrot.slane %v2638_v7, 4  ;;  %v2641_v45 = vshll.u32 %v16366_v27, 16  ;;  %v11639_v32 = vcombine.low %v2596_v38, %v2606_v25  ;;  %v2625_v22 = vrot.slane %v2624_v55, 4  ;;  %12888 = vmatpush3.bf16.msra.mxu0 %v13458_v48 }
 0x284   :  { %v2647_v4 = vrot.slane %v2645_v56, 4  ;;  %v2651_v53 = vshll.u32 %v2412_v40, 16  ;;  %v2704_v47 = vshrl.u32 %v16448_v31, 16  ;;  %v2707_v34 = vshll.u32 %v16448_v31, 16  ;;  %12804 = vmatpush3.bf16.msra.mxu1 %v13439_v23 }
 0x285   :  { %v2643_v43 = vrot.slane %v2641_v45, 5  ;;  %v2717_v15 = vshrl.u32 %v16439_v54, 16  ;;  %12661 = vmatprep.mubr.bf16.mxu1 %v11639_v32  ;;  %12746 = vmatmul.mubr.bf16.gmra.mxu0 %v11682_v9  ;;  %v2630_v27 = vsel %vm16257_vm11, %v2625_v22, %v2629_v6  ;;  %v11684_v1 = vcombine.low %v16448_v31, %v16439_v54  ;;  %v2415_v6 = vld [vmem:[#allocation2 + $0x8c] sm:$0x1] }
 0x286   :  { %v2653_v56 = vrot.slane %v2651_v53, 5  ;;  %v2662_v59 = vor.u32 %v2661_v44, %v16415_v24  ;;  %v11640_v21 = vcombine.low %v2620_v63, %v2630_v27  ;;  %12749 = vmatprep.mubr.bf16.mxu0 %v11683_v20  ;;  %v2706_v37 = vrot.slane %v2704_v47, 4  ;;  %12805 = vmatprep.subr.bf16.mxu1 %v13446_v60  ;;  %v13455_v24 = vld [vmem:[%s21257_s4 + $0x80] sm:$0xff]   ;;  %v13462_v20 = vld [vmem:[%s21257_s4 + $0x138] sm:$0xff]  }
 0x287   :  { %v2644_v39 = vsel %vm16257_vm11, %v2639_v14, %v2643_v43  ;;  %v2648_v58 = vor.u32 %v2647_v4, %v2643_v43  ;;  %v2709_v19 = vrot.slane %v2707_v34, 5  ;;  %v2665_v3 = vshll.u32 %v16395_v49, 16  ;;  %v2352_v14 = vld [vmem:[#allocation2 + $0xa8] sm:$0xf]  ;;  %v16497_v43 = vld [vmem:[#allocation2 + $0xac] sm:$0xf] }
 0x288   :  { %v2663_v9 = vrot.slane %v2662_v59, 4  ;;  %v2671_v57 = vrot.slane %v2669_v62, 4  ;;  %v2675_v48 = vshll.u32 %v2413_v0, 16  ;;  %v2728_v28 = vshrl.u32 %v2348_v13, 16  ;;  %12806 = vmatpush3.bf16.msra.mxu1 %v13446_v60 }
 0x289   :  { %12662 = vmatmul.mubr.bf16.gmra.mxu1 %v11640_v21  ;;  %v2649_v51 = vrot.slane %v2648_v58, 4  ;;  %v2731_v44 = vshll.u32 %v2348_v13, 16  ;;  %v2667_v17 = vrot.slane %v2665_v3, 5  ;;  %v2741_v11 = vshrl.u32 %v16468_v36, 16  ;;  %12807 = vmatprep.subr.bf16.mxu1 %v13455_v24  ;;  %v16501_v21 = vld [vmem:[#allocation2 + $0xb8] sm:$0xf] }
 0x28a   :  { %v11685_v8 = vcombine.low %v2348_v13, %v16468_v36  ;;  %v2686_v38 = vor.u32 %v2685_v5, %v2682_v50  ;;  %v2677_v62 = vrot.slane %v2675_v48, 5  ;;  %v2730_v16 = vrot.slane %v2728_v28, 4  ;;  %v2416_v58 = vld [vmem:[#allocation2 + $0x98] sm:$0x1] }
 0x28b   :  { %v2654_v49 = vsel %vm16257_vm11, %v2649_v51, %v2653_v56  ;;  %v2733_v23 = vrot.slane %v2731_v44, 5  ;;  %v2668_v10 = vsel %vm16257_vm11, %v2663_v9, %v2667_v17  ;;  %v2672_v18 = vor.u32 %v2671_v57, %v2667_v17 }
 0x28c   :  { %v11641_v12 = vcombine.low %v2644_v39, %v2654_v49  ;;  %v2687_v29 = vrot.slane %v2686_v38, 4  ;;  %v2689_v40 = vshll.u32 %v16430_v33, 16  ;;  %v2695_v7 = vrot.slane %v2693_v42, 4  ;;  %12808 = vmatpush3.bf16.msra.mxu1 %v13455_v24 }
 0x28d   :  { %v2699_v63 = vshll.u32 %v2414_v52, 16  ;;  %v2752_v55 = vshrl.u32 %v2350_v2, 16  ;;  %12750 = vmatmul.mubr.bf16.gmra.mxu0 %v11684_v1  ;;  %v2673_v50 = vrot.slane %v2672_v18, 4  ;;  %v2755_v31 = vshll.u32 %v2350_v2, 16  ;;  %12953 = vmatprep.subr.bf16.mxu1 %v13462_v20  ;;  %v2354_v52 = vld [vmem:[#allocation2 + $0xb4] sm:$0xf] }
 0x28e   :  { %12665 = vmatprep.mubr.bf16.mxu1 %v11641_v12  ;;  %v2765_v25 = vshrl.u32 %v16480_v26, 16  ;;  %v11686_v5 = vcombine.low %v2350_v2, %v16480_v26  ;;  %12753 = vmatprep.mubr.bf16.mxu0 %v11685_v8  ;;  %v2691_v45 = vrot.slane %v2689_v40, 5  ;;  %v2710_v4 = vor.u32 %v2709_v19, %v2706_v37  ;;  %v2417_v2 = vld [vmem:[#allocation2 + $0xa4] sm:$0x1]  ;;  %v2418_v20 = vld [vmem:[#allocation2 + $0xb0] sm:$0x1] }
 0x28f   :  { %v2701_v32 = vrot.slane %v2699_v63, 5  ;;  %v2754_v22 = vrot.slane %v2752_v55, 4  ;;  %v2678_v33 = vsel %vm16257_vm11, %v2673_v50, %v2677_v62  ;;  %v2757_v42 = vrot.slane %v2755_v31, 5  ;;  %v2356_v63 = vld [vmem:[#allocation2 + $0xd8] sm:$0xf] }
 0x290   :  { %v2713_v53 = vshll.u32 %v16439_v54, 16  ;;  %v2719_v60 = vrot.slane %v2717_v15, 4  ;;  %v11642_v47 = vcombine.low %v2668_v10, %v2678_v33  ;;  %v2692_v34 = vsel %vm16257_vm11, %v2687_v29, %v2691_v45 }
 0x291   :  { %v2696_v0 = vor.u32 %v2695_v7, %v2691_v45  ;;  %v2711_v27 = vrot.slane %v2710_v4, 4  ;;  %v2723_v1 = vshll.u32 %v2415_v6, 16  ;;  %v2776_v59 = vshrl.u32 %v2352_v14, 16 }
 0x292   :  { %v2715_v56 = vrot.slane %v2713_v53, 5  ;;  %v2779_v13 = vshll.u32 %v2352_v14, 16  ;;  %12666 = vmatmul.mubr.bf16.gmra.mxu1 %v11642_v47  ;;  %v2789_v54 = vshrl.u32 %v16497_v43, 16  ;;  %v11687_v15 = vcombine.low %v2352_v14, %v16497_v43  ;;  %v2357_v53 = vld [vmem:[#allocation2 + $0xdc] sm:$0xf] }
 0x293   :  { %v2697_v39 = vrot.slane %v2696_v0, 4  ;;  %v2734_v37 = vor.u32 %v2733_v23, %v2730_v16  ;;  %v2725_v3 = vrot.slane %v2723_v1, 5  ;;  %v2778_v57 = vrot.slane %v2776_v59, 4 }
 0x294   :  { %v2716_v19 = vsel %vm16257_vm11, %v2711_v27, %v2715_v56  ;;  %v2720_v9 = vor.u32 %v2719_v60, %v2715_v56  ;;  %v2781_v51 = vrot.slane %v2779_v13, 5  ;;  %v2737_v28 = vshll.u32 %v16468_v36, 16 }
 0x295   :  { %v2702_v24 = vsel %vm16257_vm11, %v2697_v39, %v2701_v32  ;;  %v2735_v48 = vrot.slane %v2734_v37, 4  ;;  %12754 = vmatmul.mubr.bf16.gmra.mxu0 %v11686_v5  ;;  %v2743_v8 = vrot.slane %v2741_v11, 4  ;;  %v2747_v38 = vshll.u32 %v2416_v58, 16 }
 0x296   :  { %v11643_v44 = vcombine.low %v2692_v34, %v2702_v24  ;;  %v2721_v17 = vrot.slane %v2720_v9, 4  ;;  %12757 = vmatprep.mubr.bf16.mxu0 %v11687_v15  ;;  %v2739_v49 = vrot.slane %v2737_v28, 5  ;;  %v2800_v62 = vshrl.u32 %v2354_v52, 16  ;;  %v2419_v9 = vld [vmem:[#allocation2 + $0xbc] sm:$0x1] }
 0x297   :  { %v2803_v16 = vshll.u32 %v2354_v52, 16  ;;  %v2813_v23 = vshrl.u32 %v16501_v21, 16  ;;  %v2749_v10 = vrot.slane %v2747_v38, 5  ;;  %v11688_v18 = vcombine.low %v2354_v52, %v16501_v21 }
 0x298   :  { %12669 = vmatprep.mubr.bf16.mxu1 %v11643_v44  ;;  %v2726_v12 = vsel %vm16257_vm11, %v2721_v17, %v2725_v3  ;;  %v2758_v29 = vor.u32 %v2757_v42, %v2754_v22  ;;  %v2740_v36 = vsel %vm16257_vm11, %v2735_v48, %v2739_v49  ;;  %v2744_v11 = vor.u32 %v2743_v8, %v2739_v49  ;;  %v2358_v22 = vld [vmem:[#allocation2 + $0xe4] sm:$0xf]  ;;  %v16530_v3 = vld [vmem:[#allocation2 + $0xf4] sm:$0xf]  ;;  %v2360_v8 = vld [vmem:[#allocation2 + $0xf0] sm:$0xf] }
 0x299   :  { %v11644_v40 = vcombine.low %v2716_v19, %v2726_v12  ;;  %v2802_v7 = vrot.slane %v2800_v62, 4  ;;  %v2805_v55 = vrot.slane %v2803_v16, 5  ;;  %v2761_v50 = vshll.u32 %v16480_v26, 16 }
 0x29a   :  { %v2759_v6 = vrot.slane %v2758_v29, 4  ;;  %v2767_v31 = vrot.slane %v2765_v25, 4  ;;  %v2745_v5 = vrot.slane %v2744_v11, 4  ;;  %v2771_v14 = vshll.u32 %v2417_v2, 16  ;;  %v2420_v11 = vld [vmem:[#allocation2 + $0xe0] sm:$0x1] }
 0x29b   :  { %12670 = vmatmul.mubr.bf16.gmra.mxu1 %v11644_v40  ;;  %v2782_v45 = vor.u32 %v2781_v51, %v2778_v57  ;;  %v2785_v32 = vshll.u32 %v16497_v43, 16  ;;  %v2763_v4 = vrot.slane %v2761_v50, 5  ;;  %v2791_v33 = vrot.slane %v2789_v54, 4  ;;  %v16526_v43 = vld [vmem:[#allocation2 + $0xe8] sm:$0xf] }
 0x29c   :  { %v2795_v42 = vshll.u32 %v2418_v20, 16  ;;  %v2824_v60 = vshrl.u32 %v2356_v63, 16  ;;  %v2750_v47 = vsel %vm16257_vm11, %v2745_v5, %v2749_v10  ;;  %v2773_v34 = vrot.slane %v2771_v14, 5  ;;  %v2362_v50 = vld [vmem:[#allocation2 + $0xfc] sm:$0xf] }
 0x29d   :  { %v2783_v0 = vrot.slane %v2782_v45, 4  ;;  %v2787_v27 = vrot.slane %v2785_v32, 5  ;;  %v11645_v26 = vcombine.low %v2740_v36, %v2750_v47  ;;  %12758 = vmatmul.mubr.bf16.gmra.mxu0 %v11688_v18  ;;  %v2764_v25 = vsel %vm16257_vm11, %v2759_v6, %v2763_v4 }
 0x29e   :  { %v2768_v56 = vor.u32 %v2767_v31, %v2763_v4  ;;  %v2797_v1 = vrot.slane %v2795_v42, 5  ;;  %v2826_v39 = vrot.slane %v2824_v60, 4  ;;  %v2827_v54 = vshll.u32 %v2356_v63, 16  ;;  %v16543_v31 = vld [vmem:[#allocation2 + $0x100] sm:$0xf] }
 0x29f   :  { %v2788_v59 = vsel %vm16257_vm11, %v2783_v0, %v2787_v27  ;;  %v2792_v13 = vor.u32 %v2791_v33, %v2787_v27  ;;  %12673 = vmatprep.mubr.bf16.mxu1 %v11645_v26  ;;  %v2837_v58 = vshrl.u32 %v2357_v53, 16  ;;  %v11689_v37 = vcombine.low %v2356_v63, %v2357_v53  ;;  %v2421_v26 = vld [vmem:[#allocation2 + $0xec] sm:$0x1] }
 0x2a0   :  { %v2769_v15 = vrot.slane %v2768_v56, 4  ;;  %v2848_v19 = vshrl.u32 %v2358_v22, 16  ;;  %v2829_v52 = vrot.slane %v2827_v54, 5  ;;  %v2851_v24 = vshll.u32 %v2358_v22, 16 }
 0x2a1   :  { %v2793_v57 = vrot.slane %v2792_v13, 4  ;;  %v2861_v51 = vshrl.u32 %v16526_v43, 16  ;;  %12761 = vmatprep.mubr.bf16.mxu0 %v11689_v37  ;;  %v11690_v44 = vcombine.low %v2358_v22, %v16526_v43  ;;  %v2806_v17 = vor.u32 %v2805_v55, %v2802_v7 }
 0x2a2   :  { %v2774_v48 = vsel %vm16257_vm11, %v2769_v15, %v2773_v34  ;;  %v2850_v28 = vrot.slane %v2848_v19, 4  ;;  %v2853_v49 = vrot.slane %v2851_v24, 5  ;;  %v2809_v62 = vshll.u32 %v16501_v21, 16 }
 0x2a3   :  { %v11646_v38 = vcombine.low %v2764_v25, %v2774_v48  ;;  %v2798_v2 = vsel %vm16257_vm11, %v2793_v57, %v2797_v1  ;;  %v2807_v12 = vrot.slane %v2806_v17, 4  ;;  %v2815_v10 = vrot.slane %v2813_v23, 4  ;;  %v2364_v25 = vld [vmem:[#allocation2 + $0x108] sm:$0xf]  ;;  %v2422_v17 = vld [vmem:[#allocation2 + $0xf8] sm:$0x1] }
 0x2a4   :  { %v11647_v16 = vcombine.low %v2788_v59, %v2798_v2  ;;  %v2819_v18 = vshll.u32 %v2419_v9, 16  ;;  %v2811_v29 = vrot.slane %v2809_v62, 5  ;;  %v2872_v20 = vshrl.u32 %v2360_v8, 16 }
 0x2a5   :  { %12674 = vmatmul.mubr.bf16.gmra.mxu1 %v11646_v38  ;;  %v2875_v40 = vshll.u32 %v2360_v8, 16  ;;  %v2885_v36 = vshrl.u32 %v16530_v3, 16  ;;  %12762 = vmatmul.mubr.bf16.gmra.mxu0 %v11690_v44  ;;  %v11691_v63 = vcombine.low %v2360_v8, %v16530_v3  ;;  %v2830_v55 = vor.u32 %v2829_v52, %v2826_v39  ;;  %v16553_v39 = vld [vmem:[#allocation2 + $0x10c] sm:$0xf]  ;;  %v2366_v8 = vld [vmem:[#allocation2 + $0x114] sm:$0xf] }
 0x2a6   :  { %12677 = vmatprep.mubr.bf16.mxu1 %v11647_v16  ;;  %v2821_v7 = vrot.slane %v2819_v18, 5  ;;  %v2833_v6 = vshll.u32 %v2357_v53, 16  ;;  %v2812_v21 = vsel %vm16257_vm11, %v2807_v12, %v2811_v29  ;;  %v2816_v23 = vor.u32 %v2815_v10, %v2811_v29 }
 0x2a7   :  { %v2874_v5 = vrot.slane %v2872_v20, 4  ;;  %v2877_v14 = vrot.slane %v2875_v40, 5  ;;  %12765 = vmatprep.mubr.bf16.mxu0 %v11691_v63  ;;  %v2831_v45 = vrot.slane %v2830_v55, 4  ;;  %v2839_v22 = vrot.slane %v2837_v58, 4 }
 0x2a8   :  { %v2835_v32 = vrot.slane %v2833_v6, 5  ;;  %v2843_v4 = vshll.u32 %v2420_v11, 16  ;;  %v2817_v33 = vrot.slane %v2816_v23, 4  ;;  %v2896_v42 = vshrl.u32 %v2362_v50, 16  ;;  %v2423_v6 = vld [vmem:[#allocation2 + $0x104] sm:$0x1] }
 0x2a9   :  { %v2899_v60 = vshll.u32 %v2362_v50, 16  ;;  %v2909_v47 = vshrl.u32 %v16543_v31, 16  ;;  %v11692_v27 = vcombine.low %v2362_v50, %v16543_v31  ;;  %v2854_v13 = vor.u32 %v2853_v49, %v2850_v28  ;;  %v16560_v49 = vld [vmem:[#allocation2 + $0x118] sm:$0xf] }
 0x2aa   :  { %v2836_v53 = vsel %vm16257_vm11, %v2831_v45, %v2835_v32  ;;  %v2840_v34 = vor.u32 %v2839_v22, %v2835_v32  ;;  %v2845_v0 = vrot.slane %v2843_v4, 5  ;;  %v2822_v56 = vsel %vm16257_vm11, %v2817_v33, %v2821_v7  ;;  %v2368_v32 = vld [vmem:[#allocation2 + $0x120] sm:$0xf]  ;;  %v16571_v22 = vld [vmem:[#allocation2 + $0x124] sm:$0xf] }
 0x2ab   :  { %v2898_v1 = vrot.slane %v2896_v42, 4  ;;  %v2901_v59 = vrot.slane %v2899_v60, 5  ;;  %v11648_v54 = vcombine.low %v2812_v21, %v2822_v56  ;;  %v2857_v58 = vshll.u32 %v16526_v43, 16 }
 0x2ac   :  { %v2841_v15 = vrot.slane %v2840_v34, 4  ;;  %v2863_v37 = vrot.slane %v2861_v51, 4  ;;  %v2855_v19 = vrot.slane %v2854_v13, 4  ;;  %v2867_v9 = vshll.u32 %v2421_v26, 16  ;;  %v2424_v26 = vld [vmem:[#allocation2 + $0x110] sm:$0x1] }
 0x2ad   :  { %v2920_v57 = vshrl.u32 %v2364_v25, 16  ;;  %v2923_v52 = vshll.u32 %v2364_v25, 16  ;;  %12678 = vmatmul.mubr.bf16.gmra.mxu1 %v11648_v54  ;;  %12766 = vmatmul.mubr.bf16.gmra.mxu0 %v11692_v27  ;;  %v2859_v48 = vrot.slane %v2857_v58, 5  ;;  %v2933_v44 = vshrl.u32 %v16553_v39, 16  ;;  %v16578_v58 = vld [vmem:[#allocation2 + $0x130] sm:$0xf] }
 0x2ae   :  { %v2846_v24 = vsel %vm16257_vm11, %v2841_v15, %v2845_v0  ;;  %v11693_v28 = vcombine.low %v2364_v25, %v16553_v39  ;;  %v2869_v2 = vrot.slane %v2867_v9, 5  ;;  %v2878_v12 = vor.u32 %v2877_v14, %v2874_v5 }
 0x2af   :  { %v11649_v38 = vcombine.low %v2836_v53, %v2846_v24  ;;  %v2922_v43 = vrot.slane %v2920_v57, 4  ;;  %v2925_v51 = vrot.slane %v2923_v52, 5  ;;  %v2860_v62 = vsel %vm16257_vm11, %v2855_v19, %v2859_v48 }
 0x2b0   :  { %v2864_v16 = vor.u32 %v2863_v37, %v2859_v48  ;;  %12769 = vmatprep.mubr.bf16.mxu0 %v11693_v28  ;;  %v2881_v10 = vshll.u32 %v16530_v3, 16  ;;  %v2887_v18 = vrot.slane %v2885_v36, 4  ;;  %v2891_v29 = vshll.u32 %v2422_v17, 16  ;;  %v2425_v17 = vld [vmem:[#allocation2 + $0x11c] sm:$0x1] }
 0x2b1   :  { %12681 = vmatprep.mubr.bf16.mxu1 %v11649_v38  ;;  %v2944_v20 = vshrl.u32 %v2366_v8, 16  ;;  %v2947_v40 = vshll.u32 %v2366_v8, 16  ;;  %v2879_v7 = vrot.slane %v2878_v12, 4  ;;  %v2957_v55 = vshrl.u32 %v16560_v49, 16 }
 0x2b2   :  { %v2865_v11 = vrot.slane %v2864_v16, 4  ;;  %v2883_v63 = vrot.slane %v2881_v10, 5  ;;  %v2893_v50 = vrot.slane %v2891_v29, 5  ;;  %v11694_v45 = vcombine.low %v2366_v8, %v16560_v49  ;;  %v2372_v8 = vld [vmem:[#allocation2 + $0x138] sm:$0xf] }
 0x2b3   :  { %v2946_v21 = vrot.slane %v2944_v20, 4  ;;  %v2949_v23 = vrot.slane %v2947_v40, 5  ;;  %v2902_v14 = vor.u32 %v2901_v59, %v2898_v1  ;;  %v2905_v33 = vshll.u32 %v16543_v31, 16  ;;  %v2370_v59 = vld [vmem:[#allocation2 + $0x12c] sm:$0xf] }
 0x2b4   :  { %v2870_v3 = vsel %vm16257_vm11, %v2865_v11, %v2869_v2  ;;  %v2884_v36 = vsel %vm16257_vm11, %v2879_v7, %v2883_v63  ;;  %v2888_v5 = vor.u32 %v2887_v18, %v2883_v63  ;;  %v2911_v42 = vrot.slane %v2909_v47, 4  ;;  %v16589_v20 = vld [vmem:[#allocation2 + $0x13c] sm:$0xf] }
 0x2b5   :  { %v11650_v4 = vcombine.low %v2860_v62, %v2870_v3  ;;  %v2915_v60 = vshll.u32 %v2423_v6, 16  ;;  %12770 = vmatmul.mubr.bf16.gmra.mxu0 %v11694_v45  ;;  %v2903_v34 = vrot.slane %v2902_v14, 4  ;;  %v2968_v0 = vshrl.u32 %v2368_v32, 16  ;;  %v2426_v6 = vld [vmem:[#allocation2 + $0x128] sm:$0x1] }
 0x2b6   :  { %v2889_v53 = vrot.slane %v2888_v5, 4  ;;  %v2971_v27 = vshll.u32 %v2368_v32, 16  ;;  %v2907_v25 = vrot.slane %v2905_v33, 5  ;;  %v2981_v13 = vshrl.u32 %v16571_v22, 16  ;;  %v16594_v3 = vld [vmem:[#allocation2 + $0x148] sm:$0xf] }
 0x2b7   :  { %12682 = vmatmul.mubr.bf16.gmra.mxu1 %v11650_v4  ;;  %v2917_v56 = vrot.slane %v2915_v60, 5  ;;  %v11695_v1 = vcombine.low %v2368_v32, %v16571_v22  ;;  %v2970_v31 = vrot.slane %v2968_v0, 4  ;;  %v2926_v15 = vor.u32 %v2925_v51, %v2922_v43  ;;  %v16592_v32 = vld [vmem:[#allocation2 + $0x144] sm:$0xf]  ;;  %v16600_v60 = vld [vmem:[#allocation2 + $0x134] sm:$0x1] }
 0x2b8   :  { %v2894_v54 = vsel %vm16257_vm11, %v2889_v53, %v2893_v50  ;;  %v2973_v47 = vrot.slane %v2971_v27, 5  ;;  %v2908_v19 = vsel %vm16257_vm11, %v2903_v34, %v2907_v25  ;;  %v2912_v9 = vor.u32 %v2911_v42, %v2907_v25  ;;  %v2376_v53 = vld [vmem:[#allocation2 + $0x150] sm:$0xf] }
 0x2b9   :  { %v11651_v37 = vcombine.low %v2884_v36, %v2894_v54  ;;  %12773 = vmatprep.mubr.bf16.mxu0 %v11695_v1  ;;  %v2929_v57 = vshll.u32 %v16553_v39, 16  ;;  %v2927_v52 = vrot.slane %v2926_v15, 4  ;;  %v2935_v24 = vrot.slane %v2933_v44, 4 }
 0x2ba   :  { %v2939_v48 = vshll.u32 %v2424_v26, 16  ;;  %v2992_v28 = vshrl.u32 %v2370_v59, 16  ;;  %v2913_v38 = vrot.slane %v2912_v9, 4  ;;  %v2995_v43 = vshll.u32 %v2370_v59, 16 }
 0x2bb   :  { %12685 = vmatprep.mubr.bf16.mxu1 %v11651_v37  ;;  %v2931_v2 = vrot.slane %v2929_v57, 5  ;;  %v3005_v51 = vshrl.u32 %v16578_v58, 16  ;;  %v11696_v12 = vcombine.low %v2370_v59, %v16578_v58  ;;  %v2950_v10 = vor.u32 %v2949_v23, %v2946_v21 }
 0x2bc   :  { %v2941_v62 = vrot.slane %v2939_v48, 5  ;;  %v2994_v16 = vrot.slane %v2992_v28, 4  ;;  %v2918_v39 = vsel %vm16257_vm11, %v2913_v38, %v2917_v56  ;;  %v2997_v29 = vrot.slane %v2995_v43, 5  ;;  %v16615_v28 = vld [vmem:[#allocation2 + $0x140] sm:$0x1] }
 0x2bd   :  { %v2932_v44 = vsel %vm16257_vm11, %v2927_v52, %v2931_v2  ;;  %v2936_v18 = vor.u32 %v2935_v24, %v2931_v2  ;;  %v11652_v40 = vcombine.low %v2908_v19, %v2918_v39  ;;  %12774 = vmatmul.mubr.bf16.gmra.mxu0 %v11696_v12  ;;  %v2951_v11 = vrot.slane %v2950_v10, 4  ;;  %v16610_v52 = vld [vmem:[#allocation2 + $0x154] sm:$0xf] }
 0x2be   :  { %v2953_v7 = vshll.u32 %v16560_v49, 16  ;;  %v2959_v63 = vrot.slane %v2957_v55, 4  ;;  %v2963_v45 = vshll.u32 %v2425_v17, 16  ;;  %v3016_v21 = vshrl.u32 %v2372_v8, 16 }
 0x2bf   :  { %v2937_v50 = vrot.slane %v2936_v18, 4  ;;  %v3019_v23 = vshll.u32 %v2372_v8, 16  ;;  %12686 = vmatmul.mubr.bf16.gmra.mxu1 %v11652_v40  ;;  %v3029_v5 = vshrl.u32 %v16589_v20, 16  ;;  %v11697_v14 = vcombine.low %v2372_v8, %v16589_v20 }
 0x2c0   :  { %v2955_v36 = vrot.slane %v2953_v7, 5  ;;  %v2974_v4 = vor.u32 %v2973_v47, %v2970_v31  ;;  %v2965_v55 = vrot.slane %v2963_v45, 5  ;;  %v3018_v33 = vrot.slane %v3016_v21, 4  ;;  %v16628_v7 = vld [vmem:[#allocation2 + $0x160] sm:$0xf] }
 0x2c1   :  { %v2942_v49 = vsel %vm16257_vm11, %v2937_v50, %v2941_v62  ;;  %v3021_v42 = vrot.slane %v3019_v23, 5  ;;  %12777 = vmatprep.mubr.bf16.mxu0 %v11697_v14  ;;  %v2977_v25 = vshll.u32 %v16571_v22, 16  ;;  %v2983_v56 = vrot.slane %v2981_v13, 4  ;;  %v16635_v14 = vld [vmem:[#allocation2 + $0x14c] sm:$0x1] }
 0x2c2   :  { %v11653_v34 = vcombine.low %v2932_v44, %v2942_v49  ;;  %v2956_v0 = vsel %vm16257_vm11, %v2951_v11, %v2955_v36  ;;  %v2960_v27 = vor.u32 %v2959_v63, %v2955_v36  ;;  %v2975_v26 = vrot.slane %v2974_v4, 4 }
 0x2c3   :  { %v2987_v1 = vshll.u32 %v2426_v6, 16  ;;  %v3040_v59 = vshrl.u32 %v16592_v32, 16  ;;  %v3043_v31 = vshll.u32 %v16592_v32, 16  ;;  %v11698_v47 = vcombine.low %v16592_v32, %v16594_v3 }
 0x2c4   :  { %12689 = vmatprep.mubr.bf16.mxu1 %v11653_v34  ;;  %v2961_v54 = vrot.slane %v2960_v27, 4  ;;  %v2998_v15 = vor.u32 %v2997_v29, %v2994_v16  ;;  %v2979_v37 = vrot.slane %v2977_v25, 5  ;;  %v3001_v9 = vshll.u32 %v16578_v58, 16  ;;  %v16619_v58 = vld [vmem:[#allocation2 + $0x15c] sm:$0xf] }
 0x2c5   :  { %v2989_v19 = vrot.slane %v2987_v1, 5  ;;  %v3007_v57 = vrot.slane %v3005_v51, 4  ;;  %12778 = vmatmul.mubr.bf16.gmra.mxu0 %v11698_v47  ;;  %v3011_v24 = vshll.u32 %v16600_v60, 16  ;;  %v3064_v48 = vshrl.u32 %v2376_v53, 16 }
 0x2c6   :  { %v2966_v22 = vsel %vm16257_vm11, %v2961_v54, %v2965_v55  ;;  %v2999_v13 = vrot.slane %v2998_v15, 4  ;;  %v2980_v8 = vsel %vm16257_vm11, %v2975_v26, %v2979_v37  ;;  %v2984_v38 = vor.u32 %v2983_v56, %v2979_v37 }
 0x2c7   :  { %v11654_v17 = vcombine.low %v2956_v0, %v2966_v22  ;;  %v3003_v2 = vrot.slane %v3001_v9, 5  ;;  %v3013_v43 = vrot.slane %v3011_v24, 5  ;;  %v16621_v51 = vrot.slane %v3064_v48, 4  ;;  %v16660_v48 = vld [vmem:[#allocation2 + $0x174] sm:$0xf] }
 0x2c8   :  { %v3067_v62 = vshll.u32 %v2376_v53, 16  ;;  %v3077_v16 = vshrl.u32 %v16610_v52, 16  ;;  %v2985_v12 = vrot.slane %v2984_v38, 4  ;;  %v11699_v44 = vcombine.low %v2376_v53, %v16610_v52 }
 0x2c9   :  { %12690 = vmatmul.mubr.bf16.gmra.mxu1 %v11654_v17  ;;  %v3004_v10 = vsel %vm16257_vm11, %v2999_v13, %v3003_v2  ;;  %v3008_v39 = vor.u32 %v3007_v57, %v3003_v2  ;;  %v3022_v29 = vor.u32 %v3021_v42, %v3018_v33  ;;  %v3025_v40 = vshll.u32 %v16589_v20, 16  ;;  %v16637_v20 = vld [vmem:[#allocation2 + $0x16c] sm:$0xf]  ;;  %v2380_v33 = vld [vmem:[#allocation2 + $0x168] sm:$0xf]  ;;  %v16646_v42 = vld [vmem:[%s21257_s4 + $0x178] sm:$0xff]  }
 0x2ca   :  { %v3069_v18 = vrot.slane %v3067_v62, 5  ;;  %v3031_v11 = vrot.slane %v3029_v5, 4  ;;  %v2990_v63 = vsel %vm16257_vm11, %v2985_v12, %v2989_v19  ;;  %12781 = vmatprep.mubr.bf16.mxu0 %v11699_v44  ;;  %v3035_v50 = vshll.u32 %v16615_v28, 16  ;;  %13033 = vmatprep.subr.bf16.mxu0 %v16646_v42  ;;  %v16656_v57 = vld [vmem:[#allocation2 + $0x158] sm:$0x1] }
 0x2cb   :  { %v3009_v6 = vrot.slane %v3008_v39, 4  ;;  %v3088_v45 = vshrl.u32 %v16619_v58, 16  ;;  %v11655_v21 = vcombine.low %v2980_v8, %v2990_v63  ;;  %v3023_v23 = vrot.slane %v3022_v29, 4 }
 0x2cc   :  { %v3027_v32 = vrot.slane %v3025_v40, 5  ;;  %v3091_v36 = vshll.u32 %v16619_v58, 16  ;;  %v3037_v4 = vrot.slane %v3035_v50, 5  ;;  %v11700_v49 = vcombine.low %v16619_v58, %v16628_v7  ;;  %v16664_v58 = vld [vmem:[#allocation2 + $0x178] sm:$0xf] }
 0x2cd   :  { %v3014_v5 = vsel %vm16257_vm11, %v3009_v6, %v3013_v43  ;;  %v3042_v55 = vrot.slane %v3040_v59, 4  ;;  %12693 = vmatprep.mubr.bf16.mxu1 %v11655_v21  ;;  %v3045_v27 = vrot.slane %v3043_v31, 5  ;;  %v3049_v26 = vshll.u32 %v16594_v3, 16  ;;  %v16666_v43 = vld [vmem:[#allocation2 + $0x164] sm:$0x1] }
 0x2ce   :  { %v11656_v53 = vcombine.low %v3004_v10, %v3014_v5  ;;  %v3028_v34 = vsel %vm16257_vm11, %v3023_v23, %v3027_v32  ;;  %v3032_v0 = vor.u32 %v3031_v11, %v3027_v32  ;;  %12782 = vmatmul.mubr.bf16.gmra.mxu0 %v11700_v49  ;;  %v3053_v25 = vshrl.u32 %v16594_v3, 16 }
 0x2cf   :  { %v3059_v56 = vshll.u32 %v16635_v14, 16  ;;  %v3046_v54 = vor.u32 %v3045_v27, %v3042_v55  ;;  %v3112_v47 = vshrl.u32 %v2380_v33, 16  ;;  %v3115_v15 = vshll.u32 %v2380_v33, 16  ;;  %v16688_v27 = vld [vmem:[#allocation2 + $0x18c] sm:$0xf] }
 0x2d0   :  { %v3033_v59 = vrot.slane %v3032_v0, 4  ;;  %v3051_v37 = vrot.slane %v3049_v26, 5  ;;  %v3055_v19 = vrot.slane %v3053_v25, 4  ;;  %v3125_v31 = vshrl.u32 %v16637_v20, 16  ;;  %v13594_v0 = vld [vmem:[#allocation2 + $0xac] sm:$0xf] }
 0x2d1   :  { %12694 = vmatmul.mubr.bf16.gmra.mxu1 %v11656_v53  ;;  %v3061_v9 = vrot.slane %v3059_v56, 5  ;;  %v3047_v22 = vrot.slane %v3046_v54, 4  ;;  %v3114_v13 = vrot.slane %v3112_v47, 4  ;;  %v3117_v24 = vrot.slane %v3115_v15, 5  ;;  %v16690_v54 = vld [vmem:[#allocation2 + $0x190] sm:$0xf] }
 0x2d2   :  { %v3038_v3 = vsel %vm16257_vm11, %v3033_v59, %v3037_v4  ;;  %v3056_v8 = vor.u32 %v3055_v19, %v3051_v37  ;;  %v11701_v38 = vcombine.low %v2380_v33, %v16637_v20  ;;  %v3070_v2 = vor.u32 %v3069_v18, %v16621_v51  ;;  %v2384_v18 = vld [vmem:[#allocation2 + $0x180] sm:$0xf]  ;;  %v16683_v33 = vld [vmem:[#allocation2 + $0x184] sm:$0xf] }
 0x2d3   :  { %v11657_v17 = vcombine.low %v3028_v34, %v3038_v3  ;;  %v3052_v62 = vsel %vm16257_vm11, %v3047_v22, %v3051_v37  ;;  %v3073_v12 = vshll.u32 %v16610_v52, 16  ;;  %v3079_v10 = vrot.slane %v3077_v16, 4 }
 0x2d4   :  { %v3083_v39 = vshll.u32 %v16656_v57, 16  ;;  %v3057_v44 = vrot.slane %v3056_v8, 4  ;;  %12785 = vmatprep.mubr.bf16.mxu0 %v11701_v38  ;;  %v3071_v29 = vrot.slane %v3070_v2, 4  ;;  %v3136_v40 = vshrl.u32 %v16660_v48, 16 }
 0x2d5   :  { %12697 = vmatprep.mubr.bf16.mxu1 %v11657_v17  ;;  %v3139_v51 = vshll.u32 %v16660_v48, 16  ;;  %v3075_v11 = vrot.slane %v3073_v12, 5  ;;  %v11702_v6 = vcombine.low %v16660_v48, %v16664_v58  ;;  %v3090_v50 = vrot.slane %v3088_v45, 4 }
 0x2d6   :  { %v3085_v63 = vrot.slane %v3083_v39, 5  ;;  %v3062_v16 = vsel %vm16257_vm11, %v3057_v44, %v3061_v9  ;;  %v3093_v21 = vrot.slane %v3091_v36, 5  ;;  %v3097_v23 = vshll.u32 %v16628_v7, 16  ;;  %v16686_v36 = vld [vmem:[#allocation2 + $0x170] sm:$0x1] }
 0x2d7   :  { %v3101_v32 = vshrl.u32 %v16628_v7, 16  ;;  %v11658_v5 = vcombine.low %v3052_v62, %v3062_v16  ;;  %v3076_v4 = vsel %vm16257_vm11, %v3071_v29, %v3075_v11  ;;  %v3080_v49 = vor.u32 %v3079_v10, %v3075_v11  ;;  %12786 = vmatmul.mubr.bf16.gmra.mxu0 %v11702_v6 }
 0x2d8   :  { %v3107_v55 = vshll.u32 %v16666_v43, 16  ;;  %v3094_v53 = vor.u32 %v3093_v21, %v3090_v50  ;;  %v3099_v45 = vrot.slane %v3097_v23, 5  ;;  %v3160_v56 = vshrl.u32 %v2384_v18, 16  ;;  %v13457_v50 = vld [vmem:[#allocation2 + $0xc] sm:$0xff]  }
 0x2d9   :  { %v3103_v34 = vrot.slane %v3101_v32, 4  ;;  %12698 = vmatmul.mubr.bf16.gmra.mxu1 %v11658_v5  ;;  %v3081_v26 = vrot.slane %v3080_v49, 4  ;;  %v3163_v59 = vshll.u32 %v2384_v18, 16  ;;  %v3173_v37 = vshrl.u32 %v16683_v33, 16  ;;  %v16714_v5 = vld [vmem:[#allocation2 + $0x188] sm:$0x1] }
 0x2da   :  { %v3109_v25 = vrot.slane %v3107_v55, 5  ;;  %v3095_v47 = vrot.slane %v3094_v53, 4  ;;  %v11703_v19 = vcombine.low %v2384_v18, %v16683_v33  ;;  %v3162_v3 = vrot.slane %v3160_v56, 4  ;;  %v16708_v18 = vld [vmem:[#allocation2 + $0x17c] sm:$0x1] }
 0x2db   :  { %v3104_v15 = vor.u32 %v3103_v34, %v3099_v45  ;;  %v3086_v9 = vsel %vm16257_vm11, %v3081_v26, %v3085_v63  ;;  %v3165_v22 = vrot.slane %v3163_v59, 5  ;;  %v3118_v48 = vor.u32 %v3117_v24, %v3114_v13 }
 0x2dc   :  { %v11659_v17 = vcombine.low %v3076_v4, %v3086_v9  ;;  %v3100_v8 = vsel %vm16257_vm11, %v3095_v47, %v3099_v45  ;;  %12789 = vmatprep.mubr.bf16.mxu0 %v11703_v19  ;;  %v3121_v2 = vshll.u32 %v16637_v20, 16  ;;  %v3127_v12 = vrot.slane %v3125_v31, 4  ;;  %v16722_v9 = vld [vmem:[#allocation2 + $0x194] sm:$0x1] }
 0x2dd   :  { %v3105_v38 = vrot.slane %v3104_v15, 4  ;;  %v3119_v62 = vrot.slane %v3118_v48, 4  ;;  %v3131_v10 = vshll.u32 %v16686_v36, 16  ;;  %v3184_v39 = vshrl.u32 %v16688_v27, 16 }
 0x2de   :  { %12701 = vmatprep.mubr.bf16.mxu1 %v11659_v17  ;;  %v3123_v24 = vrot.slane %v3121_v2, 5  ;;  %v3187_v44 = vshll.u32 %v16688_v27, 16  ;;  %v11704_v29 = vcombine.low %v16688_v27, %v16690_v54  ;;  %v3138_v6 = vrot.slane %v3136_v40, 4 }
 0x2df   :  { %v3110_v13 = vsel %vm16257_vm11, %v3105_v38, %v3109_v25  ;;  %v3133_v63 = vrot.slane %v3131_v10, 5  ;;  %v3141_v31 = vrot.slane %v3139_v51, 5  ;;  %v3145_v23 = vshll.u32 %v16664_v58, 16  ;;  %v13492_v10 = vld [vmem:[%s21257_s4 + $0x170] sm:$0xff]  }
 0x2e0   :  { %v11660_v11 = vcombine.low %v3100_v8, %v3110_v13  ;;  %v3124_v16 = vsel %vm16257_vm11, %v3119_v62, %v3123_v24  ;;  %v3128_v21 = vor.u32 %v3127_v12, %v3123_v24  ;;  %12790 = vmatmul.mubr.bf16.gmra.mxu0 %v11704_v29  ;;  %v3149_v32 = vshrl.u32 %v16664_v58, 16  ;;  %v4217_v8 = vld [vmem:[#allocation2] sm:$0xe]  ;;  %v13459_v12 = vld [vmem:[#allocation2 + $0x18] sm:$0xff]  }
 0x2e1   :  { %v3142_v4 = vor.u32 %v3141_v31, %v3138_v6  ;;  %v3155_v49 = vshll.u32 %v16708_v18, 16  ;;  %12889 = vmatprep.mubr.bf16.mxu0 %v13457_v50  ;;  %v3166_v40 = vor.u32 %v3165_v22, %v3162_v3  ;;  %v3147_v53 = vrot.slane %v3145_v23, 5  ;;  %v13592_v50 = vld [vmem:[#allocation2 + $0xa0] sm:$0xf] }
 0x2e2   :  { %12702 = vmatmul.mubr.bf16.gmra.mxu1 %v11660_v11  ;;  %v3129_v51 = vrot.slane %v3128_v21, 4  ;;  %v3151_v45 = vrot.slane %v3149_v32, 4  ;;  %v3169_v34 = vshll.u32 %v16683_v33, 16  ;;  %v3175_v56 = vrot.slane %v3173_v37, 4  ;;  %v4218_v11 = vld [vmem:[#allocation2 + $0xc] sm:$0xe] }
 0x2e3   :  { %v3143_v27 = vrot.slane %v3142_v4, 4  ;;  %v3157_v26 = vrot.slane %v3155_v49, 5  ;;  %v3167_v25 = vrot.slane %v3166_v40, 4  ;;  %v3179_v19 = vshll.u32 %v16714_v5, 16 }
 0x2e4   :  { %v3134_v59 = vsel %vm16257_vm11, %v3129_v51, %v3133_v63  ;;  %v3152_v47 = vor.u32 %v3151_v45, %v3147_v53  ;;  %v3171_v15 = vrot.slane %v3169_v34, 5  ;;  %v3186_v22 = vrot.slane %v3184_v39, 4  ;;  %v4219_v63 = vld [vmem:[#allocation2 + $0x18] sm:$0xe]  ;;  %v13495_v51 = vld [vmem:[%s21257_s4 + $0x168] sm:$0xff]  }
 0x2e5   :  { %v11661_v48 = vcombine.low %v3124_v16, %v3134_v59  ;;  %v3148_v3 = vsel %vm16257_vm11, %v3143_v27, %v3147_v53  ;;  %v3189_v17 = vrot.slane %v3187_v44, 5  ;;  %v3181_v62 = vrot.slane %v3179_v19, 5  ;;  %v13460_v44 = vld [vmem:[#allocation2 + $0x24] sm:$0xff]  }
 0x2e6   :  { %v3153_v38 = vrot.slane %v3152_v47, 4  ;;  %v3172_v37 = vsel %vm16257_vm11, %v3167_v25, %v3171_v15  ;;  %v3176_v2 = vor.u32 %v3175_v56, %v3171_v15  ;;  %v3193_v24 = vshll.u32 %v16690_v54, 16  ;;  %v13567_v27 = vld [vmem:[#allocation2 + $0x4] sm:$0xf]  ;;  %v13568_v56 = vld [vmem:[#allocation2 + $0x10] sm:$0xf] }
 0x2e7   :  { %12705 = vmatprep.mubr.bf16.mxu1 %v11661_v48  ;;  %v3190_v13 = vor.u32 %v3189_v17, %v3186_v22  ;;  %v3197_v29 = vshrl.u32 %v16690_v54, 16  ;;  %v3203_v39 = vshll.u32 %v16722_v9, 16  ;;  %v11713_v40 = vrot.slane %v4217_v8, 9  ;;  %v13569_v15 = vld [vmem:[#allocation2 + $0x1c] sm:$0xf] }
 0x2e8   :  { %v3158_v6 = vsel %vm16257_vm11, %v3153_v38, %v3157_v26  ;;  %v3177_v31 = vrot.slane %v3176_v2, 4  ;;  %12890 = vmatmul.mubr.bf16.vlgmr.msra.gmra.mxu0 %v13459_v12  ;;  %v3195_v23 = vrot.slane %v3193_v24, 5  ;;  %v4318_v26 = vrot.slane %v13567_v27, 5  ;;  %v4220_v48 = vld [vmem:[#allocation2 + $0x24] sm:$0xe] }
 0x2e9   :  { %v11662_v16 = vcombine.low %v3148_v3, %v3158_v6  ;;  %v3191_v21 = vrot.slane %v3190_v13, 4  ;;  %v3199_v32 = vrot.slane %v3197_v29, 4  ;;  %12893 = vmatprep.mubr.bf16.mxu0 %v13460_v44  ;;  %13034 = vmatpush3.bf16.msra.mxu0 %v16646_v42  ;;  %v3205_v49 = vrot.slane %v3203_v39, 5  ;;  %v13570_v8 = vld [vmem:[#allocation2 + $0x20] sm:$0x1] }
 0x2ea   :  { %v3182_v4 = vsel %vm16257_vm11, %v3177_v31, %v3181_v62  ;;  %13035 = vmatprep.subr.bf16.mxu0 %v13492_v10  ;;  %v21868_v42 = vmov 0  ;;  %v11714_v25 = vrot.slane %v4218_v11, 9  ;;  %v4325_v59 = vrot.slane %v13568_v56, 5  ;;  %v13497_v24 = vld [vmem:[%s21257_s4 + $0x160] sm:$0xff]   ;;  %v13571_v11 = vld [vmem:[#allocation2 + $0x28] sm:$0xf] }
 0x2eb   :  { %12706 = vmatmul.mubr.bf16.gmra.mxu1 %v11662_v16  ;;  %v11663_v53 = vcombine.low %v3172_v37, %v3182_v4  ;;  %v3196_v45 = vsel %vm16257_vm11, %v3191_v21, %v3195_v23  ;;  %v3200_v34 = vor.u32 %v3199_v32, %v3195_v23  ;;  %v21869_v42 = vsel %vm16746_vm14, 4294967295, %v21868_v42  ;;  %v13461_v37 = vld [vmem:[#allocation2 + $0x30] sm:$0xff]   ;;  %v13463_v39 = vld [vmem:[#allocation2 + $0x3c] sm:$0xff]   ;;  %v13574_v27 = vld [vmem:[#allocation2 + $0x38] sm:$0x1] }
 0x2ec   :  { %21870 = vst [vmem:[#allocation20_spill] sm:$0xff] %v21869_v42  ;;  %v11715_v47 = vrot.slane %v4219_v63, 9  ;;  %v4332_v19 = vrot.slane %v13569_v15, 5  ;;  %v4319_v22 = vsel %vm16746_vm14, %v11713_v40, %v4318_v26  ;;  %v4320_v17 = vrot.slane %v4318_v26, 4  ;;  %v4221_v6 = vld [vmem:[#allocation2 + $0x30] sm:$0xe] }
 0x2ed   :  { %12709 = vmatprep.mubr.bf16.mxu1 %v11663_v53  ;;  %v3201_v3 = vrot.slane %v3200_v34, 4  ;;  %v4335_v38 = vrot.slane %v13570_v8, 5  ;;  %13036 = vmatpush3.bf16.msra.mxu0 %v13492_v10  ;;  %v16754_v2 = vsel %vm16746_vm14, %v11714_v25, %v4325_v59  ;;  %v4327_v62 = vrot.slane %v4325_v59, 4  ;;  %v4222_v23 = vld [vmem:[#allocation2 + $0x3c] sm:$0xe] }
 0x2ee   :  { %v16758_v12 = vsel %vm16746_vm14, %v11715_v47, %v4332_v19  ;;  %v4334_v13 = vrot.slane %v4332_v19, 4  ;;  %13037 = vmatprep.subr.bf16.mxu0 %v13495_v51  ;;  %v4322_v10 = vsel %vm16746_vm14, %v4320_v17, %v4321_v41  ;;  %v11716_v44 = vrot.slane %v4220_v48, 9  ;;  %v4223_v41 = vld [vmem:[#allocation2 + $0x48] sm:$0xe]  ;;  %v13499_v25 = vld [vmem:[%s21257_s4 + $0x158] sm:$0xff]  }
 0x2ef   :  { %v3206_v29 = vsel %vm16257_vm11, %v3201_v3, %v3205_v49  ;;  %v4339_v63 = vrot.slane %v13571_v11, 5  ;;  %v11745_v16 = vcombine.low %v4319_v22, %v4322_v10  ;;  %v16773_v21 = vsel %vm16746_vm14, %v4327_v62, %v4328_v46  ;;  %v13572_v46 = vld [vmem:[#allocation2 + $0x2c] sm:$0x1]  ;;  %v13575_v59 = vld [vmem:[#allocation2 + $0x40] sm:$0xf] }
 0x2f0   :  { %v11664_v31 = vcombine.low %v3196_v45, %v3206_v29  ;;  %12894 = vmatmul.mubr.bf16.gmra.mxu0 %v13461_v37  ;;  %v16777_v61 = vsel %vm16746_vm14, %v4334_v13, %v4335_v38  ;;  %v11746_v32 = vcombine.low %v16754_v2, %v16773_v21  ;;  %v4342_v40 = vrot.slane %v13572_v46, 5  ;;  %v13573_v45 = vld [vmem:[#allocation2 + $0x34] sm:$0xf]  ;;  %v13576_v15 = vld [vmem:[#allocation2 + $0x44] sm:$0x1] }
 0x2f1   :  { %12897 = vmatprep.mubr.bf16.mxu0 %v13463_v39  ;;  %v11747_v4 = vcombine.low %v16758_v12, %v16777_v61  ;;  %v16785_v35 = vsel %vm16746_vm14, %v11716_v44, %v4339_v63  ;;  %v4341_v49 = vrot.slane %v4339_v63, 4  ;;  %13038 = vmatpush3.bf16.msra.mxu0 %v13495_v51  ;;  %v11717_v53 = vrot.slane %v4221_v6, 9  ;;  %v4224_v51 = vld [vmem:[#allocation2 + $0x54] sm:$0xe]  ;;  %v13577_v8 = vld [vmem:[#allocation2 + $0x4c] sm:$0xf] }
 0x2f2   :  { %v4346_v34 = vrot.slane %v13573_v45, 5  ;;  %v4349_v26 = vrot.slane %v13574_v27, 5  ;;  %13039 = vmatprep.subr.bf16.mxu0 %v13497_v24  ;;  %v11718_v56 = vrot.slane %v4222_v23, 9  ;;  %v4353_v47 = vrot.slane %v13575_v59, 5  ;;  %v13578_v29 = vld [vmem:[#allocation2 + $0x50] sm:$0x1] }
 0x2f3   :  { %12710 = vmatmul.mubr.bf16.gmra.mxu1 %v11664_v31  ;;  %v4356_v19 = vrot.slane %v13576_v15, 5  ;;  %v11719_v48 = vrot.slane %v4223_v41, 9  ;;  %v16792_v3 = vsel %vm16746_vm14, %v4341_v49, %v4342_v40  ;;  %v4360_v38 = vrot.slane %v13577_v8, 5  ;;  %v4225_v39 = vld [vmem:[#allocation2 + $0x60] sm:$0xe]  ;;  %v13464_v44 = vld [vmem:[#allocation2 + $0x48] sm:$0xff]  }
 0x2f4   :  { %12809 = vmatprep.mubr.bf16.mxu1 %v11745_v16  ;;  %v16796_v22 = vsel %vm16746_vm14, %v11717_v53, %v4346_v34  ;;  %v4348_v17 = vrot.slane %v4346_v34, 4  ;;  %v11748_v37 = vcombine.low %v16785_v35, %v16792_v3  ;;  %v16802_v62 = vsel %vm16746_vm14, %v11718_v56, %v4353_v47  ;;  %v13501_v16 = vld [vmem:[%s21257_s4 + $0x150] sm:$0xff]   ;;  %v13579_v49 = vld [vmem:[#allocation2 + $0x58] sm:$0xf]  ;;  %v13580_v40 = vld [vmem:[#allocation2 + $0x5c] sm:$0x1] }
 0x2f5   :  { %v4355_v13 = vrot.slane %v4353_v47, 4  ;;  %v4363_v10 = vrot.slane %v13578_v29, 5  ;;  %13040 = vmatpush3.bf16.msra.mxu0 %v13497_v24  ;;  %v16810_v63 = vsel %vm16746_vm14, %v11719_v48, %v4360_v38  ;;  %v4362_v6 = vrot.slane %v4360_v38, 4  ;;  %v13465_v23 = vld [vmem:[#allocation2 + $0x54] sm:$0xff]   ;;  %v4226_v45 = vld [vmem:[#allocation2 + $0x6c] sm:$0xe] }
 0x2f6   :  { %v16806_v11 = vsel %vm16746_vm14, %v4348_v17, %v4349_v26  ;;  %v11720_v31 = vrot.slane %v4224_v51, 9  ;;  %13041 = vmatprep.subr.bf16.mxu0 %v13499_v25  ;;  %v4367_v46 = vrot.slane %v13579_v49, 5  ;;  %v4370_v53 = vrot.slane %v13580_v40, 5  ;;  %v13581_v56 = vld [vmem:[#allocation2 + $0x64] sm:$0xf]  ;;  %v13467_v15 = vld [vmem:[%s21257_s4 + $0x130] sm:$0xff]  }
 0x2f7   :  { %v11749_v24 = vcombine.low %v16796_v22, %v16806_v11  ;;  %v16819_v41 = vsel %vm16746_vm14, %v4355_v13, %v4356_v19  ;;  %v16825_v27 = vsel %vm16746_vm14, %v4362_v6, %v4363_v10  ;;  %v11721_v26 = vrot.slane %v4225_v39, 9  ;;  %v4227_v47 = vld [vmem:[#allocation2 + $0x78] sm:$0xe]  ;;  %v13582_v17 = vld [vmem:[#allocation2 + $0x68] sm:$0x1] }
 0x2f8   :  { %12898 = vmatmul.mubr.bf16.gmra.mxu0 %v13464_v44  ;;  %v11750_v34 = vcombine.low %v16802_v62, %v16819_v41  ;;  %v4374_v59 = vrot.slane %v13581_v56, 5  ;;  %v11751_v19 = vcombine.low %v16810_v63, %v16825_v27  ;;  %v16834_v48 = vsel %vm16746_vm14, %v11720_v31, %v4367_v46  ;;  %v13583_v10 = vld [vmem:[#allocation2 + $0x70] sm:$0xf]  ;;  %v16843_v44 = vld [vmem:[%s21257_s4 + $0x148] sm:$0xff]   ;;  %v13584_v6 = vld [vmem:[#allocation2 + $0x74] sm:$0x1] }
 0x2f9   :  { %12901 = vmatprep.mubr.bf16.mxu0 %v13465_v23  ;;  %v4369_v51 = vrot.slane %v4367_v46, 4  ;;  %v4377_v8 = vrot.slane %v13582_v17, 5  ;;  %13042 = vmatpush3.bf16.msra.mxu0 %v13499_v25  ;;  %v11722_v29 = vrot.slane %v4226_v45, 9  ;;  %v4381_v39 = vrot.slane %v13583_v10, 5  ;;  %v13585_v49 = vld [vmem:[#allocation2 + $0x7c] sm:$0xf] }
 0x2fa   :  { %v16838_v38 = vsel %vm16746_vm14, %v11721_v26, %v4374_v59  ;;  %v4376_v13 = vrot.slane %v4374_v59, 4  ;;  %13043 = vmatprep.subr.bf16.mxu0 %v13501_v16  ;;  %v4384_v31 = vrot.slane %v13584_v6, 5  ;;  %v11723_v23 = vrot.slane %v4227_v47, 9  ;;  %v4228_v40 = vld [vmem:[#allocation2 + $0x84] sm:$0xe]  ;;  %v13586_v45 = vld [vmem:[%s21257_s4 + $0x138] sm:$0xff]  }
 0x2fb   :  { %12810 = vmatmul.mubr.bf16.vlgmr.msra.gmra.mxu1 %v11746_v32  ;;  %v16850_v25 = vsel %vm16746_vm14, %v4369_v51, %v4370_v53  ;;  %v4388_v46 = vrot.slane %v13585_v49, 5  ;;  %v16866_v32 = vsel %vm16746_vm14, %v11722_v29, %v4381_v39  ;;  %v4383_v53 = vrot.slane %v4381_v39, 4  ;;  %v4229_v26 = vld [vmem:[#allocation2 + $0x90] sm:$0xe]  ;;  %v13472_v12 = vld [vmem:[%s21257_s4 + $0x128] sm:$0xff]   ;;  %v13466_v51 = vld [vmem:[#allocation2 + $0x60] sm:$0xff]  }
 0x2fc   :  { %12954 = vmatpush3.bf16.msra.mxu1 %v13586_v45  ;;  %12813 = vmatprep.mubr.bf16.mxu1 %v11747_v4  ;;  %v16862_v21 = vsel %vm16746_vm14, %v4376_v13, %v4377_v8  ;;  %v13587_v59 = vld [vmem:[#allocation2 + $0x80] sm:$0x1]  ;;  %v11724_v8 = vrot.slane %v4228_v40, 9  ;;  %v13588_v13 = vld [vmem:[#allocation2 + $0x88] sm:$0xf]  ;;  %v13468_v49 = vld [vmem:[#allocation2 + $0x6c] sm:$0xff]  }
 0x2fd   :  { %12955 = vmatprep.subr.bf16.mxu1 %v13467_v15  ;;  %v16875_v61 = vsel %vm16746_vm14, %v11723_v23, %v4388_v46  ;;  %v4390_v4 = vrot.slane %v4388_v46, 4  ;;  %v4391_v47 = vrot.slane %v13587_v59, 5  ;;  %13044 = vmatpush3.bf16.msra.mxu0 %v13501_v16  ;;  %v16879_v17 = vsel %vm16746_vm14, %v4383_v53, %v4384_v31  ;;  %v13589_v10 = vld [vmem:[#allocation2 + $0x8c] sm:$0x1]  ;;  %v4230_v6 = vld [vmem:[#allocation2 + $0x9c] sm:$0xe] }
 0x2fe   :  { %v4395_v29 = vrot.slane %v13588_v13, 5  ;;  %v4398_v39 = vrot.slane %v13589_v10, 5  ;;  %13045 = vmatprep.subr.bf16.mxu0 %v16843_v44  ;;  %v11725_v46 = vrot.slane %v4229_v26, 9  ;;  %v13590_v45 = vld [vmem:[#allocation2 + $0x94] sm:$0xf]  ;;  %v13505_v40 = vld [vmem:[%s21257_s4 + $0x140] sm:$0xff]  }
 0x2ff   :  { %v16886_v16 = vsel %vm16746_vm14, %v4390_v4, %v4391_v47  ;;  %v4402_v31 = vrot.slane %v13590_v45, 5  ;;  %v4231_v53 = vld [vmem:[#allocation2 + $0xa8] sm:$0xe]  ;;  %v13591_v4 = vld [vmem:[#allocation2 + $0x98] sm:$0x1]  ;;  %v4409_v55 = vrot.slane %v13592_v50, 5 }
 0x300   :  { %12902 = vmatmul.mubr.bf16.gmra.mxu0 %v13466_v51  ;;  %12956 = vmatpush3.bf16.msra.mxu1 %v13467_v15  ;;  %v16895_v13 = vsel %vm16746_vm14, %v11724_v8, %v4395_v29  ;;  %v4397_v10 = vrot.slane %v4395_v29, 4  ;;  %v4405_v47 = vrot.slane %v13591_v4, 5  ;;  %v13477_v15 = vld [vmem:[%s21257_s4 + $0x120] sm:$0xff]   ;;  %v11726_v51 = vrot.slane %v4230_v6, 9  ;;  %v4232_v23 = vld [vmem:[#allocation2 + $0xb4] sm:$0xe] }
 0x301   :  { %12905 = vmatprep.mubr.bf16.mxu0 %v13468_v49  ;;  %12957 = vmatprep.subr.bf16.mxu1 %v13472_v12  ;;  %v16899_v26 = vsel %vm16746_vm14, %v11725_v46, %v4402_v31  ;;  %v4404_v45 = vrot.slane %v4402_v31, 4  ;;  %v13593_v29 = vld [vmem:[#allocation2 + $0xa4] sm:$0x1]  ;;  %v11727_v49 = vrot.slane %v4231_v53, 9  ;;  %v4416_v59 = vrot.slane %v13594_v0, 5 }
 0x302   :  { %v16906_v8 = vsel %vm16746_vm14, %v4397_v10, %v4398_v39  ;;  %v4412_v4 = vrot.slane %v13593_v29, 5  ;;  %13046 = vmatpush3.bf16.msra.mxu0 %v16843_v44  ;;  %v16920_v39 = vsel %vm16746_vm14, %v11726_v51, %v4409_v55  ;;  %v4411_v46 = vrot.slane %v4409_v55, 4  ;;  %v4233_v0 = vld [vmem:[#allocation2 + $0xd8] sm:$0xe]  ;;  %v13595_v44 = vld [vmem:[#allocation2 + $0xb0] sm:$0x1] }
 0x303   :  { %12814 = vmatmul.mubr.bf16.gmra.mxu1 %v11748_v37  ;;  %v16916_v50 = vsel %vm16746_vm14, %v4404_v45, %v4405_v47  ;;  %13047 = vmatprep.subr.bf16.mxu0 %v13505_v40  ;;  %v16929_v3 = vsel %vm16746_vm14, %v11727_v49, %v4416_v59  ;;  %v4418_v37 = vrot.slane %v4416_v59, 4  ;;  %v4419_v31 = vrot.slane %v13595_v44, 5  ;;  %v13596_v10 = vld [vmem:[#allocation2 + $0xb8] sm:$0xf]  ;;  %v13597_v11 = vld [vmem:[#allocation2 + $0xbc] sm:$0x1] }
 0x304   :  { %12817 = vmatprep.mubr.bf16.mxu1 %v11749_v24  ;;  %12958 = vmatpush3.bf16.msra.mxu1 %v13472_v12  ;;  %v16933_v55 = vsel %vm16746_vm14, %v4411_v46, %v4412_v4  ;;  %v11728_v53 = vrot.slane %v4232_v23, 9  ;;  %v4423_v22 = vrot.slane %v13596_v10, 5  ;;  %v4426_v24 = vrot.slane %v13597_v11, 5  ;;  %v13482_v12 = vld [vmem:[%s21257_s4 + $0x118] sm:$0xff]   ;;  %v4234_v47 = vld [vmem:[#allocation2 + $0xe4] sm:$0xe] }
 0x305   :  { %12959 = vmatprep.subr.bf16.mxu1 %v13477_v15  ;;  %v13469_v45 = vld [vmem:[#allocation2 + $0x78] sm:$0xff]   ;;  %v16942_v51 = vsel %vm16746_vm14, %v4418_v37, %v4419_v31  ;;  %v11729_v29 = vrot.slane %v4233_v0, 9  ;;  %v4235_v49 = vld [vmem:[#allocation2 + $0xf0] sm:$0xe]  ;;  %v13470_v46 = vld [vmem:[#allocation2 + $0x84] sm:$0xff]   ;;  %v11730_v31 = vrot.slane %v4234_v47, 9 }
 0x306   :  { %v13598_v4 = vld [vmem:[#allocation2 + $0xdc] sm:$0xf]  ;;  %13048 = vmatpush3.bf16.msra.mxu0 %v13505_v40  ;;  %v16948_v10 = vsel %vm16746_vm14, %v11728_v53, %v4423_v22  ;;  %v4425_v11 = vrot.slane %v4423_v22, 4  ;;  %v13599_v35 = vld [vmem:[#allocation2 + $0xe0] sm:$0x1]  ;;  %v11731_v6 = vrot.slane %v4235_v49, 9 }
 0x307   :  { %v4430_v23 = vrot.slane %v13598_v4, 5  ;;  %v4433_v59 = vrot.slane %v13599_v35, 5  ;;  %v13600_v40 = vld [vmem:[#allocation2 + $0xe8] sm:$0xf]  ;;  %v13601_v53 = vld [vmem:[#allocation2 + $0xec] sm:$0x1] }
 0x308   :  { %12906 = vmatmul.mubr.bf16.gmra.mxu0 %v13469_v45  ;;  %12960 = vmatpush3.bf16.msra.mxu1 %v13477_v15  ;;  %v4437_v4 = vrot.slane %v13600_v40, 5  ;;  %v16956_v44 = vsel %vm16746_vm14, %v4425_v11, %v4426_v24  ;;  %v4440_v22 = vrot.slane %v13601_v53, 5  ;;  %v13602_v35 = vld [vmem:[#allocation2 + $0xf4] sm:$0xf]  ;;  %v4236_v15 = vld [vmem:[#allocation2 + $0xfc] sm:$0xe] }
 0x309   :  { %v16952_v0 = vsel %vm16746_vm14, %v11729_v29, %v4430_v23  ;;  %v4432_v37 = vrot.slane %v4430_v23, 4  ;;  %12909 = vmatprep.mubr.bf16.mxu0 %v13470_v46  ;;  %12961 = vmatprep.subr.bf16.mxu1 %v13482_v12  ;;  %v4444_v45 = vrot.slane %v13602_v35, 5  ;;  %v13487_v29 = vld [vmem:[%s21257_s4 + $0x110] sm:$0xff]   ;;  %v4237_v49 = vld [vmem:[#allocation2 + $0x108] sm:$0xe]  ;;  %v11732_v62 = vrot.slane %v4236_v15, 9 }
 0x30a   :  { %v16969_v24 = vsel %vm16746_vm14, %v11730_v31, %v4437_v4  ;;  %v4439_v46 = vrot.slane %v4437_v4, 4  ;;  %v13604_v41 = vld [vmem:[#allocation2 + $0x100] sm:$0xf]  ;;  %v13605_v4 = vld [vmem:[#allocation2 + $0x104] sm:$0x1]  ;;  %v11733_v63 = vrot.slane %v4237_v49, 9 }
 0x30b   :  { %v16965_v23 = vsel %vm16746_vm14, %v4432_v37, %v4433_v59  ;;  %12818 = vmatmul.mubr.bf16.gmra.mxu1 %v11750_v34  ;;  %v16978_v40 = vsel %vm16746_vm14, %v11731_v6, %v4444_v45  ;;  %v4446_v53 = vrot.slane %v4444_v45, 4  ;;  %v13603_v59 = vld [vmem:[#allocation2 + $0xf8] sm:$0x1]  ;;  %v4451_v34 = vrot.slane %v13604_v41, 5  ;;  %v4238_v11 = vld [vmem:[#allocation2 + $0x114] sm:$0xe] }
 0x30c   :  { %v4447_v37 = vrot.slane %v13603_v59, 5  ;;  %12821 = vmatprep.mubr.bf16.mxu1 %v11751_v19  ;;  %v16985_v31 = vsel %vm16746_vm14, %v4439_v46, %v4440_v22  ;;  %12962 = vmatpush3.bf16.msra.mxu1 %v13482_v12  ;;  %v4454_v35 = vrot.slane %v13605_v4, 5  ;;  %v13606_v27 = vld [vmem:[#allocation2 + $0x10c] sm:$0xf]  ;;  %v4239_v22 = vld [vmem:[#allocation2 + $0x120] sm:$0xe] }
 0x30d   :  { %v4458_v19 = vrot.slane %v13606_v27, 5  ;;  %12963 = vmatprep.subr.bf16.mxu1 %v13487_v29  ;;  %v13494_v12 = vld [vmem:[%s21257_s4 + $0x108] sm:$0xff]   ;;  %v13471_v15 = vld [vmem:[#allocation2 + $0x90] sm:$0xff]   ;;  %v17000_v59 = vsel %vm16746_vm14, %v11732_v62, %v4451_v34  ;;  %v4453_v41 = vrot.slane %v4451_v34, 4  ;;  %v13473_v49 = vld [vmem:[#allocation2 + $0x9c] sm:$0xff]   ;;  %v11734_v6 = vrot.slane %v4238_v11, 9 }
 0x30e   :  { %v16991_v45 = vsel %vm16746_vm14, %v4446_v53, %v4447_v37  ;;  %v13607_v53 = vld [vmem:[#allocation2 + $0x110] sm:$0x1]  ;;  %v13608_v47 = vld [vmem:[#allocation2 + $0x118] sm:$0xf]  ;;  %v13609_v56 = vld [vmem:[#allocation2 + $0x11c] sm:$0x1] }
 0x30f   :  { %21871 = vst [vmem:[#allocation22_spill] sm:$0xff] %v16991_v45  ;;  %v4461_v37 = vrot.slane %v13607_v53, 5  ;;  %v17004_v4 = vsel %vm16746_vm14, %v11733_v63, %v4458_v19  ;;  %v4460_v27 = vrot.slane %v4458_v19, 4  ;;  %v4465_v1 = vrot.slane %v13608_v47, 5  ;;  %v13610_v2 = vld [vmem:[#allocation2 + $0x124] sm:$0xf] }
 0x310   :  { %12910 = vmatmul.mubr.bf16.gmra.mxu0 %v13471_v15  ;;  %v17008_v46 = vsel %vm16746_vm14, %v4453_v41, %v4454_v35  ;;  %v4468_v62 = vrot.slane %v13609_v56, 5  ;;  %12964 = vmatpush3.bf16.msra.mxu1 %v13487_v29  ;;  %v11735_v34 = vrot.slane %v4239_v22, 9  ;;  %v4472_v53 = vrot.slane %v13610_v2, 5  ;;  %v4240_v45 = vld [vmem:[#allocation2 + $0x12c] sm:$0xe]  ;;  %v13503_v2 = vld [vmem:[%s21257_s4 + $0x100] sm:$0xff]  }
 0x311   :  { %12913 = vmatprep.mubr.bf16.mxu0 %v13473_v49  ;;  %v17014_v11 = vsel %vm16746_vm14, %v4460_v27, %v4461_v37  ;;  %v17018_v47 = vsel %vm16746_vm14, %v11734_v6, %v4465_v1  ;;  %v4467_v35 = vrot.slane %v4465_v1, 4  ;;  %v4241_v19 = vld [vmem:[#allocation2 + $0x138] sm:$0xe]  ;;  %12965 = vmatprep.subr.bf16.mxu1 %v13494_v12  ;;  %v13611_v15 = vld [vmem:[#allocation2 + $0x128] sm:$0x1]  ;;  %v21872_v6 = vcombine.low %v16834_v48, %v16850_v25 }
 0x312   :  { %v17027_v29 = vsel %vm16746_vm14, %v11735_v34, %v4472_v53  ;;  %v4474_v22 = vrot.slane %v4472_v53, 4  ;;  %v4475_v41 = vrot.slane %v13611_v15, 5  ;;  %v11736_v37 = vrot.slane %v4240_v45, 9  ;;  %v13612_v49 = vld [vmem:[#allocation2 + $0x130] sm:$0xf] }
 0x313   :  { %12822 = vmatmul.mubr.bf16.gmra.mxu1 %v21872_v6  ;;  %v17034_v1 = vsel %vm16746_vm14, %v4467_v35, %v4468_v62  ;;  %v4479_v27 = vrot.slane %v13612_v49, 5  ;;  %v4482_v56 = vrot.slane %v16600_v60, 5  ;;  %v4242_v63 = vld [vmem:[#allocation2 + $0x144] sm:$0xe]  ;;  %v21873_v34 = vcombine.low %v16838_v38, %v16862_v21  ;;  %v13613_v62 = vld [vmem:[#allocation2 + $0x13c] sm:$0xf] }
 0x314   :  { %v17044_v48 = vsel %vm16746_vm14, %v4474_v22, %v4475_v41  ;;  %v11737_v25 = vrot.slane %v4241_v19, 9  ;;  %v4486_v35 = vrot.slane %v13613_v62, 5  ;;  %12966 = vmatpush3.bf16.msra.mxu1 %v13494_v12  ;;  %v4243_v45 = vld [vmem:[#allocation2 + $0x150] sm:$0xe]  ;;  %v4489_v21 = vrot.slane %v16615_v28, 5  ;;  %v13506_v22 = vld [vmem:[%s21257_s4 + $0x1b8] sm:$0xff]  }
 0x315   :  { %12825 = vmatprep.mubr.bf16.mxu1 %v21873_v34  ;;  %21874 = vst [vmem:[#allocation19_spill] sm:$0xff] %v17044_v48  ;;  %v17050_v15 = vsel %vm16746_vm14, %v11736_v37, %v4479_v27  ;;  %v4481_v38 = vrot.slane %v4479_v27, 4  ;;  %12967 = vmatprep.subr.bf16.mxu1 %v13503_v2  ;;  %v13474_v19 = vld [vmem:[#allocation2 + $0xa8] sm:$0xff]   ;;  %v11738_v6 = vrot.slane %v4242_v63, 9  ;;  %v4244_v62 = vld [vmem:[#allocation2 + $0x15c] sm:$0xe] }
 0x316   :  { %v17058_v12 = vsel %vm16746_vm14, %v11737_v25, %v4486_v35  ;;  %v4488_v41 = vrot.slane %v4486_v35, 4  ;;  %v13614_v49 = vld [vmem:[#allocation2 + $0x148] sm:$0xf]  ;;  %v13475_v37 = vld [vmem:[#allocation2 + $0xb4] sm:$0xff]   ;;  %v11739_v28 = vrot.slane %v4243_v45, 9  ;;  %v4500_v60 = vrot.slane %v16610_v52, 5 }
 0x317   :  { %v4493_v34 = vrot.slane %v13614_v49, 5  ;;  %v17062_v27 = vsel %vm16746_vm14, %v4481_v38, %v4482_v56  ;;  %v4503_v53 = vrot.slane %v16656_v57, 5  ;;  %v4245_v48 = vld [vmem:[#allocation2 + $0x168] sm:$0xe]  ;;  %v4246_v38 = vld [vmem:[#allocation2 + $0x174] sm:$0xe] }
 0x318   :  { %12914 = vmatmul.mubr.bf16.gmra.mxu0 %v13474_v19  ;;  %v17070_v63 = vsel %vm16746_vm14, %v4488_v41, %v4489_v21  ;;  %12968 = vmatpush3.bf16.msra.mxu1 %v13503_v2  ;;  %v17080_v57 = vsel %vm16746_vm14, %v11739_v28, %v4500_v60  ;;  %v4502_v45 = vrot.slane %v4500_v60, 4  ;;  %v11740_v19 = vrot.slane %v4244_v62, 9  ;;  %v17082_v49 = vld [vmem:[#allocation2 + $0x10] sm:$0xf]  ;;  %v7169_v52 = vld [vmem:[#allocation2 + $0x24] sm:$0xe] }
 0x319   :  { %v17074_v35 = vsel %vm16746_vm14, %v11738_v6, %v4493_v34  ;;  %v4495_v56 = vrot.slane %v4493_v34, 4  ;;  %12917 = vmatprep.mubr.bf16.mxu0 %v13475_v37  ;;  %13113 = vmatprep.subr.bf16.mxu1 %v13506_v22  ;;  %v21875_v21 = vrot.slane %v16635_v14, 5  ;;  %v4507_v2 = vrot.slane %v16628_v7, 5  ;;  %v7167_v37 = vld [vmem:[#allocation2 + $0xc] sm:$0xe]  ;;  %v13480_v25 = vld [vmem:[#allocation2 + $0xfc] sm:$0xff]  }
 0x31a   :  { %v11741_v6 = vrot.slane %v4245_v48, 9  ;;  %v4514_v34 = vrot.slane %v16637_v20, 5  ;;  %v21876_v28 = vcombine.low %v16866_v32, %v16879_v17  ;;  %v17099_v14 = vsel %vm16746_vm14, %v4502_v45, %v4503_v53  ;;  %v4247_v7 = vld [vmem:[#allocation2 + $0x180] sm:$0xe]  ;;  %v13478_v32 = vld [vmem:[#allocation2 + $0xe4] sm:$0xff]  }
 0x31b   :  { %v17088_v41 = vsel %vm16746_vm14, %v4495_v56, %v21875_v21  ;;  %v4517_v22 = vrot.slane %v16686_v36, 5  ;;  %v11742_v62 = vrot.slane %v4246_v38, 9  ;;  %v17102_v56 = vld [vmem:[#allocation2 + $0x14] sm:$0x1]  ;;  %v21877_v20 = vcombine.low %v16875_v61, %v16886_v16  ;;  %v13476_v61 = vld [vmem:[#allocation2 + $0xc0] sm:$0xff]  }
 0x31c   :  { %12826 = vmatmul.mubr.bf16.gmra.mxu1 %v21876_v28  ;;  %v17111_v17 = vsel %vm16746_vm14, %v11740_v19, %v4507_v2  ;;  %v4509_v48 = vrot.slane %v4507_v2, 4  ;;  %v17115_v53 = vsel %vm16746_vm14, %v11741_v6, %v4514_v34  ;;  %v4516_v36 = vrot.slane %v4514_v34, 4  ;;  %v7168_v6 = vld [vmem:[#allocation2 + $0x18] sm:$0xe] }
 0x31d   :  { %12829 = vmatprep.mubr.bf16.mxu1 %v21877_v20  ;;  %21878 = vst [vmem:[#allocation4_spill] sm:$0xff] %v17111_v17  ;;  %21879 = vst [vmem:[#allocation3_spill] sm:$0xff] %v17115_v53  ;;  %v4521_v38 = vrot.slane %v16664_v58, 5  ;;  %v11865_v45 = vrot.slane %v7167_v37, 9  ;;  %v7297_v21 = vrot.slane %v17082_v49, 5  ;;  %v21880_v16 = vrot.slane %v16666_v43, 5 }
 0x31e   :  { %v7300_v19 = vrot.slane %v17102_v56, 5  ;;  %v11743_v2 = vrot.slane %v4247_v7, 9  ;;  %v4528_v20 = vrot.slane %v16683_v33, 5  ;;  %v17131_v34 = vsel %vm16746_vm14, %v4516_v36, %v4517_v22 }
 0x31f   :  { %v17123_v28 = vsel %vm16746_vm14, %v4509_v48, %v21880_v16  ;;  %21882 = vst [vmem:[#allocation26_spill] sm:$0xff] %v17131_v34  ;;  %v17135_v43 = vsel %vm16746_vm14, %v11742_v62, %v4521_v38  ;;  %v4523_v37 = vrot.slane %v4521_v38, 4  ;;  %v17137_v48 = vld [vmem:[#allocation2 + $0x1c] sm:$0xf]  ;;  %v17139_v16 = vld [vmem:[#allocation2 + $0x20] sm:$0x1]  ;;  %v17145_v7 = vsel %vm16746_vm14, %v11865_v45, %v7297_v21 }
 0x320   :  { %21881 = vst [vmem:[#allocation21_spill] sm:$0xff] %v17123_v28  ;;  %21883 = vst [vmem:[#allocation27_spill] sm:$0xff] %v17135_v43  ;;  %12918 = vmatmul.mubr.bf16.gmra.mxu0 %v13476_v61  ;;  %v7299_v58 = vrot.slane %v7297_v21, 4  ;;  %v17149_v22 = vsel %vm16746_vm14, %v11743_v2, %v4528_v20  ;;  %v4248_v62 = vld [vmem:[#allocation2 + $0x18c] sm:$0xe]  ;;  %v21885_v36 = vrot.slane %v16708_v18, 5  ;;  %v21889_v45 = vcombine.low %v16899_v26, %v16916_v50 }
 0x321   :  { %21884 = vst [vmem:[#allocation23_spill] sm:$0xff] %v17149_v22  ;;  %12921 = vmatprep.mubr.bf16.mxu0 %v13478_v32  ;;  %v4530_v61 = vrot.slane %v4528_v20, 4  ;;  %v4531_v33 = vrot.slane %v16714_v5, 5  ;;  %v11866_v60 = vrot.slane %v7168_v6, 9  ;;  %v7304_v32 = vrot.slane %v17137_v48, 5  ;;  %v13479_v50 = vld [vmem:[#allocation2 + $0xf0] sm:$0xff]  }
 0x322   :  { %v17155_v38 = vsel %vm16746_vm14, %v4523_v37, %v21885_v36  ;;  %v17162_v21 = vsel %vm16746_vm14, %v7299_v58, %v7300_v19  ;;  %v7307_v18 = vrot.slane %v17139_v16, 5  ;;  %v17166_v2 = vld [vmem:[#allocation2 + $0x28] sm:$0xf]  ;;  %v17168_v37 = vld [vmem:[#allocation2 + $0x2c] sm:$0x1]  ;;  %v21887_v5 = vcombine.low %v16895_v13, %v16906_v8 }
 0x323   :  { %21886 = vst [vmem:[#allocation6_spill] sm:$0xff] %v17155_v38  ;;  %v17177_v6 = vsel %vm16746_vm14, %v4530_v61, %v4531_v33  ;;  %v11744_v19 = vrot.slane %v4248_v62, 9  ;;  %v4535_v58 = vrot.slane %v16690_v54, 5  ;;  %v5758_v36 = vld [vmem:[#allocation2 + $0xc] sm:$0xf]  ;;  %v17187_v13 = vsel %vm16746_vm14, %v11866_v60, %v7304_v32 }
 0x324   :  { %12830 = vmatmul.mubr.bf16.gmra.mxu1 %v21887_v5  ;;  %21888 = vst [vmem:[#allocation25_spill] sm:$0xff] %v17177_v6  ;;  %21890 = vst [vmem:[#allocation12_spill] sm:$0xff] %v17187_v13  ;;  %v7306_v8 = vrot.slane %v7304_v32, 4  ;;  %v11867_v5 = vrot.slane %v7169_v52, 9  ;;  %v7311_v62 = vrot.slane %v17166_v2, 5  ;;  %v7314_v26 = vrot.slane %v17168_v37, 5 }
 0x325   :  { %12833 = vmatprep.mubr.bf16.mxu1 %v21889_v45  ;;  %v17189_v20 = vpop.f32.mrf.mxu0  ;;  %v17193_v33 = vsel %vm16746_vm14, %v11744_v19, %v4535_v58  ;;  %v4537_v54 = vrot.slane %v4535_v58, 4  ;;  %v5855_v60 = vshrl.u32 %v5758_v36, 16  ;;  %v5858_v45 = vshll.u32 %v5758_v36, 16  ;;  %v7170_v32 = vld [vmem:[#allocation2 + $0x30] sm:$0xe] }
 0x326   :  { %21891 = vst [vmem:[#allocation8_spill] sm:$0xff] %v17193_v33  ;;  %v17199_v61 = vsel %vm16746_vm14, %v7306_v8, %v7307_v18  ;;  %v5864_v52 = vshll.u32 %v17082_v49, 16  ;;  %v21893_v58 = vrot.slane %v16722_v9, 5  ;;  %v17214_v18 = vsel %vm16746_vm14, %v11867_v5, %v7311_v62  ;;  %v17216_v8 = vld [vmem:[#allocation2 + $0x34] sm:$0xf] }
 0x327   :  { %21892 = vst [vmem:[#allocation30_spill] sm:$0xff] %v17199_v61  ;;  %v17202_v6 = vpop.f32.mrf.mxu0  ;;  %21895 = vst [vmem:[#allocation5_spill] sm:$0xff] %v17214_v18  ;;  %v7313_v36 = vrot.slane %v7311_v62, 4  ;;  %v17218_v38 = vld [vmem:[#allocation2 + $0x38] sm:$0x1]  ;;  %v5857_v19 = vrot.slane %v5855_v60, 4 }
 0x328   :  { %v17210_v22 = vsel %vm16746_vm14, %v4537_v54, %v21893_v58  ;;  %12922 = vmatmul.mubr.bf16.gmra.mxu0 %v13479_v50  ;;  %v5860_v61 = vrot.slane %v5858_v45, 5  ;;  %v5866_v9 = vrot.slane %v5864_v52, 5  ;;  %v5761_v13 = vld [vmem:[#allocation2 + $0x18] sm:$0xf]  ;;  %v5868_v62 = vshrl.u32 %v17082_v49, 16 }
 0x329   :  { %21894 = vst [vmem:[#allocation10_spill] sm:$0xff] %v17210_v22  ;;  %12925 = vmatprep.mubr.bf16.mxu0 %v13480_v25  ;;  %v17222_v54 = vpop.f32.mrf.mxu0  ;;  %v17226_v5 = vsel %vm16746_vm14, %v7313_v36, %v7314_v26  ;;  %v5874_v58 = vshll.u32 %v17102_v56, 16  ;;  %v11868_v34 = vrot.slane %v7170_v32, 9  ;;  %v7318_v60 = vrot.slane %v17216_v8, 5  ;;  %v7171_v33 = vld [vmem:[#allocation2 + $0x3c] sm:$0xe] }
 0x32a   :  { %21896 = vst [vmem:[#allocation7_spill] sm:$0xff] %v17226_v5  ;;  %v5861_v43 = vor.u32 %v5860_v61, %v5857_v19  ;;  %v7321_v45 = vrot.slane %v17218_v38, 5  ;;  %v21897_v25 = vcombine.low %v16920_v39, %v16933_v55  ;;  %v5870_v26 = vrot.slane %v5868_v62, 4  ;;  %v17247_v39 = vld [vmem:[#allocation2 + $0x40] sm:$0xf] }
 0x32b   :  { %v17237_v52 = vpop.f32.mrf.mxu0  ;;  %v5876_v36 = vrot.slane %v5874_v58, 5  ;;  %v5879_v49 = vshrl.u32 %v5761_v13, 16  ;;  %v5882_v22 = vshll.u32 %v5761_v13, 16  ;;  %v21898_v56 = vcombine.low %v16929_v3, %v16942_v51  ;;  %v13481_v3 = vld [vmem:[#allocation2 + $0x108] sm:$0xff]  }
 0x32c   :  { %12834 = vmatmul.mubr.bf16.gmra.mxu1 %v21897_v25  ;;  %v5862_v32 = vrot.slane %v5861_v43, 4  ;;  %v17244_v61 = vsel %vm16746_vm14, %v11868_v34, %v7318_v60  ;;  %v7320_v19 = vrot.slane %v7318_v60, 4  ;;  %v5888_v50 = vshll.u32 %v17137_v48, 16 }
 0x32d   :  { %12837 = vmatprep.mubr.bf16.mxu1 %v21898_v56  ;;  %v17249_v55 = vpop.f32.mrf.mxu0  ;;  %v5871_v62 = vor.u32 %v5870_v26, %v5866_v9  ;;  %v5881_v58 = vrot.slane %v5879_v49, 4  ;;  %v5884_v25 = vrot.slane %v5882_v22, 5  ;;  %v5892_v13 = vshrl.u32 %v17137_v48, 16  ;;  %v17259_v56 = vld [vmem:[#allocation2 + $0x44] sm:$0x1]  ;;  %v13483_v26 = vld [vmem:[#allocation2 + $0x114] sm:$0xff]  }
 0x32e   :  { %v5867_v51 = vsel %vm16257_vm11, %v5862_v32, %v5866_v9  ;;  %v17256_v34 = vsel %vm16746_vm14, %v7320_v19, %v7321_v45  ;;  %v5890_v43 = vrot.slane %v5888_v50, 5  ;;  %v5898_v60 = vshll.u32 %v17139_v16, 16  ;;  %v5764_v32 = vld [vmem:[#allocation2 + $0x24] sm:$0xf] }
 0x32f   :  { %v12651_v5 = vpop.f32.mrf.mxu1  ;;  %v17261_v49 = vpop.f32.mrf.mxu0  ;;  %v5872_v22 = vrot.slane %v5871_v62, 4  ;;  %v5885_v18 = vor.u32 %v5884_v25, %v5881_v58  ;;  %v5894_v53 = vrot.slane %v5892_v13, 4  ;;  %v11869_v50 = vrot.slane %v7171_v33, 9 }
 0x330   :  { %12926 = vmatmul.mubr.bf16.gmra.mxu0 %v13481_v3  ;;  %v17266_v9 = vadd.f32 %v17189_v20, %v12651_v5  ;;  %v5900_v45 = vrot.slane %v5898_v60, 5  ;;  %v7325_v16 = vrot.slane %v17247_v39, 5  ;;  %v7328_v58 = vrot.slane %v17259_v56, 5 }
 0x331   :  { %12929 = vmatprep.mubr.bf16.mxu0 %v13483_v26  ;;  %v3433_v19 = vpop.f32.mrf.mxu1  ;;  %v17269_v28 = vpop.f32.mrf.mxu0  ;;  %v5877_v62 = vsel %vm16257_vm11, %v5872_v22, %v5876_v36  ;;  %v5886_v17 = vrot.slane %v5885_v18, 4  ;;  %v5895_v48 = vor.u32 %v5894_v53, %v5890_v43  ;;  %v21901_v13 = vcombine.low %v16948_v10, %v16956_v44 }
 0x332   :  { %21899 = vst [vmem:[#allocation9_spill] sm:$0xff] %v17266_v9  ;;  %v17275_v25 = vadd.f32 %v17202_v6, %v3433_v19  ;;  %v17277_v20 = vcombine.low %v5867_v51, %v5877_v62  ;;  %v17281_v33 = vsel %vm16746_vm14, %v11869_v50, %v7325_v16  ;;  %v7327_v5 = vrot.slane %v7325_v16, 4  ;;  %v17302_v50 = vld [vmem:[#allocation2 + $0x4c] sm:$0xf]  ;;  %v5767_v19 = vld [vmem:[#allocation2 + $0x30] sm:$0xf] }
 0x333   :  { %v12652_v3 = vpop.f32.mrf.mxu1  ;;  %v17286_v36 = vpop.f32.mrf.mxu0  ;;  %v5891_v53 = vsel %vm16257_vm11, %v5886_v17, %v5890_v43  ;;  %v5896_v18 = vrot.slane %v5895_v48, 4  ;;  %v5903_v6 = vshrl.u32 %v5764_v32, 16  ;;  %v5906_v60 = vshll.u32 %v5764_v32, 16  ;;  %v7172_v17 = vld [vmem:[#allocation2 + $0x48] sm:$0xe] }
 0x334   :  { %21900 = vst [vmem:[#allocation31_spill] sm:$0xff] %v17275_v25  ;;  %12838 = vmatmul.mubr.bf16.gmra.mxu1 %v21901_v13  ;;  %v21902_v51 = vcombine.low %v16952_v0, %v16965_v23  ;;  %v17294_v26 = vadd.f32 %v17222_v54, %v12652_v3  ;;  %v17298_v44 = vsel %vm16746_vm14, %v7327_v5, %v7328_v58  ;;  %v5912_v10 = vshll.u32 %v17166_v2, 16  ;;  %v17310_v32 = vld [vmem:[#allocation2 + $0x50] sm:$0x1] }
 0x335   :  { %v5916_v22 = vshrl.u32 %v17166_v2, 16  ;;  %v3436_v43 = vpop.f32.mrf.mxu1  ;;  %v17304_v48 = vpop.f32.mrf.mxu0  ;;  %v5901_v0 = vsel %vm16257_vm11, %v5896_v18, %v5900_v45  ;;  %v5905_v54 = vrot.slane %v5903_v6, 4  ;;  %v5908_v16 = vrot.slane %v5906_v60, 5  ;;  %v13484_v2 = vld [vmem:[#allocation2 + $0x120] sm:$0xff]  }
 0x336   :  { %12841 = vmatprep.mubr.bf16.mxu1 %v21902_v51  ;;  %21903 = vst [vmem:[#allocation29_spill] sm:$0xff] %v17294_v26  ;;  %v17313_v62 = vadd.f32 %v17237_v52, %v3436_v43  ;;  %v17315_v58 = vcombine.low %v5891_v53, %v5901_v0  ;;  %v5914_v5 = vrot.slane %v5912_v10, 5  ;;  %v13485_v51 = vld [vmem:[#allocation2 + $0x12c] sm:$0xff]   ;;  %v5922_v18 = vshll.u32 %v17168_v37, 16 }
 0x337   :  { %v5918_v13 = vrot.slane %v5916_v22, 4  ;;  %v12655_v3 = vpop.f32.mrf.mxu1  ;;  %v17317_v26 = vpop.f32.mrf.mxu0  ;;  %v5909_v45 = vor.u32 %v5908_v16, %v5905_v54  ;;  %v11870_v6 = vrot.slane %v7172_v17, 9  ;;  %v7332_v60 = vrot.slane %v17302_v50, 5 }
 0x338   :  { %21904 = vst [vmem:[#allocation32_spill] sm:$0xff] %v17313_v62  ;;  %12930 = vmatmul.mubr.bf16.gmra.mxu0 %v13484_v2  ;;  %v17322_v23 = vadd.f32 %v17249_v55, %v12655_v3  ;;  %v7335_v53 = vrot.slane %v17310_v32, 5  ;;  %v5927_v43 = vshrl.u32 %v5767_v19, 16  ;;  %v5924_v62 = vrot.slane %v5922_v18, 5 }
 0x339   :  { %v5919_v52 = vor.u32 %v5918_v13, %v5914_v5  ;;  %12933 = vmatprep.mubr.bf16.mxu0 %v13485_v51  ;;  %v3449_v10 = vpop.f32.mrf.mxu1  ;;  %v17325_v22 = vpop.f32.mrf.mxu0  ;;  %v5910_v0 = vrot.slane %v5909_v45, 4  ;;  %v17329_v37 = vsel %vm16746_vm14, %v11870_v6, %v7332_v60  ;;  %v7334_v17 = vrot.slane %v7332_v60, 4  ;;  %v17347_v60 = vld [vmem:[#allocation2 + $0x58] sm:$0xf] }
 0x33a   :  { %21905 = vst [vmem:[#allocation24_spill] sm:$0xff] %v17322_v23  ;;  %v17332_v54 = vadd.f32 %v17261_v49, %v3449_v10  ;;  %v5929_v16 = vrot.slane %v5927_v43, 4  ;;  %v5930_v2 = vshll.u32 %v5767_v19, 16  ;;  %v21907_v13 = vcombine.low %v16969_v24, %v16985_v31  ;;  %v7173_v19 = vld [vmem:[#allocation2 + $0x54] sm:$0xe]  ;;  %v21908_v24 = vld [vmem:[#allocation22_spill] sm:$0xff] }
 0x33b   :  { %v5920_v55 = vrot.slane %v5919_v52, 4  ;;  %v12656_v3 = vpop.f32.mrf.mxu1  ;;  %v17337_v51 = vpop.f32.mrf.mxu0  ;;  %v5915_v45 = vsel %vm16257_vm11, %v5910_v0, %v5914_v5  ;;  %v17343_v18 = vsel %vm16746_vm14, %v7334_v17, %v7335_v53  ;;  %v5936_v49 = vshll.u32 %v17216_v8, 16  ;;  %v17359_v10 = vld [vmem:[#allocation2 + $0x5c] sm:$0x1]  ;;  %v13488_v53 = vld [vmem:[#allocation2 + $0x144] sm:$0xff]  }
 0x33c   :  { %21906 = vst [vmem:[#allocation35_spill] sm:$0xff] %v17332_v54  ;;  %12842 = vmatmul.mubr.bf16.gmra.mxu1 %v21907_v13  ;;  %v5940_v6 = vshrl.u32 %v17216_v8, 16  ;;  %v21909_v31 = vcombine.low %v16978_v40, %v21908_v24  ;;  %v17353_v52 = vadd.f32 %v17269_v28, %v12656_v3  ;;  %v5932_v43 = vrot.slane %v5930_v2, 5  ;;  %v5770_v8 = vld [vmem:[#allocation2 + $0x3c] sm:$0xf] }
 0x33d   :  { %v5925_v5 = vsel %vm16257_vm11, %v5920_v55, %v5924_v62  ;;  %v3452_v0 = vpop.f32.mrf.mxu1  ;;  %v17361_v17 = vpop.f32.mrf.mxu0  ;;  %v5938_v40 = vrot.slane %v5936_v49, 5  ;;  %v5946_v28 = vshll.u32 %v17218_v38, 16  ;;  %v13486_v62 = vld [vmem:[#allocation2 + $0x138] sm:$0xff]   ;;  %v7339_v2 = vrot.slane %v17347_v60, 5 }
 0x33e   :  { %12845 = vmatprep.mubr.bf16.mxu1 %v21909_v31  ;;  %21910 = vst [vmem:[#allocation33_spill] sm:$0xff] %v17353_v52  ;;  %v17363_v13 = vcombine.low %v5915_v45, %v5925_v5  ;;  %v5942_v24 = vrot.slane %v5940_v6, 4  ;;  %v17367_v3 = vadd.f32 %v17286_v36, %v3452_v0  ;;  %v5933_v55 = vor.u32 %v5932_v43, %v5929_v16 }
 0x33f   :  { %v11871_v31 = vrot.slane %v7173_v19, 9  ;;  %v17370_v52 = vpop.f32.mrf.mxu0  ;;  %v5948_v23 = vrot.slane %v5946_v28, 5  ;;  %v7342_v45 = vrot.slane %v17359_v10, 5  ;;  %v5951_v5 = vshrl.u32 %v5770_v8, 16 }
 0x340   :  { %21911 = vst [vmem:[#allocation36_spill] sm:$0xff] %v17367_v3  ;;  %v5943_v54 = vor.u32 %v5942_v24, %v5938_v40  ;;  %12934 = vmatmul.mubr.bf16.gmra.mxu0 %v13486_v62  ;;  %v5934_v6 = vrot.slane %v5933_v55, 4  ;;  %v7341_v36 = vrot.slane %v7339_v2, 4  ;;  %v5954_v16 = vshll.u32 %v5770_v8, 16  ;;  %v17383_v3 = vld [vmem:[#allocation2 + $0x64] sm:$0xf] }
 0x341   :  { %v12659_v49 = vpop.f32.mrf.mxu1  ;;  %v17375_v38 = vsel %vm16746_vm14, %v11871_v31, %v7339_v2  ;;  %12937 = vmatprep.mubr.bf16.mxu0 %v13488_v53  ;;  %v17380_v43 = vpop.f32.mrf.mxu0  ;;  %v5953_v24 = vrot.slane %v5951_v5, 4  ;;  %v5960_v28 = vshll.u32 %v17247_v39, 16  ;;  %v17392_v53 = vld [vmem:[#allocation2 + $0x68] sm:$0x1]  ;;  %v7174_v2 = vld [vmem:[#allocation2 + $0x60] sm:$0xe] }
 0x342   :  { %v17378_v19 = vadd.f32 %v17304_v48, %v12659_v49  ;;  %v5944_v0 = vrot.slane %v5943_v54, 4  ;;  %v5939_v55 = vsel %vm16257_vm11, %v5934_v6, %v5938_v40  ;;  %v17389_v31 = vsel %vm16746_vm14, %v7341_v36, %v7342_v45 }
 0x343   :  { %v3465_v62 = vpop.f32.mrf.mxu1  ;;  %v5956_v8 = vrot.slane %v5954_v16, 5  ;;  %v5964_v48 = vshrl.u32 %v17247_v39, 16  ;;  %v21913_v54 = vcombine.low %v17000_v59, %v17008_v46  ;;  %v17400_v49 = vpop.f32.mrf.mxu0  ;;  %v5962_v6 = vrot.slane %v5960_v28, 5  ;;  %v5773_v39 = vld [vmem:[#allocation2 + $0x48] sm:$0xf] }
 0x344   :  { %21912 = vst [vmem:[#allocation34_spill] sm:$0xff] %v17378_v19  ;;  %v17398_v5 = vadd.f32 %v17317_v26, %v3465_v62  ;;  %v5949_v40 = vsel %vm16257_vm11, %v5944_v0, %v5948_v23  ;;  %v21915_v36 = vcombine.low %v17004_v4, %v17014_v11  ;;  %v5970_v62 = vshll.u32 %v17259_v56, 16  ;;  %v13489_v4 = vld [vmem:[#allocation2 + $0x150] sm:$0xff]   ;;  %v13491_v56 = vld [vmem:[#allocation2 + $0x15c] sm:$0xff]  }
 0x345   :  { %12846 = vmatmul.mubr.bf16.gmra.mxu1 %v21913_v54  ;;  %v12660_v16 = vpop.f32.mrf.mxu1  ;;  %v17409_v46 = vcombine.low %v5939_v55, %v5949_v40  ;;  %v5957_v59 = vor.u32 %v5956_v8, %v5953_v24  ;;  %v5966_v26 = vrot.slane %v5964_v48, 4  ;;  %v17415_v23 = vpop.f32.mrf.mxu0  ;;  %v11872_v0 = vrot.slane %v7174_v2, 9 }
 0x346   :  { %21914 = vst [vmem:[#allocation37_spill] sm:$0xff] %v17398_v5  ;;  %12849 = vmatprep.mubr.bf16.mxu1 %v21915_v36  ;;  %v17413_v54 = vadd.f32 %v17325_v22, %v12660_v16  ;;  %v7346_v28 = vrot.slane %v17383_v3, 5  ;;  %v7349_v45 = vrot.slane %v17392_v53, 5  ;;  %v5972_v55 = vrot.slane %v5970_v62, 5 }
 0x347   :  { %v3468_v5 = vpop.f32.mrf.mxu1  ;;  %v5958_v11 = vrot.slane %v5957_v59, 4  ;;  %v5967_v36 = vor.u32 %v5966_v26, %v5962_v6  ;;  %v5975_v40 = vshrl.u32 %v5773_v39, 16  ;;  %v17422_v8 = vpop.f32.mrf.mxu0  ;;  %v5978_v2 = vshll.u32 %v5773_v39, 16 }
 0x348   :  { %21916 = vst [vmem:[#allocation38_spill] sm:$0xff] %v17413_v54  ;;  %v17420_v24 = vadd.f32 %v17337_v51, %v3468_v5  ;;  %v17426_v22 = vsel %vm16746_vm14, %v11872_v0, %v7346_v28  ;;  %v7348_v48 = vrot.slane %v7346_v28, 4  ;;  %12938 = vmatmul.mubr.bf16.gmra.mxu0 %v13489_v4  ;;  %v5984_v54 = vshll.u32 %v17302_v50, 16  ;;  %v17431_v51 = vld [vmem:[#allocation2 + $0x70] sm:$0xf] }
 0x349   :  { %v12663_v16 = vpop.f32.mrf.mxu1  ;;  %v5963_v59 = vsel %vm16257_vm11, %v5958_v11, %v5962_v6  ;;  %v5968_v26 = vrot.slane %v5967_v36, 4  ;;  %v5977_v62 = vrot.slane %v5975_v40, 4  ;;  %12941 = vmatprep.mubr.bf16.mxu0 %v13491_v56  ;;  %v5980_v0 = vrot.slane %v5978_v2, 5  ;;  %v17443_v6 = vld [vmem:[#allocation2 + $0x74] sm:$0x1] }
 0x34a   :  { %21917 = vst [vmem:[#allocation11_spill] sm:$0xff] %v17420_v24  ;;  %v17434_v5 = vadd.f32 %v17361_v17, %v12663_v16  ;;  %v17436_v24 = vpop.f32.mrf.mxu0  ;;  %v17440_v39 = vsel %vm16746_vm14, %v7348_v48, %v7349_v45  ;;  %v5988_v28 = vshrl.u32 %v17302_v50, 16  ;;  %v7175_v4 = vld [vmem:[#allocation2 + $0x6c] sm:$0xe]  ;;  %v5986_v40 = vrot.slane %v5984_v54, 5 }
 0x34b   :  { %v3481_v11 = vpop.f32.mrf.mxu1  ;;  %v5973_v36 = vsel %vm16257_vm11, %v5968_v26, %v5972_v55  ;;  %v5994_v56 = vshll.u32 %v17310_v32, 16  ;;  %v5776_v16 = vld [vmem:[#allocation2 + $0x54] sm:$0xf]  ;;  %v21919_v45 = vcombine.low %v17018_v47, %v17034_v1  ;;  %v11873_v19 = vrot.slane %v7175_v4, 9 }
 0x34c   :  { %21918 = vst [vmem:[#allocation39_spill] sm:$0xff] %v17434_v5  ;;  %v17454_v50 = vadd.f32 %v17370_v52, %v3481_v11  ;;  %v17456_v48 = vpop.f32.mrf.mxu0  ;;  %v17458_v2 = vcombine.low %v5963_v59, %v5973_v36  ;;  %v5981_v5 = vor.u32 %v5980_v0, %v5977_v62  ;;  %v5990_v55 = vrot.slane %v5988_v28, 4  ;;  %v21921_v26 = vld [vmem:[#allocation19_spill] sm:$0xff]  ;;  %v13493_v59 = vld [vmem:[#allocation2 + $0x168] sm:$0xff]  }
 0x34d   :  { %12850 = vmatmul.mubr.bf16.gmra.mxu1 %v21919_v45  ;;  %v21922_v17 = vcombine.low %v17027_v29, %v21921_v26  ;;  %v12664_v54 = vpop.f32.mrf.mxu1  ;;  %v5996_v32 = vrot.slane %v5994_v56, 5  ;;  %v7353_v25 = vrot.slane %v17431_v51, 5  ;;  %v7356_v47 = vrot.slane %v17443_v6, 5  ;;  %v13496_v36 = vld [vmem:[#allocation2 + $0x174] sm:$0xff]  }
 0x34e   :  { %21920 = vst [vmem:[#allocation40_spill] sm:$0xff] %v17454_v50  ;;  %v17466_v1 = vadd.f32 %v17380_v43, %v12664_v54  ;;  %v17468_v52 = vpop.f32.mrf.mxu0  ;;  %v5982_v11 = vrot.slane %v5981_v5, 4  ;;  %v5991_v62 = vor.u32 %v5990_v55, %v5986_v40  ;;  %v5999_v0 = vshrl.u32 %v5776_v16, 16  ;;  %v7176_v45 = vld [vmem:[#allocation2 + $0x78] sm:$0xe] }
 0x34f   :  { %12853 = vmatprep.mubr.bf16.mxu1 %v21922_v17  ;;  %v3484_v28 = vpop.f32.mrf.mxu1  ;;  %v17472_v29 = vsel %vm16746_vm14, %v11873_v19, %v7353_v25  ;;  %v7355_v4 = vrot.slane %v7353_v25, 4  ;;  %v6002_v17 = vshll.u32 %v5776_v16, 16  ;;  %v6008_v56 = vshll.u32 %v17347_v60, 16  ;;  %v17484_v50 = vld [vmem:[#allocation2 + $0x80] sm:$0x1] }
 0x350   :  { %21923 = vst [vmem:[#allocation14_spill] sm:$0xff] %v17466_v1  ;;  %v17476_v43 = vadd.f32 %v17400_v49, %v3484_v28  ;;  %v17478_v26 = vpop.f32.mrf.mxu0  ;;  %v5987_v5 = vsel %vm16257_vm11, %v5982_v11, %v5986_v40  ;;  %v5992_v55 = vrot.slane %v5991_v62, 4  ;;  %v6001_v54 = vrot.slane %v5999_v0, 4  ;;  %v17482_v1 = vld [vmem:[#allocation2 + $0x7c] sm:$0xf]  ;;  %12942 = vmatmul.mubr.bf16.gmra.mxu0 %v13493_v59 }
 0x351   :  { %v17488_v25 = vsel %vm16746_vm14, %v7355_v4, %v7356_v47  ;;  %v6004_v19 = vrot.slane %v6002_v17, 5  ;;  %v6010_v16 = vrot.slane %v6008_v56, 5  ;;  %v6012_v49 = vshrl.u32 %v17347_v60, 16  ;;  %v5779_v28 = vld [vmem:[#allocation2 + $0x60] sm:$0xf]  ;;  %12945 = vmatprep.mubr.bf16.mxu0 %v13496_v36  ;;  %v17504_v36 = vld [vmem:[%s21257_s4 + $0x1f8] sm:$0xff]  }
 0x352   :  { %21924 = vst [vmem:[#allocation41_spill] sm:$0xff] %v17476_v43  ;;  %v17491_v43 = vpop.f32.mrf.mxu0  ;;  %v5997_v40 = vsel %vm16257_vm11, %v5992_v55, %v5996_v32  ;;  %v6018_v59 = vshll.u32 %v17359_v10, 16  ;;  %v11874_v62 = vrot.slane %v7176_v45, 9  ;;  %v12667_v0 = vpop.f32.mrf.mxu1  ;;  %v7360_v60 = vrot.slane %v17482_v1, 5  ;;  %13193 = vmatprep.subr.bf16.mxu0 %v17504_v36 }
 0x353   :  { %v17498_v47 = vcombine.low %v5987_v5, %v5997_v40  ;;  %v6005_v4 = vor.u32 %v6004_v19, %v6001_v54  ;;  %v6014_v17 = vrot.slane %v6012_v49, 4  ;;  %v21926_v32 = vcombine.low %v17050_v15, %v17062_v27 }
 0x354   :  { %v17510_v56 = vadd.f32 %v17415_v23, %v12667_v0  ;;  %v17512_v10 = vpop.f32.mrf.mxu0  ;;  %v6020_v45 = vrot.slane %v6018_v59, 5  ;;  %v7363_v5 = vrot.slane %v17484_v50, 5  ;;  %v6023_v55 = vshrl.u32 %v5779_v28, 16  ;;  %v3497_v19 = vpop.f32.mrf.mxu1 }
 0x355   :  { %21925 = vst [vmem:[#allocation13_spill] sm:$0xff] %v17498_v47  ;;  %12854 = vmatmul.mubr.bf16.gmra.mxu1 %v21926_v32  ;;  %v21928_v54 = vcombine.low %v17058_v12, %v17070_v63  ;;  %v6006_v49 = vrot.slane %v6005_v4, 4  ;;  %v6015_v40 = vor.u32 %v6014_v17, %v6010_v16  ;;  %v17520_v15 = vsel %vm16746_vm14, %v11874_v62, %v7360_v60  ;;  %v7177_v63 = vld [vmem:[#allocation2 + $0x84] sm:$0xe]  ;;  %v13500_v17 = vld [vmem:[#allocation2 + $0x18c] sm:$0xff]  }
 0x356   :  { %21927 = vst [vmem:[#allocation15_spill] sm:$0xff] %v17510_v56  ;;  %v7362_v27 = vrot.slane %v7360_v60, 4  ;;  %v17524_v23 = vadd.f32 %v17422_v8, %v3497_v19  ;;  %v17526_v59 = vpop.f32.mrf.mxu0  ;;  %v6025_v0 = vrot.slane %v6023_v55, 4  ;;  %v6026_v32 = vshll.u32 %v5779_v28, 16  ;;  %v13498_v4 = vld [vmem:[#allocation2 + $0x180] sm:$0xff]  }
 0x357   :  { %12857 = vmatprep.mubr.bf16.mxu1 %v21928_v54  ;;  %v6032_v12 = vshll.u32 %v17383_v3, 16  ;;  %v12668_v54 = vpop.f32.mrf.mxu1  ;;  %v6011_v62 = vsel %vm16257_vm11, %v6006_v49, %v6010_v16  ;;  %v6016_v11 = vrot.slane %v6015_v40, 4  ;;  %v6036_v8 = vshrl.u32 %v17383_v3, 16  ;;  %v17536_v19 = vld [vmem:[#allocation2 + $0x88] sm:$0xf] }
 0x358   :  { %21929 = vst [vmem:[#allocation16_spill] sm:$0xff] %v17524_v23  ;;  %v17533_v60 = vsel %vm16746_vm14, %v7362_v27, %v7363_v5  ;;  %v17539_v28 = vadd.f32 %v17436_v24, %v12668_v54  ;;  %v17541_v55 = vpop.f32.mrf.mxu0  ;;  %v6028_v56 = vrot.slane %v6026_v32, 5  ;;  %v17545_v16 = vld [vmem:[#allocation2 + $0x8c] sm:$0x1]  ;;  %12946 = vmatmul.mubr.bf16.gmra.mxu0 %v13498_v4  ;;  %v6042_v27 = vshll.u32 %v17392_v53, 16 }
 0x359   :  { %21930 = vst [vmem:[#allocation17_spill] sm:$0xff] %v17533_v60  ;;  %v6034_v9 = vrot.slane %v6032_v12, 5  ;;  %v5782_v49 = vld [vmem:[#allocation2 + $0x6c] sm:$0xf]  ;;  %v3500_v40 = vpop.f32.mrf.mxu1  ;;  %v6021_v3 = vsel %vm16257_vm11, %v6016_v11, %v6020_v45  ;;  %v6038_v5 = vrot.slane %v6036_v8, 4  ;;  %v11875_v24 = vrot.slane %v7177_v63, 9  ;;  %12949 = vmatprep.mubr.bf16.mxu0 %v13500_v17 }
 0x35a   :  { %21931 = vst [vmem:[#allocation18_spill] sm:$0xff] %v17539_v28  ;;  %v17551_v54 = vadd.f32 %v17456_v48, %v3500_v40  ;;  %v17553_v28 = vpop.f32.mrf.mxu0  ;;  %v17555_v32 = vcombine.low %v6011_v62, %v6021_v3  ;;  %v6029_v12 = vor.u32 %v6028_v56, %v6025_v0  ;;  %v7367_v23 = vrot.slane %v17536_v19, 5 }
 0x35b   :  { %v12671_v47 = vpop.f32.mrf.mxu1  ;;  %v6039_v4 = vor.u32 %v6038_v5, %v6034_v9  ;;  %v6044_v60 = vrot.slane %v6042_v27, 5  ;;  %v7370_v11 = vrot.slane %v17545_v16, 5  ;;  %v6047_v45 = vshrl.u32 %v5782_v49, 16  ;;  %v17589_v27 = vld [vmem:[#allocation2 + $0x98] sm:$0x1] }
 0x35c   :  { %21932 = vst [vmem:[#allocation22_spill] sm:$0xff] %v17551_v54  ;;  %v21933_v53 = vcombine.low %v17074_v35, %v17088_v41  ;;  %v17563_v48 = vadd.f32 %v17468_v52, %v12671_v47  ;;  %v17565_v63 = vpop.f32.mrf.mxu0  ;;  %v6030_v17 = vrot.slane %v6029_v12, 4  ;;  %v17569_v56 = vsel %vm16746_vm14, %v11875_v24, %v7367_v23  ;;  %v17575_v52 = vld [vmem:[#allocation2 + $0x94] sm:$0xf]  ;;  %v13502_v12 = vld [vmem:[#allocation2 + $0x198] sm:$0xff]  }
 0x35d   :  { %v7369_v0 = vrot.slane %v7367_v23, 4  ;;  %v21935_v62 = vcombine.low %v17080_v57, %v17099_v14  ;;  %v3513_v8 = vpop.f32.mrf.mxu1  ;;  %v6040_v40 = vrot.slane %v6039_v4, 4  ;;  %v6049_v3 = vrot.slane %v6047_v45, 4  ;;  %v21942_v4 = vld [vmem:[#allocation21_spill] sm:$0xff] }
 0x35e   :  { %12858 = vmatmul.mubr.bf16.gmra.mxu1 %v21933_v53  ;;  %21934 = vst [vmem:[#allocation19_spill] sm:$0xff] %v17563_v48  ;;  %v6050_v35 = vshll.u32 %v5782_v49, 16  ;;  %v6056_v41 = vshll.u32 %v17431_v51, 16  ;;  %v17578_v47 = vadd.f32 %v17478_v26, %v3513_v8  ;;  %v17580_v5 = vpop.f32.mrf.mxu0  ;;  %v6035_v23 = vsel %vm16257_vm11, %v6030_v17, %v6034_v9  ;;  %v7178_v49 = vld [vmem:[#allocation2 + $0x90] sm:$0xe] }
 0x35f   :  { %12861 = vmatprep.mubr.bf16.mxu1 %v21935_v62  ;;  %v17586_v57 = vsel %vm16746_vm14, %v7369_v0, %v7370_v11  ;;  %v6060_v14 = vshrl.u32 %v17431_v51, 16  ;;  %v12672_v24 = vpop.f32.mrf.mxu1  ;;  %v6045_v26 = vsel %vm16257_vm11, %v6040_v40, %v6044_v60  ;;  %v5785_v9 = vld [vmem:[#allocation2 + $0x78] sm:$0xf]  ;;  %v6066_v62 = vshll.u32 %v17443_v6, 16 }
 0x360   :  { %21936 = vst [vmem:[#allocation42_spill] sm:$0xff] %v17578_v47  ;;  %v6052_v45 = vrot.slane %v6050_v35, 5  ;;  %v6058_v53 = vrot.slane %v6056_v41, 5  ;;  %v17596_v17 = vadd.f32 %v17491_v43, %v12672_v24  ;;  %v17598_v11 = vpop.f32.mrf.mxu0  ;;  %v17600_v51 = vcombine.low %v6035_v23, %v6045_v26  ;;  %12950 = vmatmul.mubr.bf16.gmra.mxu0 %v13502_v12 }
 0x361   :  { %v6062_v0 = vrot.slane %v6060_v14, 4  ;;  %v3516_v8 = vpop.f32.mrf.mxu1  ;;  %v11876_v60 = vrot.slane %v7178_v49, 9  ;;  %v7374_v40 = vrot.slane %v17575_v52, 5  ;;  %v7377_v35 = vrot.slane %v17589_v27, 5 }
 0x362   :  { %21937 = vst [vmem:[#allocation43_spill] sm:$0xff] %v17596_v17  ;;  %21938 = vst [vmem:[#allocation44_spill] sm:$0xff] %v17600_v51  ;;  %v6053_v47 = vor.u32 %v6052_v45, %v6049_v3  ;;  %v17606_v41 = vadd.f32 %v17512_v10, %v3516_v8  ;;  %v21940_v43 = vcombine.low %v17145_v7, %v17162_v21  ;;  %v17611_v23 = vpop.f32.mrf.mxu0  ;;  %v6068_v24 = vrot.slane %v6066_v62, 5  ;;  %v21941_v45 = vld [vmem:[#allocation4_spill] sm:$0xff]  ;;  %v17624_v62 = vld [vmem:[#allocation2 + $0xa0] sm:$0xf] }
 0x363   :  { %v6063_v14 = vor.u32 %v6062_v0, %v6058_v53  ;;  %v6071_v6 = vshrl.u32 %v5785_v9, 16  ;;  %v17615_v3 = vsel %vm16746_vm14, %v11876_v60, %v7374_v40  ;;  %v7376_v49 = vrot.slane %v7374_v40, 4 }
 0x364   :  { %21939 = vst [vmem:[#allocation45_spill] sm:$0xff] %v17606_v41  ;;  %13049 = vmatprep.mubr.bf16.mxu0 %v21940_v43  ;;  %v6054_v26 = vrot.slane %v6053_v47, 4  ;;  %v6074_v12 = vshll.u32 %v5785_v9, 16  ;;  %v21943_v10 = vcombine.low %v21941_v45, %v21942_v4  ;;  %v17620_v8 = vpop.f32.mrf.mxu0  ;;  %v6080_v43 = vshll.u32 %v17482_v1, 16  ;;  %v21944_v47 = vld [vmem:[#allocation3_spill] sm:$0xff]  ;;  %v21945_v41 = vld [vmem:[#allocation26_spill] sm:$0xff] }
 0x365   :  { %v6064_v7 = vrot.slane %v6063_v14, 4  ;;  %v6073_v21 = vrot.slane %v6071_v6, 4  ;;  %v6084_v0 = vshrl.u32 %v17482_v1, 16  ;;  %v21946_v60 = vcombine.low %v21944_v47, %v21945_v41  ;;  %v12675_v40 = vpop.f32.mrf.mxu1  ;;  %v17636_v45 = vld [vmem:[#allocation2 + $0xa4] sm:$0x1] }
 0x366   :  { %12862 = vmatmul.mubr.bf16.gmra.mxu1 %v21943_v10  ;;  %v6059_v9 = vsel %vm16257_vm11, %v6054_v26, %v6058_v53  ;;  %v17633_v4 = vsel %vm16746_vm14, %v7376_v49, %v7377_v35  ;;  %v6076_v14 = vrot.slane %v6074_v12, 5  ;;  %v6090_v6 = vshll.u32 %v17484_v50, 16  ;;  %v7179_v1 = vld [vmem:[#allocation2 + $0x9c] sm:$0xe]  ;;  %v17641_v17 = vpop.f32.mrf.mxu0  ;;  %v5788_v35 = vld [vmem:[#allocation2 + $0x84] sm:$0xf] }
 0x367   :  { %12865 = vmatprep.mubr.bf16.mxu1 %v21946_v60  ;;  %21947 = vst [vmem:[#allocation4_spill] sm:$0xff] %v17633_v4  ;;  %v17639_v10 = vadd.f32 %v17526_v59, %v12675_v40  ;;  %v6069_v41 = vsel %vm16257_vm11, %v6064_v7, %v6068_v24  ;;  %v6082_v26 = vrot.slane %v6080_v43, 5  ;;  %v3529_v49 = vpop.f32.mrf.mxu1  ;;  %v6086_v47 = vrot.slane %v6084_v0, 4  ;;  %v13513_v59 = vld [vmem:[%s21257_s4 + $0x1f0] sm:$0xff]  }
 0x368   :  { %v17647_v12 = vcombine.low %v6059_v9, %v6069_v41  ;;  %v6077_v50 = vor.u32 %v6076_v14, %v6073_v21  ;;  %v6092_v60 = vrot.slane %v6090_v6, 5  ;;  %v17653_v40 = vadd.f32 %v17541_v55, %v3529_v49  ;;  %v21951_v9 = vld [vmem:[#allocation12_spill] sm:$0xff]  ;;  %v21952_v41 = vld [vmem:[#allocation30_spill] sm:$0xff]  ;;  %v21955_v55 = vld [vmem:[#allocation5_spill] sm:$0xff] }
 0x369   :  { %21948 = vst [vmem:[#allocation21_spill] sm:$0xff] %v17639_v10  ;;  %v17655_v10 = vpop.f32.mrf.mxu0  ;;  %v11877_v24 = vrot.slane %v7179_v1, 9  ;;  %v7381_v7 = vrot.slane %v17624_v62, 5  ;;  %v7384_v43 = vrot.slane %v17636_v45, 5  ;;  %v12676_v53 = vpop.f32.mrf.mxu1  ;;  %v21953_v21 = vcombine.low %v21951_v9, %v21952_v41  ;;  %v21956_v49 = vld [vmem:[#allocation7_spill] sm:$0xff] }
 0x36a   :  { %21949 = vst [vmem:[#allocation3_spill] sm:$0xff] %v17647_v12  ;;  %21950 = vst [vmem:[#allocation26_spill] sm:$0xff] %v17653_v40  ;;  %v6078_v0 = vrot.slane %v6077_v50, 4  ;;  %v6087_v14 = vor.u32 %v6086_v47, %v6082_v26  ;;  %v6095_v6 = vshrl.u32 %v5788_v35, 16  ;;  %v6098_v48 = vshll.u32 %v5788_v35, 16 }
 0x36b   :  { %13050 = vmatmul.mubr.bf16.vlgmr.msra.gmra.mxu0 %v21953_v21  ;;  %v17663_v54 = vadd.f32 %v17553_v28, %v12676_v53  ;;  %v21957_v40 = vcombine.low %v21955_v55, %v21956_v49  ;;  %v17668_v1 = vpop.f32.mrf.mxu0  ;;  %v17672_v12 = vsel %vm16746_vm14, %v11877_v24, %v7381_v7  ;;  %v7383_v51 = vrot.slane %v7381_v7, 4  ;;  %v17675_v50 = vld [vmem:[#allocation2 + $0xac] sm:$0xf]  ;;  %v3532_v35 = vpop.f32.mrf.mxu1  ;;  %v7180_v41 = vld [vmem:[#allocation2 + $0xa8] sm:$0xe]  ;;  %v21958_v7 = vld [vmem:[#allocation27_spill] sm:$0xff] }
 0x36c   :  { %v6104_v9 = vshll.u32 %v17536_v19, 16  ;;  %13194 = vmatpush3.bf16.msra.mxu0 %v17504_v36  ;;  %v6083_v28 = vsel %vm16257_vm11, %v6078_v0, %v6082_v26  ;;  %v6088_v53 = vrot.slane %v6087_v14, 4  ;;  %v6097_v47 = vrot.slane %v6095_v6, 4  ;;  %v13515_v24 = vld [vmem:[%s21257_s4 + $0x1e8] sm:$0xff]   ;;  %v17696_v14 = vld [vmem:[#allocation2 + $0xb0] sm:$0x1] }
 0x36d   :  { %21954 = vst [vmem:[#allocation12_spill] sm:$0xff] %v17663_v54  ;;  %13053 = vmatprep.mubr.bf16.mxu0 %v21957_v40  ;;  %v6100_v40 = vrot.slane %v6098_v48, 5  ;;  %13195 = vmatprep.subr.bf16.mxu0 %v13513_v59  ;;  %v21959_v21 = vld [vmem:[#allocation6_spill] sm:$0xff]  ;;  %v17687_v49 = vadd.f32 %v17565_v63, %v3532_v35  ;;  %v17689_v36 = vpop.f32.mrf.mxu0  ;;  %v17693_v26 = vsel %vm16746_vm14, %v7383_v51, %v7384_v43  ;;  %v6108_v0 = vshrl.u32 %v17536_v19, 16  ;;  %v21962_v6 = vld [vmem:[#allocation23_spill] sm:$0xff]  ;;  %v21963_v54 = vld [vmem:[#allocation25_spill] sm:$0xff]  ;;  %v12679_v43 = vpop.f32.mrf.mxu1 }
 0x36e   :  { %v21960_v55 = vcombine.low %v21958_v7, %v21959_v21  ;;  %v6106_v48 = vrot.slane %v6104_v9, 5  ;;  %v21964_v4 = vcombine.low %v21962_v6, %v21963_v54  ;;  %v6093_v7 = vsel %vm16257_vm11, %v6088_v53, %v6092_v60  ;;  %v5791_v51 = vld [vmem:[#allocation2 + $0x90] sm:$0xf]  ;;  %v7181_v63 = vld [vmem:[#allocation2 + $0xb4] sm:$0xe] }
 0x36f   :  { %21961 = vst [vmem:[#allocation30_spill] sm:$0xff] %v17687_v49  ;;  %v6101_v35 = vor.u32 %v6100_v40, %v6097_v47  ;;  %v6114_v21 = vshll.u32 %v17545_v16, 16  ;;  %v17706_v9 = vpop.f32.mrf.mxu0  ;;  %v17708_v19 = vcombine.low %v6083_v28, %v6093_v7  ;;  %v11878_v49 = vrot.slane %v7180_v41, 9  ;;  %v13516_v16 = vld [vmem:[%s21257_s4 + $0x1e0] sm:$0xff]   ;;  %v3545_v40 = vpop.f32.mrf.mxu1 }
 0x370   :  { %12866 = vmatmul.mubr.bf16.gmra.mxu1 %v21960_v55  ;;  %v6110_v55 = vrot.slane %v6108_v0, 4  ;;  %v7388_v54 = vrot.slane %v17675_v50, 5  ;;  %13196 = vmatpush3.bf16.msra.mxu0 %v13513_v59  ;;  %v7391_v47 = vrot.slane %v17696_v14, 5  ;;  %v17725_v6 = vadd.f32 %v17598_v11, %v3545_v40 }
 0x371   :  { %12869 = vmatprep.mubr.bf16.mxu1 %v21964_v4  ;;  %v17712_v4 = vadd.f32 %v17580_v5, %v12679_v43  ;;  %v6102_v60 = vrot.slane %v6101_v35, 4  ;;  %v6116_v53 = vrot.slane %v6114_v21, 5  ;;  %13197 = vmatprep.subr.bf16.mxu0 %v13515_v24  ;;  %v17718_v28 = vpop.f32.mrf.mxu0  ;;  %v6119_v5 = vshrl.u32 %v5791_v51, 16 }
 0x372   :  { %v6111_v0 = vor.u32 %v6110_v55, %v6106_v48  ;;  %v17722_v41 = vsel %vm16746_vm14, %v11878_v49, %v7388_v54  ;;  %v7390_v59 = vrot.slane %v7388_v54, 4  ;;  %21966 = vst [vmem:[#allocation7_spill] sm:$0xff] %v17725_v6  ;;  %v21967_v7 = vcombine.low %v17244_v61, %v17256_v34  ;;  %v17733_v55 = vld [vmem:[#allocation2 + $0xb8] sm:$0xf]  ;;  %v12680_v49 = vpop.f32.mrf.mxu1 }
 0x373   :  { %21965 = vst [vmem:[#allocation5_spill] sm:$0xff] %v17712_v4  ;;  %v6107_v35 = vsel %vm16257_vm11, %v6102_v60, %v6106_v48  ;;  %v6122_v21 = vshll.u32 %v5791_v51, 16  ;;  %v6128_v43 = vshll.u32 %v17575_v52, 16  ;;  %v21968_v54 = vcombine.low %v17281_v33, %v17298_v44  ;;  %v17738_v11 = vpop.f32.mrf.mxu0  ;;  %v17745_v51 = vld [vmem:[#allocation2 + $0xbc] sm:$0x1] }
 0x374   :  { %13054 = vmatmul.mubr.bf16.gmra.mxu0 %v21967_v7  ;;  %v6112_v40 = vrot.slane %v6111_v0, 4  ;;  %v17742_v61 = vsel %vm16746_vm14, %v7390_v59, %v7391_v47  ;;  %v6121_v34 = vrot.slane %v6119_v5, 4  ;;  %v6132_v48 = vshrl.u32 %v17575_v52, 16  ;;  %v13517_v47 = vld [vmem:[%s21257_s4 + $0x1d8] sm:$0xff]   ;;  %v21971_v59 = vld [vmem:[#allocation10_spill] sm:$0xff]  ;;  %v3548_v5 = vpop.f32.mrf.mxu1 }
 0x375   :  { %13057 = vmatprep.mubr.bf16.mxu0 %v21968_v54  ;;  %13198 = vmatpush3.bf16.msra.mxu0 %v13515_v24  ;;  %v17748_v60 = vadd.f32 %v17611_v23, %v12680_v49  ;;  %v6124_v44 = vrot.slane %v6122_v21, 5  ;;  %v6130_v7 = vrot.slane %v6128_v43, 5  ;;  %v5794_v54 = vld [vmem:[#allocation2 + $0x9c] sm:$0xf]  ;;  %v17758_v24 = vpop.f32.mrf.mxu0  ;;  %v6138_v21 = vshll.u32 %v17589_v27, 16 }
 0x376   :  { %13199 = vmatprep.subr.bf16.mxu0 %v13516_v16  ;;  %v21970_v0 = vld [vmem:[#allocation8_spill] sm:$0xff]  ;;  %v6117_v23 = vsel %vm16257_vm11, %v6112_v40, %v6116_v53  ;;  %v6134_v49 = vrot.slane %v6132_v48, 4  ;;  %v11879_v43 = vrot.slane %v7181_v63, 9  ;;  %v17765_v33 = vadd.f32 %v17620_v8, %v3548_v5 }
 0x377   :  { %21969 = vst [vmem:[#allocation27_spill] sm:$0xff] %v17748_v60  ;;  %v21972_v52 = vcombine.low %v21970_v0, %v21971_v59  ;;  %v17767_v60 = vcombine.low %v6107_v35, %v6117_v23  ;;  %v6125_v6 = vor.u32 %v6124_v44, %v6121_v34  ;;  %v7395_v0 = vrot.slane %v17733_v55, 5  ;;  %v17770_v59 = vpop.f32.mrf.mxu0  ;;  %v12683_v27 = vpop.f32.mrf.mxu1  ;;  %v13518_v34 = vld [vmem:[%s21257_s4 + $0x1d0] sm:$0xff]   ;;  %v17786_v23 = vld [vmem:[#allocation2 + $0xc4] sm:$0xf] }
 0x378   :  { %v6140_v4 = vrot.slane %v6138_v21, 5  ;;  %v7398_v53 = vrot.slane %v17745_v51, 5  ;;  %v6143_v40 = vshrl.u32 %v5794_v54, 16  ;;  %v6146_v35 = vshll.u32 %v5794_v54, 16 }
 0x379   :  { %12870 = vmatmul.mubr.bf16.gmra.mxu1 %v21972_v52  ;;  %v6135_v52 = vor.u32 %v6134_v49, %v6130_v7  ;;  %13200 = vmatpush3.bf16.msra.mxu0 %v13516_v16  ;;  %v6126_v63 = vrot.slane %v6125_v6, 4  ;;  %v7397_v8 = vrot.slane %v7395_v0, 4  ;;  %v17781_v48 = vadd.f32 %v17641_v17, %v12683_v27  ;;  %v17783_v44 = vpop.f32.mrf.mxu0  ;;  %v3561_v49 = vpop.f32.mrf.mxu1 }
 0x37a   :  { %12969 = vmatprep.mubr.bf16.mxu1 %v17277_v20  ;;  %v17775_v20 = vsel %vm16746_vm14, %v11879_v43, %v7395_v0  ;;  %13201 = vmatprep.subr.bf16.mxu0 %v13517_v47  ;;  %v6145_v16 = vrot.slane %v6143_v40, 4  ;;  %v6152_v6 = vshll.u32 %v17624_v62, 16  ;;  %v21973_v54 = vcombine.low %v17329_v37, %v17343_v18  ;;  %v7182_v40 = vld [vmem:[#allocation2 + $0xc0] sm:$0xe] }
 0x37b   :  { %v6136_v5 = vrot.slane %v6135_v52, 4  ;;  %v6131_v21 = vsel %vm16257_vm11, %v6126_v63, %v6130_v7  ;;  %v17795_v17 = vsel %vm16746_vm14, %v7397_v8, %v7398_v53  ;;  %v6148_v43 = vrot.slane %v6146_v35, 5  ;;  %v17798_v52 = vld [vmem:[#allocation2 + $0xc8] sm:$0x1]  ;;  %v17806_v18 = vpop.f32.mrf.mxu0  ;;  %v13507_v7 = vld [vmem:[%s21257_s4 + $0x1b0] sm:$0xff]  }
 0x37c   :  { %13058 = vmatmul.mubr.bf16.gmra.mxu0 %v21973_v54  ;;  %v6156_v0 = vshrl.u32 %v17624_v62, 16  ;;  %v17801_v27 = vadd.f32 %v17655_v10, %v3561_v49  ;;  %v21975_v37 = vcombine.low %v17375_v38, %v17389_v31  ;;  %v6154_v63 = vrot.slane %v6152_v6, 5  ;;  %v5797_v8 = vld [vmem:[#allocation2 + $0xa8] sm:$0xf]  ;;  %v12684_v10 = vpop.f32.mrf.mxu1  ;;  %v17850_v62 = vld [vmem:[#allocation2 + $0xec] sm:$0x1] }
 0x37d   :  { %v6141_v53 = vsel %vm16257_vm11, %v6136_v5, %v6140_v4  ;;  %13202 = vmatpush3.bf16.msra.mxu0 %v13517_v47  ;;  %v6149_v38 = vor.u32 %v6148_v43, %v6145_v16  ;;  %v6162_v49 = vshll.u32 %v17636_v45, 16  ;;  %v13520_v54 = vld [vmem:[%s21257_s4 + $0x1c8] sm:$0xff]   ;;  %v17823_v4 = vadd.f32 %v17668_v1, %v12684_v10  ;;  %v17825_v5 = vpop.f32.mrf.mxu0  ;;  %v13615_v45 = vld [vmem:[%s21257_s4 + $0x1b8] sm:$0xff]  }
 0x37e   :  { %21974 = vst [vmem:[#allocation6_spill] sm:$0xff] %v17801_v27  ;;  %13061 = vmatprep.mubr.bf16.mxu0 %v21975_v37  ;;  %v17815_v35 = vcombine.low %v6131_v21, %v6141_v53  ;;  %v6158_v31 = vrot.slane %v6156_v0, 4  ;;  %13203 = vmatprep.subr.bf16.mxu0 %v13518_v34  ;;  %v11880_v47 = vrot.slane %v7182_v40, 9  ;;  %v7402_v6 = vrot.slane %v17786_v23, 5  ;;  %v3564_v21 = vpop.f32.mrf.mxu1  ;;  %v13508_v53 = vld [vmem:[%s21257_s4 + $0x1a8] sm:$0xff]  }
 0x37f   :  { %21976 = vst [vmem:[#allocation23_spill] sm:$0xff] %v17823_v4  ;;  %v7405_v16 = vrot.slane %v17798_v52, 5  ;;  %v6150_v43 = vrot.slane %v6149_v38, 4  ;;  %v6164_v0 = vrot.slane %v6162_v49, 5  ;;  %v6167_v1 = vshrl.u32 %v5797_v8, 16  ;;  %v17836_v40 = vpop.f32.mrf.mxu0 }
 0x380   :  { %v17834_v37 = vadd.f32 %v17689_v36, %v3564_v21  ;;  %v17843_v10 = vsel %vm16746_vm14, %v11880_v47, %v7402_v6  ;;  %v17845_v38 = vld [vmem:[#allocation2 + $0xe8] sm:$0xf]  ;;  %v6176_v21 = vshll.u32 %v17675_v50, 16  ;;  %v21979_v27 = vcombine.low %v17472_v29, %v17488_v25 }
 0x381   :  { %12970 = vmatmul.mubr.bf16.vlgmr.msra.gmra.mxu1 %v17315_v58  ;;  %v6159_v58 = vor.u32 %v6158_v31, %v6154_v63  ;;  %13204 = vmatpush3.bf16.msra.mxu0 %v13518_v34  ;;  %v6155_v36 = vsel %vm16257_vm11, %v6150_v43, %v6154_v63  ;;  %v6169_v49 = vrot.slane %v6167_v1, 4  ;;  %v17852_v4 = vpop.f32.mrf.mxu0  ;;  %v6180_v34 = vshrl.u32 %v17675_v50, 16  ;;  %v7183_v63 = vld [vmem:[#allocation2 + $0xe4] sm:$0xe] }
 0x382   :  { %13114 = vmatpush3.bf16.msra.mxu1 %v13615_v45  ;;  %12973 = vmatprep.mubr.bf16.mxu1 %v17363_v13  ;;  %21977 = vst [vmem:[#allocation25_spill] sm:$0xff] %v17834_v37  ;;  %v7404_v13 = vrot.slane %v7402_v6, 4  ;;  %v6170_v45 = vshll.u32 %v5797_v8, 16  ;;  %v12687_v37 = vpop.f32.mrf.mxu1  ;;  %v6186_v6 = vshll.u32 %v17696_v14, 16  ;;  %v13521_v43 = vld [vmem:[%s21257_s4 + $0x1c0] sm:$0xff]   ;;  %v21978_v1 = vcombine.low %v17426_v22, %v17440_v39 }
 0x383   :  { %13115 = vmatprep.subr.bf16.mxu1 %v13507_v7  ;;  %v6160_v31 = vrot.slane %v6159_v58, 4  ;;  %13205 = vmatprep.subr.bf16.mxu0 %v13520_v54  ;;  %v17864_v58 = vadd.f32 %v17706_v9, %v12687_v37  ;;  %v6178_v14 = vrot.slane %v6176_v21, 5  ;;  %v17876_v9 = vpop.f32.mrf.mxu0  ;;  %v13509_v22 = vld [vmem:[%s21257_s4 + $0x1a0] sm:$0xff]   ;;  %v11881_v21 = vrot.slane %v7183_v63, 9 }
 0x384   :  { %v17856_v47 = vsel %vm16746_vm14, %v7404_v13, %v7405_v16  ;;  %v6172_v8 = vrot.slane %v6170_v45, 5  ;;  %13062 = vmatmul.mubr.bf16.gmra.mxu0 %v21978_v1  ;;  %v5800_v13 = vld [vmem:[#allocation2 + $0xb4] sm:$0xf]  ;;  %v3577_v45 = vpop.f32.mrf.mxu1  ;;  %v7409_v1 = vrot.slane %v17845_v38, 5  ;;  %v7412_v29 = vrot.slane %v17850_v62, 5 }
 0x385   :  { %v6165_v16 = vsel %vm16257_vm11, %v6160_v31, %v6164_v0  ;;  %13065 = vmatprep.mubr.bf16.mxu0 %v21979_v27  ;;  %v6188_v0 = vrot.slane %v6186_v6, 5  ;;  %v17884_v31 = vadd.f32 %v17718_v28, %v3577_v45  ;;  %13206 = vmatpush3.bf16.msra.mxu0 %v13520_v54  ;;  %v17889_v27 = vpop.f32.mrf.mxu0  ;;  %v6191_v50 = vshrl.u32 %v5800_v13, 16 }
 0x386   :  { %13116 = vmatpush3.bf16.msra.mxu1 %v13507_v7  ;;  %v17878_v37 = vcombine.low %v6155_v36, %v6165_v16  ;;  %v6173_v39 = vor.u32 %v6172_v8, %v6169_v49  ;;  %v6182_v7 = vrot.slane %v6180_v34, 4  ;;  %v12688_v25 = vpop.f32.mrf.mxu1  ;;  %v6194_v49 = vshll.u32 %v5800_v13, 16  ;;  %13207 = vmatprep.subr.bf16.mxu0 %v13521_v43  ;;  %v17900_v34 = vld [vmem:[#allocation2 + $0xf4] sm:$0xf] }
 0x387   :  { %13117 = vmatprep.subr.bf16.mxu1 %v13508_v53  ;;  %21980 = vst [vmem:[#allocation8_spill] sm:$0xff] %v17884_v31  ;;  %v17893_v28 = vadd.f32 %v17738_v11, %v12688_v25  ;;  %v17897_v8 = vsel %vm16746_vm14, %v11881_v21, %v7409_v1  ;;  %v7411_v54 = vrot.slane %v7409_v1, 4  ;;  %v17902_v63 = vpop.f32.mrf.mxu0  ;;  %v6193_v11 = vrot.slane %v6191_v50, 4 }
 0x388   :  { %v6174_v36 = vrot.slane %v6173_v39, 4  ;;  %v6183_v16 = vor.u32 %v6182_v7, %v6178_v14  ;;  %v3580_v6 = vpop.f32.mrf.mxu1  ;;  %v6196_v45 = vrot.slane %v6194_v49, 5  ;;  %v13510_v39 = vld [vmem:[%s21257_s4 + $0x198] sm:$0xff]   ;;  %v6204_v25 = vshrl.u32 %v17733_v55, 16  ;;  %v5803_v49 = vld [vmem:[#allocation2 + $0xc0] sm:$0xf] }
 0x389   :  { %12974 = vmatmul.mubr.bf16.gmra.mxu1 %v17409_v46  ;;  %21981 = vst [vmem:[#allocation10_spill] sm:$0xff] %v17893_v28  ;;  %v6200_v46 = vshll.u32 %v17733_v55, 16  ;;  %v17910_v7 = vadd.f32 %v17758_v24, %v3580_v6  ;;  %v17914_v21 = vsel %vm16746_vm14, %v7411_v54, %v7412_v29  ;;  %v17917_v28 = vld [vmem:[#allocation2 + $0xf8] sm:$0x1]  ;;  %13208 = vmatpush3.bf16.msra.mxu0 %v13521_v43  ;;  %v17919_v50 = vpop.f32.mrf.mxu0  ;;  %v21983_v54 = vld [vmem:[#allocation17_spill] sm:$0xff] }
 0x38a   :  { %12977 = vmatprep.mubr.bf16.mxu1 %v17458_v2  ;;  %13118 = vmatpush3.bf16.msra.mxu1 %v13508_v53  ;;  %v6179_v2 = vsel %vm16257_vm11, %v6174_v36, %v6178_v14  ;;  %v6184_v13 = vrot.slane %v6183_v16, 4  ;;  %v7184_v53 = vld [vmem:[#allocation2 + $0xf0] sm:$0xe]  ;;  %v6197_v24 = vor.u32 %v6196_v45, %v6193_v11  ;;  %v6210_v16 = vshll.u32 %v17745_v51, 16  ;;  %v12691_v29 = vpop.f32.mrf.mxu1  ;;  %v5806_v36 = vld [vmem:[#allocation2 + $0xe4] sm:$0xf] }
 0x38b   :  { %13119 = vmatprep.subr.bf16.mxu1 %v13509_v22  ;;  %21982 = vst [vmem:[#allocation46_spill] sm:$0xff] %v17910_v7  ;;  %v6202_v1 = vrot.slane %v6200_v46, 5  ;;  %v21984_v46 = vcombine.low %v17520_v15, %v21983_v54  ;;  %v6206_v43 = vrot.slane %v6204_v25, 4  ;;  %v11882_v6 = vrot.slane %v7184_v53, 9  ;;  %v17938_v51 = vpop.f32.mrf.mxu0 }
 0x38c   :  { %v6189_v14 = vsel %vm16257_vm11, %v6184_v13, %v6188_v0  ;;  %v7416_v7 = vrot.slane %v17900_v34, 5  ;;  %v17933_v0 = vadd.f32 %v17770_v59, %v12691_v29  ;;  %v21986_v13 = vcombine.low %v17569_v56, %v17586_v57  ;;  %v21987_v57 = vld [vmem:[#allocation13_spill] sm:$0xff] }
 0x38d   :  { %13066 = vmatmul.mubr.bf16.gmra.mxu0 %v21984_v46  ;;  %v17929_v55 = vcombine.low %v6179_v2, %v6189_v14  ;;  %v6198_v11 = vrot.slane %v6197_v24, 4  ;;  %v6212_v45 = vrot.slane %v6210_v16, 5  ;;  %v7419_v15 = vrot.slane %v17917_v28, 5  ;;  %v3593_v2 = vpop.f32.mrf.mxu1  ;;  %v17952_v24 = vpop.f32.mrf.mxu0  ;;  %v17957_v46 = vld [vmem:[#allocation2 + $0x100] sm:$0xf] }
 0x38e   :  { %13120 = vmatpush3.bf16.msra.mxu1 %v13509_v22  ;;  %21985 = vst [vmem:[#allocation17_spill] sm:$0xff] %v17933_v0  ;;  %13069 = vmatprep.mubr.bf16.mxu0 %v21986_v13  ;;  %v13511_v22 = vld [vmem:[%s21257_s4 + $0x190] sm:$0xff]   ;;  %v6207_v53 = vor.u32 %v6206_v43, %v6202_v1  ;;  %v17946_v59 = vsel %vm16746_vm14, %v11882_v6, %v7416_v7  ;;  %v7418_v25 = vrot.slane %v7416_v7, 4  ;;  %v6215_v56 = vshrl.u32 %v5803_v49, 16  ;;  %v7185_v43 = vld [vmem:[#allocation2 + $0xfc] sm:$0xe] }
 0x38f   :  { %13121 = vmatprep.subr.bf16.mxu1 %v13510_v39  ;;  %v17950_v14 = vadd.f32 %v17783_v44, %v3593_v2  ;;  %v6203_v16 = vsel %vm16257_vm11, %v6198_v11, %v6202_v1  ;;  %v6218_v29 = vshll.u32 %v5803_v49, 16  ;;  %v6224_v54 = vshll.u32 %v17786_v23, 16  ;;  %v12692_v7 = vpop.f32.mrf.mxu1 }
 0x390   :  { %v6208_v6 = vrot.slane %v6207_v53, 4  ;;  %v17962_v13 = vsel %vm16746_vm14, %v7418_v25, %v7419_v15  ;;  %v6217_v44 = vrot.slane %v6215_v56, 4  ;;  %v6228_v2 = vshrl.u32 %v17786_v23, 16  ;;  %v13514_v15 = vld [vmem:[%s21257_s4 + $0x188] sm:$0xff]   ;;  %v17975_v25 = vpop.f32.mrf.mxu0 }
 0x391   :  { %12978 = vmatmul.mubr.bf16.gmra.mxu1 %v21987_v57  ;;  %21988 = vst [vmem:[#allocation13_spill] sm:$0xff] %v17950_v14  ;;  %v17965_v57 = vld [vmem:[#allocation2 + $0x104] sm:$0x1]  ;;  %v17968_v1 = vadd.f32 %v17806_v18, %v12692_v7  ;;  %v6220_v11 = vrot.slane %v6218_v29, 5  ;;  %v3596_v53 = vpop.f32.mrf.mxu1  ;;  %v6234_v18 = vshll.u32 %v17798_v52, 16  ;;  %v11883_v56 = vrot.slane %v7185_v43, 9 }
 0x392   :  { %12981 = vmatprep.mubr.bf16.mxu1 %v17555_v32  ;;  %13122 = vmatpush3.bf16.msra.mxu1 %v13510_v39  ;;  %v6226_v32 = vrot.slane %v6224_v54, 5  ;;  %v6213_v23 = vsel %vm16257_vm11, %v6208_v6, %v6212_v45  ;;  %v6230_v39 = vrot.slane %v6228_v2, 4  ;;  %v17981_v7 = vadd.f32 %v17825_v5, %v3596_v53  ;;  %v21990_v14 = vld [vmem:[#allocation4_spill] sm:$0xff]  ;;  %v17989_v31 = vpop.f32.mrf.mxu0 }
 0x393   :  { %21989 = vst [vmem:[#allocation47_spill] sm:$0xff] %v17968_v1  ;;  %13123 = vmatprep.subr.bf16.mxu1 %v13511_v22  ;;  %v17983_v29 = vcombine.low %v6203_v16, %v6213_v23  ;;  %v6221_v54 = vor.u32 %v6220_v11, %v6217_v44  ;;  %v7423_v49 = vrot.slane %v17957_v46, 5  ;;  %v12695_v1 = vpop.f32.mrf.mxu1  ;;  %v21991_v0 = vcombine.low %v17615_v3, %v21990_v14  ;;  %v13519_v14 = vld [vmem:[%s21257_s4 + $0x180] sm:$0xff]   ;;  %v21993_v53 = vld [vmem:[#allocation44_spill] sm:$0xff] }
 0x394   :  { %v6231_v45 = vor.u32 %v6230_v39, %v6226_v32  ;;  %v6236_v6 = vrot.slane %v6234_v18, 5  ;;  %v7426_v52 = vrot.slane %v17965_v57, 5  ;;  %v6239_v43 = vshrl.u32 %v5806_v36, 16 }
 0x395   :  { %13070 = vmatmul.mubr.bf16.gmra.mxu0 %v21991_v0  ;;  %v17993_v5 = vadd.f32 %v17836_v40, %v12695_v1  ;;  %v21992_v16 = vcombine.low %v17672_v12, %v17693_v26  ;;  %v6222_v44 = vrot.slane %v6221_v54, 4  ;;  %v18000_v3 = vsel %vm16746_vm14, %v11883_v56, %v7423_v49  ;;  %v3609_v2 = vpop.f32.mrf.mxu1  ;;  %v18008_v26 = vld [vmem:[#allocation2 + $0x10c] sm:$0xf]  ;;  %v18021_v56 = vld [vmem:[#allocation2 + $0x110] sm:$0x1] }
 0x396   :  { %13124 = vmatpush3.bf16.msra.mxu1 %v13511_v22  ;;  %v7425_v0 = vrot.slane %v7423_v49, 4  ;;  %v18005_v22 = vpop.f32.mrf.mxu0  ;;  %v6232_v40 = vrot.slane %v6231_v45, 4  ;;  %v6241_v1 = vrot.slane %v6239_v43, 4  ;;  %v6242_v11 = vshll.u32 %v5806_v36, 16  ;;  %v7186_v36 = vld [vmem:[#allocation2 + $0x108] sm:$0xe] }
 0x397   :  { %13073 = vmatprep.mubr.bf16.mxu0 %v21992_v16  ;;  %13125 = vmatprep.subr.bf16.mxu1 %v13514_v15  ;;  %v6248_v12 = vshll.u32 %v17845_v38, 16  ;;  %v18012_v23 = vadd.f32 %v17852_v4, %v3609_v2  ;;  %v6227_v49 = vsel %vm16257_vm11, %v6222_v44, %v6226_v32  ;;  %v6252_v18 = vshrl.u32 %v17845_v38, 16  ;;  %v21994_v54 = vld [vmem:[#allocation3_spill] sm:$0xff]  ;;  %v12696_v45 = vpop.f32.mrf.mxu1 }
 0x398   :  { %v18018_v39 = vsel %vm16746_vm14, %v7425_v0, %v7426_v52  ;;  %v18024_v43 = vpop.f32.mrf.mxu0  ;;  %v6237_v4 = vsel %vm16257_vm11, %v6232_v40, %v6236_v6  ;;  %v6244_v16 = vrot.slane %v6242_v11, 5  ;;  %v5809_v52 = vld [vmem:[#allocation2 + $0xf0] sm:$0xf]  ;;  %v18031_v38 = vadd.f32 %v17876_v9, %v12696_v45  ;;  %v13523_v6 = vld [vmem:[%s21257_s4 + $0x238] sm:$0xff]  }
 0x399   :  { %12982 = vmatmul.mubr.bf16.gmra.mxu1 %v21993_v53  ;;  %v6250_v44 = vrot.slane %v6248_v12, 5  ;;  %v18033_v0 = vcombine.low %v6227_v49, %v6237_v4  ;;  %v6254_v2 = vrot.slane %v6252_v18, 4  ;;  %v6258_v53 = vshll.u32 %v17850_v62, 16  ;;  %v3612_v40 = vpop.f32.mrf.mxu1 }
 0x39a   :  { %12985 = vmatprep.mubr.bf16.mxu1 %v21994_v54  ;;  %13126 = vmatpush3.bf16.msra.mxu1 %v13514_v15  ;;  %21995 = vst [vmem:[#allocation4_spill] sm:$0xff] %v18031_v38  ;;  %v6245_v54 = vor.u32 %v6244_v16, %v6241_v1  ;;  %v11884_v32 = vrot.slane %v7186_v36, 9  ;;  %v7430_v11 = vrot.slane %v18008_v26, 5  ;;  %v7433_v15 = vrot.slane %v18021_v56, 5  ;;  %v18044_v12 = vpop.f32.mrf.mxu0 }
 0x39b   :  { %13127 = vmatprep.subr.bf16.mxu1 %v13519_v14  ;;  %v18042_v9 = vadd.f32 %v17889_v27, %v3612_v40  ;;  %v6255_v49 = vor.u32 %v6254_v2, %v6250_v44  ;;  %v6260_v18 = vrot.slane %v6258_v53, 5  ;;  %v6263_v62 = vshrl.u32 %v5809_v52, 16  ;;  %v12699_v38 = vpop.f32.mrf.mxu1 }
 0x39c   :  { %v21996_v45 = vcombine.low %v17722_v41, %v17742_v61  ;;  %v6246_v4 = vrot.slane %v6245_v54, 4  ;;  %v18051_v1 = vsel %vm16746_vm14, %v11884_v32, %v7430_v11  ;;  %v7432_v36 = vrot.slane %v7430_v11, 4  ;;  %v18056_v2 = vpop.f32.mrf.mxu0  ;;  %v18060_v54 = vld [vmem:[#allocation2 + $0x118] sm:$0xf]  ;;  %v7187_v11 = vld [vmem:[#allocation2 + $0x114] sm:$0xe] }
 0x39d   :  { %v6266_v16 = vshll.u32 %v5809_v52, 16  ;;  %v21997_v27 = vcombine.low %v17775_v20, %v17795_v17  ;;  %v6256_v53 = vrot.slane %v6255_v49, 4  ;;  %v6265_v40 = vrot.slane %v6263_v62, 4  ;;  %v18071_v52 = vld [vmem:[#allocation2 + $0x11c] sm:$0x1] }
 0x39e   :  { %13074 = vmatmul.mubr.bf16.gmra.mxu0 %v21996_v45  ;;  %13128 = vmatpush3.bf16.msra.mxu1 %v13519_v14  ;;  %v6272_v41 = vshll.u32 %v17900_v34, 16  ;;  %v6276_v61 = vshrl.u32 %v17900_v34, 16  ;;  %v18063_v32 = vadd.f32 %v17902_v63, %v12699_v38  ;;  %v6251_v14 = vsel %vm16257_vm11, %v6246_v4, %v6250_v44  ;;  %v3625_v34 = vpop.f32.mrf.mxu1  ;;  %v18074_v49 = vpop.f32.mrf.mxu0  ;;  %v5812_v62 = vld [vmem:[#allocation2 + $0xfc] sm:$0xf] }
 0x39f   :  { %13077 = vmatprep.mubr.bf16.mxu0 %v21997_v27  ;;  %13273 = vmatprep.subr.bf16.mxu1 %v13523_v6  ;;  %v18069_v20 = vsel %vm16746_vm14, %v7432_v36, %v7433_v15  ;;  %v6268_v17 = vrot.slane %v6266_v16, 5  ;;  %v6261_v63 = vsel %vm16257_vm11, %v6256_v53, %v6260_v18  ;;  %v18082_v15 = vadd.f32 %v17919_v50, %v3625_v34 }
 0x3a0   :  { %v6274_v44 = vrot.slane %v6272_v41, 5  ;;  %v6278_v6 = vrot.slane %v6276_v61, 4  ;;  %v18084_v45 = vcombine.low %v6251_v14, %v6261_v63  ;;  %v6282_v4 = vshll.u32 %v17917_v28, 16  ;;  %v12700_v36 = vpop.f32.mrf.mxu1  ;;  %v18087_v16 = vpop.f32.mrf.mxu0 }
 0x3a1   :  { %12986 = vmatmul.mubr.bf16.gmra.mxu1 %v17708_v19  ;;  %v6269_v19 = vor.u32 %v6268_v17, %v6265_v40  ;;  %v11885_v27 = vrot.slane %v7187_v11, 9  ;;  %v7437_v53 = vrot.slane %v18060_v54, 5  ;;  %v7440_v41 = vrot.slane %v18071_v52, 5 }
 0x3a2   :  { %12989 = vmatprep.mubr.bf16.mxu1 %v17767_v60  ;;  %v6279_v18 = vor.u32 %v6278_v6, %v6274_v44  ;;  %v18092_v61 = vadd.f32 %v17938_v51, %v12700_v36  ;;  %v6284_v50 = vrot.slane %v6282_v4, 5  ;;  %v6287_v34 = vshrl.u32 %v5812_v62, 16  ;;  %v3628_v14 = vpop.f32.mrf.mxu1  ;;  %v18101_v6 = vpop.f32.mrf.mxu0 }
 0x3a3   :  { %v6270_v60 = vrot.slane %v6269_v19, 4  ;;  %v18096_v28 = vsel %vm16746_vm14, %v11885_v27, %v7437_v53  ;;  %v7439_v40 = vrot.slane %v7437_v53, 4  ;;  %v6290_v17 = vshll.u32 %v5812_v62, 16  ;;  %v7188_v27 = vld [vmem:[#allocation2 + $0x120] sm:$0xe] }
 0x3a4   :  { %v6280_v63 = vrot.slane %v6279_v18, 4  ;;  %v18099_v11 = vadd.f32 %v17952_v24, %v3628_v14  ;;  %v21998_v51 = vcombine.low %v17843_v10, %v17856_v47  ;;  %v6289_v4 = vrot.slane %v6287_v34, 4  ;;  %v18109_v18 = vld [vmem:[#allocation2 + $0x124] sm:$0xf]  ;;  %v12703_v53 = vpop.f32.mrf.mxu1  ;;  %v5815_v34 = vld [vmem:[#allocation2 + $0x108] sm:$0xf] }
 0x3a5   :  { %v6275_v19 = vsel %vm16257_vm11, %v6270_v60, %v6274_v44  ;;  %v6296_v36 = vshll.u32 %v17957_v46, 16  ;;  %v21999_v24 = vcombine.low %v17897_v8, %v17914_v21  ;;  %v18118_v10 = vsel %vm16746_vm14, %v7439_v40, %v7440_v41  ;;  %v18121_v60 = vld [vmem:[#allocation2 + $0x128] sm:$0x1] }
 0x3a6   :  { %13078 = vmatmul.mubr.bf16.gmra.mxu0 %v21998_v51  ;;  %v6285_v62 = vsel %vm16257_vm11, %v6280_v63, %v6284_v50  ;;  %v6292_v47 = vrot.slane %v6290_v17, 5  ;;  %v6300_v44 = vshrl.u32 %v17957_v46, 16  ;;  %v18124_v14 = vadd.f32 %v17975_v25, %v12703_v53  ;;  %v18126_v51 = vpop.f32.mrf.mxu0  ;;  %v3641_v41 = vpop.f32.mrf.mxu1 }
 0x3a7   :  { %13081 = vmatprep.mubr.bf16.mxu0 %v21999_v24  ;;  %v18128_v8 = vcombine.low %v6275_v19, %v6285_v62  ;;  %v6298_v50 = vrot.slane %v6296_v36, 5  ;;  %v6306_v46 = vshll.u32 %v17965_v57, 16  ;;  %v11886_v17 = vrot.slane %v7188_v27, 9 }
 0x3a8   :  { %v6293_v63 = vor.u32 %v6292_v47, %v6289_v4  ;;  %v6302_v40 = vrot.slane %v6300_v44, 4  ;;  %v18136_v25 = vadd.f32 %v17989_v31, %v3641_v41  ;;  %v18138_v53 = vpop.f32.mrf.mxu0  ;;  %v7444_v19 = vrot.slane %v18109_v18, 5  ;;  %v12704_v62 = vpop.f32.mrf.mxu1  ;;  %v18151_v41 = vld [vmem:[#allocation2 + $0x130] sm:$0xf] }
 0x3a9   :  { %12990 = vmatmul.mubr.bf16.gmra.mxu1 %v17815_v35  ;;  %v7447_v24 = vrot.slane %v18121_v60, 5  ;;  %v6311_v36 = vshrl.u32 %v5815_v34, 16  ;;  %v6308_v4 = vrot.slane %v6306_v46, 5  ;;  %v6314_v47 = vshll.u32 %v5815_v34, 16 }
 0x3aa   :  { %12993 = vmatprep.mubr.bf16.mxu1 %v17878_v37  ;;  %v6294_v35 = vrot.slane %v6293_v63, 4  ;;  %v6303_v21 = vor.u32 %v6302_v40, %v6298_v50  ;;  %v18143_v57 = vadd.f32 %v18005_v22, %v12704_v62  ;;  %v18145_v27 = vpop.f32.mrf.mxu0  ;;  %v18149_v37 = vsel %vm16746_vm14, %v11886_v17, %v7444_v19  ;;  %v3644_v38 = vpop.f32.mrf.mxu1  ;;  %v7189_v22 = vld [vmem:[#allocation2 + $0x12c] sm:$0xe] }
 0x3ab   :  { %v7446_v31 = vrot.slane %v7444_v19, 4  ;;  %v6313_v44 = vrot.slane %v6311_v36, 4  ;;  %v6316_v46 = vrot.slane %v6314_v47, 5  ;;  %v6320_v34 = vshll.u32 %v18008_v26, 16  ;;  %v18170_v36 = vld [vmem:[#allocation2 + $0x134] sm:$0x1] }
 0x3ac   :  { %22000 = vst [vmem:[#allocation44_spill] sm:$0xff] %v18143_v57  ;;  %v6299_v63 = vsel %vm16257_vm11, %v6294_v35, %v6298_v50  ;;  %v6304_v40 = vrot.slane %v6303_v21, 4  ;;  %v18157_v62 = vadd.f32 %v18024_v43, %v3644_v38  ;;  %v18159_v57 = vpop.f32.mrf.mxu0  ;;  %v22002_v17 = vcombine.low %v17946_v59, %v17962_v13  ;;  %v5818_v35 = vld [vmem:[#allocation2 + $0x114] sm:$0xf] }
 0x3ad   :  { %22001 = vst [vmem:[#allocation3_spill] sm:$0xff] %v18159_v57  ;;  %v18166_v19 = vsel %vm16746_vm14, %v7446_v31, %v7447_v24  ;;  %v6324_v50 = vshrl.u32 %v18008_v26, 16  ;;  %v6330_v21 = vshll.u32 %v18021_v56, 16  ;;  %v22003_v43 = vcombine.low %v18000_v3, %v18018_v39  ;;  %v12707_v57 = vpop.f32.mrf.mxu1 }
 0x3ae   :  { %13082 = vmatmul.mubr.bf16.gmra.mxu0 %v22002_v17  ;;  %v6309_v38 = vsel %vm16257_vm11, %v6304_v40, %v6308_v4  ;;  %v6317_v13 = vor.u32 %v6316_v46, %v6313_v44  ;;  %v6322_v24 = vrot.slane %v6320_v34, 5  ;;  %v18179_v47 = vpop.f32.mrf.mxu0  ;;  %v11887_v17 = vrot.slane %v7189_v22, 9  ;;  %v7190_v22 = vld [vmem:[#allocation2 + $0x138] sm:$0xe] }
 0x3af   :  { %13085 = vmatprep.mubr.bf16.mxu0 %v22003_v43  ;;  %22004 = vst [vmem:[#allocation48_spill] sm:$0xff] %v18179_v47  ;;  %v18181_v26 = vcombine.low %v6299_v63, %v6309_v38  ;;  %v6326_v56 = vrot.slane %v6324_v50, 4  ;;  %v6332_v31 = vrot.slane %v6330_v21, 5  ;;  %v7451_v39 = vrot.slane %v18151_v41, 5  ;;  %v3657_v50 = vpop.f32.mrf.mxu1 }
 0x3b0   :  { %v6318_v3 = vrot.slane %v6317_v13, 4  ;;  %v7454_v4 = vrot.slane %v18170_v36, 5  ;;  %v6335_v40 = vshrl.u32 %v5818_v35, 16  ;;  %v18187_v43 = vadd.f32 %v18044_v12, %v12707_v57  ;;  %v18190_v44 = vpop.f32.mrf.mxu0  ;;  %v18199_v57 = vld [vmem:[#allocation2 + $0x13c] sm:$0xf] }
 0x3b1   :  { %12994 = vmatmul.mubr.bf16.gmra.mxu1 %v17929_v55  ;;  %22005 = vst [vmem:[#allocation49_spill] sm:$0xff] %v18190_v44  ;;  %v6327_v63 = vor.u32 %v6326_v56, %v6322_v24  ;;  %v6338_v46 = vshll.u32 %v5818_v35, 16  ;;  %v6344_v34 = vshll.u32 %v18060_v54, 16  ;;  %v18197_v21 = vsel %vm16746_vm14, %v11887_v17, %v7451_v39  ;;  %v18206_v44 = vld [vmem:[#allocation2 + $0x140] sm:$0x1]  ;;  %v12708_v47 = vpop.f32.mrf.mxu1 }
 0x3b2   :  { %12997 = vmatprep.mubr.bf16.mxu1 %v17983_v29  ;;  %v6323_v55 = vsel %vm16257_vm11, %v6318_v3, %v6322_v24  ;;  %v7453_v38 = vrot.slane %v7451_v39, 4  ;;  %v6337_v12 = vrot.slane %v6335_v40, 4  ;;  %v18202_v29 = vadd.f32 %v18056_v2, %v3657_v50  ;;  %v18204_v13 = vpop.f32.mrf.mxu0  ;;  %v5821_v40 = vld [vmem:[#allocation2 + $0x120] sm:$0xf] }
 0x3b3   :  { %v6328_v35 = vrot.slane %v6327_v63, 4  ;;  %v6340_v56 = vrot.slane %v6338_v46, 5  ;;  %v6346_v59 = vrot.slane %v6344_v34, 5  ;;  %v6348_v17 = vshrl.u32 %v18060_v54, 16  ;;  %v3660_v54 = vpop.f32.mrf.mxu1 }
 0x3b4   :  { %v7455_v24 = vsel %vm16746_vm14, %v7453_v38, %v7454_v4  ;;  %v6354_v3 = vshll.u32 %v18071_v52, 16  ;;  %v11888_v39 = vrot.slane %v7190_v22, 9  ;;  %v18213_v2 = vadd.f32 %v18074_v49, %v12708_v47  ;;  %v18215_v50 = vpop.f32.mrf.mxu0 }
 0x3b5   :  { %22006 = vst [vmem:[#allocation50_spill] sm:$0xff] %v18215_v50  ;;  %v22007_v63 = vcombine.low %v18051_v1, %v18069_v20  ;;  %v6333_v46 = vsel %vm16257_vm11, %v6328_v35, %v6332_v31  ;;  %v11919_v4 = vcombine.low %v18197_v21, %v7455_v24  ;;  %v6341_v34 = vor.u32 %v6340_v56, %v6337_v12  ;;  %v12711_v35 = vpop.f32.mrf.mxu1  ;;  %v22028_v50 = vld [vmem:[#allocation33_spill] sm:$0xff] }
 0x3b6   :  { %v22008_v52 = vcombine.low %v18096_v28, %v18118_v10  ;;  %v18226_v22 = vcombine.low %v6323_v55, %v6333_v46  ;;  %v6350_v49 = vrot.slane %v6348_v17, 4  ;;  %v6356_v47 = vrot.slane %v6354_v3, 5  ;;  %v18232_v20 = vpop.f32.mrf.mxu0 }
 0x3b7   :  { %13086 = vmatmul.mubr.bf16.gmra.mxu0 %v22007_v63  ;;  %v7458_v38 = vrot.slane %v18199_v57, 5  ;;  %v18230_v1 = vadd.f32 %v18087_v16, %v3660_v54  ;;  %22009 = vst [vmem:[#allocation51_spill] sm:$0xff] %v18232_v20  ;;  %v6342_v31 = vrot.slane %v6341_v34, 4  ;;  %v7461_v21 = vrot.slane %v18206_v44, 5  ;;  %v7191_v63 = vld [vmem:[#allocation2 + $0x144] sm:$0xe]  ;;  %v3673_v46 = vpop.f32.mrf.mxu1 }
 0x3b8   :  { %13089 = vmatprep.mubr.bf16.mxu0 %v22008_v52  ;;  %v6359_v12 = vshrl.u32 %v5821_v40, 16  ;;  %v6351_v28 = vor.u32 %v6350_v49, %v6346_v59  ;;  %v6362_v56 = vshll.u32 %v5821_v40, 16  ;;  %v18241_v24 = vadd.f32 %v18101_v6, %v12711_v35  ;;  %v18244_v16 = vpop.f32.mrf.mxu0  ;;  %v18254_v54 = vld [vmem:[#allocation2 + $0x148] sm:$0xf] }
 0x3b9   :  { %12998 = vmatmul.mubr.bf16.gmra.mxu1 %v18033_v0  ;;  %v18238_v10 = vsel %vm16746_vm14, %v11888_v39, %v7458_v38  ;;  %v7460_v55 = vrot.slane %v7458_v38, 4  ;;  %22010 = vst [vmem:[#allocation52_spill] sm:$0xff] %v18244_v16  ;;  %v6347_v17 = vsel %vm16257_vm11, %v6342_v31, %v6346_v59  ;;  %v6368_v0 = vshll.u32 %v18109_v18, 16  ;;  %v18264_v31 = vld [vmem:[#allocation2 + $0x14c] sm:$0x1] }
 0x3ba   :  { %13001 = vmatprep.mubr.bf16.mxu1 %v18084_v45  ;;  %v6361_v3 = vrot.slane %v6359_v12, 4  ;;  %v6352_v34 = vrot.slane %v6351_v28, 4  ;;  %v6364_v40 = vrot.slane %v6362_v56, 5  ;;  %v6372_v6 = vshrl.u32 %v18109_v18, 16  ;;  %v18259_v52 = vpop.f32.mrf.mxu0  ;;  %v12712_v12 = vpop.f32.mrf.mxu1 }
 0x3bb   :  { %v18251_v39 = vsel %vm16746_vm14, %v7460_v55, %v7461_v21  ;;  %v18257_v45 = vadd.f32 %v18126_v51, %v3673_v46  ;;  %22011 = vst [vmem:[#allocation53_spill] sm:$0xff] %v18259_v52  ;;  %v6370_v49 = vrot.slane %v6368_v0, 5  ;;  %v6378_v38 = vshll.u32 %v18121_v60, 16  ;;  %v5824_v21 = vld [vmem:[#allocation2 + $0x12c] sm:$0xf] }
 0x3bc   :  { %v11920_v59 = vcombine.low %v18238_v10, %v18251_v39  ;;  %v6357_v18 = vsel %vm16257_vm11, %v6352_v34, %v6356_v47  ;;  %v6365_v35 = vor.u32 %v6364_v40, %v6361_v3  ;;  %v6374_v28 = vrot.slane %v6372_v6, 4  ;;  %v18271_v56 = vpop.f32.mrf.mxu0  ;;  %v3676_v39 = vpop.f32.mrf.mxu1 }
 0x3bd   :  { %v11889_v55 = vrot.slane %v7191_v63, 9  ;;  %v18269_v51 = vadd.f32 %v18138_v53, %v12712_v12  ;;  %22012 = vst [vmem:[#allocation54_spill] sm:$0xff] %v18271_v56  ;;  %v22013_v10 = vcombine.low %v18149_v37, %v18166_v19  ;;  %v18276_v60 = vcombine.low %v6347_v17, %v6357_v18 }
 0x3be   :  { %v6380_v0 = vrot.slane %v6378_v38, 5  ;;  %v7465_v46 = vrot.slane %v18254_v54, 5  ;;  %v6366_v47 = vrot.slane %v6365_v35, 4  ;;  %v6375_v3 = vor.u32 %v6374_v28, %v6370_v49  ;;  %v18283_v40 = vpop.f32.mrf.mxu0  ;;  %v12811_v6 = vpop.f32.mrf.mxu1  ;;  %v18291_v35 = vld [vmem:[#allocation2 + $0x154] sm:$0xf] }
 0x3bf   :  { %13090 = vmatmul.mubr.bf16.gmra.mxu0 %v22013_v10  ;;  %v7468_v63 = vrot.slane %v18264_v31, 5  ;;  %v6383_v34 = vshrl.u32 %v5824_v21, 16  ;;  %v18281_v53 = vadd.f32 %v18145_v27, %v3676_v39  ;;  %22014 = vst [vmem:[#allocation55_spill] sm:$0xff] %v18283_v40  ;;  %v6386_v17 = vshll.u32 %v5824_v21, 16  ;;  %v22015_v27 = vld [vmem:[#allocation9_spill] sm:$0xff] }
 0x3c0   :  { %13093 = vmatprep.mubr.bf16.mxu0 %v11919_v4  ;;  %v7466_v37 = vsel %vm16746_vm14, %v11889_v55, %v7465_v46  ;;  %v7467_v19 = vrot.slane %v7465_v46, 4  ;;  %v6371_v4 = vsel %vm16257_vm11, %v6366_v47, %v6370_v49  ;;  %v6376_v38 = vrot.slane %v6375_v3, 4  ;;  %v18297_v55 = vpop.f32.mrf.mxu0  ;;  %v18302_v49 = vld [vmem:[#allocation2 + $0x158] sm:$0x1]  ;;  %v7192_v46 = vld [vmem:[#allocation2 + $0x150] sm:$0xe]  ;;  %v4766_v39 = vpop.f32.mrf.mxu1 }
 0x3c1   :  { %13002 = vmatmul.mubr.bf16.gmra.mxu1 %v18128_v8  ;;  %v6385_v12 = vrot.slane %v6383_v34, 4  ;;  %v6392_v18 = vshll.u32 %v18151_v41, 16  ;;  %v18294_v28 = vadd.f32 %v12811_v6, %v22015_v27  ;;  %22016 = vst [vmem:[#allocation9_spill] sm:$0xff] %v18297_v55  ;;  %v6388_v8 = vrot.slane %v6386_v17, 5  ;;  %v22017_v27 = vld [vmem:[#allocation31_spill] sm:$0xff] }
 0x3c2   :  { %13005 = vmatprep.mubr.bf16.mxu1 %v18181_v26  ;;  %v7469_v21 = vsel %vm16746_vm14, %v7467_v19, %v7468_v63  ;;  %v6396_v10 = vshrl.u32 %v18151_v41, 16  ;;  %v6381_v47 = vsel %vm16257_vm11, %v6376_v38, %v6380_v0  ;;  %v6402_v6 = vshll.u32 %v18170_v36, 16  ;;  %v5827_v26 = vld [vmem:[#allocation2 + $0x138] sm:$0xf]  ;;  %v18310_v40 = vpop.f32.mrf.mxu0  ;;  %v12812_v17 = vpop.f32.mrf.mxu1 }
 0x3c3   :  { %v11921_v3 = vcombine.low %v7466_v37, %v7469_v21  ;;  %v6394_v34 = vrot.slane %v6392_v18, 5  ;;  %v18308_v55 = vadd.f32 %v4766_v39, %v22017_v27  ;;  %22018 = vst [vmem:[#allocation31_spill] sm:$0xff] %v18310_v40  ;;  %v18312_v63 = vcombine.low %v6371_v4, %v6381_v47  ;;  %v22019_v37 = vld [vmem:[#allocation29_spill] sm:$0xff]  ;;  %v22021_v47 = vld [vmem:[#allocation32_spill] sm:$0xff]  ;;  %v22025_v40 = vld [vmem:[#allocation35_spill] sm:$0xff] }
 0x3c4   :  { %v6389_v41 = vor.u32 %v6388_v8, %v6385_v12  ;;  %v6398_v19 = vrot.slane %v6396_v10, 4  ;;  %v6404_v56 = vrot.slane %v6402_v6, 5  ;;  %v11890_v52 = vrot.slane %v7192_v46, 9  ;;  %v18319_v36 = vpop.f32.mrf.mxu0  ;;  %v4769_v4 = vpop.f32.mrf.mxu1 }
 0x3c5   :  { %v7472_v16 = vrot.slane %v18291_v35, 5  ;;  %v7475_v0 = vrot.slane %v18302_v49, 5  ;;  %v18317_v38 = vadd.f32 %v12812_v17, %v22019_v37  ;;  %22020 = vst [vmem:[#allocation29_spill] sm:$0xff] %v18319_v36  ;;  %v6407_v39 = vshrl.u32 %v5827_v26, 16  ;;  %v18331_v17 = vld [vmem:[#allocation2 + $0x160] sm:$0xf] }
 0x3c6   :  { %v6390_v18 = vrot.slane %v6389_v41, 4  ;;  %v6399_v21 = vor.u32 %v6398_v19, %v6394_v34  ;;  %v6410_v10 = vshll.u32 %v5827_v26, 16  ;;  %v6416_v46 = vshll.u32 %v18199_v57, 16  ;;  %v18327_v27 = vpop.f32.mrf.mxu0  ;;  %v12815_v37 = vpop.f32.mrf.mxu1 }
 0x3c7   :  { %13094 = vmatmul.mubr.bf16.gmra.mxu0 %v11920_v59  ;;  %v7473_v12 = vsel %vm16746_vm14, %v11890_v52, %v7472_v16  ;;  %v7474_v8 = vrot.slane %v7472_v16, 4  ;;  %v18325_v6 = vadd.f32 %v4769_v4, %v22021_v47  ;;  %22022 = vst [vmem:[#allocation32_spill] sm:$0xff] %v18327_v27  ;;  %v6409_v19 = vrot.slane %v6407_v39, 4  ;;  %v18337_v47 = vld [vmem:[#allocation2 + $0x164] sm:$0x1]  ;;  %v22023_v27 = vld [vmem:[#allocation24_spill] sm:$0xff] }
 0x3c8   :  { %13097 = vmatprep.mubr.bf16.mxu0 %v11921_v3  ;;  %v6395_v59 = vsel %vm16257_vm11, %v6390_v18, %v6394_v34  ;;  %v6400_v41 = vrot.slane %v6399_v21, 4  ;;  %v7193_v3 = vld [vmem:[#allocation2 + $0x15c] sm:$0xe]  ;;  %v6412_v52 = vrot.slane %v6410_v10, 5  ;;  %v6418_v26 = vrot.slane %v6416_v46, 5  ;;  %v18345_v18 = vpop.f32.mrf.mxu0  ;;  %v4782_v39 = vpop.f32.mrf.mxu1 }
 0x3c9   :  { %13006 = vmatmul.mubr.bf16.gmra.mxu1 %v18226_v22  ;;  %v7476_v16 = vsel %vm16746_vm14, %v7474_v8, %v7475_v0  ;;  %v6420_v4 = vshrl.u32 %v18199_v57, 16  ;;  %v18340_v36 = vadd.f32 %v12815_v37, %v22023_v27  ;;  %22024 = vst [vmem:[#allocation24_spill] sm:$0xff] %v18345_v18  ;;  %v6426_v21 = vshll.u32 %v18206_v44, 16  ;;  %v5830_v0 = vld [vmem:[#allocation2 + $0x144] sm:$0xf] }
 0x3ca   :  { %13009 = vmatprep.mubr.bf16.mxu1 %v18276_v60  ;;  %v6405_v34 = vsel %vm16257_vm11, %v6400_v41, %v6404_v56  ;;  %v11922_v22 = vcombine.low %v7473_v12, %v7476_v16  ;;  %v6413_v10 = vor.u32 %v6412_v52, %v6409_v19  ;;  %v11891_v46 = vrot.slane %v7193_v3, 9  ;;  %v18351_v27 = vpop.f32.mrf.mxu0  ;;  %v12816_v41 = vpop.f32.mrf.mxu1 }
 0x3cb   :  { %v11847_v8 = vcombine.low %v6395_v59, %v6405_v34  ;;  %v6422_v57 = vrot.slane %v6420_v4, 4  ;;  %v18349_v20 = vadd.f32 %v4782_v39, %v22025_v40  ;;  %22027 = vst [vmem:[#allocation56_spill] sm:$0xff] %v18351_v27  ;;  %v6428_v60 = vrot.slane %v6426_v21, 5  ;;  %v18375_v27 = vld [vmem:[#allocation2 + $0x170] sm:$0x1] }
 0x3cc   :  { %v7479_v37 = vrot.slane %v18331_v17, 5  ;;  %v7482_v56 = vrot.slane %v18337_v47, 5  ;;  %v6414_v12 = vrot.slane %v6413_v10, 4  ;;  %v6431_v44 = vshrl.u32 %v5830_v0, 16  ;;  %v18358_v19 = vpop.f32.mrf.mxu0  ;;  %v4785_v4 = vpop.f32.mrf.mxu1 }
 0x3cd   :  { %22026 = vst [vmem:[#allocation35_spill] sm:$0xff] %v18349_v20  ;;  %v6423_v16 = vor.u32 %v6422_v57, %v6418_v26  ;;  %v6434_v18 = vshll.u32 %v5830_v0, 16  ;;  %v18356_v59 = vadd.f32 %v12816_v41, %v22028_v50  ;;  %22030 = vst [vmem:[#allocation57_spill] sm:$0xff] %v18358_v19  ;;  %v6440_v52 = vshll.u32 %v18254_v54, 16  ;;  %v7194_v0 = vld [vmem:[#allocation2 + $0x168] sm:$0xe] }
 0x3ce   :  { %v7480_v40 = vsel %vm16746_vm14, %v11891_v46, %v7479_v37  ;;  %v7481_v3 = vrot.slane %v7479_v37, 4  ;;  %v6419_v34 = vsel %vm16257_vm11, %v6414_v12, %v6418_v26  ;;  %v6433_v39 = vrot.slane %v6431_v44, 4  ;;  %v22031_v57 = vld [vmem:[#allocation36_spill] sm:$0xff]  ;;  %v18370_v41 = vpop.f32.mrf.mxu0  ;;  %v18373_v19 = vld [vmem:[#allocation2 + $0x16c] sm:$0xf]  ;;  %v12819_v26 = vpop.f32.mrf.mxu1 }
 0x3cf   :  { %22029 = vst [vmem:[#allocation33_spill] sm:$0xff] %v18356_v59  ;;  %13098 = vmatmul.mubr.bf16.gmra.mxu0 %v11922_v22  ;;  %v6424_v21 = vrot.slane %v6423_v16, 4  ;;  %v6436_v10 = vrot.slane %v6434_v18, 5  ;;  %v18366_v50 = vadd.f32 %v4785_v4, %v22031_v57  ;;  %22033 = vst [vmem:[#allocation58_spill] sm:$0xff] %v18370_v41  ;;  %v6442_v46 = vrot.slane %v6440_v52, 5 }
 0x3d0   :  { %v7483_v22 = vsel %vm16746_vm14, %v7481_v3, %v7482_v56  ;;  %v6444_v37 = vshrl.u32 %v18254_v54, 16  ;;  %v6450_v44 = vshll.u32 %v18264_v31, 16  ;;  %v5833_v56 = vld [vmem:[#allocation2 + $0x150] sm:$0xf]  ;;  %v22034_v3 = vld [vmem:[#allocation34_spill] sm:$0xff]  ;;  %v18384_v57 = vpop.f32.mrf.mxu0  ;;  %v11892_v41 = vrot.slane %v7194_v0, 9 }
 0x3d1   :  { %22032 = vst [vmem:[#allocation36_spill] sm:$0xff] %v18366_v50  ;;  %13010 = vmatmul.mubr.bf16.gmra.mxu1 %v18312_v63  ;;  %v6429_v18 = vsel %vm16257_vm11, %v6424_v21, %v6428_v60  ;;  %v11923_v12 = vcombine.low %v7480_v40, %v7483_v22  ;;  %v6437_v16 = vor.u32 %v6436_v10, %v6433_v39  ;;  %22036 = vst [vmem:[#allocation59_spill] sm:$0xff] %v18384_v57  ;;  %v4798_v50 = vpop.f32.mrf.mxu1  ;;  %v22037_v21 = vld [vmem:[#allocation37_spill] sm:$0xff]  ;;  %v18409_v57 = vld [vmem:[#allocation2 + $0x17c] sm:$0x1] }
 0x3d2   :  { %v18382_v4 = vadd.f32 %v12819_v26, %v22034_v3  ;;  %13013 = vmatprep.mubr.bf16.mxu1 %v11847_v8  ;;  %v11848_v54 = vcombine.low %v6419_v34, %v6429_v18  ;;  %v6446_v52 = vrot.slane %v6444_v37, 4  ;;  %v6452_v59 = vrot.slane %v6450_v44, 5  ;;  %v18391_v10 = vpop.f32.mrf.mxu0 }
 0x3d3   :  { %13101 = vmatprep.mubr.bf16.mxu0 %v11923_v12  ;;  %v6438_v63 = vrot.slane %v6437_v16, 4  ;;  %v7486_v60 = vrot.slane %v18373_v19, 5  ;;  %v7489_v40 = vrot.slane %v18375_v27, 5  ;;  %v18389_v31 = vadd.f32 %v4798_v50, %v22037_v21  ;;  %22039 = vst [vmem:[#allocation60_spill] sm:$0xff] %v18391_v10  ;;  %v12820_v22 = vpop.f32.mrf.mxu1  ;;  %v18398_v12 = vld [vmem:[#allocation2 + $0x178] sm:$0xf] }
 0x3d4   :  { %22035 = vst [vmem:[#allocation34_spill] sm:$0xff] %v18382_v4  ;;  %v6447_v39 = vor.u32 %v6446_v52, %v6442_v46  ;;  %v6455_v8 = vshrl.u32 %v5833_v56, 16  ;;  %v6458_v34 = vshll.u32 %v5833_v56, 16  ;;  %v6464_v18 = vshll.u32 %v18291_v35, 16  ;;  %v22040_v16 = vld [vmem:[#allocation38_spill] sm:$0xff]  ;;  %v18403_v3 = vpop.f32.mrf.mxu0 }
 0x3d5   :  { %22038 = vst [vmem:[#allocation37_spill] sm:$0xff] %v18389_v31  ;;  %v6443_v0 = vsel %vm16257_vm11, %v6438_v63, %v6442_v46  ;;  %v7487_v37 = vsel %vm16746_vm14, %v11892_v41, %v7486_v60  ;;  %v7488_v26 = vrot.slane %v7486_v60, 4  ;;  %v18401_v50 = vadd.f32 %v12820_v22, %v22040_v16  ;;  %22042 = vst [vmem:[#allocation61_spill] sm:$0xff] %v18403_v3  ;;  %v7195_v21 = vld [vmem:[#allocation2 + $0x174] sm:$0xe]  ;;  %v4801_v10 = vpop.f32.mrf.mxu1 }
 0x3d6   :  { %v6448_v44 = vrot.slane %v6447_v39, 4  ;;  %v6457_v52 = vrot.slane %v6455_v8, 4  ;;  %v6460_v56 = vrot.slane %v6458_v34, 5  ;;  %v6466_v63 = vrot.slane %v6464_v18, 5  ;;  %v22043_v31 = vld [vmem:[#allocation11_spill] sm:$0xff]  ;;  %v18416_v16 = vpop.f32.mrf.mxu0 }
 0x3d7   :  { %22041 = vst [vmem:[#allocation38_spill] sm:$0xff] %v18401_v50  ;;  %v7490_v46 = vsel %vm16746_vm14, %v7488_v26, %v7489_v40  ;;  %v6468_v41 = vshrl.u32 %v18291_v35, 16  ;;  %v6474_v60 = vshll.u32 %v18302_v49, 16  ;;  %v18412_v22 = vadd.f32 %v4801_v10, %v22043_v31  ;;  %22045 = vst [vmem:[#allocation62_spill] sm:$0xff] %v18416_v16  ;;  %v5836_v3 = vld [vmem:[#allocation2 + $0x15c] sm:$0xf]  ;;  %v12823_v50 = vpop.f32.mrf.mxu1 }
 0x3d8   :  { %v6453_v39 = vsel %vm16257_vm11, %v6448_v44, %v6452_v59  ;;  %v11924_v8 = vcombine.low %v7487_v37, %v7490_v46  ;;  %v6461_v34 = vor.u32 %v6460_v56, %v6457_v52  ;;  %v11893_v18 = vrot.slane %v7195_v21, 9  ;;  %v22046_v49 = vld [vmem:[#allocation39_spill] sm:$0xff]  ;;  %v18423_v37 = vpop.f32.mrf.mxu0  ;;  %v22049_v46 = vld [vmem:[#allocation40_spill] sm:$0xff]  ;;  %v22052_v16 = vld [vmem:[#allocation14_spill] sm:$0xff] }
 0x3d9   :  { %22044 = vst [vmem:[#allocation11_spill] sm:$0xff] %v18412_v22  ;;  %13014 = vmatmul.mubr.bf16.gmra.mxu1 %v11848_v54  ;;  %v11849_v40 = vcombine.low %v6443_v0, %v6453_v39  ;;  %v6470_v26 = vrot.slane %v6468_v41, 4  ;;  %v6476_v35 = vrot.slane %v6474_v60, 5  ;;  %v18419_v4 = vadd.f32 %v12823_v50, %v22046_v49  ;;  %22048 = vst [vmem:[#allocation63_spill] sm:$0xff] %v18423_v37  ;;  %v4814_v44 = vpop.f32.mrf.mxu1  ;;  %v18435_v37 = vld [vmem:[#allocation2 + $0x184] sm:$0xf] }
 0x3da   :  { %13102 = vmatmul.mubr.bf16.gmra.mxu0 %v11924_v8  ;;  %v6462_v31 = vrot.slane %v6461_v34, 4  ;;  %v7493_v10 = vrot.slane %v18398_v12, 5  ;;  %v7496_v59 = vrot.slane %v18409_v57, 5  ;;  %v6479_v56 = vshrl.u32 %v5836_v3, 16  ;;  %v18433_v39 = vpop.f32.mrf.mxu0  ;;  %v7196_v8 = vld [vmem:[#allocation2 + $0x180] sm:$0xe] }
 0x3db   :  { %22047 = vst [vmem:[#allocation39_spill] sm:$0xff] %v18419_v4  ;;  %13017 = vmatprep.mubr.bf16.mxu1 %v11849_v40  ;;  %v6471_v52 = vor.u32 %v6470_v26, %v6466_v63  ;;  %v6482_v54 = vshll.u32 %v5836_v3, 16  ;;  %v6488_v0 = vshll.u32 %v18331_v17, 16  ;;  %v18427_v21 = vadd.f32 %v4814_v44, %v22049_v46  ;;  %22051 = vst [vmem:[#allocation64_spill] sm:$0xff] %v18433_v39  ;;  %v12824_v34 = vpop.f32.mrf.mxu1  ;;  %v18446_v46 = vld [vmem:[#allocation2 + $0x188] sm:$0x1] }
 0x3dc   :  { %v6467_v50 = vsel %vm16257_vm11, %v6462_v31, %v6466_v63  ;;  %v7494_v41 = vsel %vm16746_vm14, %v11893_v18, %v7493_v10  ;;  %v7495_v60 = vrot.slane %v7493_v10, 4  ;;  %v6481_v26 = vrot.slane %v6479_v56, 4  ;;  %v18444_v10 = vpop.f32.mrf.mxu0 }
 0x3dd   :  { %22050 = vst [vmem:[#allocation40_spill] sm:$0xff] %v18427_v21  ;;  %v6472_v40 = vrot.slane %v6471_v52, 4  ;;  %v6484_v49 = vrot.slane %v6482_v54, 5  ;;  %v6490_v3 = vrot.slane %v6488_v0, 5  ;;  %v18438_v44 = vadd.f32 %v12824_v34, %v22052_v16  ;;  %22054 = vst [vmem:[#allocation65_spill] sm:$0xff] %v18444_v10  ;;  %v4817_v56 = vpop.f32.mrf.mxu1  ;;  %v22055_v34 = vld [vmem:[#allocation41_spill] sm:$0xff] }
 0x3de   :  { %v7497_v63 = vsel %vm16746_vm14, %v7495_v60, %v7496_v59  ;;  %v6492_v31 = vshrl.u32 %v18331_v17, 16  ;;  %v6498_v18 = vshll.u32 %v18337_v47, 16  ;;  %v5839_v52 = vld [vmem:[#allocation2 + $0x168] sm:$0xf]  ;;  %v11894_v16 = vrot.slane %v7196_v8, 9  ;;  %v18453_v21 = vpop.f32.mrf.mxu0 }
 0x3df   :  { %22053 = vst [vmem:[#allocation14_spill] sm:$0xff] %v18438_v44  ;;  %v6477_v54 = vsel %vm16257_vm11, %v6472_v40, %v6476_v35  ;;  %v11925_v0 = vcombine.low %v7494_v41, %v7497_v63  ;;  %v6485_v39 = vor.u32 %v6484_v49, %v6481_v26  ;;  %v18451_v44 = vadd.f32 %v4817_v56, %v22055_v34  ;;  %v12827_v47 = vpop.f32.mrf.mxu1  ;;  %v22057_v35 = vld [vmem:[#allocation15_spill] sm:$0xff]  ;;  %v7197_v26 = vld [vmem:[#allocation2 + $0x18c] sm:$0xe]  ;;  %v22060_v34 = vld [vmem:[#allocation16_spill] sm:$0xff] }
 0x3e0   :  { %v11850_v59 = vcombine.low %v6467_v50, %v6477_v54  ;;  %v6494_v60 = vrot.slane %v6492_v31, 4  ;;  %v6500_v17 = vrot.slane %v6498_v18, 5  ;;  %22056 = vst [vmem:[#allocation41_spill] sm:$0xff] %v18453_v21  ;;  %v7500_v4 = vrot.slane %v18435_v37, 5  ;;  %v18461_v49 = vpop.f32.mrf.mxu0  ;;  %v18467_v54 = vld [vmem:[#allocation2 + $0x190] sm:$0xf] }
 0x3e1   :  { %13105 = vmatprep.mubr.bf16.mxu0 %v11925_v0  ;;  %v6486_v10 = vrot.slane %v6485_v39, 4  ;;  %v7503_v22 = vrot.slane %v18446_v46, 5  ;;  %v6503_v20 = vshrl.u32 %v5839_v52, 16  ;;  %v18458_v41 = vadd.f32 %v12827_v47, %v22057_v35  ;;  %22059 = vst [vmem:[#allocation66_spill] sm:$0xff] %v18461_v49  ;;  %v4830_v39 = vpop.f32.mrf.mxu1  ;;  %v18472_v47 = vld [vmem:[#allocation2 + $0x194] sm:$0x1] }
 0x3e2   :  { %13018 = vmatmul.mubr.bf16.gmra.mxu1 %v11850_v59  ;;  %v6495_v8 = vor.u32 %v6494_v60, %v6490_v3  ;;  %v6506_v40 = vshll.u32 %v5839_v52, 16  ;;  %v6512_v50 = vshll.u32 %v18373_v19, 16  ;;  %v7501_v31 = vsel %vm16746_vm14, %v11894_v16, %v7500_v4  ;;  %v18474_v35 = vpop.f32.mrf.mxu0  ;;  %v5842_v16 = vld [vmem:[#allocation2 + $0x174] sm:$0xf] }
 0x3e3   :  { %22058 = vst [vmem:[#allocation15_spill] sm:$0xff] %v18458_v41  ;;  %v6491_v63 = vsel %vm16257_vm11, %v6486_v10, %v6490_v3  ;;  %v7502_v18 = vrot.slane %v7500_v4, 4  ;;  %v6505_v56 = vrot.slane %v6503_v20, 4  ;;  %v18470_v59 = vadd.f32 %v4830_v39, %v22060_v34  ;;  %22062 = vst [vmem:[#allocation67_spill] sm:$0xff] %v18474_v35  ;;  %v12828_v49 = vpop.f32.mrf.mxu1  ;;  %v22063_v39 = vld [vmem:[#allocation18_spill] sm:$0xff] }
 0x3e4   :  { %v6496_v0 = vrot.slane %v6495_v8, 4  ;;  %v6508_v52 = vrot.slane %v6506_v40, 5  ;;  %v6514_v60 = vrot.slane %v6512_v50, 5  ;;  %v6516_v10 = vshrl.u32 %v18373_v19, 16  ;;  %v18485_v21 = vpop.f32.mrf.mxu0 }
 0x3e5   :  { %22061 = vst [vmem:[#allocation16_spill] sm:$0xff] %v18470_v59  ;;  %v7504_v3 = vsel %vm16746_vm14, %v7502_v18, %v7503_v22  ;;  %v6522_v20 = vshll.u32 %v18375_v27, 16  ;;  %v11895_v4 = vrot.slane %v7197_v26, 9  ;;  %v18483_v40 = vadd.f32 %v12828_v49, %v22063_v39  ;;  %22065 = vst [vmem:[#allocation68_spill] sm:$0xff] %v18485_v21  ;;  %v4833_v59 = vpop.f32.mrf.mxu1  ;;  %v22066_v18 = vld [vmem:[#allocation22_spill] sm:$0xff] }
 0x3e6   :  { %v6501_v8 = vsel %vm16257_vm11, %v6496_v0, %v6500_v17  ;;  %v11926_v50 = vcombine.low %v7501_v31, %v7504_v3  ;;  %v6509_v34 = vor.u32 %v6508_v52, %v6505_v56  ;;  %v6518_v41 = vrot.slane %v6516_v10, 4  ;;  %v18492_v49 = vpop.f32.mrf.mxu0  ;;  %v22069_v10 = vld [vmem:[#allocation19_spill] sm:$0xff] }
 0x3e7   :  { %22064 = vst [vmem:[#allocation18_spill] sm:$0xff] %v18483_v40  ;;  %v11851_v35 = vcombine.low %v6491_v63, %v6501_v8  ;;  %v6524_v22 = vrot.slane %v6522_v20, 5  ;;  %v7507_v19 = vrot.slane %v18467_v54, 5  ;;  %v18489_v27 = vadd.f32 %v4833_v59, %v22066_v18  ;;  %22068 = vst [vmem:[#allocation69_spill] sm:$0xff] %v18492_v49  ;;  %v12831_v31 = vpop.f32.mrf.mxu1  ;;  %v18513_v49 = vld [vmem:[#allocation2 + $0x1a0] sm:$0x1] }
 0x3e8   :  { %13106 = vmatmul.mubr.bf16.gmra.mxu0 %v11926_v50  ;;  %v6510_v26 = vrot.slane %v6509_v34, 4  ;;  %v7510_v17 = vrot.slane %v18472_v47, 5  ;;  %v6527_v0 = vshrl.u32 %v5842_v16, 16  ;;  %v6519_v56 = vor.u32 %v6518_v41, %v6514_v60  ;;  %v7198_v50 = vld [vmem:[#allocation2 + $0x198] sm:$0xe]  ;;  %v18502_v34 = vpop.f32.mrf.mxu0 }
 0x3e9   :  { %22067 = vst [vmem:[#allocation22_spill] sm:$0xff] %v18489_v27  ;;  %13021 = vmatprep.mubr.bf16.mxu1 %v11851_v35  ;;  %v7508_v63 = vsel %vm16746_vm14, %v11895_v4, %v7507_v19  ;;  %v7509_v52 = vrot.slane %v7507_v19, 4  ;;  %v6530_v3 = vshll.u32 %v5842_v16, 16  ;;  %v18497_v20 = vadd.f32 %v12831_v31, %v22069_v10  ;;  %22071 = vst [vmem:[#allocation70_spill] sm:$0xff] %v18502_v34  ;;  %v4846_v16 = vpop.f32.mrf.mxu1  ;;  %v18507_v19 = vld [vmem:[#allocation2 + $0x19c] sm:$0xf] }
 0x3ea   :  { %v6515_v59 = vsel %vm16257_vm11, %v6510_v26, %v6514_v60  ;;  %v6529_v8 = vrot.slane %v6527_v0, 4  ;;  %v6536_v39 = vshll.u32 %v18398_v12, 16  ;;  %v6520_v35 = vrot.slane %v6519_v56, 4  ;;  %v22072_v26 = vld [vmem:[#allocation42_spill] sm:$0xff]  ;;  %v5845_v34 = vld [vmem:[#allocation2 + $0x180] sm:$0xf]  ;;  %v18515_v56 = vpop.f32.mrf.mxu0 }
 0x3eb   :  { %22070 = vst [vmem:[#allocation19_spill] sm:$0xff] %v18497_v20  ;;  %v7511_v41 = vsel %vm16746_vm14, %v7509_v52, %v7510_v17  ;;  %v6532_v18 = vrot.slane %v6530_v3, 5  ;;  %v6540_v4 = vshrl.u32 %v18398_v12, 16  ;;  %v6546_v60 = vshll.u32 %v18409_v57, 16  ;;  %22074 = vst [vmem:[#allocation71_spill] sm:$0xff] %v18515_v56  ;;  %v12832_v3 = vpop.f32.mrf.mxu1 }
 0x3ec   :  { %v11927_v31 = vcombine.low %v7508_v63, %v7511_v41  ;;  %v6538_v10 = vrot.slane %v6536_v39, 5  ;;  %v18511_v0 = vadd.f32 %v4846_v16, %v22072_v26  ;;  %v6525_v17 = vsel %vm16257_vm11, %v6520_v35, %v6524_v22  ;;  %v22075_v39 = vld [vmem:[#allocation43_spill] sm:$0xff]  ;;  %v18523_v16 = vpop.f32.mrf.mxu0 }
 0x3ed   :  { %v6533_v52 = vor.u32 %v6532_v18, %v6529_v8  ;;  %v6542_v12 = vrot.slane %v6540_v4, 4  ;;  %v11896_v21 = vrot.slane %v7198_v50, 9  ;;  %v11852_v20 = vcombine.low %v6515_v59, %v6525_v17  ;;  %22077 = vst [vmem:[#allocation72_spill] sm:$0xff] %v18523_v16  ;;  %v4849_v56 = vpop.f32.mrf.mxu1  ;;  %v22078_v8 = vld [vmem:[#allocation45_spill] sm:$0xff] }
 0x3ee   :  { %22073 = vst [vmem:[#allocation42_spill] sm:$0xff] %v18511_v0  ;;  %13109 = vmatprep.mubr.bf16.mxu0 %v11927_v31  ;;  %v6548_v63 = vrot.slane %v6546_v60, 5  ;;  %v18520_v57 = vadd.f32 %v12832_v3, %v22075_v39  ;;  %v7514_v41 = vrot.slane %v18507_v19, 5  ;;  %v7517_v27 = vrot.slane %v18513_v49, 5  ;;  %v18531_v4 = vpop.f32.mrf.mxu0  ;;  %v8738_v3 = vld [vmem:[#allocation2 + $0x18] sm:$0xf] }
 0x3ef   :  { %v6534_v26 = vrot.slane %v6533_v52, 4  ;;  %v6543_v0 = vor.u32 %v6542_v12, %v6538_v10  ;;  %v6551_v22 = vshrl.u32 %v5845_v34, 16  ;;  %13022 = vmatmul.mubr.bf16.gmra.mxu1 %v11852_v20  ;;  %v18527_v35 = vadd.f32 %v4849_v56, %v22078_v8  ;;  %22080 = vst [vmem:[#allocation73_spill] sm:$0xff] %v18531_v4  ;;  %v12835_v17 = vpop.f32.mrf.mxu1  ;;  %v22081_v56 = vld [vmem:[#allocation21_spill] sm:$0xff] }
 0x3f0   :  { %22076 = vst [vmem:[#allocation43_spill] sm:$0xff] %v18520_v57  ;;  %v7515_v59 = vsel %vm16746_vm14, %v11896_v21, %v7514_v41  ;;  %v7516_v50 = vrot.slane %v7514_v41, 4  ;;  %v6554_v18 = vshll.u32 %v5845_v34, 16  ;;  %v6560_v12 = vshll.u32 %v18435_v37, 16  ;;  %v8739_v41 = vld [vmem:[#allocation2 + $0x1c] sm:$0xf]  ;;  %v18542_v8 = vpop.f32.mrf.mxu0 }
 0x3f1   :  { %22079 = vst [vmem:[#allocation45_spill] sm:$0xff] %v18527_v35  ;;  %v6539_v31 = vsel %vm16257_vm11, %v6534_v26, %v6538_v10  ;;  %v6544_v60 = vrot.slane %v6543_v0, 4  ;;  %v6553_v52 = vrot.slane %v6551_v22, 4  ;;  %v18539_v39 = vadd.f32 %v12835_v17, %v22081_v56  ;;  %22083 = vst [vmem:[#allocation74_spill] sm:$0xff] %v18542_v8  ;;  %v8740_v4 = vld [vmem:[#allocation2 + $0x20] sm:$0x1]  ;;  %v4862_v16 = vpop.f32.mrf.mxu1 }
 0x3f2   :  { %v7518_v20 = vsel %vm16746_vm14, %v7516_v50, %v7517_v27  ;;  %v6556_v21 = vrot.slane %v6554_v18, 5  ;;  %v6564_v34 = vshrl.u32 %v18435_v37, 16  ;;  %v6562_v26 = vrot.slane %v6560_v12, 5  ;;  %v5848_v56 = vld [vmem:[#allocation2 + $0x18c] sm:$0xf]  ;;  %v18547_v18 = vpop.f32.mrf.mxu0 }
 0x3f3   :  { %22082 = vst [vmem:[#allocation21_spill] sm:$0xff] %v18539_v39  ;;  %v6549_v10 = vsel %vm16257_vm11, %v6544_v60, %v6548_v63  ;;  %v11928_v0 = vcombine.low %v7515_v59, %v7518_v20  ;;  %v6570_v22 = vshll.u32 %v18446_v46, 16  ;;  %v8835_v17 = vshrl.u32 %v8738_v3, 16  ;;  %22084 = vst [vmem:[#allocation75_spill] sm:$0xff] %v18547_v18  ;;  %v12836_v57 = vpop.f32.mrf.mxu1  ;;  %v22088_v18 = vld [vmem:[#allocation26_spill] sm:$0xff] }
 0x3f4   :  { %v11853_v42 = vcombine.low %v6539_v31, %v6549_v10  ;;  %v6557_v27 = vor.u32 %v6556_v21, %v6553_v52  ;;  %v6566_v50 = vrot.slane %v6564_v34, 4  ;;  %v8838_v39 = vshll.u32 %v8738_v3, 16  ;;  %v18549_v12 = vpop.f32.mrf.mxu0 }
 0x3f5   :  { %13110 = vmatmul.mubr.bf16.gmra.mxu0 %v11928_v0  ;;  %v6572_v37 = vrot.slane %v6570_v22, 5  ;;  %v8844_v8 = vshll.u32 %v8739_v41, 16  ;;  %v8848_v35 = vshrl.u32 %v8739_v41, 16  ;;  %v8837_v60 = vrot.slane %v8835_v17, 4  ;;  %22085 = vst [vmem:[#allocation76_spill] sm:$0xff] %v18549_v12  ;;  %v4865_v34 = vpop.f32.mrf.mxu1 }
 0x3f6   :  { %13025 = vmatprep.mubr.bf16.mxu1 %v11853_v42  ;;  %v6558_v63 = vrot.slane %v6557_v27, 4  ;;  %v6567_v59 = vor.u32 %v6566_v50, %v6562_v26  ;;  %v8854_v46 = vshll.u32 %v8740_v4, 16  ;;  %v8840_v31 = vrot.slane %v8838_v39, 5  ;;  %v18553_v41 = vpop.f32.mrf.mxu0 }
 0x3f7   :  { %v8846_v52 = vrot.slane %v8844_v8, 5  ;;  %v8850_v20 = vrot.slane %v8848_v35, 4  ;;  %v6575_v21 = vshrl.u32 %v5848_v56, 16  ;;  %v6578_v22 = vshll.u32 %v5848_v56, 16  ;;  %22086 = vst [vmem:[#allocation77_spill] sm:$0xff] %v18553_v41  ;;  %v12839_v17 = vpop.f32.mrf.mxu1 }
 0x3f8   :  { %v6563_v10 = vsel %vm16257_vm11, %v6558_v63, %v6562_v26  ;;  %v6568_v0 = vrot.slane %v6567_v59, 4  ;;  %v8856_v3 = vrot.slane %v8854_v46, 5  ;;  %v8841_v42 = vor.u32 %v8840_v31, %v8837_v60  ;;  %v18560_v26 = vpop.f32.mrf.mxu0  ;;  %v8741_v60 = vld [vmem:[#allocation2 + $0x24] sm:$0xf] }
 0x3f9   :  { %v8851_v27 = vor.u32 %v8850_v20, %v8846_v52  ;;  %v6577_v50 = vrot.slane %v6575_v21, 4  ;;  %v6584_v4 = vshll.u32 %v18467_v54, 16  ;;  %v6580_v35 = vrot.slane %v6578_v22, 5  ;;  %22087 = vst [vmem:[#allocation78_spill] sm:$0xff] %v18560_v26  ;;  %v18562_v31 = vpop.f32.mrf.mxu1  ;;  %v22091_v22 = vld [vmem:[#allocation12_spill] sm:$0xff] }
 0x3fa   :  { %v6573_v39 = vsel %vm16257_vm11, %v6568_v0, %v6572_v37  ;;  %v6588_v8 = vshrl.u32 %v18467_v54, 16  ;;  %v6594_v12 = vshll.u32 %v18472_v47, 16  ;;  %v8842_v56 = vrot.slane %v8841_v42, 4  ;;  %v8742_v37 = vld [vmem:[#allocation2 + $0x28] sm:$0xf]  ;;  %v18567_v54 = vpop.f32.mrf.mxu0 }
 0x3fb   :  { %v11854_v63 = vcombine.low %v6563_v10, %v6573_v39  ;;  %v8852_v59 = vrot.slane %v8851_v27, 4  ;;  %v6586_v46 = vrot.slane %v6584_v4, 5  ;;  %v6581_v20 = vor.u32 %v6580_v35, %v6577_v50  ;;  %v8743_v0 = vld [vmem:[#allocation2 + $0x2c] sm:$0x1]  ;;  %22090 = vst [vmem:[#allocation79_spill] sm:$0xff] %v18567_v54 }
 0x3fc   :  { %v6590_v21 = vrot.slane %v6588_v8, 4  ;;  %v6596_v41 = vrot.slane %v6594_v12, 5  ;;  %v18565_v40 = vadd.f32 %v4862_v16, %v22088_v18  ;;  %v8847_v47 = vsel %vm16257_vm11, %v8842_v56, %v8846_v52  ;;  %v22093_v27 = vld [vmem:[#allocation30_spill] sm:$0xff]  ;;  %v18579_v12 = vpop.f32.mrf.mxu1  ;;  %v18581_v35 = vpop.f32.mrf.mxu0  ;;  %v5851_v54 = vld [vmem:[#allocation2 + $0x198] sm:$0xf] }
 0x3fd   :  { %13026 = vmatmul.mubr.bf16.gmra.mxu1 %v11854_v63  ;;  %v8857_v10 = vsel %vm16257_vm11, %v8852_v59, %v8856_v3  ;;  %v18574_v42 = vadd.f32 %v12836_v57, %v22091_v22  ;;  %v18577_v50 = vadd.f32 %v4865_v34, %v22093_v27  ;;  %v6582_v18 = vrot.slane %v6581_v20, 4  ;;  %22095 = vst [vmem:[#allocation80_spill] sm:$0xff] %v18581_v35  ;;  %v22096_v22 = vld [vmem:[#allocation5_spill] sm:$0xff] }
 0x3fe   :  { %22089 = vst [vmem:[#allocation26_spill] sm:$0xff] %v18565_v40  ;;  %v11977_v16 = vcombine.low %v8847_v47, %v8857_v10  ;;  %v6591_v4 = vor.u32 %v6590_v21, %v6586_v46  ;;  %v8859_v39 = vshrl.u32 %v8741_v60, 16  ;;  %v8862_v8 = vshll.u32 %v8741_v60, 16  ;;  %v4881_v3 = vpop.f32.mrf.mxu1  ;;  %v18588_v20 = vpop.f32.mrf.mxu0  ;;  %v22103_v40 = vld [vmem:[#allocation7_spill] sm:$0xff] }
 0x3ff   :  { %22092 = vst [vmem:[#allocation12_spill] sm:$0xff] %v18574_v42  ;;  %22094 = vst [vmem:[#allocation30_spill] sm:$0xff] %v18577_v50  ;;  %v8868_v63 = vshll.u32 %v8742_v37, 16  ;;  %v8872_v52 = vshrl.u32 %v8742_v37, 16  ;;  %v8878_v56 = vshll.u32 %v8743_v0, 16  ;;  %v6587_v57 = vsel %vm16257_vm11, %v6582_v18, %v6586_v46 }
 0x400   :  { %13209 = vmatprep.mubr.bf16.mxu0 %v11977_v16  ;;  %v6592_v34 = vrot.slane %v6591_v4, 4  ;;  %v8861_v59 = vrot.slane %v8859_v39, 4  ;;  %v18586_v27 = vadd.f32 %v12839_v17, %v22096_v22  ;;  %22098 = vst [vmem:[#allocation81_spill] sm:$0xff] %v18588_v20  ;;  %v8864_v21 = vrot.slane %v8862_v8, 5  ;;  %v18590_v35 = vpop.f32.mrf.mxu1  ;;  %v8744_v18 = vld [vmem:[#allocation2 + $0x30] sm:$0xf]  ;;  %v18595_v4 = vpop.f32.mrf.mxu0 }
 0x401   :  { %v8870_v47 = vrot.slane %v8868_v63, 5  ;;  %v8874_v10 = vrot.slane %v8872_v52, 4  ;;  %v8880_v60 = vrot.slane %v8878_v56, 5  ;;  %v6599_v0 = vshrl.u32 %v5851_v54, 16  ;;  %22099 = vst [vmem:[#allocation82_spill] sm:$0xff] %v18595_v4 }
 0x402   :  { %22097 = vst [vmem:[#allocation5_spill] sm:$0xff] %v18586_v27  ;;  %v6597_v37 = vsel %vm16257_vm11, %v6592_v34, %v6596_v41  ;;  %v6602_v16 = vshll.u32 %v5851_v54, 16  ;;  %v6608_v46 = vshll.u32 %v18507_v19, 16  ;;  %v8865_v39 = vor.u32 %v8864_v21, %v8861_v59  ;;  %v8745_v63 = vld [vmem:[#allocation2 + $0x34] sm:$0xf]  ;;  %v18598_v52 = vpop.f32.mrf.mxu1  ;;  %v18601_v34 = vpop.f32.mrf.mxu0 }
 0x403   :  { %v11855_v17 = vcombine.low %v6587_v57, %v6597_v37  ;;  %v8875_v22 = vor.u32 %v8874_v10, %v8870_v47  ;;  %v6612_v8 = vshrl.u32 %v18507_v19, 16  ;;  %v6601_v56 = vrot.slane %v6599_v0, 4  ;;  %22100 = vst [vmem:[#allocation83_spill] sm:$0xff] %v18601_v34  ;;  %v8746_v19 = vld [vmem:[#allocation2 + $0x38] sm:$0x1] }
 0x404   :  { %v6604_v20 = vrot.slane %v6602_v16, 5  ;;  %v6610_v26 = vrot.slane %v6608_v46, 5  ;;  %v6618_v41 = vshll.u32 %v18513_v49, 16  ;;  %v8866_v54 = vrot.slane %v8865_v39, 4  ;;  %v18603_v57 = vpop.f32.mrf.mxu1  ;;  %v18605_v42 = vpop.f32.mrf.mxu0 }
 0x405   :  { %13029 = vmatprep.mubr.bf16.mxu1 %v11855_v17  ;;  %v8876_v27 = vrot.slane %v8875_v22, 4  ;;  %v6614_v50 = vrot.slane %v6612_v8, 4  ;;  %v8883_v4 = vshrl.u32 %v8744_v18, 16  ;;  %v8886_v10 = vshll.u32 %v8744_v18, 16  ;;  %22101 = vst [vmem:[#allocation84_spill] sm:$0xff] %v18605_v42 }
 0x406   :  { %v6605_v59 = vor.u32 %v6604_v20, %v6601_v56  ;;  %v6620_v21 = vrot.slane %v6618_v41, 5  ;;  %v8892_v37 = vshll.u32 %v8745_v63, 16  ;;  %v8871_v0 = vsel %vm16257_vm11, %v8866_v54, %v8870_v47  ;;  %v18611_v17 = vpop.f32.mrf.mxu1  ;;  %v8747_v56 = vld [vmem:[#allocation2 + $0x3c] sm:$0xf]  ;;  %v18613_v41 = vpop.f32.mrf.mxu0  ;;  %v8748_v54 = vld [vmem:[#allocation2 + $0x40] sm:$0xf] }
 0x407   :  { %v8881_v49 = vsel %vm16257_vm11, %v8876_v27, %v8880_v60  ;;  %v6615_v16 = vor.u32 %v6614_v50, %v6610_v26  ;;  %v8885_v46 = vrot.slane %v8883_v4, 4  ;;  %v8888_v8 = vrot.slane %v8886_v10, 5  ;;  %22102 = vst [vmem:[#allocation85_spill] sm:$0xff] %v18613_v41  ;;  %v22105_v4 = vld [vmem:[#allocation27_spill] sm:$0xff]  ;;  %v8751_v41 = vld [vmem:[#allocation2 + $0x4c] sm:$0xf] }
 0x408   :  { %v11978_v39 = vcombine.low %v8871_v0, %v8881_v49  ;;  %v6606_v22 = vrot.slane %v6605_v59, 4  ;;  %v8894_v20 = vrot.slane %v8892_v37, 5  ;;  %v8896_v34 = vshrl.u32 %v8745_v63, 16  ;;  %v18619_v27 = vpop.f32.mrf.mxu1  ;;  %v8749_v63 = vld [vmem:[#allocation2 + $0x44] sm:$0x1] }
 0x409   :  { %v6616_v18 = vrot.slane %v6615_v16, 4  ;;  %v8902_v42 = vshll.u32 %v8746_v19, 16  ;;  %v18617_v47 = vadd.f32 %v18562_v31, %v22103_v40  ;;  %v8889_v60 = vor.u32 %v8888_v8, %v8885_v46  ;;  %v18630_v19 = vpop.f32.mrf.mxu0 }
 0x40a   :  { %13210 = vmatmul.mubr.bf16.vlgmr.msra.gmra.mxu0 %v11978_v39  ;;  %v6611_v50 = vsel %vm16257_vm11, %v6606_v22, %v6610_v26  ;;  %v18625_v59 = vadd.f32 %v18579_v12, %v22105_v4  ;;  %v18628_v10 = vadd.f32 %v4881_v3, %v17765_v33  ;;  %22108 = vst [vmem:[#allocation87_spill] sm:$0xff] %v18630_v19  ;;  %v8898_v31 = vrot.slane %v8896_v34, 4  ;;  %v18634_v49 = vpop.f32.mrf.mxu1  ;;  %v8750_v12 = vld [vmem:[#allocation2 + $0x48] sm:$0xf]  ;;  %v13522_v3 = vld [vmem:[#allocation2 + $0x18] sm:$0xff]  }
 0x40b   :  { %22104 = vst [vmem:[#allocation7_spill] sm:$0xff] %v18617_v47  ;;  %v6621_v40 = vsel %vm16257_vm11, %v6616_v18, %v6620_v21  ;;  %v8904_v37 = vrot.slane %v8902_v42, 5  ;;  %v8907_v0 = vshrl.u32 %v8747_v56, 16  ;;  %v8890_v16 = vrot.slane %v8889_v60, 4  ;;  %v18636_v22 = vpop.f32.mrf.mxu0  ;;  %v8752_v18 = vld [vmem:[#allocation2 + $0x50] sm:$0x1] }
 0x40c   :  { %22106 = vst [vmem:[#allocation27_spill] sm:$0xff] %v18625_v59  ;;  %22107 = vst [vmem:[#allocation86_spill] sm:$0xff] %v18628_v10  ;;  %v11856_v26 = vcombine.low %v6611_v50, %v6621_v40  ;;  %v8910_v46 = vshll.u32 %v8747_v56, 16  ;;  %v8916_v39 = vshll.u32 %v8748_v54, 16  ;;  %v8899_v33 = vor.u32 %v8898_v31, %v8894_v20  ;;  %v18638_v10 = vpop.f32.mrf.mxu1 }
 0x40d   :  { %22109 = vst [vmem:[#allocation88_spill] sm:$0xff] %v18636_v22  ;;  %v8909_v8 = vrot.slane %v8907_v0, 4  ;;  %v8920_v4 = vshrl.u32 %v8748_v54, 16  ;;  %v8926_v19 = vshll.u32 %v8749_v63, 16  ;;  %v8895_v42 = vsel %vm16257_vm11, %v8890_v16, %v8894_v20  ;;  %v18646_v50 = vpop.f32.mrf.mxu0 }
 0x40e   :  { %13030 = vmatmul.mubr.bf16.gmra.mxu1 %v11856_v26  ;;  %v8912_v34 = vrot.slane %v8910_v46, 5  ;;  %v8918_v21 = vrot.slane %v8916_v39, 5  ;;  %v18644_v56 = vadd.f32 %v18590_v35, %v17781_v48  ;;  %22111 = vst [vmem:[#allocation90_spill] sm:$0xff] %v18646_v50  ;;  %v8900_v60 = vrot.slane %v8899_v33, 4  ;;  %v18648_v31 = vpop.f32.mrf.mxu1 }
 0x40f   :  { %13129 = vmatprep.mubr.bf16.mxu1 %v13522_v3  ;;  %v8922_v54 = vrot.slane %v8920_v4, 4  ;;  %v8928_v63 = vrot.slane %v8926_v19, 5  ;;  %v8931_v40 = vshrl.u32 %v8750_v12, 16  ;;  %v8934_v26 = vshll.u32 %v8750_v12, 16  ;;  %v18650_v16 = vpop.f32.mrf.mxu0 }
 0x410   :  { %22110 = vst [vmem:[#allocation89_spill] sm:$0xff] %v18644_v56  ;;  %v8913_v0 = vor.u32 %v8912_v34, %v8909_v8  ;;  %v8940_v22 = vshll.u32 %v8751_v41, 16  ;;  %v8944_v20 = vshrl.u32 %v8751_v41, 16  ;;  %22112 = vst [vmem:[#allocation91_spill] sm:$0xff] %v18650_v16  ;;  %v8905_v48 = vsel %vm16257_vm11, %v8900_v60, %v8904_v37  ;;  %v18654_v50 = vpop.f32.mrf.mxu1  ;;  %v8753_v56 = vld [vmem:[#allocation2 + $0x54] sm:$0xf] }
 0x411   :  { %v8923_v35 = vor.u32 %v8922_v54, %v8918_v21  ;;  %v8933_v46 = vrot.slane %v8931_v40, 4  ;;  %v8950_v39 = vshll.u32 %v8752_v18, 16  ;;  %v11979_v33 = vcombine.low %v8895_v42, %v8905_v48  ;;  %v18656_v59 = vpop.f32.mrf.mxu0  ;;  %v22114_v34 = vld [vmem:[#allocation6_spill] sm:$0xff]  ;;  %v8754_v37 = vld [vmem:[#allocation2 + $0x58] sm:$0xf] }
 0x412   :  { %v8914_v3 = vrot.slane %v8913_v0, 4  ;;  %v8936_v19 = vrot.slane %v8934_v26, 5  ;;  %v8942_v4 = vrot.slane %v8940_v22, 5  ;;  %22113 = vst [vmem:[#allocation92_spill] sm:$0xff] %v18656_v59  ;;  %v8946_v8 = vrot.slane %v8944_v20, 4  ;;  %v18662_v60 = vpop.f32.mrf.mxu1  ;;  %v13524_v18 = vld [vmem:[#allocation2 + $0x24] sm:$0xff]  }
 0x413   :  { %v8924_v12 = vrot.slane %v8923_v35, 4  ;;  %v8952_v41 = vrot.slane %v8950_v39, 5  ;;  %v18660_v16 = vadd.f32 %v18598_v52, %v22114_v34  ;;  %13213 = vmatprep.mubr.bf16.mxu0 %v11979_v33  ;;  %v22116_v22 = vld [vmem:[#allocation23_spill] sm:$0xff]  ;;  %v22118_v0 = vld [vmem:[#allocation25_spill] sm:$0xff]  ;;  %v8755_v20 = vld [vmem:[#allocation2 + $0x5c] sm:$0x1]  ;;  %v18677_v48 = vpop.f32.mrf.mxu0 }
 0x414   :  { %v8919_v42 = vsel %vm16257_vm11, %v8914_v3, %v8918_v21  ;;  %v8937_v54 = vor.u32 %v8936_v19, %v8933_v46  ;;  %v18668_v40 = vadd.f32 %v18603_v57, %v22116_v22  ;;  %v18672_v26 = vadd.f32 %v18611_v17, %v22118_v0  ;;  %v13528_v52 = vld [vmem:[%s21257_s4 + $0x230] sm:$0xff]   ;;  %22120 = vst [vmem:[#allocation93_spill] sm:$0xff] %v18677_v48  ;;  %v18681_v57 = vpop.f32.mrf.mxu1  ;;  %v8756_v22 = vld [vmem:[#allocation2 + $0x60] sm:$0xf]  ;;  %v13616_v48 = vld [vmem:[%s21257_s4 + $0x238] sm:$0xff]  }
 0x415   :  { %22115 = vst [vmem:[#allocation6_spill] sm:$0xff] %v18660_v16  ;;  %v8929_v21 = vsel %vm16257_vm11, %v8924_v12, %v8928_v63  ;;  %v8947_v35 = vor.u32 %v8946_v8, %v8942_v4  ;;  %v13525_v46 = vld [vmem:[#allocation2 + $0x30] sm:$0xff]   ;;  %v8955_v39 = vshrl.u32 %v8753_v56, 16  ;;  %v8958_v33 = vshll.u32 %v8753_v56, 16  ;;  %v18683_v0 = vpop.f32.mrf.mxu0  ;;  %v8757_v8 = vld [vmem:[#allocation2 + $0x64] sm:$0xf] }
 0x416   :  { %22117 = vst [vmem:[#allocation23_spill] sm:$0xff] %v18668_v40  ;;  %22119 = vst [vmem:[#allocation25_spill] sm:$0xff] %v18672_v26  ;;  %v11980_v3 = vcombine.low %v8919_v42, %v8929_v21  ;;  %13130 = vmatmul.mubr.bf16.vlgmr.msra.gmra.mxu1 %v13524_v18  ;;  %v8938_v17 = vrot.slane %v8937_v54, 4  ;;  %v8964_v19 = vshll.u32 %v8754_v37, 16  ;;  %v8968_v34 = vshrl.u32 %v8754_v37, 16  ;;  %v18688_v26 = vpop.f32.mrf.mxu1 }
 0x417   :  { %22121 = vst [vmem:[#allocation94_spill] sm:$0xff] %v18683_v0  ;;  %v8948_v59 = vrot.slane %v8947_v35, 4  ;;  %13274 = vmatpush3.bf16.msra.mxu1 %v13616_v48  ;;  %13133 = vmatprep.mubr.bf16.mxu1 %v13525_v46  ;;  %v8957_v63 = vrot.slane %v8955_v39, 4  ;;  %v8960_v12 = vrot.slane %v8958_v33, 5  ;;  %v8974_v56 = vshll.u32 %v8755_v20, 16  ;;  %v13533_v48 = vld [vmem:[%s21257_s4 + $0x228] sm:$0xff]   ;;  %v18699_v20 = vpop.f32.mrf.mxu0 }
 0x418   :  { %13214 = vmatmul.mubr.bf16.gmra.mxu0 %v11980_v3  ;;  %v8943_v37 = vsel %vm16257_vm11, %v8938_v17, %v8942_v4  ;;  %v8966_v42 = vrot.slane %v8964_v19, 5  ;;  %v8970_v18 = vrot.slane %v8968_v34, 4  ;;  %v18694_v54 = vadd.f32 %v18619_v27, %v17864_v58  ;;  %v8758_v21 = vld [vmem:[#allocation2 + $0x68] sm:$0x1]  ;;  %13275 = vmatprep.subr.bf16.mxu1 %v13528_v52  ;;  %22123 = vst [vmem:[#allocation96_spill] sm:$0xff] %v18699_v20  ;;  %v18703_v33 = vpop.f32.mrf.mxu1  ;;  %v13526_v58 = vld [vmem:[#allocation2 + $0x3c] sm:$0xff]  }
 0x419   :  { %v8953_v35 = vsel %vm16257_vm11, %v8948_v59, %v8952_v41  ;;  %v8961_v46 = vor.u32 %v8960_v12, %v8957_v63  ;;  %v8976_v39 = vrot.slane %v8974_v56, 5  ;;  %v8979_v4 = vshrl.u32 %v8756_v22, 16  ;;  %v18705_v34 = vpop.f32.mrf.mxu0  ;;  %v8759_v20 = vld [vmem:[#allocation2 + $0x6c] sm:$0xf]  ;;  %v22125_v12 = vld [vmem:[#allocation8_spill] sm:$0xff] }
 0x41a   :  { %22122 = vst [vmem:[#allocation95_spill] sm:$0xff] %v18694_v54  ;;  %v11981_v3 = vcombine.low %v8943_v37, %v8953_v35  ;;  %v8971_v17 = vor.u32 %v8970_v18, %v8966_v42  ;;  %v8982_v27 = vshll.u32 %v8756_v22, 16  ;;  %v8988_v19 = vshll.u32 %v8757_v8, 16  ;;  %22124 = vst [vmem:[#allocation97_spill] sm:$0xff] %v18705_v34  ;;  %v18707_v47 = vpop.f32.mrf.mxu1  ;;  %v8760_v22 = vld [vmem:[#allocation2 + $0x70] sm:$0xf] }
 0x41b   :  { %v8962_v0 = vrot.slane %v8961_v46, 4  ;;  %v8981_v54 = vrot.slane %v8979_v4, 4  ;;  %v8992_v40 = vshrl.u32 %v8757_v8, 16  ;;  %v8998_v16 = vshll.u32 %v8758_v21, 16  ;;  %13276 = vmatpush3.bf16.msra.mxu1 %v13528_v52  ;;  %v18713_v37 = vpop.f32.mrf.mxu0  ;;  %v13538_v8 = vld [vmem:[%s21257_s4 + $0x220] sm:$0xff]   ;;  %v13527_v35 = vld [vmem:[#allocation2 + $0x48] sm:$0xff]  }
 0x41c   :  { %13217 = vmatprep.mubr.bf16.mxu0 %v11981_v3  ;;  %v8972_v59 = vrot.slane %v8971_v17, 4  ;;  %v8984_v41 = vrot.slane %v8982_v27, 5  ;;  %v8990_v63 = vrot.slane %v8988_v19, 5  ;;  %v18711_v56 = vadd.f32 %v18634_v49, %v22125_v12  ;;  %13277 = vmatprep.subr.bf16.mxu1 %v13533_v48  ;;  %22126 = vst [vmem:[#allocation8_spill] sm:$0xff] %v18713_v37  ;;  %v22127_v46 = vld [vmem:[#allocation10_spill] sm:$0xff]  ;;  %v18724_v3 = vpop.f32.mrf.mxu1 }
 0x41d   :  { %v8967_v52 = vsel %vm16257_vm11, %v8962_v0, %v8966_v42  ;;  %v8994_v18 = vrot.slane %v8992_v40, 4  ;;  %v9000_v21 = vrot.slane %v8998_v16, 5  ;;  %v18722_v4 = vadd.f32 %v18638_v10, %v22127_v46  ;;  %v8761_v49 = vld [vmem:[#allocation2 + $0x74] sm:$0x1]  ;;  %v22129_v19 = vld [vmem:[#allocation46_spill] sm:$0xff]  ;;  %v18732_v40 = vpop.f32.mrf.mxu0 }
 0x41e   :  { %v8977_v17 = vsel %vm16257_vm11, %v8972_v59, %v8976_v39  ;;  %13134 = vmatmul.mubr.bf16.gmra.mxu1 %v13526_v58  ;;  %v8985_v27 = vor.u32 %v8984_v41, %v8981_v54  ;;  %v18730_v12 = vadd.f32 %v18648_v31, %v22129_v19  ;;  %v9003_v0 = vshrl.u32 %v8759_v20, 16  ;;  %22131 = vst [vmem:[#allocation98_spill] sm:$0xff] %v18732_v40  ;;  %v8762_v37 = vld [vmem:[#allocation2 + $0x78] sm:$0xf]  ;;  %v8763_v34 = vld [vmem:[#allocation2 + $0x7c] sm:$0xf] }
 0x41f   :  { %22128 = vst [vmem:[#allocation10_spill] sm:$0xff] %v18722_v4  ;;  %v11982_v16 = vcombine.low %v8967_v52, %v8977_v17  ;;  %v8995_v42 = vor.u32 %v8994_v18, %v8990_v63  ;;  %13137 = vmatprep.mubr.bf16.mxu1 %v13527_v35  ;;  %v9006_v10 = vshll.u32 %v8759_v20, 16  ;;  %v9012_v46 = vshll.u32 %v8760_v22, 16  ;;  %v18734_v4 = vpop.f32.mrf.mxu1  ;;  %13278 = vmatpush3.bf16.msra.mxu1 %v13533_v48  ;;  %v18736_v41 = vpop.f32.mrf.mxu0  ;;  %v13543_v31 = vld [vmem:[%s21257_s4 + $0x218] sm:$0xff]   ;;  %v22133_v35 = vld [vmem:[#allocation17_spill] sm:$0xff] }
 0x420   :  { %22130 = vst [vmem:[#allocation46_spill] sm:$0xff] %v18730_v12  ;;  %v8986_v39 = vrot.slane %v8985_v27, 4  ;;  %v9005_v58 = vrot.slane %v9003_v0, 4  ;;  %v9016_v54 = vshrl.u32 %v8760_v22, 16  ;;  %v9022_v59 = vshll.u32 %v8761_v49, 16  ;;  %22132 = vst [vmem:[#allocation99_spill] sm:$0xff] %v18736_v41  ;;  %13279 = vmatprep.subr.bf16.mxu1 %v13538_v8 }
 0x421   :  { %13218 = vmatmul.mubr.bf16.gmra.mxu0 %v11982_v16  ;;  %v8996_v52 = vrot.slane %v8995_v42, 4  ;;  %v9008_v20 = vrot.slane %v9006_v10, 5  ;;  %v9014_v18 = vrot.slane %v9012_v46, 5  ;;  %v18743_v17 = vadd.f32 %v18654_v50, %v22133_v35  ;;  %v18745_v48 = vpop.f32.mrf.mxu1  ;;  %v8764_v19 = vld [vmem:[#allocation2 + $0x80] sm:$0x1]  ;;  %v18749_v41 = vpop.f32.mrf.mxu0 }
 0x422   :  { %v8991_v22 = vsel %vm16257_vm11, %v8986_v39, %v8990_v63  ;;  %v9018_v49 = vrot.slane %v9016_v54, 4  ;;  %v9024_v27 = vrot.slane %v9022_v59, 5  ;;  %v9027_v0 = vshrl.u32 %v8762_v37, 16  ;;  %22135 = vst [vmem:[#allocation100_spill] sm:$0xff] %v18749_v41  ;;  %v13530_v39 = vld [vmem:[#allocation2 + $0x60] sm:$0xff]   ;;  %v13548_v59 = vld [vmem:[%s21257_s4 + $0x210] sm:$0xff]  }
 0x423   :  { %22134 = vst [vmem:[#allocation17_spill] sm:$0xff] %v18743_v17  ;;  %v9001_v16 = vsel %vm16257_vm11, %v8996_v52, %v9000_v21  ;;  %v9009_v42 = vor.u32 %v9008_v20, %v9005_v58  ;;  %v9030_v10 = vshll.u32 %v8762_v37, 16  ;;  %v9036_v46 = vshll.u32 %v8763_v34, 16  ;;  %v18753_v40 = vpop.f32.mrf.mxu1  ;;  %13280 = vmatpush3.bf16.msra.mxu1 %v13538_v8  ;;  %v13529_v17 = vld [vmem:[#allocation2 + $0x54] sm:$0xff]   ;;  %v18755_v54 = vpop.f32.mrf.mxu0  ;;  %v8765_v20 = vld [vmem:[#allocation2 + $0x84] sm:$0xf] }
 0x424   :  { %v11983_v50 = vcombine.low %v8991_v22, %v9001_v16  ;;  %v9019_v35 = vor.u32 %v9018_v49, %v9014_v18  ;;  %v9029_v12 = vrot.slane %v9027_v0, 4  ;;  %v9040_v63 = vshrl.u32 %v8763_v34, 16  ;;  %22136 = vst [vmem:[#allocation101_spill] sm:$0xff] %v18755_v54  ;;  %13281 = vmatprep.subr.bf16.mxu1 %v13543_v31  ;;  %v22137_v34 = vld [vmem:[#allocation13_spill] sm:$0xff]  ;;  %v22138_v0 = vld [vmem:[#allocation47_spill] sm:$0xff] }
 0x425   :  { %v9010_v21 = vrot.slane %v9009_v42, 4  ;;  %v9032_v58 = vrot.slane %v9030_v10, 5  ;;  %v9038_v37 = vrot.slane %v9036_v46, 5  ;;  %v9046_v52 = vshll.u32 %v8764_v19, 16  ;;  %v18760_v41 = vpop.f32.mrf.mxu1  ;;  %v8766_v54 = vld [vmem:[#allocation2 + $0x88] sm:$0xf]  ;;  %v18770_v42 = vpop.f32.mrf.mxu0 }
 0x426   :  { %13221 = vmatprep.mubr.bf16.mxu0 %v11983_v50  ;;  %v9020_v8 = vrot.slane %v9019_v35, 4  ;;  %13138 = vmatmul.mubr.bf16.gmra.mxu1 %v13529_v17  ;;  %v9042_v22 = vrot.slane %v9040_v63, 4  ;;  %v18764_v49 = vadd.f32 %v18662_v60, %v22137_v34  ;;  %v18768_v16 = vadd.f32 %v18681_v57, %v22138_v0  ;;  %22140 = vst [vmem:[#allocation47_spill] sm:$0xff] %v18770_v42  ;;  %v8767_v50 = vld [vmem:[#allocation2 + $0x8c] sm:$0x1] }
 0x427   :  { %v9015_v19 = vsel %vm16257_vm11, %v9010_v21, %v9014_v18  ;;  %v9033_v10 = vor.u32 %v9032_v58, %v9029_v12  ;;  %v9048_v46 = vrot.slane %v9046_v52, 5  ;;  %13141 = vmatprep.mubr.bf16.mxu1 %v13530_v39  ;;  %v18776_v17 = vadd.f32 %v18688_v26, %v17981_v7  ;;  %v18778_v60 = vpop.f32.mrf.mxu1  ;;  %13282 = vmatpush3.bf16.msra.mxu1 %v13543_v31  ;;  %v18782_v0 = vpop.f32.mrf.mxu0  ;;  %v13553_v12 = vld [vmem:[%s21257_s4 + $0x208] sm:$0xff]   ;;  %v8768_v21 = vld [vmem:[#allocation2 + $0x90] sm:$0xf] }
 0x428   :  { %22139 = vst [vmem:[#allocation13_spill] sm:$0xff] %v18768_v16  ;;  %v9025_v57 = vsel %vm16257_vm11, %v9020_v8, %v9024_v27  ;;  %v9043_v35 = vor.u32 %v9042_v22, %v9038_v37  ;;  %v9051_v63 = vshrl.u32 %v8765_v20, 16  ;;  %v9054_v34 = vshll.u32 %v8765_v20, 16  ;;  %22142 = vst [vmem:[#allocation103_spill] sm:$0xff] %v18782_v0  ;;  %13283 = vmatprep.subr.bf16.mxu1 %v13548_v59  ;;  %v8769_v22 = vld [vmem:[#allocation2 + $0x94] sm:$0xf] }
 0x429   :  { %22141 = vst [vmem:[#allocation102_spill] sm:$0xff] %v18776_v17  ;;  %v11984_v18 = vcombine.low %v9015_v19, %v9025_v57  ;;  %v9034_v7 = vrot.slane %v9033_v10, 4  ;;  %v9060_v26 = vshll.u32 %v8766_v54, 16  ;;  %v9064_v39 = vshrl.u32 %v8766_v54, 16  ;;  %v18787_v58 = vpop.f32.mrf.mxu1  ;;  %v18789_v20 = vpop.f32.mrf.mxu0  ;;  %v8770_v54 = vld [vmem:[#allocation2 + $0x98] sm:$0x1] }
 0x42a   :  { %v9044_v31 = vrot.slane %v9043_v35, 4  ;;  %v9053_v52 = vrot.slane %v9051_v63, 4  ;;  %v9056_v27 = vrot.slane %v9054_v34, 5  ;;  %v9070_v8 = vshll.u32 %v8767_v50, 16  ;;  %22143 = vst [vmem:[#allocation104_spill] sm:$0xff] %v18789_v20  ;;  %v13531_v63 = vld [vmem:[#allocation2 + $0x6c] sm:$0xff]  }
 0x42b   :  { %13222 = vmatmul.mubr.bf16.gmra.mxu0 %v11984_v18  ;;  %v9039_v0 = vsel %vm16257_vm11, %v9034_v7, %v9038_v37  ;;  %v9062_v42 = vrot.slane %v9060_v26, 5  ;;  %v9066_v17 = vrot.slane %v9064_v39, 4  ;;  %v18795_v19 = vadd.f32 %v18703_v33, %v17993_v5  ;;  %v18797_v10 = vpop.f32.mrf.mxu1  ;;  %13284 = vmatpush3.bf16.msra.mxu1 %v13548_v59  ;;  %v18801_v18 = vpop.f32.mrf.mxu0  ;;  %v13532_v5 = vld [vmem:[#allocation2 + $0x78] sm:$0xff]   ;;  %v13558_v59 = vld [vmem:[%s21257_s4 + $0x200] sm:$0xff]  }
 0x42c   :  { %v9049_v50 = vsel %vm16257_vm11, %v9044_v31, %v9048_v46  ;;  %v9057_v57 = vor.u32 %v9056_v27, %v9053_v52  ;;  %v9072_v35 = vrot.slane %v9070_v8, 5  ;;  %v9075_v34 = vshrl.u32 %v8768_v21, 16  ;;  %22145 = vst [vmem:[#allocation106_spill] sm:$0xff] %v18801_v18  ;;  %13285 = vmatprep.subr.bf16.mxu1 %v13553_v12  ;;  %v8771_v27 = vld [vmem:[#allocation2 + $0x9c] sm:$0xf] }
 0x42d   :  { %22144 = vst [vmem:[#allocation105_spill] sm:$0xff] %v18795_v19  ;;  %v11985_v37 = vcombine.low %v9039_v0, %v9049_v50  ;;  %v9067_v7 = vor.u32 %v9066_v17, %v9062_v42  ;;  %v9078_v26 = vshll.u32 %v8768_v21, 16  ;;  %v9084_v39 = vshll.u32 %v8769_v22, 16  ;;  %v18803_v33 = vpop.f32.mrf.mxu1  ;;  %v18808_v8 = vpop.f32.mrf.mxu0  ;;  %v8772_v18 = vld [vmem:[#allocation2 + $0xa0] sm:$0xf] }
 0x42e   :  { %v9058_v20 = vrot.slane %v9057_v57, 4  ;;  %13142 = vmatmul.mubr.bf16.gmra.mxu1 %v13531_v63  ;;  %v9077_v46 = vrot.slane %v9075_v34, 4  ;;  %v9088_v31 = vshrl.u32 %v8769_v22, 16  ;;  %v9094_v52 = vshll.u32 %v8770_v54, 16  ;;  %22146 = vst [vmem:[#allocation107_spill] sm:$0xff] %v18808_v8  ;;  %v22148_v63 = vld [vmem:[#allocation4_spill] sm:$0xff] }
 0x42f   :  { %13225 = vmatprep.mubr.bf16.mxu0 %v11985_v37  ;;  %v9068_v0 = vrot.slane %v9067_v7, 4  ;;  %v9080_v17 = vrot.slane %v9078_v26, 5  ;;  %v9086_v21 = vrot.slane %v9084_v39, 5  ;;  %13145 = vmatprep.mubr.bf16.mxu1 %v13532_v5  ;;  %v18812_v50 = vadd.f32 %v18707_v47, %v18012_v23  ;;  %v18814_v19 = vpop.f32.mrf.mxu1  ;;  %v8773_v37 = vld [vmem:[#allocation2 + $0xa4] sm:$0x1]  ;;  %v18822_v7 = vpop.f32.mrf.mxu0 }
 0x430   :  { %v9063_v57 = vsel %vm16257_vm11, %v9058_v20, %v9062_v42  ;;  %v9090_v22 = vrot.slane %v9088_v31, 4  ;;  %v9096_v54 = vrot.slane %v9094_v52, 5  ;;  %v18820_v34 = vadd.f32 %v18724_v3, %v22148_v63  ;;  %22150 = vst [vmem:[#allocation109_spill] sm:$0xff] %v18822_v7  ;;  %13286 = vmatpush3.bf16.msra.mxu1 %v13553_v12  ;;  %v8774_v52 = vld [vmem:[#allocation2 + $0xa8] sm:$0xf] }
 0x431   :  { %22147 = vst [vmem:[#allocation108_spill] sm:$0xff] %v18812_v50  ;;  %v9073_v23 = vsel %vm16257_vm11, %v9068_v0, %v9072_v35  ;;  %v9081_v47 = vor.u32 %v9080_v17, %v9077_v46  ;;  %v18828_v26 = vadd.f32 %v18734_v4, %v18042_v9  ;;  %v9099_v39 = vshrl.u32 %v8771_v27, 16  ;;  %v18830_v42 = vpop.f32.mrf.mxu1  ;;  %13287 = vmatprep.subr.bf16.mxu1 %v13558_v59  ;;  %v18832_v63 = vpop.f32.mrf.mxu0  ;;  %v8775_v46 = vld [vmem:[#allocation2 + $0xac] sm:$0xf]  ;;  %v8777_v50 = vld [vmem:[#allocation2 + $0xb4] sm:$0xf] }
 0x432   :  { %22149 = vst [vmem:[#allocation4_spill] sm:$0xff] %v18820_v34  ;;  %v11986_v20 = vcombine.low %v9063_v57, %v9073_v23  ;;  %v9091_v5 = vor.u32 %v9090_v22, %v9086_v21  ;;  %v9102_v3 = vshll.u32 %v8771_v27, 16  ;;  %v9108_v31 = vshll.u32 %v8772_v18, 16  ;;  %22152 = vst [vmem:[#allocation111_spill] sm:$0xff] %v18832_v63  ;;  %v13534_v27 = vld [vmem:[#allocation2 + $0x84] sm:$0xff]   ;;  %v13535_v63 = vld [vmem:[#allocation2 + $0x90] sm:$0xff]  }
 0x433   :  { %22151 = vst [vmem:[#allocation110_spill] sm:$0xff] %v18828_v26  ;;  %v9082_v12 = vrot.slane %v9081_v47, 4  ;;  %v9101_v7 = vrot.slane %v9099_v39, 4  ;;  %v9112_v8 = vshrl.u32 %v8772_v18, 16  ;;  %v9118_v35 = vshll.u32 %v8773_v37, 16  ;;  %v18834_v0 = vpop.f32.mrf.mxu1  ;;  %v18840_v22 = vpop.f32.mrf.mxu0 }
 0x434   :  { %13226 = vmatmul.mubr.bf16.gmra.mxu0 %v11986_v20  ;;  %v9092_v9 = vrot.slane %v9091_v5, 4  ;;  %v9104_v4 = vrot.slane %v9102_v3, 5  ;;  %v9110_v17 = vrot.slane %v9108_v31, 5  ;;  %v18838_v57 = vadd.f32 %v18745_v48, %v18063_v32  ;;  %22154 = vst [vmem:[#allocation113_spill] sm:$0xff] %v18840_v22  ;;  %13288 = vmatpush3.bf16.msra.mxu1 %v13558_v59  ;;  %v8776_v47 = vld [vmem:[#allocation2 + $0xb0] sm:$0x1] }
 0x435   :  { %v9087_v23 = vsel %vm16257_vm11, %v9082_v12, %v9086_v21  ;;  %v9114_v18 = vrot.slane %v9112_v8, 4  ;;  %v9120_v37 = vrot.slane %v9118_v35, 5  ;;  %v9123_v39 = vshrl.u32 %v8774_v52, 16  ;;  %v18844_v20 = vpop.f32.mrf.mxu1  ;;  %v18848_v31 = vpop.f32.mrf.mxu0 }
 0x436   :  { %22153 = vst [vmem:[#allocation112_spill] sm:$0xff] %v18838_v57  ;;  %v9097_v5 = vsel %vm16257_vm11, %v9092_v9, %v9096_v54  ;;  %v9105_v3 = vor.u32 %v9104_v4, %v9101_v7  ;;  %13146 = vmatmul.mubr.bf16.gmra.mxu1 %v13534_v27  ;;  %v9126_v32 = vshll.u32 %v8774_v52, 16  ;;  %v9132_v48 = vshll.u32 %v8775_v46, 16  ;;  %22155 = vst [vmem:[#allocation114_spill] sm:$0xff] %v18848_v31 }
 0x437   :  { %v11987_v59 = vcombine.low %v9087_v23, %v9097_v5  ;;  %v9115_v22 = vor.u32 %v9114_v18, %v9110_v17  ;;  %v9125_v57 = vrot.slane %v9123_v39, 4  ;;  %v9136_v21 = vshrl.u32 %v8775_v46, 16  ;;  %13149 = vmatprep.mubr.bf16.mxu1 %v13535_v63  ;;  %v18850_v8 = vpop.f32.mrf.mxu1  ;;  %v18852_v16 = vpop.f32.mrf.mxu0  ;;  %v8778_v63 = vld [vmem:[#allocation2 + $0xb8] sm:$0xf]  ;;  %v8779_v18 = vld [vmem:[#allocation2 + $0xbc] sm:$0x1] }
 0x438   :  { %v9106_v12 = vrot.slane %v9105_v3, 4  ;;  %v9128_v35 = vrot.slane %v9126_v32, 5  ;;  %v9134_v26 = vrot.slane %v9132_v48, 5  ;;  %v9142_v34 = vshll.u32 %v8776_v47, 16  ;;  %22156 = vst [vmem:[#allocation115_spill] sm:$0xff] %v18852_v16  ;;  %v13536_v32 = vld [vmem:[#allocation2 + $0x9c] sm:$0xff]  }
 0x439   :  { %13229 = vmatprep.mubr.bf16.mxu0 %v11987_v59  ;;  %v9116_v54 = vrot.slane %v9115_v22, 4  ;;  %v9138_v7 = vrot.slane %v9136_v21, 4  ;;  %v18856_v52 = vadd.f32 %v18753_v40, %v18082_v15  ;;  %v18860_v46 = vadd.f32 %v18760_v41, %v18092_v61  ;;  %v18862_v9 = vpop.f32.mrf.mxu1  ;;  %v18870_v47 = vpop.f32.mrf.mxu0  ;;  %v8780_v39 = vld [vmem:[#allocation2 + $0xc0] sm:$0xf]  ;;  %v8781_v48 = vld [vmem:[#allocation2 + $0xc4] sm:$0xf] }
 0x43a   :  { %v9111_v4 = vsel %vm16257_vm11, %v9106_v12, %v9110_v17  ;;  %v9129_v27 = vor.u32 %v9128_v35, %v9125_v57  ;;  %v9144_v23 = vrot.slane %v9142_v34, 5  ;;  %v18868_v22 = vadd.f32 %v18778_v60, %v18099_v11  ;;  %22157 = vst [vmem:[#allocation116_spill] sm:$0xff] %v18870_v47  ;;  %v13537_v35 = vld [vmem:[#allocation2 + $0xa8] sm:$0xff]  }
 0x43b   :  { %v9121_v15 = vsel %vm16257_vm11, %v9116_v54, %v9120_v37  ;;  %v9139_v61 = vor.u32 %v9138_v7, %v9134_v26  ;;  %v9147_v40 = vshrl.u32 %v8777_v50, 16  ;;  %v9150_v41 = vshll.u32 %v8777_v50, 16  ;;  %v18874_v5 = vpop.f32.mrf.mxu1  ;;  %v18876_v11 = vpop.f32.mrf.mxu0  ;;  %v13541_v16 = vld [vmem:[#allocation2 + $0xcc] sm:$0xff]  }
 0x43c   :  { %v11988_v3 = vcombine.low %v9111_v4, %v9121_v15  ;;  %v9130_v17 = vrot.slane %v9129_v27, 4  ;;  %v9156_v57 = vshll.u32 %v8778_v63, 16  ;;  %v9160_v34 = vshrl.u32 %v8778_v63, 16  ;;  %22158 = vst [vmem:[#allocation117_spill] sm:$0xff] %v18876_v11  ;;  %v8782_v4 = vld [vmem:[#allocation2 + $0xc8] sm:$0x1] }
 0x43d   :  { %v9140_v60 = vrot.slane %v9139_v61, 4  ;;  %v9149_v59 = vrot.slane %v9147_v40, 4  ;;  %v9152_v21 = vrot.slane %v9150_v41, 5  ;;  %v9166_v12 = vshll.u32 %v8779_v18, 16  ;;  %v18878_v37 = vpop.f32.mrf.mxu1  ;;  %v18886_v27 = vpop.f32.mrf.mxu0 }
 0x43e   :  { %13230 = vmatmul.mubr.bf16.gmra.mxu0 %v11988_v3  ;;  %v9135_v50 = vsel %vm16257_vm11, %v9130_v17, %v9134_v26  ;;  %v9158_v54 = vrot.slane %v9156_v57, 5  ;;  %v9162_v7 = vrot.slane %v9160_v34, 4  ;;  %v18884_v63 = vadd.f32 %v18787_v58, %v18124_v14  ;;  %13150 = vmatmul.mubr.bf16.gmra.mxu1 %v13536_v32  ;;  %22159 = vst [vmem:[#allocation118_spill] sm:$0xff] %v18886_v27  ;;  %v8783_v27 = vld [vmem:[#allocation2 + $0xcc] sm:$0xf] }
 0x43f   :  { %v9145_v18 = vsel %vm16257_vm11, %v9140_v60, %v9144_v23  ;;  %v9153_v15 = vor.u32 %v9152_v21, %v9149_v59  ;;  %v9168_v61 = vrot.slane %v9166_v12, 5  ;;  %v9171_v40 = vshrl.u32 %v8780_v39, 16  ;;  %13153 = vmatprep.mubr.bf16.mxu1 %v13537_v35  ;;  %v18890_v41 = vpop.f32.mrf.mxu1  ;;  %v18892_v34 = vpop.f32.mrf.mxu0  ;;  %v8784_v12 = vld [vmem:[#allocation2 + $0xd0] sm:$0xf] }
 0x440   :  { %v11989_v26 = vcombine.low %v9135_v50, %v9145_v18  ;;  %v9163_v3 = vor.u32 %v9162_v7, %v9158_v54  ;;  %v9174_v17 = vshll.u32 %v8780_v39, 16  ;;  %v9180_v57 = vshll.u32 %v8781_v48, 16  ;;  %22160 = vst [vmem:[#allocation119_spill] sm:$0xff] %v18892_v34  ;;  %v22162_v7 = vld [vmem:[#allocation44_spill] sm:$0xff]  ;;  %v8785_v18 = vld [vmem:[#allocation2 + $0xd4] sm:$0x1] }
 0x441   :  { %v9154_v14 = vrot.slane %v9153_v15, 4  ;;  %v9173_v58 = vrot.slane %v9171_v40, 4  ;;  %v9184_v32 = vshrl.u32 %v8781_v48, 16  ;;  %v9190_v11 = vshll.u32 %v8782_v4, 16  ;;  %v18894_v47 = vpop.f32.mrf.mxu1  ;;  %v18900_v39 = vpop.f32.mrf.mxu0 }
 0x442   :  { %13233 = vmatprep.mubr.bf16.mxu0 %v11989_v26  ;;  %v9164_v23 = vrot.slane %v9163_v3, 4  ;;  %v9176_v60 = vrot.slane %v9174_v17, 5  ;;  %v9182_v59 = vrot.slane %v9180_v57, 5  ;;  %v18898_v21 = vadd.f32 %v18797_v10, %v18136_v25  ;;  %22161 = vst [vmem:[#allocation120_spill] sm:$0xff] %v18900_v39  ;;  %v13539_v3 = vld [vmem:[#allocation2 + $0xb4] sm:$0xff]  }
 0x443   :  { %v9159_v35 = vsel %vm16257_vm11, %v9154_v14, %v9158_v54  ;;  %v9186_v50 = vrot.slane %v9184_v32, 4  ;;  %v9192_v48 = vrot.slane %v9190_v11, 5  ;;  %v18906_v4 = vadd.f32 %v18803_v33, %v22162_v7  ;;  %v18908_v15 = vpop.f32.mrf.mxu1  ;;  %v18916_v54 = vpop.f32.mrf.mxu0  ;;  %v8786_v14 = vld [vmem:[#allocation2 + $0xf0] sm:$0xf]  ;;  %v13540_v32 = vld [vmem:[#allocation2 + $0xc0] sm:$0xff]  }
 0x444   :  { %v9169_v40 = vsel %vm16257_vm11, %v9164_v23, %v9168_v61  ;;  %v9177_v25 = vor.u32 %v9176_v60, %v9173_v58  ;;  %v18914_v10 = vadd.f32 %v18814_v19, %v18157_v62  ;;  %v9195_v26 = vshrl.u32 %v8783_v27, 16  ;;  %22163 = vst [vmem:[#allocation44_spill] sm:$0xff] %v18916_v54  ;;  %v8787_v23 = vld [vmem:[#allocation2 + $0xf4] sm:$0xf] }
 0x445   :  { %v11990_v11 = vcombine.low %v9159_v35, %v9169_v40  ;;  %v9187_v17 = vor.u32 %v9186_v50, %v9182_v59  ;;  %v9198_v57 = vshll.u32 %v8783_v27, 16  ;;  %v9204_v33 = vshll.u32 %v8784_v12, 16  ;;  %v18918_v7 = vpop.f32.mrf.mxu1  ;;  %v18920_v62 = vpop.f32.mrf.mxu0  ;;  %v8788_v40 = vld [vmem:[#allocation2 + $0xf8] sm:$0x1] }
 0x446   :  { %v9178_v39 = vrot.slane %v9177_v25, 4  ;;  %v9197_v34 = vrot.slane %v9195_v26, 4  ;;  %v9208_v61 = vshrl.u32 %v8784_v12, 16  ;;  %v9214_v58 = vshll.u32 %v8785_v18, 16  ;;  %13154 = vmatmul.mubr.bf16.gmra.mxu1 %v13539_v3  ;;  %22164 = vst [vmem:[#allocation121_spill] sm:$0xff] %v18920_v62 }
 0x447   :  { %13234 = vmatmul.mubr.bf16.gmra.mxu0 %v11990_v11  ;;  %v9188_v19 = vrot.slane %v9187_v17, 4  ;;  %v9200_v60 = vrot.slane %v9198_v57, 5  ;;  %v9206_v54 = vrot.slane %v9204_v33, 5  ;;  %v18924_v27 = vadd.f32 %v18830_v42, %v18187_v43  ;;  %13157 = vmatprep.mubr.bf16.mxu1 %v13540_v32  ;;  %v18926_v35 = vpop.f32.mrf.mxu1  ;;  %v18930_v26 = vpop.f32.mrf.mxu0 }
 0x448   :  { %v9183_v50 = vsel %vm16257_vm11, %v9178_v39, %v9182_v59  ;;  %v9210_v12 = vrot.slane %v9208_v61, 4  ;;  %v9216_v18 = vrot.slane %v9214_v58, 5  ;;  %v9219_v25 = vshrl.u32 %v8786_v14, 16  ;;  %22166 = vst [vmem:[#allocation123_spill] sm:$0xff] %v18930_v26  ;;  %v8789_v26 = vld [vmem:[#allocation2 + $0xfc] sm:$0xf] }
 0x449   :  { %22165 = vst [vmem:[#allocation122_spill] sm:$0xff] %v18924_v27  ;;  %v9193_v3 = vsel %vm16257_vm11, %v9188_v19, %v9192_v48  ;;  %v9201_v11 = vor.u32 %v9200_v60, %v9197_v34  ;;  %v9222_v17 = vshll.u32 %v8786_v14, 16  ;;  %v9228_v57 = vshll.u32 %v8787_v23, 16  ;;  %v18934_v43 = vpop.f32.mrf.mxu1  ;;  %v18936_v59 = vpop.f32.mrf.mxu0  ;;  %v8790_v19 = vld [vmem:[#allocation2 + $0x100] sm:$0xf] }
 0x44a   :  { %v11991_v42 = vcombine.low %v9183_v50, %v9193_v3  ;;  %v9211_v33 = vor.u32 %v9210_v12, %v9206_v54  ;;  %v9221_v32 = vrot.slane %v9219_v25, 4  ;;  %v9232_v62 = vshrl.u32 %v8787_v23, 16  ;;  %22167 = vst [vmem:[#allocation124_spill] sm:$0xff] %v18936_v59  ;;  %v13542_v3 = vld [vmem:[#allocation2 + $0xf0] sm:$0xff]  }
 0x44b   :  { %v9202_v39 = vrot.slane %v9201_v11, 4  ;;  %v9224_v61 = vrot.slane %v9222_v17, 5  ;;  %v9230_v58 = vrot.slane %v9228_v57, 5  ;;  %v9238_v31 = vshll.u32 %v8788_v40, 16  ;;  %v18938_v27 = vpop.f32.mrf.mxu1  ;;  %v18948_v60 = vpop.f32.mrf.mxu0 }
 0x44c   :  { %13237 = vmatprep.mubr.bf16.mxu0 %v11991_v42  ;;  %v9212_v34 = vrot.slane %v9211_v33, 4  ;;  %v9234_v48 = vrot.slane %v9232_v62, 4  ;;  %v18942_v14 = vadd.f32 %v18834_v0, %v18202_v29  ;;  %v18946_v23 = vadd.f32 %v18844_v20, %v18213_v2  ;;  %22168 = vst [vmem:[#allocation125_spill] sm:$0xff] %v18948_v60  ;;  %v8791_v62 = vld [vmem:[#allocation2 + $0x104] sm:$0x1] }
 0x44d   :  { %v9207_v50 = vsel %vm16257_vm11, %v9202_v39, %v9206_v54  ;;  %v9225_v12 = vor.u32 %v9224_v61, %v9221_v32  ;;  %v9240_v40 = vrot.slane %v9238_v31, 5  ;;  %v18954_v25 = vadd.f32 %v18850_v8, %v18230_v1  ;;  %v18956_v29 = vpop.f32.mrf.mxu1  ;;  %v18960_v17 = vpop.f32.mrf.mxu0  ;;  %v8792_v33 = vld [vmem:[#allocation2 + $0x108] sm:$0xf]  ;;  %v8793_v60 = vld [vmem:[#allocation2 + $0x10c] sm:$0xf] }
 0x44e   :  { %v9217_v2 = vsel %vm16257_vm11, %v9212_v34, %v9216_v18  ;;  %v9235_v0 = vor.u32 %v9234_v48, %v9230_v58  ;;  %v9243_v20 = vshrl.u32 %v8789_v26, 16  ;;  %v9246_v11 = vshll.u32 %v8789_v26, 16  ;;  %13158 = vmatmul.mubr.bf16.gmra.mxu1 %v13541_v16  ;;  %22169 = vst [vmem:[#allocation126_spill] sm:$0xff] %v18960_v17  ;;  %v13544_v17 = vld [vmem:[#allocation2 + $0xfc] sm:$0xff]  }
 0x44f   :  { %v11992_v54 = vcombine.low %v9207_v50, %v9217_v2  ;;  %v9226_v57 = vrot.slane %v9225_v12, 4  ;;  %v9252_v31 = vshll.u32 %v8790_v19, 16  ;;  %v9256_v42 = vshrl.u32 %v8790_v19, 16  ;;  %13161 = vmatprep.mubr.bf16.mxu1 %v13542_v3  ;;  %v18962_v1 = vpop.f32.mrf.mxu1  ;;  %v18964_v18 = vpop.f32.mrf.mxu0  ;;  %v8794_v19 = vld [vmem:[#allocation2 + $0x110] sm:$0x1] }
 0x450   :  { %v9236_v8 = vrot.slane %v9235_v0, 4  ;;  %v9245_v32 = vrot.slane %v9243_v20, 4  ;;  %v9248_v39 = vrot.slane %v9246_v11, 5  ;;  %v9262_v61 = vshll.u32 %v8791_v62, 16  ;;  %22170 = vst [vmem:[#allocation127_spill] sm:$0xff] %v18964_v18 }
 0x451   :  { %13238 = vmatmul.mubr.bf16.gmra.mxu0 %v11992_v54  ;;  %v9231_v16 = vsel %vm16257_vm11, %v9226_v57, %v9230_v58  ;;  %v9254_v26 = vrot.slane %v9252_v31, 5  ;;  %v9258_v34 = vrot.slane %v9256_v42, 4  ;;  %v18970_v48 = vadd.f32 %v18862_v9, %v18241_v24  ;;  %v18972_v50 = vpop.f32.mrf.mxu1  ;;  %v18976_v0 = vpop.f32.mrf.mxu0  ;;  %v8795_v57 = vld [vmem:[#allocation2 + $0x114] sm:$0xf] }
 0x452   :  { %v9241_v12 = vsel %vm16257_vm11, %v9236_v8, %v9240_v40  ;;  %v9249_v62 = vor.u32 %v9248_v39, %v9245_v32  ;;  %v9264_v3 = vrot.slane %v9262_v61, 5  ;;  %v9267_v2 = vshrl.u32 %v8792_v33, 16  ;;  %22171 = vst [vmem:[#allocation128_spill] sm:$0xff] %v18976_v0  ;;  %v13545_v61 = vld [vmem:[#allocation2 + $0x108] sm:$0xff]  }
 0x453   :  { %v11993_v20 = vcombine.low %v9231_v16, %v9241_v12  ;;  %v9259_v11 = vor.u32 %v9258_v34, %v9254_v26  ;;  %v9270_v58 = vshll.u32 %v8792_v33, 16  ;;  %v9276_v54 = vshll.u32 %v8793_v60, 16  ;;  %v18978_v31 = vpop.f32.mrf.mxu1  ;;  %v18980_v59 = vpop.f32.mrf.mxu0  ;;  %v8796_v33 = vld [vmem:[#allocation2 + $0x118] sm:$0xf] }
 0x454   :  { %v9250_v24 = vrot.slane %v9249_v62, 4  ;;  %v9269_v9 = vrot.slane %v9267_v2, 4  ;;  %v9280_v42 = vshrl.u32 %v8793_v60, 16  ;;  %v9286_v18 = vshll.u32 %v8794_v19, 16  ;;  %22172 = vst [vmem:[#allocation129_spill] sm:$0xff] %v18980_v59 }
 0x455   :  { %13241 = vmatprep.mubr.bf16.mxu0 %v11993_v20  ;;  %v9260_v40 = vrot.slane %v9259_v11, 4  ;;  %v9272_v8 = vrot.slane %v9270_v58, 5  ;;  %v9278_v32 = vrot.slane %v9276_v54, 5  ;;  %v18984_v39 = vadd.f32 %v18874_v5, %v18257_v45  ;;  %v18986_v16 = vpop.f32.mrf.mxu1  ;;  %v8797_v62 = vld [vmem:[#allocation2 + $0x11c] sm:$0x1]  ;;  %v18994_v2 = vpop.f32.mrf.mxu0 }
 0x456   :  { %v9255_v34 = vsel %vm16257_vm11, %v9250_v24, %v9254_v26  ;;  %v9282_v60 = vrot.slane %v9280_v42, 4  ;;  %v9288_v19 = vrot.slane %v9286_v18, 5  ;;  %v18992_v12 = vadd.f32 %v18878_v37, %v18269_v51  ;;  %13162 = vmatmul.mubr.bf16.gmra.mxu1 %v13544_v17  ;;  %22174 = vst [vmem:[#allocation131_spill] sm:$0xff] %v18994_v2  ;;  %v8798_v54 = vld [vmem:[#allocation2 + $0x120] sm:$0xf] }
 0x457   :  { %v9265_v45 = vsel %vm16257_vm11, %v9260_v40, %v9264_v3  ;;  %v9273_v5 = vor.u32 %v9272_v8, %v9269_v9  ;;  %v19000_v20 = vadd.f32 %v18890_v41, %v18281_v53  ;;  %v9291_v11 = vshrl.u32 %v8795_v57, 16  ;;  %13165 = vmatprep.mubr.bf16.mxu1 %v13545_v61  ;;  %v19002_v26 = vpop.f32.mrf.mxu1  ;;  %v19004_v17 = vpop.f32.mrf.mxu0  ;;  %v22177_v8 = vld [vmem:[#allocation3_spill] sm:$0xff] }
 0x458   :  { %22173 = vst [vmem:[#allocation130_spill] sm:$0xff] %v18992_v12  ;;  %v11994_v18 = vcombine.low %v9255_v34, %v9265_v45  ;;  %v9283_v58 = vor.u32 %v9282_v60, %v9278_v32  ;;  %v9294_v51 = vshll.u32 %v8795_v57, 16  ;;  %v9300_v37 = vshll.u32 %v8796_v33, 16  ;;  %22176 = vst [vmem:[#allocation133_spill] sm:$0xff] %v19004_v17  ;;  %v8799_v34 = vld [vmem:[#allocation2 + $0x124] sm:$0xf] }
 0x459   :  { %22175 = vst [vmem:[#allocation132_spill] sm:$0xff] %v19000_v20  ;;  %v9274_v24 = vrot.slane %v9273_v5, 4  ;;  %v9293_v42 = vrot.slane %v9291_v11, 4  ;;  %v9304_v2 = vshrl.u32 %v8796_v33, 16  ;;  %v9310_v3 = vshll.u32 %v8797_v62, 16  ;;  %v19006_v9 = vpop.f32.mrf.mxu1  ;;  %v19010_v60 = vpop.f32.mrf.mxu0 }
 0x45a   :  { %13242 = vmatmul.mubr.bf16.gmra.mxu0 %v11994_v18  ;;  %v9284_v53 = vrot.slane %v9283_v58, 4  ;;  %v9296_v41 = vrot.slane %v9294_v51, 5  ;;  %v9302_v40 = vrot.slane %v9300_v37, 5  ;;  %v5696_v61 = vadd.f32 %v22177_v8, %v18294_v28  ;;  %22178 = vst [vmem:[#allocation3_spill] sm:$0xff] %v19010_v60  ;;  %v8800_v11 = vld [vmem:[#allocation2 + $0x128] sm:$0x1] }
 0x45b   :  { %v9279_v57 = vsel %vm16257_vm11, %v9274_v24, %v9278_v32  ;;  %v9306_v45 = vrot.slane %v9304_v2, 4  ;;  %v9312_v5 = vrot.slane %v9310_v3, 5  ;;  %v9315_v33 = vshrl.u32 %v8798_v54, 16  ;;  %v19014_v62 = vpop.f32.mrf.mxu1  ;;  %v13546_v37 = vld [vmem:[#allocation2 + $0x114] sm:$0xff]   ;;  %v19021_v8 = vpop.f32.mrf.mxu0  ;;  %v13547_v24 = vld [vmem:[#allocation2 + $0x120] sm:$0xff]  }
 0x45c   :  { %v9289_v18 = vsel %vm16257_vm11, %v9284_v53, %v9288_v19  ;;  %v9297_v58 = vor.u32 %v9296_v41, %v9293_v42  ;;  %v19019_v51 = vadd.f32 %v18894_v47, %v5696_v61  ;;  %v9318_v28 = vshll.u32 %v8798_v54, 16  ;;  %22179 = vst [vmem:[#allocation134_spill] sm:$0xff] %v19021_v8  ;;  %v22181_v42 = vld [vmem:[#allocation48_spill] sm:$0xff]  ;;  %v22182_v41 = vld [vmem:[#allocation49_spill] sm:$0xff] }
 0x45d   :  { %v11995_v60 = vcombine.low %v9279_v57, %v9289_v18  ;;  %v9307_v17 = vor.u32 %v9306_v45, %v9302_v40  ;;  %v9317_v32 = vrot.slane %v9315_v33, 4  ;;  %v9324_v2 = vshll.u32 %v8799_v34, 16  ;;  %v19023_v3 = vpop.f32.mrf.mxu1  ;;  %v8801_v57 = vld [vmem:[#allocation2 + $0x12c] sm:$0xf] }
 0x45e   :  { %v9298_v59 = vrot.slane %v9297_v58, 4  ;;  %v9320_v0 = vrot.slane %v9318_v28, 5  ;;  %v9328_v20 = vshrl.u32 %v8799_v34, 16  ;;  %v9334_v12 = vshll.u32 %v8800_v11, 16  ;;  %13166 = vmatmul.mubr.bf16.gmra.mxu1 %v13546_v37  ;;  %v19025_v19 = vpop.f32.mrf.mxu0  ;;  %v8802_v58 = vld [vmem:[#allocation2 + $0x130] sm:$0xf] }
 0x45f   :  { %22180 = vst [vmem:[#allocation135_spill] sm:$0xff] %v19025_v19  ;;  %13245 = vmatprep.mubr.bf16.mxu0 %v11995_v60  ;;  %v9308_v47 = vrot.slane %v9307_v17, 4  ;;  %v9326_v54 = vrot.slane %v9324_v2, 5  ;;  %v5694_v53 = vadd.f32 %v22181_v42, %v18308_v55  ;;  %v5697_v61 = vadd.f32 %v22182_v41, %v18317_v38  ;;  %13169 = vmatprep.mubr.bf16.mxu1 %v13547_v24  ;;  %v19031_v45 = vpop.f32.mrf.mxu1  ;;  %v8803_v37 = vld [vmem:[#allocation2 + $0x134] sm:$0x1]  ;;  %v13549_v41 = vld [vmem:[#allocation2 + $0x12c] sm:$0xff]  }
 0x460   :  { %v9303_v34 = vsel %vm16257_vm11, %v9298_v59, %v9302_v40  ;;  %v9321_v11 = vor.u32 %v9320_v0, %v9317_v32  ;;  %v9330_v33 = vrot.slane %v9328_v20, 4  ;;  %v9336_v18 = vrot.slane %v9334_v12, 5  ;;  %v19035_v60 = vpop.f32.mrf.mxu0  ;;  %v8808_v19 = vld [vmem:[#allocation2 + $0x148] sm:$0xf] }
 0x461   :  { %22183 = vst [vmem:[#allocation48_spill] sm:$0xff] %v19035_v60  ;;  %v9313_v17 = vsel %vm16257_vm11, %v9308_v47, %v9312_v5  ;;  %v19040_v55 = vadd.f32 %v18908_v15, %v5694_v53  ;;  %v19043_v38 = vadd.f32 %v18918_v7, %v5697_v61  ;;  %v5695_v28 = vadd.f32 %v18204_v13, %v18325_v6  ;;  %v19047_v59 = vpop.f32.mrf.mxu1  ;;  %v8804_v7 = vld [vmem:[#allocation2 + $0x138] sm:$0xf] }
 0x462   :  { %v11996_v0 = vcombine.low %v9303_v34, %v9313_v17  ;;  %v9322_v12 = vrot.slane %v9321_v11, 4  ;;  %v9331_v20 = vor.u32 %v9330_v33, %v9326_v54  ;;  %v9339_v40 = vshrl.u32 %v8801_v57, 16  ;;  %v19049_v32 = vpop.f32.mrf.mxu0  ;;  %v13550_v17 = vld [vmem:[#allocation2 + $0x138] sm:$0xff]  }
 0x463   :  { %22184 = vst [vmem:[#allocation49_spill] sm:$0xff] %v19043_v38  ;;  %22185 = vst [vmem:[#allocation136_spill] sm:$0xff] %v19049_v32  ;;  %v19052_v5 = vadd.f32 %v18926_v35, %v5695_v28  ;;  %v9342_v15 = vshll.u32 %v8801_v57, 16  ;;  %v9348_v2 = vshll.u32 %v8802_v58, 16  ;;  %v9352_v24 = vshrl.u32 %v8802_v58, 16  ;;  %v19054_v47 = vpop.f32.mrf.mxu1  ;;  %v22188_v57 = vld [vmem:[#allocation50_spill] sm:$0xff] }
 0x464   :  { %13246 = vmatmul.mubr.bf16.gmra.mxu0 %v11996_v0  ;;  %v9327_v13 = vsel %vm16257_vm11, %v9322_v12, %v9326_v54  ;;  %v9332_v6 = vrot.slane %v9331_v20, 4  ;;  %v9341_v42 = vrot.slane %v9339_v40, 4  ;;  %v9358_v53 = vshll.u32 %v8803_v37, 16  ;;  %v19058_v61 = vpop.f32.mrf.mxu0  ;;  %v8805_v58 = vld [vmem:[#allocation2 + $0x13c] sm:$0xf]  ;;  %v22238_v38 = vld [vmem:[#allocation58_spill] sm:$0xff] }
 0x465   :  { %22186 = vst [vmem:[#allocation137_spill] sm:$0xff] %v19052_v5  ;;  %22187 = vst [vmem:[#allocation138_spill] sm:$0xff] %v19058_v61  ;;  %v9344_v34 = vrot.slane %v9342_v15, 5  ;;  %v9350_v11 = vrot.slane %v9348_v2, 5  ;;  %v9354_v35 = vrot.slane %v9352_v24, 4  ;;  %v5700_v33 = vadd.f32 %v22188_v57, %v18340_v36  ;;  %v19062_v28 = vpop.f32.mrf.mxu1 }
 0x466   :  { %v9337_v0 = vsel %vm16257_vm11, %v9332_v6, %v9336_v18  ;;  %v9360_v54 = vrot.slane %v9358_v53, 5  ;;  %v8806_v12 = vld [vmem:[#allocation2 + $0x140] sm:$0x1]  ;;  %v9363_v20 = vshrl.u32 %v8804_v7, 16  ;;  %v9366_v37 = vshll.u32 %v8804_v7, 16  ;;  %13170 = vmatmul.mubr.bf16.gmra.mxu1 %v13549_v41  ;;  %v19066_v40 = vpop.f32.mrf.mxu0 }
 0x467   :  { %22189 = vst [vmem:[#allocation50_spill] sm:$0xff] %v19066_v40  ;;  %v11997_v15 = vcombine.low %v9327_v13, %v9337_v0  ;;  %v9345_v2 = vor.u32 %v9344_v34, %v9341_v42  ;;  %v9355_v24 = vor.u32 %v9354_v35, %v9350_v11  ;;  %v19069_v61 = vadd.f32 %v18934_v43, %v5700_v33  ;;  %v19071_v36 = vpop.f32.mrf.mxu1  ;;  %v22192_v40 = vld [vmem:[#allocation35_spill] sm:$0xff]  ;;  %v22195_v0 = vld [vmem:[#allocation52_spill] sm:$0xff] }
 0x468   :  { %13173 = vmatprep.mubr.bf16.mxu1 %v13550_v17  ;;  %v9365_v57 = vrot.slane %v9363_v20, 4  ;;  %v9368_v32 = vrot.slane %v9366_v37, 5  ;;  %v9372_v60 = vshll.u32 %v8805_v58, 16  ;;  %v9376_v18 = vshrl.u32 %v8805_v58, 16  ;;  %v19073_v6 = vpop.f32.mrf.mxu0  ;;  %v22193_v13 = vld [vmem:[#allocation51_spill] sm:$0xff]  ;;  %v22194_v17 = vld [vmem:[#allocation33_spill] sm:$0xff] }
 0x469   :  { %22190 = vst [vmem:[#allocation139_spill] sm:$0xff] %v19069_v61  ;;  %22191 = vst [vmem:[#allocation140_spill] sm:$0xff] %v19073_v6  ;;  %13249 = vmatprep.mubr.bf16.mxu0 %v11997_v15  ;;  %v9346_v7 = vrot.slane %v9345_v2, 4  ;;  %v9356_v53 = vrot.slane %v9355_v24, 4  ;;  %v9382_v41 = vshll.u32 %v8806_v12, 16  ;;  %v5698_v42 = vadd.f32 %v22193_v13, %v22192_v40  ;;  %v19077_v34 = vpop.f32.mrf.mxu1 }
 0x46a   :  { %v9369_v43 = vor.u32 %v9368_v32, %v9365_v57  ;;  %v9374_v35 = vrot.slane %v9372_v60, 5  ;;  %v9378_v33 = vrot.slane %v9376_v18, 4  ;;  %v5701_v20 = vadd.f32 %v22195_v0, %v22194_v17  ;;  %v8807_v37 = vld [vmem:[#allocation2 + $0x144] sm:$0xf]  ;;  %v19081_v58 = vpop.f32.mrf.mxu0  ;;  %v8809_v32 = vld [vmem:[#allocation2 + $0x14c] sm:$0x1] }
 0x46b   :  { %22196 = vst [vmem:[#allocation35_spill] sm:$0xff] %v19081_v58  ;;  %v9351_v15 = vsel %vm16257_vm11, %v9346_v7, %v9350_v11  ;;  %v9361_v12 = vsel %vm16257_vm11, %v9356_v53, %v9360_v54  ;;  %v9384_v2 = vrot.slane %v9382_v41, 5  ;;  %v19088_v40 = vadd.f32 %v18938_v27, %v5698_v42  ;;  %v19090_v60 = vpop.f32.mrf.mxu1  ;;  %v13551_v17 = vld [vmem:[#allocation2 + $0x144] sm:$0xff]   ;;  %v22200_v11 = vld [vmem:[#allocation36_spill] sm:$0xff]  ;;  %v13552_v27 = vld [vmem:[#allocation2 + $0x150] sm:$0xff]  }
 0x46c   :  { %v11998_v24 = vcombine.low %v9351_v15, %v9361_v12  ;;  %v9370_v57 = vrot.slane %v9369_v43, 4  ;;  %v9379_v18 = vor.u32 %v9378_v33, %v9374_v35  ;;  %v19093_v13 = vadd.f32 %v18956_v29, %v5701_v20  ;;  %v19095_v0 = vpop.f32.mrf.mxu0  ;;  %v22201_v7 = vld [vmem:[#allocation53_spill] sm:$0xff]  ;;  %v8810_v20 = vld [vmem:[#allocation2 + $0x150] sm:$0xf]  ;;  %v8811_v6 = vld [vmem:[#allocation2 + $0x154] sm:$0xf] }
 0x46d   :  { %22197 = vst [vmem:[#allocation51_spill] sm:$0xff] %v19088_v40  ;;  %22199 = vst [vmem:[#allocation52_spill] sm:$0xff] %v19095_v0  ;;  %v5699_v58 = vadd.f32 %v22201_v7, %v22200_v11  ;;  %v9387_v54 = vshrl.u32 %v8807_v37, 16  ;;  %v9390_v53 = vshll.u32 %v8807_v37, 16  ;;  %v9396_v41 = vshll.u32 %v8808_v19, 16  ;;  %v19099_v42 = vpop.f32.mrf.mxu1 }
 0x46e   :  { %22198 = vst [vmem:[#allocation33_spill] sm:$0xff] %v19093_v13  ;;  %13250 = vmatmul.mubr.bf16.gmra.mxu0 %v11998_v24  ;;  %v9375_v43 = vsel %vm16257_vm11, %v9370_v57, %v9374_v35  ;;  %v9380_v33 = vrot.slane %v9379_v18, 4  ;;  %v9400_v15 = vshrl.u32 %v8808_v19, 16  ;;  %v9406_v29 = vshll.u32 %v8809_v32, 16  ;;  %13174 = vmatmul.mubr.bf16.gmra.mxu1 %v13551_v17  ;;  %v19103_v12 = vpop.f32.mrf.mxu0  ;;  %v22204_v32 = vld [vmem:[#allocation34_spill] sm:$0xff] }
 0x46f   :  { %22202 = vst [vmem:[#allocation36_spill] sm:$0xff] %v19103_v12  ;;  %v19106_v0 = vadd.f32 %v18962_v1, %v5699_v58  ;;  %v9389_v11 = vrot.slane %v9387_v54, 4  ;;  %v9392_v37 = vrot.slane %v9390_v53, 5  ;;  %v9398_v7 = vrot.slane %v9396_v41, 5  ;;  %13177 = vmatprep.mubr.bf16.mxu1 %v13552_v27  ;;  %v19108_v8 = vpop.f32.mrf.mxu1  ;;  %v22205_v57 = vld [vmem:[#allocation54_spill] sm:$0xff] }
 0x470   :  { %v9385_v35 = vsel %vm16257_vm11, %v9380_v33, %v9384_v2  ;;  %v9402_v24 = vrot.slane %v9400_v15, 4  ;;  %v9408_v19 = vrot.slane %v9406_v29, 5  ;;  %v5704_v18 = vadd.f32 %v22205_v57, %v22204_v32  ;;  %v8812_v17 = vld [vmem:[#allocation2 + $0x158] sm:$0x1]  ;;  %v19114_v12 = vpop.f32.mrf.mxu0  ;;  %v8813_v40 = vld [vmem:[#allocation2 + $0x15c] sm:$0xf] }
 0x471   :  { %22203 = vst [vmem:[#allocation53_spill] sm:$0xff] %v19106_v0  ;;  %22206 = vst [vmem:[#allocation34_spill] sm:$0xff] %v19114_v12  ;;  %v11999_v1 = vcombine.low %v9375_v43, %v9385_v35  ;;  %v9393_v58 = vor.u32 %v9392_v37, %v9389_v11  ;;  %v9411_v54 = vshrl.u32 %v8810_v20, 16  ;;  %v9414_v53 = vshll.u32 %v8810_v20, 16  ;;  %v19116_v41 = vpop.f32.mrf.mxu1  ;;  %v22209_v37 = vld [vmem:[#allocation37_spill] sm:$0xff]  ;;  %v22210_v35 = vld [vmem:[#allocation55_spill] sm:$0xff] }
 0x472   :  { %v9403_v27 = vor.u32 %v9402_v24, %v9398_v7  ;;  %v19119_v0 = vadd.f32 %v18972_v50, %v5704_v18  ;;  %v9420_v13 = vshll.u32 %v8811_v6, 16  ;;  %v9424_v2 = vshrl.u32 %v8811_v6, 16  ;;  %v19121_v33 = vpop.f32.mrf.mxu0  ;;  %v13554_v50 = vld [vmem:[#allocation2 + $0x15c] sm:$0xff]  }
 0x473   :  { %22208 = vst [vmem:[#allocation141_spill] sm:$0xff] %v19121_v33  ;;  %13253 = vmatprep.mubr.bf16.mxu0 %v11999_v1  ;;  %v9394_v15 = vrot.slane %v9393_v58, 4  ;;  %v9413_v29 = vrot.slane %v9411_v54, 4  ;;  %v9416_v32 = vrot.slane %v9414_v53, 5  ;;  %v9430_v57 = vshll.u32 %v8812_v17, 16  ;;  %v19123_v12 = vpop.f32.mrf.mxu1  ;;  %v22212_v54 = vld [vmem:[#allocation38_spill] sm:$0xff] }
 0x474   :  { %22207 = vst [vmem:[#allocation54_spill] sm:$0xff] %v19119_v0  ;;  %v9404_v43 = vrot.slane %v9403_v27, 4  ;;  %v9422_v11 = vrot.slane %v9420_v13, 5  ;;  %v9426_v20 = vrot.slane %v9424_v2, 4  ;;  %v5702_v24 = vadd.f32 %v22210_v35, %v22209_v37  ;;  %v19127_v18 = vpop.f32.mrf.mxu0  ;;  %v22213_v53 = vld [vmem:[#allocation9_spill] sm:$0xff]  ;;  %v13555_v0 = vld [vmem:[#allocation2 + $0x168] sm:$0xff]  }
 0x475   :  { %22211 = vst [vmem:[#allocation37_spill] sm:$0xff] %v19127_v18  ;;  %v9399_v6 = vsel %vm16257_vm11, %v9394_v15, %v9398_v7  ;;  %v9417_v1 = vor.u32 %v9416_v32, %v9413_v29  ;;  %v9432_v58 = vrot.slane %v9430_v57, 5  ;;  %v5705_v17 = vadd.f32 %v22213_v53, %v22212_v54  ;;  %v8814_v33 = vld [vmem:[#allocation2 + $0x160] sm:$0xf]  ;;  %v19133_v27 = vpop.f32.mrf.mxu1  ;;  %v22215_v35 = vld [vmem:[#allocation11_spill] sm:$0xff] }
 0x476   :  { %v9409_v13 = vsel %vm16257_vm11, %v9404_v43, %v9408_v19  ;;  %v9427_v2 = vor.u32 %v9426_v20, %v9422_v11  ;;  %v19138_v37 = vadd.f32 %v18978_v31, %v5702_v24  ;;  %v22216_v18 = vld [vmem:[#allocation31_spill] sm:$0xff]  ;;  %v8815_v7 = vld [vmem:[#allocation2 + $0x164] sm:$0x1]  ;;  %13178 = vmatmul.mubr.bf16.gmra.mxu1 %v13554_v50  ;;  %v9435_v57 = vshrl.u32 %v8813_v40, 16  ;;  %v8816_v20 = vld [vmem:[#allocation2 + $0x168] sm:$0xf] }
 0x477   :  { %v5703_v61 = vadd.f32 %v22216_v18, %v22215_v35  ;;  %v12000_v15 = vcombine.low %v9399_v6, %v9409_v13  ;;  %v9418_v29 = vrot.slane %v9417_v1, 4  ;;  %v19143_v32 = vadd.f32 %v18986_v16, %v5705_v17  ;;  %13181 = vmatprep.mubr.bf16.mxu1 %v13555_v0  ;;  %v19145_v54 = vpop.f32.mrf.mxu1  ;;  %v19150_v24 = vpop.f32.mrf.mxu0  ;;  %v8817_v1 = vld [vmem:[#allocation2 + $0x16c] sm:$0xf]  ;;  %v22221_v13 = vld [vmem:[#allocation29_spill] sm:$0xff]  ;;  %v8818_v35 = vld [vmem:[#allocation2 + $0x170] sm:$0x1] }
 0x478   :  { %22214 = vst [vmem:[#allocation55_spill] sm:$0xff] %v19138_v37  ;;  %v9428_v53 = vrot.slane %v9427_v2, 4  ;;  %v9438_v31 = vshll.u32 %v8813_v40, 16  ;;  %v9444_v43 = vshll.u32 %v8814_v33, 16  ;;  %22219 = vst [vmem:[#allocation11_spill] sm:$0xff] %v19150_v24  ;;  %v9437_v18 = vrot.slane %v9435_v57, 4 }
 0x479   :  { %22217 = vst [vmem:[#allocation38_spill] sm:$0xff] %v19143_v32  ;;  %v19148_v19 = vadd.f32 %v19002_v26, %v5703_v61  ;;  %13254 = vmatmul.mubr.bf16.gmra.mxu0 %v12000_v15  ;;  %v9423_v50 = vsel %vm16257_vm11, %v9418_v29, %v9422_v11  ;;  %v9448_v16 = vshrl.u32 %v8814_v33, 16  ;;  %v9454_v6 = vshll.u32 %v8815_v7, 16  ;;  %v19154_v0 = vpop.f32.mrf.mxu1  ;;  %v22220_v40 = vld [vmem:[#allocation39_spill] sm:$0xff] }
 0x47a   :  { %v9433_v17 = vsel %vm16257_vm11, %v9428_v53, %v9432_v58  ;;  %v9440_v26 = vrot.slane %v9438_v31, 5  ;;  %v9446_v61 = vrot.slane %v9444_v43, 5  ;;  %v5708_v2 = vadd.f32 %v22221_v13, %v22220_v40  ;;  %v13556_v37 = vld [vmem:[#allocation2 + $0x174] sm:$0xff]   ;;  %v19165_v58 = vpop.f32.mrf.mxu0 }
 0x47b   :  { %22218 = vst [vmem:[#allocation9_spill] sm:$0xff] %v19148_v19  ;;  %v12001_v24 = vcombine.low %v9423_v50, %v9433_v17  ;;  %v9450_v15 = vrot.slane %v9448_v16, 4  ;;  %v9456_v19 = vrot.slane %v9454_v6, 5  ;;  %v9459_v32 = vshrl.u32 %v8816_v20, 16  ;;  %v19160_v11 = vpop.f32.mrf.mxu1  ;;  %22223 = vst [vmem:[#allocation39_spill] sm:$0xff] %v19165_v58  ;;  %v13557_v50 = vld [vmem:[#allocation2 + $0x180] sm:$0xff]  }
 0x47c   :  { %v9441_v33 = vor.u32 %v9440_v26, %v9437_v18  ;;  %v19163_v7 = vadd.f32 %v19006_v9, %v5708_v2  ;;  %v9462_v29 = vshll.u32 %v8816_v20, 16  ;;  %v9468_v57 = vshll.u32 %v8817_v1, 16  ;;  %v22224_v18 = vld [vmem:[#allocation40_spill] sm:$0xff]  ;;  %v8819_v2 = vld [vmem:[#allocation2 + $0x174] sm:$0xf]  ;;  %v22226_v58 = vld [vmem:[#allocation14_spill] sm:$0xff] }
 0x47d   :  { %13257 = vmatprep.mubr.bf16.mxu0 %v12001_v24  ;;  %v9451_v53 = vor.u32 %v9450_v15, %v9446_v61  ;;  %v9461_v31 = vrot.slane %v9459_v32, 4  ;;  %v9472_v43 = vshrl.u32 %v8817_v1, 16  ;;  %v9478_v40 = vshll.u32 %v8818_v35, 16  ;;  %v19167_v16 = vpop.f32.mrf.mxu1  ;;  %v22225_v26 = vld [vmem:[#allocation32_spill] sm:$0xff] }
 0x47e   :  { %22222 = vst [vmem:[#allocation31_spill] sm:$0xff] %v19163_v7  ;;  %v9442_v6 = vrot.slane %v9441_v33, 4  ;;  %v9464_v17 = vrot.slane %v9462_v29, 5  ;;  %v9470_v13 = vrot.slane %v9468_v57, 5  ;;  %v5706_v9 = vadd.f32 %v22225_v26, %v22224_v18  ;;  %13182 = vmatmul.mubr.bf16.gmra.mxu1 %v13556_v37  ;;  %v22227_v24 = vld [vmem:[#allocation24_spill] sm:$0xff] }
 0x47f   :  { %v9452_v20 = vrot.slane %v9451_v53, 4  ;;  %v9474_v7 = vrot.slane %v9472_v43, 4  ;;  %v9480_v5 = vrot.slane %v9478_v40, 5  ;;  %v5709_v15 = vadd.f32 %v22227_v24, %v22226_v58  ;;  %13185 = vmatprep.mubr.bf16.mxu1 %v13557_v50  ;;  %v19173_v32 = vpop.f32.mrf.mxu1  ;;  %v22229_v29 = vld [vmem:[#allocation56_spill] sm:$0xff]  ;;  %v19182_v53 = vpop.f32.mrf.mxu0 }
 0x480   :  { %v9447_v1 = vsel %vm16257_vm11, %v9442_v6, %v9446_v61  ;;  %v9465_v35 = vor.u32 %v9464_v17, %v9461_v31  ;;  %v19178_v33 = vadd.f32 %v19014_v62, %v5706_v9  ;;  %v5707_v57 = vadd.f32 %v22229_v29, %v18451_v44  ;;  %v8820_v37 = vld [vmem:[#allocation2 + $0x178] sm:$0xf]  ;;  %22230 = vst [vmem:[#allocation40_spill] sm:$0xff] %v19182_v53  ;;  %v8821_v50 = vld [vmem:[#allocation2 + $0x17c] sm:$0x1] }
 0x481   :  { %v9457_v43 = vsel %vm16257_vm11, %v9452_v20, %v9456_v19  ;;  %v9475_v58 = vor.u32 %v9474_v7, %v9470_v13  ;;  %v19187_v40 = vadd.f32 %v19023_v3, %v5709_v15  ;;  %v9483_v18 = vshrl.u32 %v8819_v2, 16  ;;  %v19189_v61 = vpop.f32.mrf.mxu1  ;;  %v8822_v17 = vld [vmem:[#allocation2 + $0x180] sm:$0xf]  ;;  %v22233_v15 = vld [vmem:[#allocation15_spill] sm:$0xff] }
 0x482   :  { %22228 = vst [vmem:[#allocation29_spill] sm:$0xff] %v19178_v33  ;;  %v12002_v31 = vcombine.low %v9447_v1, %v9457_v43  ;;  %v9466_v62 = vrot.slane %v9465_v35, 4  ;;  %v19192_v6 = vadd.f32 %v19031_v45, %v5707_v57  ;;  %v9486_v44 = vshll.u32 %v8819_v2, 16  ;;  %v22234_v1 = vld [vmem:[#allocation57_spill] sm:$0xff]  ;;  %v13559_v45 = vld [vmem:[#allocation2 + $0x18c] sm:$0xff]   ;;  %v19200_v57 = vpop.f32.mrf.mxu0  ;;  %v22237_v33 = vld [vmem:[#allocation16_spill] sm:$0xff] }
 0x483   :  { %22231 = vst [vmem:[#allocation32_spill] sm:$0xff] %v19187_v40  ;;  %v9476_v26 = vrot.slane %v9475_v58, 4  ;;  %v9485_v9 = vrot.slane %v9483_v18, 4  ;;  %v9492_v24 = vshll.u32 %v8820_v37, 16  ;;  %v9496_v29 = vshrl.u32 %v8820_v37, 16  ;;  %v19194_v19 = vpop.f32.mrf.mxu1  ;;  %22235 = vst [vmem:[#allocation24_spill] sm:$0xff] %v19200_v57 }
 0x484   :  { %22232 = vst [vmem:[#allocation14_spill] sm:$0xff] %v19192_v6  ;;  %13258 = vmatmul.mubr.bf16.gmra.mxu0 %v12002_v31  ;;  %v9471_v3 = vsel %vm16257_vm11, %v9466_v62, %v9470_v13  ;;  %v9488_v7 = vrot.slane %v9486_v44, 5  ;;  %v9502_v20 = vshll.u32 %v8821_v50, 16  ;;  %v5712_v35 = vadd.f32 %v22234_v1, %v22233_v15  ;;  %v8823_v43 = vld [vmem:[#allocation2 + $0x184] sm:$0xf]  ;;  %v13560_v31 = vld [vmem:[#allocation2 + $0x198] sm:$0xff]  }
 0x485   :  { %v9481_v2 = vsel %vm16257_vm11, %v9476_v26, %v9480_v5  ;;  %v9494_v58 = vrot.slane %v9492_v24, 5  ;;  %v9498_v37 = vrot.slane %v9496_v29, 4  ;;  %v8824_v18 = vld [vmem:[#allocation2 + $0x188] sm:$0x1]  ;;  %v9507_v53 = vshrl.u32 %v8822_v17, 16  ;;  %v19204_v6 = vpop.f32.mrf.mxu1 }
 0x486   :  { %v12003_v13 = vcombine.low %v9471_v3, %v9481_v2  ;;  %v9489_v62 = vor.u32 %v9488_v7, %v9485_v9  ;;  %v9504_v50 = vrot.slane %v9502_v20, 5  ;;  %v19207_v44 = vadd.f32 %v19047_v59, %v5712_v35  ;;  %13186 = vmatmul.mubr.bf16.gmra.mxu1 %v13559_v45  ;;  %v19213_v9 = vpop.f32.mrf.mxu0  ;;  %v22240_v35 = vld [vmem:[#allocation18_spill] sm:$0xff]  ;;  %v22241_v45 = vld [vmem:[#allocation59_spill] sm:$0xff] }
 0x487   :  { %v9499_v15 = vor.u32 %v9498_v37, %v9494_v58  ;;  %v9509_v1 = vrot.slane %v9507_v53, 4  ;;  %v9510_v57 = vshll.u32 %v8822_v17, 16  ;;  %v9516_v40 = vshll.u32 %v8823_v43, 16  ;;  %13189 = vmatprep.mubr.bf16.mxu1 %v13560_v31  ;;  %v19209_v5 = vpop.f32.mrf.mxu1  ;;  %22239 = vst [vmem:[#allocation15_spill] sm:$0xff] %v19213_v9  ;;  %v8825_v17 = vld [vmem:[#allocation2 + $0x18c] sm:$0xf] }
 0x488   :  { %22236 = vst [vmem:[#allocation56_spill] sm:$0xff] %v19207_v44  ;;  %13261 = vmatprep.mubr.bf16.mxu0 %v12003_v13  ;;  %v9490_v26 = vrot.slane %v9489_v62, 4  ;;  %v9520_v24 = vshrl.u32 %v8823_v43, 16  ;;  %v9526_v29 = vshll.u32 %v8824_v18, 16  ;;  %v5710_v3 = vadd.f32 %v22238_v38, %v22237_v33  ;;  %v8826_v38 = vld [vmem:[#allocation2 + $0x190] sm:$0xf] }
 0x489   :  { %v9500_v7 = vrot.slane %v9499_v15, 4  ;;  %v9512_v59 = vrot.slane %v9510_v57, 5  ;;  %v9518_v20 = vrot.slane %v9516_v40, 5  ;;  %v5713_v53 = vadd.f32 %v22241_v45, %v22240_v35  ;;  %v19217_v2 = vpop.f32.mrf.mxu1  ;;  %v13561_v33 = vld [vmem:[#allocation2 + $0x1a4] sm:$0xff]   ;;  %v22245_v15 = vld [vmem:[#allocation60_spill] sm:$0xff] }
 0x48a   :  { %v9495_v37 = vsel %vm16257_vm11, %v9490_v26, %v9494_v58  ;;  %v9522_v31 = vrot.slane %v9520_v24, 4  ;;  %v9528_v43 = vrot.slane %v9526_v29, 5  ;;  %v19222_v18 = vadd.f32 %v19054_v47, %v5710_v3  ;;  %v22244_v62 = vld [vmem:[#allocation22_spill] sm:$0xff]  ;;  %v8827_v45 = vld [vmem:[#allocation2 + $0x194] sm:$0x1]  ;;  %v19233_v29 = vpop.f32.mrf.mxu0 }
 0x48b   :  { %v9505_v57 = vsel %vm16257_vm11, %v9500_v7, %v9504_v50  ;;  %v9513_v40 = vor.u32 %v9512_v59, %v9509_v1  ;;  %v19227_v13 = vadd.f32 %v19062_v28, %v5713_v53  ;;  %v5711_v35 = vadd.f32 %v22245_v15, %v22244_v62  ;;  %v19231_v9 = vpop.f32.mrf.mxu1  ;;  %22246 = vst [vmem:[#allocation58_spill] sm:$0xff] %v19233_v29  ;;  %v8828_v28 = vld [vmem:[#allocation2 + $0x198] sm:$0xf] }
 0x48c   :  { %22242 = vst [vmem:[#allocation57_spill] sm:$0xff] %v19222_v18  ;;  %v12004_v58 = vcombine.low %v9495_v37, %v9505_v57  ;;  %v9523_v26 = vor.u32 %v9522_v31, %v9518_v20  ;;  %v9531_v24 = vshrl.u32 %v8825_v17, 16  ;;  %v9534_v47 = vshll.u32 %v8825_v17, 16  ;;  %v22248_v57 = vld [vmem:[#allocation19_spill] sm:$0xff] }
 0x48d   :  { %22243 = vst [vmem:[#allocation16_spill] sm:$0xff] %v19227_v13  ;;  %v9514_v3 = vrot.slane %v9513_v40, 4  ;;  %v19236_v18 = vadd.f32 %v19071_v36, %v5711_v35  ;;  %v9540_v50 = vshll.u32 %v8826_v38, 16  ;;  %v9544_v1 = vshrl.u32 %v8826_v38, 16  ;;  %v19238_v7 = vpop.f32.mrf.mxu1  ;;  %v22249_v40 = vld [vmem:[#allocation61_spill] sm:$0xff] }
 0x48e   :  { %13262 = vmatmul.mubr.bf16.gmra.mxu0 %v12004_v58  ;;  %v9524_v59 = vrot.slane %v9523_v26, 4  ;;  %v9533_v53 = vrot.slane %v9531_v24, 4  ;;  %v9536_v62 = vrot.slane %v9534_v47, 5  ;;  %v9550_v15 = vshll.u32 %v8827_v45, 16  ;;  %13190 = vmatmul.mubr.bf16.gmra.mxu1 %v13561_v33  ;;  %v8829_v35 = vld [vmem:[#allocation2 + $0x19c] sm:$0xf]  ;;  %v19248_v45 = vpop.f32.mrf.mxu0 }
 0x48f   :  { %22247 = vst [vmem:[#allocation18_spill] sm:$0xff] %v19236_v18  ;;  %v9519_v17 = vsel %vm16257_vm11, %v9514_v3, %v9518_v20  ;;  %v9542_v37 = vrot.slane %v9540_v50, 5  ;;  %v9546_v31 = vrot.slane %v9544_v1, 4  ;;  %v5716_v36 = vadd.f32 %v22249_v40, %v22248_v57  ;;  %v19244_v29 = vpop.f32.mrf.mxu1  ;;  %v8830_v24 = vld [vmem:[#allocation2 + $0x1a0] sm:$0x1]  ;;  %22250 = vst [vmem:[#allocation59_spill] sm:$0xff] %v19248_v45 }
 0x490   :  { %v9529_v38 = vsel %vm16257_vm11, %v9524_v59, %v9528_v43  ;;  %v9537_v58 = vor.u32 %v9536_v62, %v9533_v53  ;;  %v9552_v26 = vrot.slane %v9550_v15, 5  ;;  %v9555_v47 = vshrl.u32 %v8828_v28, 16  ;;  %v22251_v62 = vld [vmem:[#allocation42_spill] sm:$0xff] }
 0x491   :  { %v12005_v33 = vcombine.low %v9519_v17, %v9529_v38  ;;  %v9547_v18 = vor.u32 %v9546_v31, %v9542_v37  ;;  %v19251_v20 = vadd.f32 %v19077_v34, %v5716_v36  ;;  %v9558_v3 = vshll.u32 %v8828_v28, 16  ;;  %v19253_v50 = vpop.f32.mrf.mxu1  ;;  %v22252_v15 = vld [vmem:[#allocation62_spill] sm:$0xff]  ;;  %v22253_v31 = vld [vmem:[#allocation43_spill] sm:$0xff] }
 0x492   :  { %v9538_v1 = vrot.slane %v9537_v58, 4  ;;  %v9557_v57 = vrot.slane %v9555_v47, 4  ;;  %v9564_v40 = vshll.u32 %v8829_v35, 16  ;;  %v9568_v13 = vshrl.u32 %v8829_v35, 16  ;;  %v22254_v36 = vld [vmem:[#allocation63_spill] sm:$0xff]  ;;  %v19263_v58 = vpop.f32.mrf.mxu0 }
 0x493   :  { %13265 = vmatprep.mubr.bf16.mxu0 %v12005_v33  ;;  %v9548_v43 = vrot.slane %v9547_v18, 4  ;;  %v9560_v59 = vrot.slane %v9558_v3, 5  ;;  %v9574_v53 = vshll.u32 %v8830_v24, 16  ;;  %v5714_v44 = vadd.f32 %v22252_v15, %v22251_v62  ;;  %v19257_v45 = vpop.f32.mrf.mxu1  ;;  %22255 = vst [vmem:[#allocation22_spill] sm:$0xff] %v19263_v58 }
 0x494   :  { %v9543_v34 = vsel %vm16257_vm11, %v9538_v1, %v9542_v37  ;;  %v9566_v17 = vrot.slane %v9564_v40, 5  ;;  %v9570_v28 = vrot.slane %v9568_v13, 4  ;;  %v5717_v38 = vadd.f32 %v22254_v36, %v22253_v31  ;;  %v22257_v13 = vld [vmem:[#allocation45_spill] sm:$0xff]  ;;  %v22258_v1 = vld [vmem:[#allocation64_spill] sm:$0xff] }
 0x495   :  { %v9553_v18 = vsel %vm16257_vm11, %v9548_v43, %v9552_v26  ;;  %v9561_v35 = vor.u32 %v9560_v59, %v9557_v57  ;;  %v9576_v24 = vrot.slane %v9574_v53, 5  ;;  %v19268_v47 = vadd.f32 %v19090_v60, %v5714_v44  ;;  %v19270_v33 = vpop.f32.mrf.mxu1  ;;  %v22259_v31 = vld [vmem:[#allocation21_spill] sm:$0xff]  ;;  %v22261_v26 = vld [vmem:[#allocation26_spill] sm:$0xff]  ;;  %v22263_v59 = vld [vmem:[#allocation12_spill] sm:$0xff] }
 0x496   :  { %v12006_v3 = vcombine.low %v9543_v34, %v9553_v18  ;;  %v9571_v62 = vor.u32 %v9570_v28, %v9566_v17  ;;  %v19273_v37 = vadd.f32 %v19099_v42, %v5717_v38  ;;  %v5715_v40 = vadd.f32 %v22258_v1, %v22257_v13  ;;  %v22260_v36 = vld [vmem:[#allocation65_spill] sm:$0xff]  ;;  %v22264_v60 = vld [vmem:[#allocation66_spill] sm:$0xff]  ;;  %v10147_v53 = vld [vmem:[#allocation2 + $0x18] sm:$0xe] }
 0x497   :  { %22256 = vst [vmem:[#allocation60_spill] sm:$0xff] %v19268_v47  ;;  %v9562_v15 = vrot.slane %v9561_v35, 4  ;;  %v5720_v58 = vadd.f32 %v22260_v36, %v22259_v31  ;;  %v22262_v57 = vld [vmem:[#allocation41_spill] sm:$0xff]  ;;  %v5721_v44 = vadd.f32 %v22264_v60, %v22263_v59  ;;  %v19283_v47 = vpop.f32.mrf.mxu1  ;;  %v22265_v28 = vld [vmem:[#allocation30_spill] sm:$0xff]  ;;  %v22266_v38 = vld [vmem:[#allocation67_spill] sm:$0xff]  ;;  %v19292_v31 = vpop.f32.mrf.mxu0 }
 0x498   :  { %v5718_v43 = vadd.f32 %v22262_v57, %v22261_v26  ;;  %13266 = vmatmul.mubr.bf16.gmra.mxu0 %v12006_v3  ;;  %v9572_v34 = vrot.slane %v9571_v62, 4  ;;  %v19286_v42 = vadd.f32 %v19108_v8, %v5715_v40  ;;  %v5719_v18 = vadd.f32 %v22266_v38, %v22265_v28  ;;  %v22267_v35 = vld [vmem:[#allocation5_spill] sm:$0xff]  ;;  %v22268_v13 = vld [vmem:[#allocation68_spill] sm:$0xff]  ;;  %22269 = vst [vmem:[#allocation19_spill] sm:$0xff] %v19292_v31  ;;  %v19305_v40 = vld [vmem:[#allocation2 + $0x1a8] sm:$0xf] }
 0x499   :  { %v5724_v1 = vadd.f32 %v22268_v13, %v22267_v35  ;;  %v9567_v36 = vsel %vm16257_vm11, %v9562_v15, %v9566_v17  ;;  %v19297_v26 = vadd.f32 %v19116_v41, %v5720_v58  ;;  %v19303_v8 = vadd.f32 %v19133_v27, %v5721_v44  ;;  %v8831_v62 = vld [vmem:[#allocation2 + $0x1a4] sm:$0xf]  ;;  %22273 = vst [vmem:[#allocation43_spill] sm:$0xff] %v19305_v40  ;;  %v19307_v57 = vpop.f32.mrf.mxu1  ;;  %v13617_v15 = vld [vmem:[#allocation2 + $0x1c] sm:$0xf]  ;;  %v22276_v28 = vld [vmem:[#allocation7_spill] sm:$0xff] }
 0x49a   :  { %v19300_v3 = vadd.f32 %v19123_v12, %v5718_v43  ;;  %v9577_v59 = vsel %vm16257_vm11, %v9572_v34, %v9576_v24  ;;  %v19312_v60 = vadd.f32 %v19145_v54, %v5719_v18  ;;  %v12017_v17 = vrot.slane %v10147_v53, 9  ;;  %v8833_v12 = vld [vmem:[#allocation2 + $0x1ac] sm:$0x1]  ;;  %v13618_v43 = vld [vmem:[#allocation2 + $0x20] sm:$0x1]  ;;  %v22450_v53 = vld [vmem:[#allocation11_spill] sm:$0xff] }
 0x49b   :  { %22270 = vst [vmem:[#allocation61_spill] sm:$0xff] %v19297_v26  ;;  %22272 = vst [vmem:[#allocation62_spill] sm:$0xff] %v19303_v8  ;;  %v19315_v41 = vadd.f32 %v19154_v0, %v5724_v1  ;;  %v12007_v58 = vcombine.low %v9567_v36, %v9577_v59  ;;  %v10277_v27 = vrot.slane %v13617_v15, 5  ;;  %v10280_v44 = vrot.slane %v13618_v43, 5  ;;  %v22277_v38 = vld [vmem:[#allocation69_spill] sm:$0xff]  ;;  %v19319_v13 = vpop.f32.mrf.mxu1  ;;  %v19323_v0 = vpop.f32.mrf.mxu0 }
 0x49c   :  { %22271 = vst [vmem:[#allocation42_spill] sm:$0xff] %v19300_v3  ;;  %22274 = vst [vmem:[#allocation63_spill] sm:$0xff] %v19312_v60  ;;  %v5722_v35 = vadd.f32 %v22277_v38, %v22276_v28  ;;  %v9579_v31 = vshrl.u32 %v8831_v62, 16  ;;  %v9582_v24 = vshll.u32 %v8831_v62, 16  ;;  %v9588_v54 = vshll.u32 %v19305_v40, 16  ;;  %v22282_v60 = vld [vmem:[#allocation70_spill] sm:$0xff] }
 0x49d   :  { %22275 = vst [vmem:[#allocation45_spill] sm:$0xff] %v19315_v41  ;;  %v9592_v34 = vshrl.u32 %v19305_v40, 16  ;;  %22278 = vst [vmem:[#allocation64_spill] sm:$0xff] %v19323_v0  ;;  %13269 = vmatprep.mubr.bf16.mxu0 %v12007_v58  ;;  %v10278_v18 = vsel %vm16746_vm14, %v12017_v17, %v10277_v27  ;;  %v10279_v1 = vrot.slane %v10277_v27, 4  ;;  %v9598_v59 = vshll.u32 %v8833_v12, 16  ;;  %v19330_v15 = vpop.f32.mrf.mxu1  ;;  %v22281_v58 = vld [vmem:[#allocation27_spill] sm:$0xff]  ;;  %v19342_v26 = vpop.f32.mrf.mxu0 }
 0x49e   :  { %v19328_v36 = vadd.f32 %v19160_v11, %v5722_v35  ;;  %v9581_v43 = vrot.slane %v9579_v31, 4  ;;  %v9584_v28 = vrot.slane %v9582_v24, 5  ;;  %v9590_v62 = vrot.slane %v9588_v54, 5  ;;  %v10148_v41 = vld [vmem:[#allocation2 + $0x24] sm:$0xe]  ;;  %v22283_v17 = vld [vmem:[#allocation86_spill] sm:$0xff] }
 0x49f   :  { %v9594_v38 = vrot.slane %v9592_v34, 4  ;;  %v10281_v40 = vsel %vm16746_vm14, %v10279_v1, %v10280_v44  ;;  %v9600_v0 = vrot.slane %v9598_v59, 5  ;;  %v5725_v8 = vadd.f32 %v22282_v60, %v22281_v58  ;;  %v22284_v27 = vld [vmem:[#allocation71_spill] sm:$0xff]  ;;  %v19338_v11 = vpop.f32.mrf.mxu1  ;;  %v22285_v31 = vld [vmem:[#allocation89_spill] sm:$0xff]  ;;  %v22286_v24 = vld [vmem:[#allocation72_spill] sm:$0xff]  ;;  %22287 = vst [vmem:[#allocation65_spill] sm:$0xff] %v19342_v26 }
 0x4a0   :  { %22280 = vst [vmem:[#allocation21_spill] sm:$0xff] %v19328_v36  ;;  %v5723_v3 = vadd.f32 %v22284_v27, %v22283_v17  ;;  %v12049_v12 = vcombine.low %v10278_v18, %v10281_v40  ;;  %v9585_v35 = vor.u32 %v9584_v28, %v9581_v43  ;;  %v5728_v54 = vadd.f32 %v22286_v24, %v22285_v31  ;;  %v10149_v34 = vld [vmem:[#allocation2 + $0x30] sm:$0xe]  ;;  %v13619_v59 = vld [vmem:[#allocation2 + $0x28] sm:$0xf] }
 0x4a1   :  { %v9595_v36 = vor.u32 %v9594_v38, %v9590_v62  ;;  %v19345_v44 = vadd.f32 %v19167_v16, %v5725_v8  ;;  %v12018_v60 = vrot.slane %v10148_v41, 9  ;;  %v10284_v58 = vrot.slane %v13619_v59, 5  ;;  %v13620_v38 = vld [vmem:[#allocation2 + $0x2c] sm:$0x1]  ;;  %v13621_v16 = vld [vmem:[#allocation2 + $0x34] sm:$0xf] }
 0x4a2   :  { %v19348_v1 = vadd.f32 %v19173_v32, %v5723_v3  ;;  %13289 = vmatprep.mubr.bf16.mxu1 %v12049_v12  ;;  %v9586_v17 = vrot.slane %v9585_v35, 4  ;;  %v19351_v18 = vadd.f32 %v19189_v61, %v5728_v54  ;;  %v19353_v43 = vpop.f32.mrf.mxu1  ;;  %v10287_v27 = vrot.slane %v13620_v38, 5  ;;  %v22289_v61 = vld [vmem:[#allocation73_spill] sm:$0xff]  ;;  %v19363_v35 = vpop.f32.mrf.mxu0  ;;  %v13622_v38 = vld [vmem:[#allocation2 + $0x38] sm:$0x1] }
 0x4a3   :  { %v9596_v40 = vrot.slane %v9595_v36, 4  ;;  %v10286_v28 = vrot.slane %v10284_v58, 4  ;;  %v12019_v31 = vrot.slane %v10149_v34, 9  ;;  %v10291_v8 = vrot.slane %v13621_v16, 5  ;;  %v22288_v36 = vld [vmem:[#allocation6_spill] sm:$0xff]  ;;  %22290 = vst [vmem:[#allocation26_spill] sm:$0xff] %v19363_v35 }
 0x4a4   :  { %v9591_v32 = vsel %vm16257_vm11, %v9586_v17, %v9590_v62  ;;  %v10285_v41 = vsel %vm16746_vm14, %v12018_v60, %v10284_v58  ;;  %v5726_v12 = vadd.f32 %v22289_v61, %v22288_v36  ;;  %v19365_v24 = vpop.f32.mrf.mxu1  ;;  %v10294_v62 = vrot.slane %v13622_v38, 5  ;;  %v10150_v17 = vld [vmem:[#allocation2 + $0x3c] sm:$0xe]  ;;  %v22291_v60 = vld [vmem:[#allocation23_spill] sm:$0xff]  ;;  %v22292_v58 = vld [vmem:[#allocation74_spill] sm:$0xff] }
 0x4a5   :  { %v9601_v3 = vsel %vm16257_vm11, %v9596_v40, %v9600_v0  ;;  %v10288_v34 = vsel %vm16746_vm14, %v10286_v28, %v10287_v27  ;;  %v10293_v59 = vrot.slane %v10291_v8, 4  ;;  %v5729_v40 = vadd.f32 %v22292_v58, %v22291_v60  ;;  %v22293_v16 = vld [vmem:[#allocation25_spill] sm:$0xff]  ;;  %v22294_v36 = vld [vmem:[#allocation75_spill] sm:$0xff] }
 0x4a6   :  { %v12008_v54 = vcombine.low %v9591_v32, %v9601_v3  ;;  %v12050_v30 = vcombine.low %v10285_v41, %v10288_v34  ;;  %v19370_v0 = vadd.f32 %v19194_v19, %v5726_v12  ;;  %v5727_v61 = vadd.f32 %v22294_v36, %v22293_v16  ;;  %v22295_v27 = vld [vmem:[#allocation95_spill] sm:$0xff]  ;;  %v22296_v3 = vld [vmem:[#allocation76_spill] sm:$0xff]  ;;  %v13623_v41 = vld [vmem:[#allocation2 + $0x40] sm:$0xf]  ;;  %v19388_v16 = vpop.f32.mrf.mxu0 }
 0x4a7   :  { %v10292_v32 = vsel %vm16746_vm14, %v12019_v31, %v10291_v8  ;;  %v10295_v28 = vsel %vm16746_vm14, %v10293_v59, %v10294_v62  ;;  %v5732_v38 = vadd.f32 %v22296_v3, %v22295_v27  ;;  %v10298_v34 = vrot.slane %v13623_v41, 5  ;;  %v10151_v19 = vld [vmem:[#allocation2 + $0x48] sm:$0xe]  ;;  %22297 = vst [vmem:[#allocation41_spill] sm:$0xff] %v19388_v16  ;;  %v19390_v31 = vpop.f32.mrf.mxu1  ;;  %v13624_v62 = vld [vmem:[#allocation2 + $0x44] sm:$0x1] }
 0x4a8   :  { %13270 = vmatmul.mubr.bf16.gmra.mxu0 %v12008_v54  ;;  %13290 = vmatmul.mubr.bf16.vlgmr.msra.gmra.mxu1 %v12050_v30  ;;  %v12051_v12 = vcombine.low %v10292_v32, %v10295_v28  ;;  %v19383_v60 = vadd.f32 %v19204_v6, %v5729_v40  ;;  %v19386_v58 = vadd.f32 %v19209_v5, %v5727_v61  ;;  %v12020_v54 = vrot.slane %v10150_v17, 9  ;;  %v13625_v32 = vld [vmem:[#allocation2 + $0x4c] sm:$0xf]  ;;  %v22298_v6 = vld [vmem:[#allocation77_spill] sm:$0xff]  ;;  %v22302_v41 = vld [vmem:[#allocation79_spill] sm:$0xff] }
 0x4a9   :  { %v19393_v8 = vadd.f32 %v19217_v2, %v5732_v38  ;;  %v10300_v59 = vrot.slane %v10298_v34, 4  ;;  %v10301_v36 = vrot.slane %v13624_v62, 5  ;;  %v12021_v30 = vrot.slane %v10151_v19, 9  ;;  %v22299_v17 = vld [vmem:[#allocation10_spill] sm:$0xff]  ;;  %v22303_v38 = vld [vmem:[#allocation17_spill] sm:$0xff]  ;;  %v22304_v16 = vld [vmem:[#allocation80_spill] sm:$0xff] }
 0x4aa   :  { %13293 = vmatprep.mubr.bf16.mxu1 %v12051_v12  ;;  %v10305_v28 = vrot.slane %v13625_v32, 5  ;;  %v5730_v40 = vadd.f32 %v22298_v6, %v18711_v56  ;;  %v22300_v61 = vld [vmem:[#allocation78_spill] sm:$0xff]  ;;  %v5736_v35 = vadd.f32 %v22304_v16, %v22303_v38  ;;  %v10299_v19 = vsel %vm16746_vm14, %v12020_v54, %v10298_v34  ;;  %v13626_v62 = vld [vmem:[#allocation2 + $0x50] sm:$0x1]  ;;  %v19410_v6 = vpop.f32.mrf.mxu0  ;;  %v13627_v34 = vld [vmem:[#allocation2 + $0x58] sm:$0xf] }
 0x4ab   :  { %v10302_v5 = vsel %vm16746_vm14, %v10300_v59, %v10301_v36  ;;  %v5733_v27 = vadd.f32 %v22300_v61, %v22299_v17  ;;  %v22301_v3 = vld [vmem:[#allocation46_spill] sm:$0xff]  ;;  %v10308_v32 = vrot.slane %v13626_v62, 5  ;;  %22305 = vst [vmem:[#allocation12_spill] sm:$0xff] %v19410_v6  ;;  %v19412_v59 = vpop.f32.mrf.mxu1  ;;  %v10312_v54 = vrot.slane %v13627_v34, 5  ;;  %v10153_v62 = vld [vmem:[#allocation2 + $0x60] sm:$0xe] }
 0x4ac   :  { %v5731_v2 = vadd.f32 %v22302_v41, %v22301_v3  ;;  %v10307_v12 = vrot.slane %v10305_v28, 4  ;;  %v19408_v56 = vadd.f32 %v19231_v9, %v5730_v40  ;;  %v19421_v16 = vadd.f32 %v19253_v50, %v5736_v35  ;;  %v10152_v3 = vld [vmem:[#allocation2 + $0x54] sm:$0xe]  ;;  %v13628_v41 = vld [vmem:[#allocation2 + $0x64] sm:$0xf]  ;;  %v22310_v34 = vld [vmem:[#allocation82_spill] sm:$0xff] }
 0x4ad   :  { %v19415_v36 = vadd.f32 %v19238_v7, %v5733_v27  ;;  %v12052_v61 = vcombine.low %v10299_v19, %v10302_v5  ;;  %v10306_v9 = vsel %vm16746_vm14, %v12021_v30, %v10305_v28  ;;  %v10319_v38 = vrot.slane %v13628_v41, 5  ;;  %v22308_v50 = vld [vmem:[#allocation81_spill] sm:$0xff]  ;;  %v19431_v19 = vpop.f32.mrf.mxu0  ;;  %v22312_v41 = vld [vmem:[#allocation102_spill] sm:$0xff] }
 0x4ae   :  { %v19418_v17 = vadd.f32 %v19244_v29, %v5731_v2  ;;  %22307 = vst [vmem:[#allocation30_spill] sm:$0xff] %v19421_v16  ;;  %v10309_v40 = vsel %vm16746_vm14, %v10307_v12, %v10308_v32  ;;  %v10314_v27 = vrot.slane %v10312_v54, 4  ;;  %v5734_v35 = vadd.f32 %v22308_v50, %v18764_v49  ;;  %v22309_v2 = vld [vmem:[#allocation13_spill] sm:$0xff]  ;;  %22311 = vst [vmem:[#allocation67_spill] sm:$0xff] %v19431_v19  ;;  %v13629_v12 = vld [vmem:[#allocation2 + $0x5c] sm:$0x1] }
 0x4af   :  { %v12053_v7 = vcombine.low %v10306_v9, %v10309_v40  ;;  %v10321_v29 = vrot.slane %v10319_v38, 4  ;;  %v5737_v5 = vadd.f32 %v22310_v34, %v22309_v2  ;;  %v19433_v30 = vpop.f32.mrf.mxu1  ;;  %v12022_v28 = vrot.slane %v10152_v3, 9  ;;  %v22313_v9 = vld [vmem:[#allocation83_spill] sm:$0xff]  ;;  %v22314_v6 = vld [vmem:[#allocation105_spill] sm:$0xff]  ;;  %v22326_v19 = vld [vmem:[#allocation90_spill] sm:$0xff] }
 0x4b0   :  { %22306 = vst [vmem:[#allocation66_spill] sm:$0xff] %v19418_v17  ;;  %13294 = vmatmul.mubr.bf16.gmra.mxu1 %v12052_v61  ;;  %v10315_v32 = vrot.slane %v13629_v12, 5  ;;  %v5735_v40 = vadd.f32 %v22313_v9, %v22312_v41  ;;  %v22315_v61 = vld [vmem:[#allocation84_spill] sm:$0xff]  ;;  %v12023_v16 = vrot.slane %v10153_v62, 9  ;;  %v13630_v17 = vld [vmem:[#allocation2 + $0x68] sm:$0x1]  ;;  %v19440_v50 = vadd.f32 %v19257_v45, %v5734_v35 }
 0x4b1   :  { %13297 = vmatprep.mubr.bf16.mxu1 %v12053_v7  ;;  %v5740_v26 = vadd.f32 %v22315_v61, %v22314_v6  ;;  %v10322_v49 = vrot.slane %v13630_v17, 5  ;;  %v19443_v2 = vadd.f32 %v19270_v33, %v5737_v5  ;;  %v19445_v34 = vpop.f32.mrf.mxu1  ;;  %v13631_v6 = vld [vmem:[#allocation2 + $0x70] sm:$0xf]  ;;  %v13632_v17 = vld [vmem:[#allocation2 + $0x7c] sm:$0xf]  ;;  %v19457_v33 = vpop.f32.mrf.mxu0  ;;  %v10313_v5 = vsel %vm16746_vm14, %v12022_v28, %v10312_v54 }
 0x4b2   :  { %v10316_v3 = vsel %vm16746_vm14, %v10314_v27, %v10315_v32  ;;  %v19450_v7 = vadd.f32 %v19283_v47, %v5735_v40  ;;  %v10326_v62 = vrot.slane %v13631_v6, 5  ;;  %v10333_v35 = vrot.slane %v13632_v17, 5  ;;  %22318 = vst [vmem:[#allocation7_spill] sm:$0xff] %v19457_v33  ;;  %v22319_v41 = vld [vmem:[#allocation108_spill] sm:$0xff]  ;;  %v22320_v27 = vld [vmem:[#allocation85_spill] sm:$0xff]  ;;  %v22322_v9 = vld [vmem:[#allocation87_spill] sm:$0xff] }
 0x4b3   :  { %v19453_v12 = vadd.f32 %v19307_v57, %v5740_v26  ;;  %v10323_v45 = vsel %vm16746_vm14, %v10321_v29, %v10322_v49  ;;  %v5738_v32 = vadd.f32 %v22320_v27, %v22319_v41  ;;  %v22321_v47 = vld [vmem:[#allocation4_spill] sm:$0xff]  ;;  %v19465_v26 = vpop.f32.mrf.mxu1  ;;  %v12054_v57 = vcombine.low %v10313_v5, %v10316_v3  ;;  %v10154_v29 = vld [vmem:[#allocation2 + $0x6c] sm:$0xe] }
 0x4b4   :  { %22316 = vst [vmem:[#allocation5_spill] sm:$0xff] %v19450_v7  ;;  %v5741_v40 = vadd.f32 %v22322_v9, %v22321_v47  ;;  %v10320_v61 = vsel %vm16746_vm14, %v12023_v16, %v10319_v38  ;;  %v22323_v49 = vld [vmem:[#allocation110_spill] sm:$0xff]  ;;  %v22324_v6 = vld [vmem:[#allocation88_spill] sm:$0xff]  ;;  %v10328_v28 = vrot.slane %v10326_v62, 4  ;;  %v10335_v3 = vrot.slane %v10333_v35, 4  ;;  %v19482_v38 = vpop.f32.mrf.mxu0 }
 0x4b5   :  { %22317 = vst [vmem:[#allocation68_spill] sm:$0xff] %v19453_v12  ;;  %v5739_v17 = vadd.f32 %v22324_v6, %v22323_v49  ;;  %v22325_v33 = vld [vmem:[#allocation112_spill] sm:$0xff]  ;;  %v12055_v54 = vcombine.low %v10320_v61, %v10323_v45  ;;  %v19474_v41 = vadd.f32 %v19319_v13, %v5738_v32  ;;  %v13633_v45 = vld [vmem:[#allocation2 + $0x74] sm:$0x1]  ;;  %v7059_v47 = vpop.f32.mrf.mxu1  ;;  %v13634_v32 = vld [vmem:[#allocation2 + $0x80] sm:$0x1] }
 0x4b6   :  { %v5744_v12 = vadd.f32 %v22326_v19, %v22325_v33  ;;  %v10155_v7 = vld [vmem:[#allocation2 + $0x78] sm:$0xe]  ;;  %v19477_v27 = vadd.f32 %v19330_v15, %v5741_v40  ;;  %v12024_v19 = vrot.slane %v10154_v29, 9  ;;  %v10329_v33 = vrot.slane %v13633_v45, 5  ;;  %v22327_v15 = vld [vmem:[#allocation91_spill] sm:$0xff]  ;;  %v22330_v6 = vld [vmem:[#allocation94_spill] sm:$0xff] }
 0x4b7   :  { %v19480_v16 = vadd.f32 %v19338_v11, %v5739_v17  ;;  %v12025_v13 = vrot.slane %v10155_v7, 9  ;;  %v10336_v9 = vrot.slane %v13634_v32, 5  ;;  %v5742_v40 = vadd.f32 %v22327_v15, %v18856_v52  ;;  %v13635_v49 = vld [vmem:[#allocation2 + $0x88] sm:$0xf]  ;;  %v13636_v52 = vld [vmem:[#allocation2 + $0x94] sm:$0xf] }
 0x4b8   :  { %13298 = vmatmul.mubr.bf16.gmra.mxu1 %v12054_v57  ;;  %v19485_v5 = vadd.f32 %v19353_v43, %v5744_v12  ;;  %v22328_v57 = vld [vmem:[#allocation92_spill] sm:$0xff]  ;;  %v10330_v61 = vsel %vm16746_vm14, %v10328_v28, %v10329_v33  ;;  %v10340_v43 = vrot.slane %v13635_v49, 5  ;;  %v22329_v12 = vld [vmem:[#allocation93_spill] sm:$0xff]  ;;  %v5748_v17 = vadd.f32 %v22330_v6, %v18884_v63  ;;  %v22335_v6 = vld [vmem:[#allocation122_spill] sm:$0xff] }
 0x4b9   :  { %13301 = vmatprep.mubr.bf16.mxu1 %v12055_v54  ;;  %v5745_v11 = vadd.f32 %v22328_v57, %v18860_v46  ;;  %v5743_v29 = vadd.f32 %v22329_v12, %v18868_v22  ;;  %v10337_v7 = vsel %vm16746_vm14, %v10335_v3, %v10336_v9  ;;  %v19499_v54 = vpop.f32.mrf.mxu0  ;;  %v10347_v45 = vrot.slane %v13636_v52, 5  ;;  %v10156_v15 = vld [vmem:[#allocation2 + $0x84] sm:$0xe]  ;;  %v10157_v57 = vld [vmem:[#allocation2 + $0x90] sm:$0xe] }
 0x4ba   :  { %v19502_v46 = vadd.f32 %v19365_v24, %v5742_v40  ;;  %v10327_v33 = vsel %vm16746_vm14, %v12024_v19, %v10326_v62  ;;  %v19513_v63 = vadd.f32 %v19433_v30, %v5748_v17  ;;  %v10334_v9 = vsel %vm16746_vm14, %v12025_v13, %v10333_v35  ;;  %v22333_v30 = vld [vmem:[#allocation97_spill] sm:$0xff]  ;;  %v13637_v12 = vld [vmem:[#allocation2 + $0x8c] sm:$0x1]  ;;  %v22334_v35 = vld [vmem:[#allocation8_spill] sm:$0xff] }
 0x4bb   :  { %v19505_v28 = vadd.f32 %v19390_v31, %v5745_v11  ;;  %v19510_v22 = vadd.f32 %v19412_v59, %v5743_v29  ;;  %v12056_v32 = vcombine.low %v10327_v33, %v10330_v61  ;;  %v12057_v24 = vcombine.low %v10334_v9, %v10337_v7  ;;  %v19517_v49 = vpop.f32.mrf.mxu0  ;;  %v22332_v59 = vld [vmem:[#allocation96_spill] sm:$0xff]  ;;  %v22336_v17 = vld [vmem:[#allocation98_spill] sm:$0xff] }
 0x4bc   :  { %v10342_v40 = vrot.slane %v10340_v43, 4  ;;  %v10349_v11 = vrot.slane %v10347_v45, 4  ;;  %22331 = vst [vmem:[#allocation69_spill] sm:$0xff] %v19517_v49  ;;  %v5746_v62 = vadd.f32 %v22332_v59, %v18898_v21  ;;  %v5749_v19 = vadd.f32 %v22333_v30, %v18906_v4 }
 0x4bd   :  { %v13027_v3 = vpop.f32.mrf.mxu1  ;;  %v12026_v61 = vrot.slane %v10156_v15, 9  ;;  %v10343_v29 = vrot.slane %v13637_v12, 5  ;;  %v5747_v13 = vadd.f32 %v22334_v35, %v18914_v10  ;;  %v5752_v7 = vadd.f32 %v22336_v17, %v22335_v6  ;;  %v13639_v15 = vld [vmem:[#allocation2 + $0xa0] sm:$0xf]  ;;  %v19541_v30 = vpop.f32.mrf.mxu0  ;;  %v13640_v12 = vld [vmem:[#allocation2 + $0xac] sm:$0xf] }
 0x4be   :  { %v12027_v33 = vrot.slane %v10157_v57, 9  ;;  %v19528_v49 = vadd.f32 %v19445_v34, %v5746_v62  ;;  %v19531_v21 = vadd.f32 %v19465_v26, %v5749_v19  ;;  %v10361_v34 = vrot.slane %v13640_v12, 5  ;;  %v22337_v62 = vld [vmem:[#allocation99_spill] sm:$0xff] }
 0x4bf   :  { %v7072_v31 = vpop.f32.mrf.mxu1  ;;  %v10344_v4 = vsel %vm16746_vm14, %v10342_v40, %v10343_v29  ;;  %v19535_v59 = vadd.f32 %v7059_v47, %v5747_v13  ;;  %v19537_v10 = vadd.f32 %v13027_v3, %v5752_v7  ;;  %v10341_v26 = vsel %vm16746_vm14, %v12026_v61, %v10340_v43  ;;  %v22338_v40 = vld [vmem:[#allocation100_spill] sm:$0xff]  ;;  %v13642_v12 = vld [vmem:[#allocation2 + $0xb0] sm:$0x1] }
 0x4c0   :  { %13302 = vmatmul.mubr.bf16.gmra.mxu1 %v12056_v32  ;;  %v13638_v32 = vld [vmem:[#allocation2 + $0x98] sm:$0x1]  ;;  %v5750_v19 = vadd.f32 %v22337_v62, %v18942_v14  ;;  %v5753_v29 = vadd.f32 %v22338_v40, %v18946_v23  ;;  %v12058_v35 = vcombine.low %v10341_v26, %v10344_v4  ;;  %v10348_v3 = vsel %vm16746_vm14, %v12027_v33, %v10347_v45  ;;  %v10158_v13 = vld [vmem:[#allocation2 + $0x9c] sm:$0xe]  ;;  %v19557_v14 = vpop.f32.mrf.mxu0  ;;  %v13641_v45 = vld [vmem:[#allocation2 + $0xa4] sm:$0x1] }
 0x4c1   :  { %13305 = vmatprep.mubr.bf16.mxu1 %v12057_v24  ;;  %v13028_v52 = vpop.f32.mrf.mxu1  ;;  %v10350_v9 = vrot.slane %v13638_v32, 5  ;;  %v10354_v24 = vrot.slane %v13639_v15, 5  ;;  %v10159_v32 = vld [vmem:[#allocation2 + $0xa8] sm:$0xe]  ;;  %v10363_v23 = vrot.slane %v10361_v34, 4  ;;  %v12028_v4 = vrot.slane %v10158_v13, 9 }
 0x4c2   :  { %v19555_v43 = vadd.f32 %v13028_v52, %v5753_v29  ;;  %v10357_v33 = vrot.slane %v13641_v45, 5  ;;  %v12029_v15 = vrot.slane %v10159_v32, 9  ;;  %v19563_v52 = vpop.f32.mrf.mxu0  ;;  %v10161_v32 = vld [vmem:[#allocation2 + $0xc0] sm:$0xe] }
 0x4c3   :  { %v10351_v57 = vsel %vm16746_vm14, %v10349_v11, %v10350_v9  ;;  %v7075_v47 = vpop.f32.mrf.mxu1  ;;  %v22339_v11 = vld [vmem:[#allocation101_spill] sm:$0xff]  ;;  %v10356_v7 = vrot.slane %v10354_v24, 4  ;;  %v19553_v9 = vadd.f32 %v7072_v31, %v5750_v19  ;;  %v13643_v31 = vld [vmem:[#allocation2 + $0xb8] sm:$0xf]  ;;  %v10355_v29 = vsel %vm16746_vm14, %v12028_v4, %v10354_v24 }
 0x4c4   :  { %v5751_v6 = vadd.f32 %v22339_v11, %v18954_v25  ;;  %v12059_v17 = vcombine.low %v10348_v3, %v10351_v57  ;;  %v10364_v25 = vrot.slane %v13642_v12, 5  ;;  %v10368_v26 = vrot.slane %v13643_v31, 5  ;;  %v13644_v19 = vld [vmem:[#allocation2 + $0xc4] sm:$0xf]  ;;  %v19577_v12 = vpop.f32.mrf.mxu0  ;;  %v10162_v31 = vld [vmem:[#allocation2 + $0xcc] sm:$0xe] }
 0x4c5   :  { %v10358_v57 = vsel %vm16746_vm14, %v10356_v7, %v10357_v33  ;;  %v10375_v40 = vrot.slane %v13644_v19, 5  ;;  %v10362_v11 = vsel %vm16746_vm14, %v12029_v15, %v10361_v34  ;;  %v13646_v34 = vld [vmem:[#allocation2 + $0xd0] sm:$0xf]  ;;  %v22344_v19 = vld [vmem:[#allocation130_spill] sm:$0xff] }
 0x4c6   :  { %v19559_v61 = vadd.f32 %v7075_v47, %v5751_v6  ;;  %v10365_v62 = vsel %vm16746_vm14, %v10363_v23, %v10364_v25  ;;  %v10160_v47 = vld [vmem:[#allocation2 + $0xb4] sm:$0xe]  ;;  %v12060_v13 = vcombine.low %v10355_v29, %v10358_v57  ;;  %v10370_v7 = vrot.slane %v10368_v26, 4  ;;  %v22345_v29 = vld [vmem:[#allocation104_spill] sm:$0xff] }
 0x4c7   :  { %v22342_v23 = vld [vmem:[#allocation103_spill] sm:$0xff]  ;;  %v12030_v24 = vrot.slane %v10160_v47, 9  ;;  %v10377_v4 = vrot.slane %v10375_v40, 4  ;;  %v10382_v15 = vrot.slane %v13646_v34, 5 }
 0x4c8   :  { %13306 = vmatmul.mubr.bf16.gmra.mxu1 %v12058_v35  ;;  %v22340_v35 = vld [vmem:[#allocation47_spill] sm:$0xff]  ;;  %v5754_v33 = vadd.f32 %v22342_v23, %v18984_v39  ;;  %v22348_v23 = vld [vmem:[#allocation106_spill] sm:$0xff] }
 0x4c9   :  { %13309 = vmatprep.mubr.bf16.mxu1 %v12059_v17  ;;  %v5756_v3 = vadd.f32 %v22340_v35, %v18970_v48  ;;  %v12061_v17 = vcombine.low %v10362_v11, %v10365_v62  ;;  %v13645_v48 = vld [vmem:[#allocation2 + $0xbc] sm:$0x1]  ;;  %v5757_v35 = vadd.f32 %v22345_v29, %v22344_v19  ;;  %v13647_v11 = vld [vmem:[#allocation2 + $0xc8] sm:$0x1]  ;;  %v13648_v34 = vld [vmem:[#allocation2 + $0xf4] sm:$0xf] }
 0x4ca   :  { %v10371_v57 = vrot.slane %v13645_v48, 5  ;;  %v10378_v39 = vrot.slane %v13647_v11, 5  ;;  %v10389_v19 = vrot.slane %v13648_v34, 5  ;;  %v10384_v11 = vrot.slane %v10382_v15, 4 }
 0x4cc   :  { %v10372_v47 = vsel %vm16746_vm14, %v10370_v7, %v10371_v57 }
 0x4ce   :  { %v13031_v6 = vpop.f32.mrf.mxu1 }
 0x4cf   :  { %v19573_v45 = vadd.f32 %v13031_v6, %v5756_v3  ;;  %v12031_v3 = vrot.slane %v10161_v32, 9  ;;  %v12032_v32 = vrot.slane %v10162_v31, 9  ;;  %v22352_v31 = vld [vmem:[#allocation109_spill] sm:$0xff] }
 0x4d0   :  { %13310 = vmatmul.mubr.bf16.gmra.mxu1 %v12060_v13  ;;  %v7088_v25 = vpop.f32.mrf.mxu1 }
 0x4d1   :  { %22341 = vst [vmem:[#allocation20_spill] sm:$0xff] %v19573_v45  ;;  %13313 = vmatprep.mubr.bf16.mxu1 %v12061_v17  ;;  %v19579_v62 = vadd.f32 %v7088_v25, %v5754_v33  ;;  %v22347_v17 = vld [vmem:[#allocation132_spill] sm:$0xff]  ;;  %v19589_v45 = vpop.f32.mrf.mxu0  ;;  %v10369_v33 = vsel %vm16746_vm14, %v12030_v24, %v10368_v26  ;;  %v10379_v25 = vsel %vm16746_vm14, %v10377_v4, %v10378_v39 }
 0x4d2   :  { %v13032_v13 = vpop.f32.mrf.mxu1  ;;  %v5755_v48 = vadd.f32 %v22348_v23, %v22347_v17  ;;  %22349 = vst [vmem:[#allocation86_spill] sm:$0xff] %v19589_v45  ;;  %v12062_v17 = vcombine.low %v10369_v33, %v10372_v47  ;;  %v10376_v23 = vsel %vm16746_vm14, %v12031_v3, %v10375_v40  ;;  %v8000_v39 = vadd.f32 %v22352_v31, %v19040_v55  ;;  %v22355_v47 = vld [vmem:[#allocation49_spill] sm:$0xff]  ;;  %v22356_v33 = vld [vmem:[#allocation111_spill] sm:$0xff] }
 0x4d3   :  { %22343 = vst [vmem:[#allocation27_spill] sm:$0xff] %v19579_v62  ;;  %v19585_v6 = vadd.f32 %v13032_v13, %v5757_v35  ;;  %v13649_v62 = vld [vmem:[#allocation2 + $0xd4] sm:$0x1]  ;;  %v12063_v24 = vcombine.low %v10376_v23, %v10379_v25  ;;  %v19605_v34 = vpop.f32.mrf.mxu0  ;;  %v8003_v25 = vadd.f32 %v22356_v33, %v22355_v47  ;;  %v13651_v23 = vld [vmem:[#allocation2 + $0x100] sm:$0xf]  ;;  %v22363_v33 = vld [vmem:[#allocation114_spill] sm:$0xff] }
 0x4d4   :  { %v7091_v29 = vpop.f32.mrf.mxu1  ;;  %v10385_v7 = vrot.slane %v13649_v62, 5  ;;  %v22350_v35 = vld [vmem:[#allocation107_spill] sm:$0xff]  ;;  %22353 = vst [vmem:[#allocation89_spill] sm:$0xff] %v19605_v34  ;;  %v10391_v62 = vrot.slane %v10389_v19, 4  ;;  %v22359_v31 = vld [vmem:[#allocation113_spill] sm:$0xff] }
 0x4d5   :  { %22346 = vst [vmem:[#allocation70_spill] sm:$0xff] %v19585_v6  ;;  %v19595_v57 = vadd.f32 %v7091_v29, %v5755_v48  ;;  %v8002_v13 = vadd.f32 %v22350_v35, %v19019_v51  ;;  %v10163_v6 = vld [vmem:[#allocation2 + $0xf0] sm:$0xe]  ;;  %v10383_v51 = vsel %vm16746_vm14, %v12032_v32, %v10382_v15  ;;  %v13650_v35 = vld [vmem:[#allocation2 + $0xf8] sm:$0x1]  ;;  %v19619_v15 = vpop.f32.mrf.mxu0 }
 0x4d6   :  { %v13131_v26 = vpop.f32.mrf.mxu1  ;;  %v10386_v40 = vsel %vm16746_vm14, %v10384_v11, %v10385_v7  ;;  %v12033_v29 = vrot.slane %v10163_v6, 9  ;;  %v10392_v55 = vrot.slane %v13650_v35, 5  ;;  %22360 = vst [vmem:[#allocation73_spill] sm:$0xff] %v19619_v15  ;;  %v13652_v7 = vld [vmem:[#allocation2 + $0x10c] sm:$0xf]  ;;  %v22362_v47 = vld [vmem:[#allocation139_spill] sm:$0xff] }
 0x4d7   :  { %v19601_v4 = vadd.f32 %v13131_v26, %v8002_v13  ;;  %v12064_v32 = vcombine.low %v10383_v51, %v10386_v40  ;;  %v8006_v35 = vadd.f32 %v22363_v33, %v22362_v47  ;;  %v22365_v40 = vld [vmem:[#allocation51_spill] sm:$0xff]  ;;  %v13653_v33 = vld [vmem:[#allocation2 + $0x104] sm:$0x1] }
 0x4d8   :  { %13314 = vmatmul.mubr.bf16.gmra.mxu1 %v12062_v17  ;;  %v8419_v48 = vpop.f32.mrf.mxu1  ;;  %v10396_v17 = vrot.slane %v13651_v23, 5  ;;  %v10393_v11 = vsel %vm16746_vm14, %v10391_v62, %v10392_v55  ;;  %v22366_v62 = vld [vmem:[#allocation115_spill] sm:$0xff] }
 0x4d9   :  { %22351 = vst [vmem:[#allocation71_spill] sm:$0xff] %v19601_v4  ;;  %13317 = vmatprep.mubr.bf16.mxu1 %v12063_v24  ;;  %v19611_v3 = vadd.f32 %v8419_v48, %v8000_v39  ;;  %v22358_v24 = vld [vmem:[#allocation137_spill] sm:$0xff]  ;;  %v10403_v39 = vrot.slane %v13652_v7, 5  ;;  %v8004_v55 = vadd.f32 %v22366_v62, %v22365_v40  ;;  %v19633_v7 = vpop.f32.mrf.mxu0  ;;  %v13655_v62 = vld [vmem:[#allocation2 + $0x118] sm:$0xf]  ;;  %v22379_v34 = vld [vmem:[#allocation119_spill] sm:$0xff] }
 0x4da   :  { %v13132_v13 = vpop.f32.mrf.mxu1  ;;  %v8001_v4 = vadd.f32 %v22359_v31, %v22358_v24  ;;  %v10398_v31 = vrot.slane %v10396_v17, 4  ;;  %22367 = vst [vmem:[#allocation25_spill] sm:$0xff] %v19633_v7 }
 0x4db   :  { %22354 = vst [vmem:[#allocation72_spill] sm:$0xff] %v19611_v3  ;;  %v19615_v26 = vadd.f32 %v13132_v13, %v8003_v25  ;;  %v10390_v25 = vsel %vm16746_vm14, %v12033_v29, %v10389_v19  ;;  %v10164_v13 = vld [vmem:[#allocation2 + $0xfc] sm:$0xe]  ;;  %v22369_v29 = vld [vmem:[#allocation33_spill] sm:$0xff] }
 0x4dc   :  { %v8422_v48 = vpop.f32.mrf.mxu1  ;;  %v12065_v24 = vcombine.low %v10390_v25, %v10393_v11  ;;  %v12034_v47 = vrot.slane %v10164_v13, 9  ;;  %v22370_v11 = vld [vmem:[#allocation116_spill] sm:$0xff]  ;;  %v22373_v13 = vld [vmem:[#allocation117_spill] sm:$0xff] }
 0x4dd   :  { %22357 = vst [vmem:[#allocation6_spill] sm:$0xff] %v19615_v26  ;;  %v19623_v6 = vadd.f32 %v8422_v48, %v8001_v4  ;;  %v10165_v26 = vld [vmem:[#allocation2 + $0x108] sm:$0xe]  ;;  %v10405_v4 = vrot.slane %v10403_v39, 4  ;;  %v8007_v25 = vadd.f32 %v22370_v11, %v22369_v29 }
 0x4de   :  { %v13135_v23 = vpop.f32.mrf.mxu1  ;;  %v12035_v3 = vrot.slane %v10165_v26, 9  ;;  %v10397_v11 = vsel %vm16746_vm14, %v12034_v47, %v10396_v17 }
 0x4df   :  { %22361 = vst [vmem:[#allocation23_spill] sm:$0xff] %v19623_v6  ;;  %v19629_v51 = vadd.f32 %v13135_v23, %v8006_v35  ;;  %v10399_v6 = vrot.slane %v13653_v33, 5  ;;  %v13654_v35 = vld [vmem:[#allocation2 + $0x110] sm:$0x1]  ;;  %v19645_v33 = vpop.f32.mrf.mxu0 }
 0x4e0   :  { %13318 = vmatmul.mubr.bf16.gmra.mxu1 %v12064_v32  ;;  %v8435_v48 = vpop.f32.mrf.mxu1  ;;  %v10406_v23 = vrot.slane %v13654_v35, 5  ;;  %v10410_v32 = vrot.slane %v13655_v62, 5  ;;  %v10404_v62 = vsel %vm16746_vm14, %v12035_v3, %v10403_v39  ;;  %v22382_v39 = vld [vmem:[#allocation38_spill] sm:$0xff] }
 0x4e1   :  { %22364 = vst [vmem:[#allocation74_spill] sm:$0xff] %v19629_v51  ;;  %13321 = vmatprep.mubr.bf16.mxu1 %v12065_v24  ;;  %v19635_v19 = vadd.f32 %v8435_v48, %v8004_v55  ;;  %v10400_v40 = vsel %vm16746_vm14, %v10398_v31, %v10399_v6  ;;  %v22372_v24 = vld [vmem:[#allocation53_spill] sm:$0xff]  ;;  %v22375_v6 = vld [vmem:[#allocation54_spill] sm:$0xff]  ;;  %v19661_v17 = vpop.f32.mrf.mxu0 }
 0x4e2   :  { %v13136_v51 = vpop.f32.mrf.mxu1  ;;  %v8005_v15 = vadd.f32 %v22373_v13, %v22372_v24  ;;  %v10407_v55 = vsel %vm16746_vm14, %v10405_v4, %v10406_v23  ;;  %v13656_v48 = vld [vmem:[#allocation2 + $0x124] sm:$0xf]  ;;  %v22376_v31 = vld [vmem:[#allocation118_spill] sm:$0xff]  ;;  %v10166_v24 = vld [vmem:[#allocation2 + $0x114] sm:$0xe]  ;;  %22380 = vst [vmem:[#allocation10_spill] sm:$0xff] %v19661_v17 }
 0x4e3   :  { %22368 = vst [vmem:[#allocation75_spill] sm:$0xff] %v19635_v19  ;;  %v19641_v7 = vadd.f32 %v13136_v51, %v8007_v25  ;;  %v10417_v26 = vrot.slane %v13656_v48, 5  ;;  %v8010_v51 = vadd.f32 %v22376_v31, %v22375_v6  ;;  %v12066_v25 = vcombine.low %v10397_v11, %v10400_v40  ;;  %v10167_v4 = vld [vmem:[#allocation2 + $0x120] sm:$0xe]  ;;  %v22378_v48 = vld [vmem:[#allocation55_spill] sm:$0xff] }
 0x4e4   :  { %v8438_v29 = vpop.f32.mrf.mxu1  ;;  %v10412_v19 = vrot.slane %v10410_v32, 4  ;;  %v8008_v45 = vadd.f32 %v22379_v34, %v22378_v48  ;;  %v12036_v40 = vrot.slane %v10166_v24, 9  ;;  %v12037_v31 = vrot.slane %v10167_v4, 9  ;;  %v13659_v48 = vld [vmem:[#allocation2 + $0x130] sm:$0xf]  ;;  %v22386_v24 = vld [vmem:[#allocation44_spill] sm:$0xff] }
 0x4e5   :  { %22371 = vst [vmem:[#allocation95_spill] sm:$0xff] %v19641_v7  ;;  %v19651_v35 = vadd.f32 %v8438_v29, %v8005_v15  ;;  %v12067_v7 = vcombine.low %v10404_v62, %v10407_v55  ;;  %v10419_v15 = vrot.slane %v10417_v26, 4  ;;  %v13657_v29 = vld [vmem:[#allocation2 + $0x11c] sm:$0x1]  ;;  %v22393_v17 = vld [vmem:[#allocation123_spill] sm:$0xff] }
 0x4e6   :  { %v13139_v13 = vpop.f32.mrf.mxu1  ;;  %v10413_v11 = vrot.slane %v13657_v29, 5  ;;  %v22383_v55 = vld [vmem:[#allocation120_spill] sm:$0xff]  ;;  %v19673_v29 = vpop.f32.mrf.mxu0 }
 0x4e7   :  { %22374 = vst [vmem:[#allocation76_spill] sm:$0xff] %v19651_v35  ;;  %v19657_v23 = vadd.f32 %v13139_v13, %v8010_v51  ;;  %v8011_v6 = vadd.f32 %v22383_v55, %v22382_v39  ;;  %v13658_v51 = vld [vmem:[#allocation2 + $0x128] sm:$0x1]  ;;  %22387 = vst [vmem:[#allocation79_spill] sm:$0xff] %v19673_v29  ;;  %v10411_v55 = vsel %vm16746_vm14, %v12036_v40, %v10410_v32 }
 0x4e8   :  { %13322 = vmatmul.mubr.bf16.gmra.mxu1 %v12066_v25  ;;  %v8451_v47 = vpop.f32.mrf.mxu1  ;;  %v10420_v62 = vrot.slane %v13658_v51, 5  ;;  %v10414_v34 = vsel %vm16746_vm14, %v10412_v19, %v10413_v11  ;;  %v10424_v25 = vrot.slane %v13659_v48, 5  ;;  %v22389_v19 = vld [vmem:[#allocation31_spill] sm:$0xff]  ;;  %v22390_v11 = vld [vmem:[#allocation121_spill] sm:$0xff]  ;;  %v10418_v48 = vsel %vm16746_vm14, %v12037_v31, %v10417_v26  ;;  %v19689_v32 = vpop.f32.mrf.mxu0  ;;  %v22396_v31 = vld [vmem:[#allocation32_spill] sm:$0xff] }
 0x4e9   :  { %22377 = vst [vmem:[#allocation77_spill] sm:$0xff] %v19657_v23  ;;  %13325 = vmatprep.mubr.bf16.mxu1 %v12067_v7  ;;  %v19663_v3 = vadd.f32 %v8451_v47, %v8008_v45  ;;  %v22385_v7 = vld [vmem:[#allocation9_spill] sm:$0xff]  ;;  %v13660_v47 = vld [vmem:[#allocation2 + $0x13c] sm:$0xf]  ;;  %22394 = vst [vmem:[#allocation81_spill] sm:$0xff] %v19689_v32 }
 0x4ea   :  { %v13140_v13 = vpop.f32.mrf.mxu1  ;;  %v8009_v35 = vadd.f32 %v22386_v24, %v22385_v7  ;;  %v10421_v45 = vsel %vm16746_vm14, %v10419_v15, %v10420_v62  ;;  %v10431_v4 = vrot.slane %v13660_v47, 5  ;;  %v10168_v7 = vld [vmem:[#allocation2 + $0x12c] sm:$0xe]  ;;  %v10169_v15 = vld [vmem:[#allocation2 + $0x138] sm:$0xe]  ;;  %v22392_v47 = vld [vmem:[#allocation29_spill] sm:$0xff] }
 0x4eb   :  { %22381 = vst [vmem:[#allocation78_spill] sm:$0xff] %v19663_v3  ;;  %v19669_v23 = vadd.f32 %v13140_v13, %v8011_v6  ;;  %v8014_v6 = vadd.f32 %v22390_v11, %v22389_v19  ;;  %v12068_v13 = vcombine.low %v10411_v55, %v10414_v34  ;;  %v10426_v3 = vrot.slane %v10424_v25, 4  ;;  %v22407_v32 = vld [vmem:[#allocation127_spill] sm:$0xff] }
 0x4ec   :  { %v8454_v39 = vpop.f32.mrf.mxu1  ;;  %v8012_v29 = vadd.f32 %v22393_v17, %v22392_v47  ;;  %v12038_v34 = vrot.slane %v10168_v7, 9  ;;  %v12039_v11 = vrot.slane %v10169_v15, 9  ;;  %v13663_v47 = vld [vmem:[#allocation2 + $0x148] sm:$0xf]  ;;  %v22400_v7 = vld [vmem:[#allocation125_spill] sm:$0xff] }
 0x4ed   :  { %22384 = vst [vmem:[#allocation46_spill] sm:$0xff] %v19669_v23  ;;  %v19679_v51 = vadd.f32 %v8454_v39, %v8009_v35  ;;  %v12069_v23 = vcombine.low %v10418_v48, %v10421_v45  ;;  %v10433_v35 = vrot.slane %v10431_v4, 4  ;;  %v13661_v39 = vld [vmem:[#allocation2 + $0x134] sm:$0x1]  ;;  %v22397_v45 = vld [vmem:[#allocation124_spill] sm:$0xff] }
 0x4ee   :  { %v13143_v24 = vpop.f32.mrf.mxu1  ;;  %v10427_v55 = vrot.slane %v13661_v39, 5  ;;  %v8015_v19 = vadd.f32 %v22397_v45, %v22396_v31  ;;  %v19701_v39 = vpop.f32.mrf.mxu0  ;;  %v10425_v45 = vsel %vm16746_vm14, %v12038_v34, %v10424_v25 }
 0x4ef   :  { %22388 = vst [vmem:[#allocation17_spill] sm:$0xff] %v19679_v51  ;;  %v19685_v62 = vadd.f32 %v13143_v24, %v8014_v6  ;;  %v13662_v6 = vld [vmem:[#allocation2 + $0x140] sm:$0x1]  ;;  %22401 = vst [vmem:[#allocation102_spill] sm:$0xff] %v19701_v39 }
 0x4f0   :  { %13326 = vmatmul.mubr.bf16.gmra.mxu1 %v12068_v13  ;;  %v8467_v40 = vpop.f32.mrf.mxu1  ;;  %v10434_v48 = vrot.slane %v13662_v6, 5  ;;  %v10428_v17 = vsel %vm16746_vm14, %v10426_v3, %v10427_v55  ;;  %v10438_v13 = vrot.slane %v13663_v47, 5  ;;  %v22403_v3 = vld [vmem:[#allocation56_spill] sm:$0xff]  ;;  %v22404_v55 = vld [vmem:[#allocation126_spill] sm:$0xff]  ;;  %v10432_v47 = vsel %vm16746_vm14, %v12039_v11, %v10431_v4  ;;  %v19717_v25 = vpop.f32.mrf.mxu0 }
 0x4f1   :  { %22391 = vst [vmem:[#allocation80_spill] sm:$0xff] %v19685_v62  ;;  %13329 = vmatprep.mubr.bf16.mxu1 %v12069_v23  ;;  %v19691_v26 = vadd.f32 %v8467_v40, %v8012_v29  ;;  %v22399_v23 = vld [vmem:[#allocation14_spill] sm:$0xff]  ;;  %v13664_v40 = vld [vmem:[#allocation2 + $0x154] sm:$0xf]  ;;  %v22409_v11 = vld [vmem:[#allocation16_spill] sm:$0xff] }
 0x4f2   :  { %v13144_v24 = vpop.f32.mrf.mxu1  ;;  %v8013_v51 = vadd.f32 %v22400_v7, %v22399_v23  ;;  %v10435_v29 = vsel %vm16746_vm14, %v10433_v35, %v10434_v48  ;;  %v10445_v15 = vrot.slane %v13664_v40, 5  ;;  %v10170_v23 = vld [vmem:[#allocation2 + $0x144] sm:$0xe]  ;;  %v10171_v35 = vld [vmem:[#allocation2 + $0x150] sm:$0xe] }
 0x4f3   :  { %22395 = vst [vmem:[#allocation13_spill] sm:$0xff] %v19691_v26  ;;  %v19697_v62 = vadd.f32 %v13144_v24, %v8015_v19  ;;  %v8018_v19 = vadd.f32 %v22404_v55, %v22403_v3  ;;  %v12070_v24 = vcombine.low %v10425_v45, %v10428_v17  ;;  %v10440_v26 = vrot.slane %v10438_v13, 4  ;;  %v22406_v40 = vld [vmem:[#allocation57_spill] sm:$0xff] }
 0x4f4   :  { %v8470_v31 = vpop.f32.mrf.mxu1  ;;  %v8016_v39 = vadd.f32 %v22407_v32, %v22406_v40  ;;  %v12040_v17 = vrot.slane %v10170_v23, 9  ;;  %v12041_v55 = vrot.slane %v10171_v35, 9  ;;  %v13667_v40 = vld [vmem:[#allocation2 + $0x160] sm:$0xf] }
 0x4f5   :  { %22398 = vst [vmem:[#allocation82_spill] sm:$0xff] %v19697_v62  ;;  %v19707_v6 = vadd.f32 %v8470_v31, %v8013_v51  ;;  %v12071_v62 = vcombine.low %v10432_v47, %v10435_v29  ;;  %v10447_v51 = vrot.slane %v10445_v15, 4  ;;  %v13665_v31 = vld [vmem:[#allocation2 + $0x14c] sm:$0x1]  ;;  %v22410_v29 = vld [vmem:[#allocation128_spill] sm:$0xff]  ;;  %v22413_v23 = vld [vmem:[#allocation129_spill] sm:$0xff] }
 0x4f6   :  { %v13147_v7 = vpop.f32.mrf.mxu1  ;;  %v10441_v45 = vrot.slane %v13665_v31, 5  ;;  %v8019_v3 = vadd.f32 %v22410_v29, %v22409_v11  ;;  %v19729_v31 = vpop.f32.mrf.mxu0  ;;  %v10439_v29 = vsel %vm16746_vm14, %v12040_v17, %v10438_v13  ;;  %v22417_v13 = vld [vmem:[#allocation60_spill] sm:$0xff] }
 0x4f7   :  { %22402 = vst [vmem:[#allocation83_spill] sm:$0xff] %v19707_v6  ;;  %v19713_v48 = vadd.f32 %v13147_v7, %v8018_v19  ;;  %v13666_v19 = vld [vmem:[#allocation2 + $0x158] sm:$0x1] }
 0x4f8   :  { %13330 = vmatmul.mubr.bf16.gmra.mxu1 %v12070_v24  ;;  %v8483_v34 = vpop.f32.mrf.mxu1  ;;  %v10448_v47 = vrot.slane %v13666_v19, 5  ;;  %v10442_v32 = vsel %vm16746_vm14, %v10440_v26, %v10441_v45  ;;  %v10452_v24 = vrot.slane %v13667_v40, 5  ;;  %v22415_v26 = vld [vmem:[#allocation131_spill] sm:$0xff]  ;;  %v10446_v40 = vsel %vm16746_vm14, %v12041_v55, %v10445_v15 }
 0x4f9   :  { %22405 = vst [vmem:[#allocation105_spill] sm:$0xff] %v19713_v48  ;;  %13333 = vmatprep.mubr.bf16.mxu1 %v12071_v62  ;;  %v19719_v4 = vadd.f32 %v8483_v34, %v8016_v39  ;;  %v22412_v62 = vld [vmem:[#allocation18_spill] sm:$0xff]  ;;  %v8022_v45 = vadd.f32 %v22415_v26, %v19251_v20  ;;  %v22420_v55 = vld [vmem:[#allocation3_spill] sm:$0xff] }
 0x4fa   :  { %v13148_v7 = vpop.f32.mrf.mxu1  ;;  %v8017_v6 = vadd.f32 %v22413_v23, %v22412_v62  ;;  %v10449_v39 = vsel %vm16746_vm14, %v10447_v51, %v10448_v47  ;;  %v13668_v34 = vld [vmem:[#allocation2 + $0x16c] sm:$0xf]  ;;  %v10172_v51 = vld [vmem:[#allocation2 + $0x15c] sm:$0xe]  ;;  %v10454_v23 = vrot.slane %v10452_v24, 4 }
 0x4fb   :  { %22408 = vst [vmem:[#allocation84_spill] sm:$0xff] %v19719_v4  ;;  %v19725_v48 = vadd.f32 %v13148_v7, %v8019_v3  ;;  %v10459_v35 = vrot.slane %v13668_v34, 5  ;;  %v19741_v3 = vadd.f32 %v19645_v33, %v19595_v57  ;;  %v12072_v7 = vcombine.low %v10439_v29, %v10442_v32  ;;  %v10173_v34 = vld [vmem:[#allocation2 + $0x168] sm:$0xe]  ;;  %v13669_v32 = vld [vmem:[#allocation2 + $0x164] sm:$0x1] }
 0x4fc   :  { %v8486_v11 = vpop.f32.mrf.mxu1  ;;  %v12073_v62 = vcombine.low %v10446_v40, %v10449_v39  ;;  %v12042_v33 = vrot.slane %v10172_v51, 9  ;;  %v10455_v29 = vrot.slane %v13669_v32, 5  ;;  %v8023_v39 = vadd.f32 %v22420_v55, %v19273_v37  ;;  %v22422_v51 = vld [vmem:[#allocation134_spill] sm:$0xff]  ;;  %v13672_v37 = vld [vmem:[#allocation2 + $0x184] sm:$0xf] }
 0x4fd   :  { %22411 = vst [vmem:[#allocation108_spill] sm:$0xff] %v19725_v48  ;;  %v19735_v19 = vadd.f32 %v8486_v11, %v8017_v6  ;;  %v22418_v6 = vld [vmem:[#allocation133_spill] sm:$0xff]  ;;  %v19749_v11 = vpop.f32.mrf.mxu0  ;;  %v10461_v20 = vrot.slane %v10459_v35, 4  ;;  %v12043_v26 = vrot.slane %v10173_v34, 9  ;;  %v10473_v34 = vrot.slane %v13672_v37, 5  ;;  %v22427_v37 = vld [vmem:[#allocation42_spill] sm:$0xff] }
 0x4fe   :  { %v13151_v47 = vpop.f32.mrf.mxu1  ;;  %v8020_v17 = vadd.f32 %v22418_v6, %v22417_v13  ;;  %v10456_v13 = vsel %vm16746_vm14, %v10454_v23, %v10455_v29  ;;  %v13671_v6 = vld [vmem:[#allocation2 + $0x178] sm:$0xf]  ;;  %v10453_v55 = vsel %vm16746_vm14, %v12042_v33, %v10452_v24  ;;  %v22424_v23 = vld [vmem:[#allocation61_spill] sm:$0xff]  ;;  %v22425_v29 = vld [vmem:[#allocation135_spill] sm:$0xff] }
 0x4ff   :  { %22414 = vst [vmem:[#allocation85_spill] sm:$0xff] %v19735_v19  ;;  %v19745_v48 = vadd.f32 %v13151_v47, %v8022_v45  ;;  %v13670_v45 = vld [vmem:[#allocation2 + $0x170] sm:$0x1]  ;;  %v19761_v32 = vpop.f32.mrf.mxu0  ;;  %v22428_v19 = vld [vmem:[#allocation48_spill] sm:$0xff]  ;;  %v10475_v33 = vrot.slane %v10473_v34, 4 }
 0x500   :  { %13334 = vmatmul.mubr.bf16.gmra.mxu1 %v12072_v7  ;;  %v8499_v57 = vpop.f32.mrf.mxu1  ;;  %v10462_v40 = vrot.slane %v13670_v45, 5  ;;  %v10466_v7 = vrot.slane %v13671_v6, 5  ;;  %v10174_v6 = vld [vmem:[#allocation2 + $0x174] sm:$0xe]  ;;  %v8024_v4 = vadd.f32 %v22428_v19, %v22427_v37  ;;  %v13675_v37 = vld [vmem:[#allocation2 + $0x190] sm:$0xf] }
 0x501   :  { %22416 = vst [vmem:[#allocation4_spill] sm:$0xff] %v19745_v48  ;;  %13337 = vmatprep.mubr.bf16.mxu1 %v12073_v62  ;;  %v19751_v15 = vadd.f32 %v8499_v57, %v8020_v17  ;;  %v8021_v62 = vadd.f32 %v22422_v51, %v19286_v42  ;;  %v10460_v42 = vsel %vm16746_vm14, %v12043_v26, %v10459_v35  ;;  %v19777_v24 = vpop.f32.mrf.mxu0  ;;  %v22431_v26 = vld [vmem:[#allocation62_spill] sm:$0xff] }
 0x502   :  { %v13152_v47 = vpop.f32.mrf.mxu1  ;;  %v10463_v17 = vsel %vm16746_vm14, %v10461_v20, %v10462_v40  ;;  %v10175_v20 = vld [vmem:[#allocation2 + $0x180] sm:$0xe]  ;;  %22429 = vst [vmem:[#allocation90_spill] sm:$0xff] %v19777_v24  ;;  %v22441_v24 = vld [vmem:[#allocation140_spill] sm:$0xff] }
 0x503   :  { %22419 = vst [vmem:[#allocation87_spill] sm:$0xff] %v19751_v15  ;;  %v19757_v48 = vadd.f32 %v13152_v47, %v8023_v39  ;;  %v8026_v39 = vadd.f32 %v22425_v29, %v22424_v23  ;;  %v12074_v47 = vcombine.low %v10453_v55, %v10456_v13  ;;  %v10468_v15 = vrot.slane %v10466_v7, 4 }
 0x504   :  { %v8502_v57 = vpop.f32.mrf.mxu1  ;;  %v12044_v13 = vrot.slane %v10174_v6, 9  ;;  %v12045_v29 = vrot.slane %v10175_v20, 9  ;;  %v22435_v6 = vld [vmem:[#allocation138_spill] sm:$0xff] }
 0x505   :  { %22421 = vst [vmem:[#allocation110_spill] sm:$0xff] %v19757_v48  ;;  %v19767_v45 = vadd.f32 %v8502_v57, %v8021_v62  ;;  %v12075_v48 = vcombine.low %v10460_v42, %v10463_v17  ;;  %v13673_v57 = vld [vmem:[#allocation2 + $0x17c] sm:$0x1] }
 0x506   :  { %v13155_v51 = vpop.f32.mrf.mxu1  ;;  %v10469_v55 = vrot.slane %v13673_v57, 5  ;;  %v22432_v17 = vld [vmem:[#allocation136_spill] sm:$0xff]  ;;  %v19789_v57 = vpop.f32.mrf.mxu0 }
 0x507   :  { %22423 = vst [vmem:[#allocation88_spill] sm:$0xff] %v19767_v45  ;;  %v19773_v40 = vadd.f32 %v13155_v51, %v8026_v39  ;;  %v8027_v23 = vadd.f32 %v22432_v17, %v22431_v26  ;;  %v13674_v39 = vld [vmem:[#allocation2 + $0x188] sm:$0x1]  ;;  %22436 = vst [vmem:[#allocation93_spill] sm:$0xff] %v19789_v57  ;;  %v10467_v17 = vsel %vm16746_vm14, %v12044_v13, %v10466_v7 }
 0x508   :  { %13338 = vmatmul.mubr.bf16.gmra.mxu1 %v12074_v47  ;;  %v8515_v62 = vpop.f32.mrf.mxu1  ;;  %v10476_v42 = vrot.slane %v13674_v39, 5  ;;  %v10470_v19 = vsel %vm16746_vm14, %v10468_v15, %v10469_v55  ;;  %v10480_v47 = vrot.slane %v13675_v37, 5  ;;  %v10176_v39 = vld [vmem:[#allocation2 + $0x18c] sm:$0xe]  ;;  %v22437_v55 = vld [vmem:[#allocation45_spill] sm:$0xff]  ;;  %v19805_v7 = vpop.f32.mrf.mxu0 }
 0x509   :  { %22426 = vst [vmem:[#allocation112_spill] sm:$0xff] %v19773_v40  ;;  %13341 = vmatprep.mubr.bf16.mxu1 %v12075_v48  ;;  %v19779_v35 = vadd.f32 %v8515_v62, %v8024_v4  ;;  %v22434_v48 = vld [vmem:[#allocation63_spill] sm:$0xff]  ;;  %v13676_v62 = vld [vmem:[#allocation2 + $0x19c] sm:$0xf]  ;;  %v12076_v37 = vcombine.low %v10467_v17, %v10470_v19 }
 0x50a   :  { %v13156_v51 = vpop.f32.mrf.mxu1  ;;  %v8025_v45 = vadd.f32 %v22435_v6, %v22434_v48  ;;  %v10477_v4 = vsel %vm16746_vm14, %v10475_v33, %v10476_v42  ;;  %v10487_v20 = vrot.slane %v13676_v62, 5  ;;  %v10474_v48 = vsel %vm16746_vm14, %v12045_v29, %v10473_v34  ;;  %v10177_v33 = vld [vmem:[#allocation2 + $0x198] sm:$0xe]  ;;  %v22440_v62 = vld [vmem:[#allocation21_spill] sm:$0xff]  ;;  %v13677_v19 = vld [vmem:[#allocation2 + $0x194] sm:$0x1] }
 0x50b   :  { %22430 = vst [vmem:[#allocation91_spill] sm:$0xff] %v19779_v35  ;;  %v19785_v40 = vadd.f32 %v13156_v51, %v8027_v23  ;;  %v22438_v23 = vld [vmem:[#allocation50_spill] sm:$0xff]  ;;  %v10482_v35 = vrot.slane %v10480_v47, 4  ;;  %v8028_v57 = vadd.f32 %v22441_v24, %v22440_v62  ;;  %v10483_v17 = vrot.slane %v13677_v19, 5  ;;  %v22442_v34 = vld [vmem:[#allocation43_spill] sm:$0xff] }
 0x50c   :  { %v8518_v26 = vpop.f32.mrf.mxu1  ;;  %v8030_v51 = vadd.f32 %v22438_v23, %v22437_v55  ;;  %v10489_v13 = vrot.slane %v10487_v20, 4  ;;  %v10178_v55 = vld [vmem:[#allocation2 + $0x1a4] sm:$0xe]  ;;  %v10494_v29 = vrot.slane %v22442_v34, 5  ;;  %v22444_v23 = vld [vmem:[#allocation35_spill] sm:$0xff] }
 0x50d   :  { %22433 = vst [vmem:[#allocation92_spill] sm:$0xff] %v19785_v40  ;;  %v19795_v15 = vadd.f32 %v8518_v26, %v8025_v45  ;;  %v12077_v40 = vcombine.low %v10474_v48, %v10477_v4  ;;  %v12046_v45 = vrot.slane %v10176_v39, 9  ;;  %v12047_v48 = vrot.slane %v10177_v33, 9 }
 0x50e   :  { %v13159_v6 = vpop.f32.mrf.mxu1  ;;  %v10484_v39 = vsel %vm16746_vm14, %v10482_v35, %v10483_v17  ;;  %v12048_v33 = vrot.slane %v10178_v55, 9  ;;  %v10496_v34 = vrot.slane %v10494_v29, 4  ;;  %v22446_v35 = vld [vmem:[#allocation36_spill] sm:$0xff] }
 0x50f   :  { %v19801_v42 = vadd.f32 %v13159_v6, %v8030_v51  ;;  %v8031_v51 = vadd.f32 %v22444_v23, %v19345_v44  ;;  %v13678_v6 = vld [vmem:[#allocation2 + $0x1a0] sm:$0x1]  ;;  %v13679_v23 = vld [vmem:[#allocation2 + $0x1ac] sm:$0x1]  ;;  %v8034_v17 = vadd.f32 %v22446_v35, %v19351_v18 }
 0x510   :  { %13342 = vmatmul.mubr.bf16.gmra.mxu1 %v12076_v37  ;;  %v8531_v26 = vpop.f32.mrf.mxu1  ;;  %v10490_v24 = vrot.slane %v13678_v6, 5  ;;  %v10497_v6 = vrot.slane %v13679_v23, 5 }
 0x511   :  { %22439 = vst [vmem:[#allocation94_spill] sm:$0xff] %v19801_v42  ;;  %13345 = vmatprep.mubr.bf16.mxu1 %v12077_v40  ;;  %v19808_v4 = vadd.f32 %v8531_v26, %v8028_v57  ;;  %v22445_v40 = vld [vmem:[#allocation52_spill] sm:$0xff]  ;;  %v19818_v42 = vpop.f32.mrf.mxu0  ;;  %v10481_v57 = vsel %vm16746_vm14, %v12046_v45, %v10480_v47  ;;  %v22447_v45 = vld [vmem:[#allocation34_spill] sm:$0xff] }
 0x512   :  { %v13160_v62 = vpop.f32.mrf.mxu1  ;;  %v8029_v19 = vadd.f32 %v22445_v40, %v19348_v1  ;;  %v10491_v44 = vsel %vm16746_vm14, %v10489_v13, %v10490_v24  ;;  %v10488_v1 = vsel %vm16746_vm14, %v12047_v48, %v10487_v20  ;;  %v8032_v13 = vadd.f32 %v22447_v45, %v19370_v0  ;;  %v22448_v20 = vld [vmem:[#allocation141_spill] sm:$0xff] }
 0x513   :  { %22443 = vst [vmem:[#allocation96_spill] sm:$0xff] %v19808_v4  ;;  %v19814_v37 = vadd.f32 %v13160_v62, %v8031_v51  ;;  %v12078_v51 = vcombine.low %v10481_v57, %v10484_v39  ;;  %v12079_v40 = vcombine.low %v10488_v1, %v10491_v44  ;;  %v19834_v55 = vpop.f32.mrf.mxu0  ;;  %v10498_v18 = vsel %vm16746_vm14, %v10496_v34, %v10497_v6  ;;  %v22449_v0 = vld [vmem:[#allocation37_spill] sm:$0xff] }
 0x514   :  { %v8534_v26 = vpop.f32.mrf.mxu1  ;;  %v8035_v48 = vadd.f32 %v22448_v20, %v19383_v60  ;;  %v22451_v60 = vld [vmem:[#allocation39_spill] sm:$0xff] }
 0x515   :  { %v19824_v4 = vadd.f32 %v8534_v26, %v8029_v19  ;;  %v10495_v19 = vsel %vm16746_vm14, %v12048_v33, %v10494_v29  ;;  %v8033_v26 = vadd.f32 %v22449_v0, %v19386_v58  ;;  %v19848_v23 = vpop.f32.mrf.mxu0  ;;  %v8038_v29 = vadd.f32 %v22450_v53, %v19393_v8  ;;  %v22454_v8 = vld [vmem:[#allocation24_spill] sm:$0xff]  ;;  %v22456_v0 = vld [vmem:[#allocation15_spill] sm:$0xff]  ;;  %v22457_v53 = vld [vmem:[#allocation58_spill] sm:$0xff] }
 0x516   :  { %v13163_v62 = vpop.f32.mrf.mxu1  ;;  %v12080_v35 = vcombine.low %v10495_v19, %v10498_v18  ;;  %v8036_v6 = vadd.f32 %v22451_v60, %v19408_v56  ;;  %v22453_v19 = vld [vmem:[#allocation66_spill] sm:$0xff] }
 0x517   :  { %v19830_v47 = vadd.f32 %v13163_v62, %v8034_v17  ;;  %v19858_v1 = vpop.f32.mrf.mxu0  ;;  %v8037_v18 = vadd.f32 %v22454_v8, %v22453_v19  ;;  %v22455_v56 = vld [vmem:[#allocation30_spill] sm:$0xff] }
 0x518   :  { %13346 = vmatmul.mubr.bf16.gmra.mxu1 %v12078_v51  ;;  %v8547_v24 = vpop.f32.mrf.mxu1  ;;  %v22461_v19 = vld [vmem:[#allocation22_spill] sm:$0xff] }
 0x519   :  { %13349 = vmatprep.mubr.bf16.mxu1 %v12079_v40  ;;  %v19840_v39 = vadd.f32 %v8547_v24, %v8032_v13  ;;  %v22452_v40 = vld [vmem:[#allocation40_spill] sm:$0xff]  ;;  %v19868_v20 = vpop.f32.mrf.mxu0 }
 0x51a   :  { %v13164_v57 = vpop.f32.mrf.mxu1  ;;  %v8039_v45 = vadd.f32 %v22452_v40, %v19415_v36  ;;  %v8040_v36 = vadd.f32 %v22457_v53, %v19440_v50  ;;  %v22462_v50 = vld [vmem:[#allocation68_spill] sm:$0xff] }
 0x51b   :  { %v19844_v44 = vadd.f32 %v13164_v57, %v8035_v48 }
 0x51c   :  { %v8550_v17 = vpop.f32.mrf.mxu1 }
 0x51d   :  { %v19850_v51 = vadd.f32 %v8550_v17, %v8033_v26  ;;  %v8042_v26 = vadd.f32 %v22456_v0, %v22455_v56  ;;  %v22463_v0 = vld [vmem:[#allocation19_spill] sm:$0xff] }
 0x51e   :  { %v13167_v33 = vpop.f32.mrf.mxu1 }
 0x51f   :  { %v19854_v34 = vadd.f32 %v13167_v33, %v8038_v29  ;;  %v19878_v29 = vpop.f32.mrf.mxu0 }
 0x520   :  { %13350 = vmatmul.mubr.bf16.gmra.mxu1 %v12080_v35  ;;  %v8563_v62 = vpop.f32.mrf.mxu1 }
 0x521   :  { %v19860_v58 = vadd.f32 %v8563_v62, %v8036_v6  ;;  %v22458_v6 = vld [vmem:[#allocation59_spill] sm:$0xff] }
 0x522   :  { %v13168_v13 = vpop.f32.mrf.mxu1  ;;  %v8043_v62 = vadd.f32 %v22458_v6, %v19443_v2 }
 0x523   :  { %v19864_v24 = vadd.f32 %v13168_v13, %v8039_v45  ;;  %v22460_v13 = vld [vmem:[#allocation5_spill] sm:$0xff] }
 0x524   :  { %v8566_v48 = vpop.f32.mrf.mxu1  ;;  %v8041_v8 = vadd.f32 %v22461_v19, %v22460_v13 }
 0x525   :  { %v19870_v57 = vadd.f32 %v8566_v48, %v8037_v18  ;;  %v19888_v18 = vpop.f32.mrf.mxu0 }
 0x526   :  { %v13171_v35 = vpop.f32.mrf.mxu1 }
 0x527   :  { %v19874_v17 = vadd.f32 %v13171_v35, %v8042_v26  ;;  %v8046_v26 = vadd.f32 %v22463_v0, %v22462_v50 }
 0x528   :  { %v8579_v33 = vpop.f32.mrf.mxu1 }
 0x529   :  { %v19880_v60 = vadd.f32 %v8579_v33, %v8040_v36  ;;  %v22465_v36 = vld [vmem:[#allocation64_spill] sm:$0xff]  ;;  %v19898_v33 = vpop.f32.mrf.mxu0 }
 0x52a   :  { %v13172_v40 = vpop.f32.mrf.mxu1  ;;  %v8044_v2 = vadd.f32 %v22465_v36, %v19474_v41  ;;  %v22471_v41 = vld [vmem:[#allocation41_spill] sm:$0xff] }
 0x52b   :  { %v19884_v45 = vadd.f32 %v13172_v40, %v8043_v62  ;;  %v22467_v40 = vld [vmem:[#allocation65_spill] sm:$0xff]  ;;  %v19908_v0 = vpop.f32.mrf.mxu0  ;;  %v8050_v36 = vadd.f32 %v22471_v41, %v19485_v5 }
 0x52c   :  { %v8582_v48 = vpop.f32.mrf.mxu1  ;;  %v8047_v13 = vadd.f32 %v22467_v40, %v19477_v27 }
 0x52d   :  { %22459 = vst [vmem:[#allocation97_spill] sm:$0xff] %v19884_v45  ;;  %v19890_v56 = vadd.f32 %v8582_v48, %v8041_v8  ;;  %v22469_v48 = vld [vmem:[#allocation26_spill] sm:$0xff]  ;;  %v19918_v40 = vpop.f32.mrf.mxu0 }
 0x52e   :  { %v13175_v35 = vpop.f32.mrf.mxu1  ;;  %v8045_v50 = vadd.f32 %v22469_v48, %v19480_v16  ;;  %v22475_v16 = vld [vmem:[#allocation67_spill] sm:$0xff] }
 0x52f   :  { %v19894_v53 = vadd.f32 %v13175_v35, %v8046_v26  ;;  %v8051_v48 = vadd.f32 %v22475_v16, %v19505_v28  ;;  %v19928_v41 = vpop.f32.mrf.mxu0  ;;  %v8052_v28 = vadd.f32 %v19499_v54, %v19528_v49  ;;  %v8058_v54 = vadd.f32 %v19557_v14, %v19537_v10 }
 0x530   :  { %v8595_v6 = vpop.f32.mrf.mxu1 }
 0x531   :  { %22464 = vst [vmem:[#allocation8_spill] sm:$0xff] %v19894_v53  ;;  %v19900_v62 = vadd.f32 %v8595_v6, %v8044_v2  ;;  %v22473_v6 = vld [vmem:[#allocation12_spill] sm:$0xff] }
 0x532   :  { %v13176_v19 = vpop.f32.mrf.mxu1  ;;  %v8048_v27 = vadd.f32 %v22473_v6, %v19502_v46  ;;  %v8054_v46 = vadd.f32 %v19482_v38, %v19513_v63  ;;  %v8053_v38 = vadd.f32 %v19541_v30, %v19535_v59  ;;  %v8059_v59 = vadd.f32 %v19577_v12, %v19555_v43 }
 0x533   :  { %22466 = vst [vmem:[#allocation122_spill] sm:$0xff] %v19900_v62  ;;  %v19904_v8 = vadd.f32 %v13176_v19, %v8047_v13 }
 0x534   :  { %v8598_v26 = vpop.f32.mrf.mxu1 }
 0x535   :  { %22468 = vst [vmem:[#allocation98_spill] sm:$0xff] %v19904_v8  ;;  %v19910_v35 = vadd.f32 %v8598_v26, %v8045_v50  ;;  %v22477_v26 = vld [vmem:[#allocation7_spill] sm:$0xff] }
 0x536   :  { %v13179_v53 = vpop.f32.mrf.mxu1  ;;  %v8049_v5 = vadd.f32 %v22477_v26, %v19510_v22  ;;  %v22481_v22 = vld [vmem:[#allocation69_spill] sm:$0xff] }
 0x537   :  { %22470 = vst [vmem:[#allocation99_spill] sm:$0xff] %v19910_v35  ;;  %v19914_v2 = vadd.f32 %v13179_v53, %v8050_v36  ;;  %v22510_v35 = vld [vmem:[#allocation75_spill] sm:$0xff] }
 0x538   :  { %v8611_v13 = vpop.f32.mrf.mxu1  ;;  %v10087_v62 = vadd.f32 %v19729_v31, %v22510_v35  ;;  %v22513_v35 = vld [vmem:[#allocation74_spill] sm:$0xff] }
 0x539   :  { %22472 = vst [vmem:[#allocation100_spill] sm:$0xff] %v19914_v2  ;;  %v19920_v19 = vadd.f32 %v8611_v13, %v8048_v27  ;;  %v19938_v13 = vpop.f32.mrf.mxu0 }
 0x53a   :  { %v13180_v8 = vpop.f32.mrf.mxu1 }
 0x53b   :  { %22474 = vst [vmem:[#allocation101_spill] sm:$0xff] %v19920_v19  ;;  %v19924_v50 = vadd.f32 %v13180_v8, %v8051_v48  ;;  %v8055_v48 = vadd.f32 %v22481_v22, %v19531_v21  ;;  %v19948_v63 = vpop.f32.mrf.mxu0  ;;  %v8056_v21 = vadd.f32 %v19563_v52, %v19553_v9  ;;  %v22489_v9 = vld [vmem:[#allocation20_spill] sm:$0xff]  ;;  %v22490_v52 = vld [vmem:[#allocation89_spill] sm:$0xff] }
 0x53c   :  { %v8614_v53 = vpop.f32.mrf.mxu1 }
 0x53d   :  { %22476 = vst [vmem:[#allocation47_spill] sm:$0xff] %v19924_v50  ;;  %v19930_v36 = vadd.f32 %v8614_v53, %v8049_v5  ;;  %v22507_v50 = vld [vmem:[#allocation6_spill] sm:$0xff] }
 0x53e   :  { %v13183_v6 = vpop.f32.mrf.mxu1 }
 0x53f   :  { %22478 = vst [vmem:[#allocation103_spill] sm:$0xff] %v19930_v36  ;;  %v19934_v27 = vadd.f32 %v13183_v6, %v8054_v46  ;;  %v22508_v36 = vld [vmem:[#allocation81_spill] sm:$0xff] }
 0x540   :  { %v8627_v8 = vpop.f32.mrf.mxu1  ;;  %v10086_v2 = vadd.f32 %v22508_v36, %v22507_v50 }
 0x541   :  { %22479 = vst [vmem:[#allocation130_spill] sm:$0xff] %v19934_v27  ;;  %v19940_v16 = vadd.f32 %v8627_v8, %v8052_v28  ;;  %v19958_v28 = vpop.f32.mrf.mxu0 }
 0x542   :  { %v13184_v26 = vpop.f32.mrf.mxu1 }
 0x543   :  { %22480 = vst [vmem:[#allocation104_spill] sm:$0xff] %v19940_v16  ;;  %v19944_v5 = vadd.f32 %v13184_v26, %v8055_v48  ;;  %v22487_v26 = vld [vmem:[#allocation86_spill] sm:$0xff]  ;;  %v19968_v14 = vpop.f32.mrf.mxu0 }
 0x544   :  { %v8630_v53 = vpop.f32.mrf.mxu1  ;;  %v8057_v10 = vadd.f32 %v22487_v26, %v19559_v61  ;;  %v22495_v61 = vld [vmem:[#allocation70_spill] sm:$0xff]  ;;  %v22496_v26 = vld [vmem:[#allocation25_spill] sm:$0xff] }
 0x545   :  { %22482 = vst [vmem:[#allocation132_spill] sm:$0xff] %v19944_v5  ;;  %v19950_v46 = vadd.f32 %v8630_v53, %v8053_v38  ;;  %v19978_v12 = vpop.f32.mrf.mxu0  ;;  %v22505_v5 = vld [vmem:[#allocation102_spill] sm:$0xff] }
 0x546   :  { %v13187_v49 = vpop.f32.mrf.mxu1 }
 0x547   :  { %22483 = vst [vmem:[#allocation106_spill] sm:$0xff] %v19950_v46  ;;  %v19954_v6 = vadd.f32 %v13187_v49, %v8058_v54  ;;  %v8062_v54 = vadd.f32 %v22490_v52, %v22489_v9 }
 0x548   :  { %v8643_v8 = vpop.f32.mrf.mxu1 }
 0x549   :  { %22484 = vst [vmem:[#allocation107_spill] sm:$0xff] %v19954_v6  ;;  %v19960_v22 = vadd.f32 %v8643_v8, %v8056_v21  ;;  %v22492_v8 = vld [vmem:[#allocation27_spill] sm:$0xff]  ;;  %v22493_v6 = vld [vmem:[#allocation73_spill] sm:$0xff] }
 0x54a   :  { %v13188_v30 = vpop.f32.mrf.mxu1  ;;  %v8060_v43 = vadd.f32 %v22493_v6, %v22492_v8 }
 0x54b   :  { %22485 = vst [vmem:[#allocation109_spill] sm:$0xff] %v19960_v22  ;;  %v19964_v48 = vadd.f32 %v13188_v30, %v8059_v59 }
 0x54c   :  { %v8646_v38 = vpop.f32.mrf.mxu1 }
 0x54d   :  { %22486 = vst [vmem:[#allocation49_spill] sm:$0xff] %v19964_v48  ;;  %v19970_v53 = vadd.f32 %v8646_v38, %v8057_v10  ;;  %v8063_v48 = vadd.f32 %v22496_v26, %v22495_v61  ;;  %v19986_v38 = vpop.f32.mrf.mxu0 }
 0x54e   :  { %v13191_v49 = vpop.f32.mrf.mxu1 }
 0x54f   :  { %22488 = vst [vmem:[#allocation111_spill] sm:$0xff] %v19970_v53  ;;  %v19974_v21 = vadd.f32 %v13191_v49, %v8062_v54  ;;  %v19991_v54 = vpop.f32.mrf.mxu0  ;;  %v22504_v53 = vld [vmem:[#allocation23_spill] sm:$0xff] }
 0x550   :  { %v8659_v59 = vpop.f32.mrf.mxu1  ;;  %v10084_v46 = vadd.f32 %v22505_v5, %v22504_v53 }
 0x551   :  { %22491 = vst [vmem:[#allocation137_spill] sm:$0xff] %v19974_v21  ;;  %v19980_v30 = vadd.f32 %v8659_v59, %v8060_v43  ;;  %v19993_v6 = vpop.f32.mrf.mxu0 }
 0x552   :  { %v13192_v22 = vpop.f32.mrf.mxu1 }
 0x553   :  { %22494 = vst [vmem:[#allocation113_spill] sm:$0xff] %v19980_v30  ;;  %v19984_v10 = vadd.f32 %v13192_v22, %v8063_v48  ;;  %v19995_v49 = vpop.f32.mrf.mxu0  ;;  %v22499_v22 = vld [vmem:[#allocation72_spill] sm:$0xff]  ;;  %v22500_v48 = vld [vmem:[#allocation79_spill] sm:$0xff] }
 0x554   :  { %v8662_v9 = vpop.f32.mrf.mxu1  ;;  %v10083_v26 = vadd.f32 %v22500_v48, %v22499_v22 }
 0x555   :  { %22497 = vst [vmem:[#allocation139_spill] sm:$0xff] %v19984_v10  ;;  %v19989_v52 = vadd.f32 %v8662_v9, %v19741_v3  ;;  %v19997_v8 = vpop.f32.mrf.mxu0  ;;  %v22501_v3 = vld [vmem:[#allocation71_spill] sm:$0xff]  ;;  %v22502_v9 = vld [vmem:[#allocation10_spill] sm:$0xff] }
 0x557   :  { %22498 = vst [vmem:[#allocation114_spill] sm:$0xff] %v19989_v52  ;;  %v19999_v43 = vpop.f32.mrf.mxu0  ;;  %v10085_v52 = vadd.f32 %v22502_v9, %v22501_v3 }
 0x559   :  { %v20003_v10 = vpop.f32.mrf.mxu0 }
 0x55b   :  { %v20017_v22 = vpop.f32.mrf.mxu0 }
 0x55d   :  { %v20034_v31 = vpop.f32.mrf.mxu0 }
 0x568   :  { %v13291_v59 = vpop.f32.mrf.mxu1 }
 0x569   :  { %v20011_v16 = vadd.f32 %v13291_v59, %v10085_v52 }
 0x56a   :  { %v10725_v61 = vpop.f32.mrf.mxu1 }
 0x56b   :  { %v20007_v30 = vadd.f32 %v10725_v61, %v10083_v26  ;;  %22506 = vst [vmem:[#allocation115_spill] sm:$0xff] %v20011_v16  ;;  %v11116_v36 = vmul.f32 %v20011_v16, %v20011_v16 }
 0x56c   :  { %v13292_v21 = vpop.f32.mrf.mxu1 }
 0x56d   :  { %22503 = vst [vmem:[#allocation51_spill] sm:$0xff] %v20007_v30  ;;  %v11114_v61 = vmul.f32 %v20007_v30, %v20007_v30  ;;  %v20023_v26 = vadd.f32 %v13292_v21, %v10086_v2  ;;  %v10089_v2 = vadd.f32 %v19717_v25, %v22513_v35 }
 0x56e   :  { %v10728_v27 = vpop.f32.mrf.mxu1 }
 0x56f   :  { %v20015_v19 = vadd.f32 %v10728_v27, %v10084_v46  ;;  %22511 = vst [vmem:[#allocation116_spill] sm:$0xff] %v20023_v26  ;;  %v11117_v59 = vmul.f32 %v20023_v26, %v20023_v26 }
 0x570   :  { %v13295_v48 = vpop.f32.mrf.mxu1 }
 0x571   :  { %22509 = vst [vmem:[#allocation33_spill] sm:$0xff] %v20015_v19  ;;  %v11044_v5 = vadd.f32 %v20015_v19, %v20007_v30  ;;  %v11115_v53 = vmul.f32 %v20015_v19, %v20015_v19  ;;  %v22514_v19 = vld [vmem:[#allocation76_spill] sm:$0xff]  ;;  %v20043_v45 = vadd.f32 %v13295_v48, %v10089_v2 }
 0x572   :  { %v10741_v50 = vpop.f32.mrf.mxu1  ;;  %v10088_v30 = vadd.f32 %v19761_v32, %v22514_v19 }
 0x573   :  { %v11045_v27 = vadd.f32 %v11044_v5, %v20011_v16  ;;  %v11178_v46 = vadd.f32 %v11115_v53, %v11114_v61  ;;  %v20032_v52 = vadd.f32 %v10741_v50, %v10087_v62  ;;  %v22515_v61 = vld [vmem:[#allocation95_spill] sm:$0xff] }
 0x574   :  { %v13296_v21 = vpop.f32.mrf.mxu1  ;;  %v10090_v62 = vadd.f32 %v19749_v11, %v22515_v61 }
 0x575   :  { %22512 = vst [vmem:[#allocation53_spill] sm:$0xff] %v20032_v52  ;;  %v11179_v3 = vadd.f32 %v11178_v46, %v11116_v36  ;;  %v11046_v9 = vadd.f32 %v11045_v27, %v20023_v26  ;;  %v11118_v25 = vmul.f32 %v20032_v52, %v20032_v52  ;;  %v20052_v36 = vpop.f32.mrf.mxu0  ;;  %v22517_v46 = vld [vmem:[#allocation78_spill] sm:$0xff]  ;;  %v22518_v26 = vld [vmem:[#allocation93_spill] sm:$0xff] }
 0x576   :  { %v10744_v5 = vpop.f32.mrf.mxu1  ;;  %v10091_v32 = vadd.f32 %v22518_v26, %v22517_v46  ;;  %v20056_v48 = vadd.f32 %v13296_v21, %v10090_v62  ;;  %v22520_v26 = vld [vmem:[#allocation77_spill] sm:$0xff] }
 0x577   :  { %v11047_v53 = vadd.f32 %v11046_v9, %v20032_v52  ;;  %v11180_v50 = vadd.f32 %v11179_v3, %v11117_v59  ;;  %v20050_v35 = vadd.f32 %v10744_v5, %v10088_v30  ;;  %v11120_v59 = vmul.f32 %v20043_v45, %v20043_v45  ;;  %v20066_v5 = vpop.f32.mrf.mxu0 }
 0x578   :  { %v13299_v27 = vpop.f32.mrf.mxu1 }
 0x579   :  { %22516 = vst [vmem:[#allocation117_spill] sm:$0xff] %v20050_v35  ;;  %v11181_v19 = vadd.f32 %v11180_v50, %v11118_v25  ;;  %v11048_v11 = vadd.f32 %v11047_v53, %v20050_v35  ;;  %v11119_v2 = vmul.f32 %v20050_v35, %v20050_v35  ;;  %v22521_v25 = vld [vmem:[#allocation90_spill] sm:$0xff]  ;;  %v11121_v53 = vmul.f32 %v20056_v48, %v20056_v48  ;;  %v22522_v35 = vld [vmem:[#allocation17_spill] sm:$0xff] }
 0x57a   :  { %v10757_v9 = vpop.f32.mrf.mxu1  ;;  %v10093_v21 = vadd.f32 %v22521_v25, %v22520_v26  ;;  %v10092_v52 = vadd.f32 %v19818_v42, %v22522_v35 }
 0x57b   :  { %v11049_v30 = vadd.f32 %v11048_v11, %v20043_v45  ;;  %v11182_v3 = vadd.f32 %v11181_v19, %v11119_v2  ;;  %v20064_v61 = vadd.f32 %v10757_v9, %v10091_v32  ;;  %v22523_v19 = vld [vmem:[#allocation46_spill] sm:$0xff] }
 0x57c   :  { %v13300_v62 = vpop.f32.mrf.mxu1  ;;  %v20075_v16 = vadd.f32 %v13299_v27, %v10093_v21  ;;  %v10094_v32 = vadd.f32 %v19805_v7, %v22523_v19 }
 0x57d   :  { %22519 = vst [vmem:[#allocation54_spill] sm:$0xff] %v20064_v61  ;;  %v11183_v50 = vadd.f32 %v11182_v3, %v11120_v59  ;;  %v11050_v46 = vadd.f32 %v11049_v30, %v20056_v48  ;;  %v11122_v9 = vmul.f32 %v20064_v61, %v20064_v61  ;;  %v20084_v59 = vpop.f32.mrf.mxu0  ;;  %v22525_v3 = vld [vmem:[#allocation13_spill] sm:$0xff] }
 0x57e   :  { %v10760_v11 = vpop.f32.mrf.mxu1  ;;  %v10095_v42 = vadd.f32 %v19848_v23, %v22525_v3  ;;  %v20088_v27 = vadd.f32 %v13300_v62, %v10094_v32  ;;  %v22527_v23 = vld [vmem:[#allocation80_spill] sm:$0xff]  ;;  %v22528_v3 = vld [vmem:[#allocation83_spill] sm:$0xff] }
 0x57f   :  { %v11051_v2 = vadd.f32 %v11050_v46, %v20064_v61  ;;  %v11184_v26 = vadd.f32 %v11183_v50, %v11121_v53  ;;  %v20082_v25 = vadd.f32 %v10760_v11, %v10092_v52  ;;  %v11124_v53 = vmul.f32 %v20075_v16, %v20075_v16  ;;  %v20098_v11 = vpop.f32.mrf.mxu0 }
 0x580   :  { %v13303_v30 = vpop.f32.mrf.mxu1  ;;  %v10097_v62 = vadd.f32 %v19834_v55, %v22527_v23 }
 0x581   :  { %22524 = vst [vmem:[#allocation118_spill] sm:$0xff] %v20082_v25  ;;  %v11185_v35 = vadd.f32 %v11184_v26, %v11122_v9  ;;  %v11052_v7 = vadd.f32 %v11051_v2, %v20082_v25  ;;  %v11123_v21 = vmul.f32 %v20082_v25, %v20082_v25  ;;  %v11125_v2 = vmul.f32 %v20088_v27, %v20088_v27 }
 0x582   :  { %v10773_v46 = vpop.f32.mrf.mxu1  ;;  %v10096_v25 = vadd.f32 %v19868_v20, %v22528_v3  ;;  %v20107_v61 = vadd.f32 %v13303_v30, %v10097_v62 }
 0x583   :  { %v11053_v52 = vadd.f32 %v11052_v7, %v20075_v16  ;;  %v11186_v50 = vadd.f32 %v11185_v35, %v11123_v21  ;;  %v20096_v19 = vadd.f32 %v10773_v46, %v10095_v42  ;;  %v22529_v35 = vld [vmem:[#allocation82_spill] sm:$0xff] }
 0x584   :  { %v13304_v32 = vpop.f32.mrf.mxu1  ;;  %v10098_v42 = vadd.f32 %v19858_v1, %v22529_v35 }
 0x585   :  { %22526 = vst [vmem:[#allocation55_spill] sm:$0xff] %v20096_v19  ;;  %v11187_v9 = vadd.f32 %v11186_v50, %v11124_v53  ;;  %v11054_v26 = vadd.f32 %v11053_v52, %v20088_v27  ;;  %v11126_v55 = vmul.f32 %v20096_v19, %v20096_v19  ;;  %v20116_v53 = vpop.f32.mrf.mxu0  ;;  %v22531_v50 = vld [vmem:[#allocation84_spill] sm:$0xff] }
 0x586   :  { %v10776_v7 = vpop.f32.mrf.mxu1  ;;  %v10099_v20 = vadd.f32 %v19888_v18, %v22531_v50  ;;  %v20120_v62 = vadd.f32 %v13304_v32, %v10098_v42  ;;  %v22533_v18 = vld [vmem:[#allocation105_spill] sm:$0xff] }
 0x587   :  { %v11055_v21 = vadd.f32 %v11054_v26, %v20096_v19  ;;  %v11188_v46 = vadd.f32 %v11187_v9, %v11125_v2  ;;  %v20114_v23 = vadd.f32 %v10776_v7, %v10096_v25  ;;  %v11128_v2 = vmul.f32 %v20107_v61, %v20107_v61  ;;  %v20130_v7 = vpop.f32.mrf.mxu0  ;;  %v22534_v50 = vld [vmem:[#allocation85_spill] sm:$0xff] }
 0x588   :  { %v13307_v52 = vpop.f32.mrf.mxu1  ;;  %v10101_v32 = vadd.f32 %v19878_v29, %v22533_v18 }
 0x589   :  { %22530 = vst [vmem:[#allocation119_spill] sm:$0xff] %v20114_v23  ;;  %v11189_v30 = vadd.f32 %v11188_v46, %v11126_v55  ;;  %v11056_v1 = vadd.f32 %v11055_v21, %v20114_v23  ;;  %v11127_v26 = vmul.f32 %v20114_v23, %v20114_v23  ;;  %v11129_v21 = vmul.f32 %v20120_v62, %v20120_v62 }
 0x58a   :  { %v10789_v3 = vpop.f32.mrf.mxu1  ;;  %v10100_v23 = vadd.f32 %v19908_v0, %v22534_v50  ;;  %v20139_v19 = vadd.f32 %v13307_v52, %v10101_v32 }
 0x58b   :  { %v11057_v25 = vadd.f32 %v11056_v1, %v20107_v61  ;;  %v11190_v9 = vadd.f32 %v11189_v30, %v11127_v26  ;;  %v20128_v35 = vadd.f32 %v10789_v3, %v10099_v20  ;;  %v22535_v30 = vld [vmem:[#allocation108_spill] sm:$0xff] }
 0x58c   :  { %v13308_v42 = vpop.f32.mrf.mxu1  ;;  %v10102_v20 = vadd.f32 %v19898_v33, %v22535_v30 }
 0x58d   :  { %22532 = vst [vmem:[#allocation38_spill] sm:$0xff] %v20128_v35  ;;  %v11191_v55 = vadd.f32 %v11190_v9, %v11128_v2  ;;  %v11058_v46 = vadd.f32 %v11057_v25, %v20120_v62  ;;  %v11130_v29 = vmul.f32 %v20128_v35, %v20128_v35  ;;  %v20148_v2 = vpop.f32.mrf.mxu0  ;;  %v22537_v9 = vld [vmem:[#allocation87_spill] sm:$0xff] }
 0x58e   :  { %v10792_v1 = vpop.f32.mrf.mxu1  ;;  %v10103_v0 = vadd.f32 %v19928_v41, %v22537_v9  ;;  %v20152_v32 = vadd.f32 %v13308_v42, %v10102_v20  ;;  %v22538_v41 = vld [vmem:[#allocation4_spill] sm:$0xff] }
 0x58f   :  { %v11059_v26 = vadd.f32 %v11058_v46, %v20128_v35  ;;  %v11192_v3 = vadd.f32 %v11191_v55, %v11129_v21  ;;  %v20146_v18 = vadd.f32 %v10792_v1, %v10100_v23  ;;  %v11132_v21 = vmul.f32 %v20139_v19, %v20139_v19  ;;  %v20162_v1 = vpop.f32.mrf.mxu0  ;;  %v22539_v9 = vld [vmem:[#allocation88_spill] sm:$0xff] }
 0x590   :  { %v13311_v25 = vpop.f32.mrf.mxu1  ;;  %v10105_v42 = vadd.f32 %v19918_v40, %v22538_v41 }
 0x591   :  { %22536 = vst [vmem:[#allocation120_spill] sm:$0xff] %v20146_v18  ;;  %v11193_v52 = vadd.f32 %v11192_v3, %v11130_v29  ;;  %v11060_v33 = vadd.f32 %v11059_v26, %v20146_v18  ;;  %v11131_v46 = vmul.f32 %v20146_v18, %v20146_v18  ;;  %v11133_v26 = vmul.f32 %v20152_v32, %v20152_v32 }
 0x592   :  { %v10805_v50 = vpop.f32.mrf.mxu1  ;;  %v10104_v18 = vadd.f32 %v19948_v63, %v22539_v9  ;;  %v20171_v35 = vadd.f32 %v13311_v25, %v10105_v42 }
 0x593   :  { %v11061_v23 = vadd.f32 %v11060_v33, %v20139_v19  ;;  %v11194_v55 = vadd.f32 %v11193_v52, %v11131_v46  ;;  %v20160_v30 = vadd.f32 %v10805_v50, %v10103_v0  ;;  %v22540_v52 = vld [vmem:[#allocation110_spill] sm:$0xff] }
 0x594   :  { %v13312_v20 = vpop.f32.mrf.mxu1  ;;  %v10106_v0 = vadd.f32 %v19938_v13, %v22540_v52 }
 0x595   :  { %v11195_v29 = vadd.f32 %v11194_v55, %v11132_v21  ;;  %v11062_v3 = vadd.f32 %v11061_v23, %v20152_v32  ;;  %v11134_v40 = vmul.f32 %v20160_v30, %v20160_v30  ;;  %v20180_v21 = vpop.f32.mrf.mxu0  ;;  %v22542_v55 = vld [vmem:[#allocation91_spill] sm:$0xff] }
 0x596   :  { %v10808_v33 = vpop.f32.mrf.mxu1  ;;  %v10107_v63 = vadd.f32 %v19968_v14, %v22542_v55  ;;  %v20184_v42 = vadd.f32 %v13312_v20, %v10106_v0  ;;  %v22543_v14 = vld [vmem:[#allocation112_spill] sm:$0xff]  ;;  %v10108_v55 = vadd.f32 %v19986_v38, %v19795_v15 }
 0x597   :  { %v11063_v46 = vadd.f32 %v11062_v3, %v20160_v30  ;;  %v11196_v50 = vadd.f32 %v11195_v29, %v11133_v26  ;;  %v20178_v41 = vadd.f32 %v10808_v33, %v10104_v18  ;;  %v11136_v26 = vmul.f32 %v20171_v35, %v20171_v35  ;;  %v20194_v33 = vpop.f32.mrf.mxu0 }
 0x598   :  { %v13315_v23 = vpop.f32.mrf.mxu1  ;;  %v10109_v20 = vadd.f32 %v19958_v28, %v22543_v14 }
 0x599   :  { %22541 = vst [vmem:[#allocation9_spill] sm:$0xff] %v20178_v41  ;;  %v11197_v25 = vadd.f32 %v11196_v50, %v11134_v40  ;;  %v11064_v13 = vadd.f32 %v11063_v46, %v20178_v41  ;;  %v11135_v3 = vmul.f32 %v20178_v41, %v20178_v41  ;;  %v11137_v46 = vmul.f32 %v20184_v42, %v20184_v42 }
 0x59a   :  { %v10821_v9 = vpop.f32.mrf.mxu1  ;;  %v20203_v41 = vadd.f32 %v13315_v23, %v10109_v20 }
 0x59b   :  { %v11065_v18 = vadd.f32 %v11064_v13, %v20171_v35  ;;  %v11198_v29 = vadd.f32 %v11197_v25, %v11135_v3  ;;  %v20192_v52 = vadd.f32 %v10821_v9, %v10107_v63  ;;  %v22544_v25 = vld [vmem:[#allocation92_spill] sm:$0xff] }
 0x59c   :  { %v13316_v0 = vpop.f32.mrf.mxu1  ;;  %v10110_v63 = vadd.f32 %v19978_v12, %v22544_v25 }
 0x59d   :  { %v11199_v40 = vadd.f32 %v11198_v29, %v11136_v26  ;;  %v11066_v50 = vadd.f32 %v11065_v18, %v20184_v42  ;;  %v11138_v28 = vmul.f32 %v20192_v52, %v20192_v52  ;;  %v20212_v26 = vpop.f32.mrf.mxu0  ;;  %v22546_v29 = vld [vmem:[#allocation96_spill] sm:$0xff] }
 0x59e   :  { %v10824_v13 = vpop.f32.mrf.mxu1  ;;  %v10111_v15 = vadd.f32 %v19993_v6, %v22546_v29  ;;  %v20216_v23 = vadd.f32 %v13316_v0, %v10110_v63  ;;  %v22547_v6 = vld [vmem:[#allocation94_spill] sm:$0xff]  ;;  %v10112_v29 = vadd.f32 %v19997_v8, %v19824_v4  ;;  %v10115_v4 = vadd.f32 %v20003_v10, %v19840_v39 }
 0x59f   :  { %v11067_v3 = vadd.f32 %v11066_v50, %v20192_v52  ;;  %v11200_v9 = vadd.f32 %v11199_v40, %v11137_v46  ;;  %v20210_v14 = vadd.f32 %v10824_v13, %v10108_v55  ;;  %v11140_v46 = vmul.f32 %v20203_v41, %v20203_v41  ;;  %v20226_v13 = vpop.f32.mrf.mxu0 }
 0x5a0   :  { %v13319_v18 = vpop.f32.mrf.mxu1  ;;  %v10113_v0 = vadd.f32 %v19991_v54, %v22547_v6  ;;  %v10117_v39 = vadd.f32 %v19999_v43, %v19830_v47 }
 0x5a1   :  { %22545 = vst [vmem:[#allocation44_spill] sm:$0xff] %v20210_v14  ;;  %v11201_v38 = vadd.f32 %v11200_v9, %v11138_v28  ;;  %v11068_v12 = vadd.f32 %v11067_v3, %v20210_v14  ;;  %v11139_v20 = vmul.f32 %v20210_v14, %v20210_v14  ;;  %v11141_v3 = vmul.f32 %v20216_v23, %v20216_v23 }
 0x5a2   :  { %v10837_v50 = vpop.f32.mrf.mxu1  ;;  %v20235_v14 = vadd.f32 %v13319_v18, %v10113_v0 }
 0x5a3   :  { %v11069_v40 = vadd.f32 %v11068_v12, %v20203_v41  ;;  %v11202_v55 = vadd.f32 %v11201_v38, %v11139_v20  ;;  %v20224_v25 = vadd.f32 %v10837_v50, %v10111_v15  ;;  %v10114_v15 = vadd.f32 %v19995_v49, %v19814_v37 }
 0x5a4   :  { %v13320_v63 = vpop.f32.mrf.mxu1  ;;  %v11144_v6 = vmul.f32 %v20235_v14, %v20235_v14 }
 0x5a5   :  { %v11203_v28 = vadd.f32 %v11202_v55, %v11140_v46  ;;  %v11070_v9 = vadd.f32 %v11069_v40, %v20216_v23  ;;  %v11142_v54 = vmul.f32 %v20224_v25, %v20224_v25  ;;  %v20244_v46 = vpop.f32.mrf.mxu0  ;;  %v20248_v18 = vadd.f32 %v13320_v63, %v10114_v15 }
 0x5a6   :  { %v10840_v38 = vpop.f32.mrf.mxu1 }
 0x5a7   :  { %v11071_v12 = vadd.f32 %v11070_v9, %v20224_v25  ;;  %v11204_v20 = vadd.f32 %v11203_v28, %v11141_v3  ;;  %v20242_v50 = vadd.f32 %v10840_v38, %v10112_v29  ;;  %v20258_v9 = vpop.f32.mrf.mxu0  ;;  %v11145_v63 = vmul.f32 %v20248_v18, %v20248_v18 }
 0x5a8   :  { %v13323_v40 = vpop.f32.mrf.mxu1  ;;  %v10116_v38 = vadd.f32 %v20034_v31, %v19850_v51  ;;  %v10119_v51 = vadd.f32 %v20066_v5, %v19860_v58  ;;  %v10121_v58 = vadd.f32 %v20052_v36, %v19854_v34 }
 0x5a9   :  { %v11205_v8 = vadd.f32 %v11204_v20, %v11142_v54  ;;  %v11072_v37 = vadd.f32 %v11071_v12, %v20242_v50  ;;  %v11143_v49 = vmul.f32 %v20242_v50, %v20242_v50  ;;  %v20267_v12 = vadd.f32 %v13323_v40, %v10117_v39 }
 0x5aa   :  { %v10853_v55 = vpop.f32.mrf.mxu1  ;;  %v10118_v54 = vadd.f32 %v20017_v22, %v19844_v44 }
 0x5ab   :  { %v11073_v0 = vadd.f32 %v11072_v37, %v20235_v14  ;;  %v11206_v3 = vadd.f32 %v11205_v8, %v11143_v49  ;;  %v20256_v28 = vadd.f32 %v10853_v55, %v10115_v4  ;;  %v20276_v37 = vpop.f32.mrf.mxu0 }
 0x5ac   :  { %v13324_v10 = vpop.f32.mrf.mxu1 }
 0x5ad   :  { %v11207_v29 = vadd.f32 %v11206_v3, %v11144_v6  ;;  %v11074_v15 = vadd.f32 %v11073_v0, %v20248_v18  ;;  %v11146_v47 = vmul.f32 %v20256_v28, %v20256_v28  ;;  %v20280_v40 = vadd.f32 %v13324_v10, %v10118_v54 }
 0x5ae   :  { %v10856_v20 = vpop.f32.mrf.mxu1  ;;  %v11148_v6 = vmul.f32 %v20267_v12, %v20267_v12 }
 0x5af   :  { %v11075_v4 = vadd.f32 %v11074_v15, %v20256_v28  ;;  %v11208_v43 = vadd.f32 %v11207_v29, %v11145_v63  ;;  %v20274_v8 = vadd.f32 %v10856_v20, %v10116_v38  ;;  %v20290_v63 = vpop.f32.mrf.mxu0  ;;  %v11149_v10 = vmul.f32 %v20280_v40, %v20280_v40 }
 0x5b0   :  { %v13327_v49 = vpop.f32.mrf.mxu1  ;;  %v10120_v38 = vadd.f32 %v20098_v11, %v19870_v57  ;;  %v10122_v20 = vadd.f32 %v20084_v59, %v19864_v24  ;;  %v10123_v57 = vadd.f32 %v20130_v7, %v19880_v60  ;;  %v10125_v60 = vadd.f32 %v20116_v53, %v19874_v17 }
 0x5b1   :  { %v11209_v31 = vadd.f32 %v11208_v43, %v11146_v47  ;;  %v11076_v44 = vadd.f32 %v11075_v4, %v20274_v8  ;;  %v11147_v22 = vmul.f32 %v20274_v8, %v20274_v8  ;;  %v20299_v54 = vadd.f32 %v13327_v49, %v10121_v58 }
 0x5b2   :  { %v10869_v55 = vpop.f32.mrf.mxu1 }
 0x5b3   :  { %v11077_v0 = vadd.f32 %v11076_v44, %v20267_v12  ;;  %v11210_v3 = vadd.f32 %v11209_v31, %v11147_v22  ;;  %v20288_v39 = vadd.f32 %v10869_v55, %v10119_v51  ;;  %v20308_v51 = vpop.f32.mrf.mxu0  ;;  %v11152_v22 = vmul.f32 %v20299_v54, %v20299_v54 }
 0x5b4   :  { %v13328_v5 = vpop.f32.mrf.mxu1 }
 0x5b5   :  { %v11211_v29 = vadd.f32 %v11210_v3, %v11148_v6  ;;  %v11078_v15 = vadd.f32 %v11077_v0, %v20280_v40  ;;  %v11150_v34 = vmul.f32 %v20288_v39, %v20288_v39  ;;  %v20312_v49 = vadd.f32 %v13328_v5, %v10122_v20  ;;  %v20322_v3 = vpop.f32.mrf.mxu0 }
 0x5b6   :  { %v10872_v4 = vpop.f32.mrf.mxu1 }
 0x5b7   :  { %v11079_v47 = vadd.f32 %v11078_v15, %v20288_v39  ;;  %v11212_v36 = vadd.f32 %v11211_v29, %v11149_v10  ;;  %v20306_v43 = vadd.f32 %v10872_v4, %v10120_v38  ;;  %v11153_v58 = vmul.f32 %v20312_v49, %v20312_v49  ;;  %v22548_v38 = vld [vmem:[#allocation97_spill] sm:$0xff] }
 0x5b8   :  { %v13331_v31 = vpop.f32.mrf.mxu1  ;;  %v10124_v29 = vadd.f32 %v20162_v1, %v19890_v56  ;;  %v10126_v20 = vadd.f32 %v20148_v2, %v22548_v38  ;;  %v22551_v38 = vld [vmem:[#allocation99_spill] sm:$0xff] }
 0x5b9   :  { %v11213_v11 = vadd.f32 %v11212_v36, %v11150_v34  ;;  %v11080_v24 = vadd.f32 %v11079_v47, %v20306_v43  ;;  %v11151_v59 = vmul.f32 %v20306_v43, %v20306_v43  ;;  %v20331_v15 = vadd.f32 %v13331_v31, %v10125_v60  ;;  %v20340_v36 = vpop.f32.mrf.mxu0 }
 0x5ba   :  { %v10885_v44 = vpop.f32.mrf.mxu1 }
 0x5bb   :  { %v11081_v55 = vadd.f32 %v11080_v24, %v20299_v54  ;;  %v11214_v6 = vadd.f32 %v11213_v11, %v11151_v59  ;;  %v20320_v0 = vadd.f32 %v10885_v44, %v10123_v57  ;;  %v22549_v11 = vld [vmem:[#allocation122_spill] sm:$0xff]  ;;  %v11156_v44 = vmul.f32 %v20331_v15, %v20331_v15  ;;  %v10039_v60 = vpop.f32.mrf.mxu0 }
 0x5bc   :  { %v13332_v7 = vpop.f32.mrf.mxu1  ;;  %v10127_v56 = vadd.f32 %v20194_v33, %v22549_v11 }
 0x5bd   :  { %v11215_v5 = vadd.f32 %v11214_v6, %v11152_v22  ;;  %v11082_v10 = vadd.f32 %v11081_v55, %v20312_v49  ;;  %v11154_v17 = vmul.f32 %v20320_v0, %v20320_v0  ;;  %v20344_v31 = vadd.f32 %v13332_v7, %v10126_v20 }
 0x5be   :  { %v10888_v4 = vpop.f32.mrf.mxu1  ;;  %v10128_v20 = vadd.f32 %v20226_v13, %v22551_v38  ;;  %v22554_v38 = vld [vmem:[#allocation100_spill] sm:$0xff] }
 0x5bf   :  { %v11083_v47 = vadd.f32 %v11082_v10, %v20320_v0  ;;  %v11216_v53 = vadd.f32 %v11215_v5, %v11153_v58  ;;  %v20338_v34 = vadd.f32 %v10888_v4, %v10124_v29  ;;  %v22550_v58 = vld [vmem:[#allocation8_spill] sm:$0xff]  ;;  %v11157_v5 = vmul.f32 %v20344_v31, %v20344_v31 }
 0x5c0   :  { %v13335_v57 = vpop.f32.mrf.mxu1  ;;  %v10129_v33 = vadd.f32 %v20180_v21, %v22550_v58 }
 0x5c1   :  { %v11217_v1 = vadd.f32 %v11216_v53, %v11154_v17  ;;  %v11084_v2 = vadd.f32 %v11083_v47, %v20338_v34  ;;  %v11155_v24 = vmul.f32 %v20338_v34, %v20338_v34  ;;  %v22552_v47 = vld [vmem:[#allocation98_spill] sm:$0xff] }
 0x5c2   :  { %v10901_v59 = vpop.f32.mrf.mxu1  ;;  %v20361_v4 = vadd.f32 %v13335_v57, %v10129_v33  ;;  %v10130_v17 = vadd.f32 %v20212_v26, %v22552_v47 }
 0x5c3   :  { %v11085_v22 = vadd.f32 %v11084_v2, %v20331_v15  ;;  %v11218_v55 = vadd.f32 %v11217_v1, %v11155_v24  ;;  %v20352_v6 = vadd.f32 %v10901_v59, %v10127_v56  ;;  %v20370_v2 = vpop.f32.mrf.mxu0  ;;  %v22553_v59 = vld [vmem:[#allocation101_spill] sm:$0xff] }
 0x5c4   :  { %v13336_v7 = vpop.f32.mrf.mxu1  ;;  %v10131_v13 = vadd.f32 %v20258_v9, %v22553_v59  ;;  %v11160_v58 = vmul.f32 %v20361_v4, %v20361_v4  ;;  %v10133_v9 = vadd.f32 %v20244_v46, %v22554_v38 }
 0x5c5   :  { %v11219_v10 = vadd.f32 %v11218_v55, %v11156_v44  ;;  %v11086_v29 = vadd.f32 %v11085_v22, %v20344_v31  ;;  %v11158_v21 = vmul.f32 %v20352_v6, %v20352_v6  ;;  %v20374_v44 = vadd.f32 %v13336_v7, %v10130_v17 }
 0x5c6   :  { %v10904_v53 = vpop.f32.mrf.mxu1 }
 0x5c7   :  { %v11087_v11 = vadd.f32 %v11086_v29, %v20352_v6  ;;  %v11220_v56 = vadd.f32 %v11219_v10, %v11157_v5  ;;  %v20368_v1 = vadd.f32 %v10904_v53, %v10128_v20  ;;  %v10052_v29 = vpop.f32.mrf.mxu0  ;;  %v11161_v20 = vmul.f32 %v20374_v44, %v20374_v44  ;;  %v22555_v53 = vld [vmem:[#allocation103_spill] sm:$0xff] }
 0x5c8   :  { %v13339_v24 = vpop.f32.mrf.mxu1 }
 0x5c9   :  { %v11221_v57 = vadd.f32 %v11220_v56, %v11158_v21  ;;  %v11088_v26 = vadd.f32 %v11087_v11, %v20368_v1  ;;  %v11159_v22 = vmul.f32 %v20368_v1, %v20368_v1  ;;  %v10132_v11 = vadd.f32 %v20290_v63, %v22555_v53  ;;  %v22556_v56 = vld [vmem:[#allocation47_spill] sm:$0xff] }
 0x5ca   :  { %v10917_v55 = vpop.f32.mrf.mxu1  ;;  %v20391_v21 = vadd.f32 %v13339_v24, %v10133_v9  ;;  %v10134_v59 = vadd.f32 %v20276_v37, %v22556_v56  ;;  %v22561_v56 = vld [vmem:[#allocation130_spill] sm:$0xff] }
 0x5cb   :  { %v11089_v33 = vadd.f32 %v11088_v26, %v20361_v4  ;;  %v11222_v5 = vadd.f32 %v11221_v57, %v11159_v22  ;;  %v20382_v10 = vadd.f32 %v10917_v55, %v10131_v13  ;;  %v13268_v55 = vpop.f32.mrf.mxu0 }
 0x5cc   :  { %v13340_v7 = vpop.f32.mrf.mxu1 }
 0x5cd   :  { %v11223_v47 = vadd.f32 %v11222_v5, %v11160_v58  ;;  %v11090_v17 = vadd.f32 %v11089_v33, %v20374_v44  ;;  %v11162_v46 = vmul.f32 %v20382_v10, %v20382_v10  ;;  %v22558_v33 = vld [vmem:[#allocation104_spill] sm:$0xff]  ;;  %v20402_v24 = vadd.f32 %v13340_v7, %v10134_v59 }
 0x5ce   :  { %v10920_v13 = vpop.f32.mrf.mxu1  ;;  %v10135_v5 = vadd.f32 %v20322_v3, %v22558_v33  ;;  %v10137_v3 = vadd.f32 %v20308_v51, %v22561_v56 }
 0x5cf   :  { %v11091_v57 = vadd.f32 %v11090_v17, %v20382_v10  ;;  %v11224_v26 = vadd.f32 %v11223_v47, %v11161_v20  ;;  %v20398_v22 = vadd.f32 %v10920_v13, %v10132_v11  ;;  %22559 = vst [vmem:[#allocation121_spill] sm:$0xff] %v20402_v24  ;;  %v11164_v17 = vmul.f32 %v20391_v21, %v20391_v21  ;;  %v10055_v11 = vpop.f32.mrf.mxu0 }
 0x5d0   :  { %v13343_v58 = vpop.f32.mrf.mxu1  ;;  %v11165_v59 = vmul.f32 %v20402_v24, %v20402_v24 }
 0x5d1   :  { %22557 = vst [vmem:[#allocation31_spill] sm:$0xff] %v20398_v22  ;;  %v11225_v63 = vadd.f32 %v11224_v26, %v11162_v46  ;;  %v11092_v38 = vadd.f32 %v11091_v57, %v20398_v22  ;;  %v11163_v37 = vmul.f32 %v20398_v22, %v20398_v22  ;;  %v22562_v46 = vld [vmem:[#allocation106_spill] sm:$0xff]  ;;  %v13271_v33 = vpop.f32.mrf.mxu0  ;;  %v20418_v22 = vadd.f32 %v13343_v58, %v10137_v3 }
 0x5d2   :  { %v10933_v9 = vpop.f32.mrf.mxu1  ;;  %v10136_v26 = vadd.f32 %v10039_v60, %v22562_v46 }
 0x5d3   :  { %v11093_v20 = vadd.f32 %v11092_v38, %v20391_v21  ;;  %v11226_v47 = vadd.f32 %v11225_v63, %v11163_v37  ;;  %v20410_v53 = vadd.f32 %v10933_v9, %v10135_v5  ;;  %22563 = vst [vmem:[#allocation123_spill] sm:$0xff] %v20418_v22  ;;  %v22564_v38 = vld [vmem:[#allocation132_spill] sm:$0xff]  ;;  %v10068_v3 = vpop.f32.mrf.mxu0 }
 0x5d4   :  { %v13344_v7 = vpop.f32.mrf.mxu1  ;;  %v10138_v5 = vadd.f32 %v20340_v36, %v22564_v38  ;;  %v22569_v38 = vld [vmem:[#allocation107_spill] sm:$0xff] }
 0x5d5   :  { %22560 = vst [vmem:[#allocation29_spill] sm:$0xff] %v20410_v53  ;;  %v11227_v13 = vadd.f32 %v11226_v47, %v11164_v17  ;;  %v11094_v57 = vadd.f32 %v11093_v20, %v20402_v24  ;;  %v11166_v51 = vmul.f32 %v20410_v53, %v20410_v53  ;;  %v22566_v47 = vld [vmem:[#allocation109_spill] sm:$0xff] }
 0x5d6   :  { %v10936_v63 = vpop.f32.mrf.mxu1  ;;  %v10139_v20 = vadd.f32 %v10052_v29, %v22566_v47  ;;  %v20428_v60 = vadd.f32 %v13344_v7, %v10138_v5  ;;  %v10141_v29 = vadd.f32 %v20370_v2, %v22569_v38  ;;  %v13272_v47 = vpop.f32.mrf.mxu0  ;;  %v22574_v38 = vld [vmem:[#allocation113_spill] sm:$0xff] }
 0x5d7   :  { %v11095_v37 = vadd.f32 %v11094_v57, %v20410_v53  ;;  %v11228_v9 = vadd.f32 %v11227_v13, %v11165_v59  ;;  %v20425_v56 = vadd.f32 %v10936_v63, %v10136_v26  ;;  %v11168_v57 = vmul.f32 %v20418_v22, %v20418_v22  ;;  %v22572_v53 = vld [vmem:[#allocation49_spill] sm:$0xff] }
 0x5d8   :  { %v13347_v17 = vpop.f32.mrf.mxu1  ;;  %22567 = vst [vmem:[#allocation124_spill] sm:$0xff] %v20428_v60  ;;  %v11169_v5 = vmul.f32 %v20428_v60, %v20428_v60 }
 0x5d9   :  { %22565 = vst [vmem:[#allocation32_spill] sm:$0xff] %v20425_v56  ;;  %v11229_v24 = vadd.f32 %v11228_v9, %v11166_v51  ;;  %v11096_v58 = vadd.f32 %v11095_v37, %v20425_v56  ;;  %v11167_v36 = vmul.f32 %v20425_v56, %v20425_v56  ;;  %v22570_v51 = vld [vmem:[#allocation111_spill] sm:$0xff]  ;;  %v20444_v56 = vadd.f32 %v13347_v17, %v10141_v29 }
 0x5da   :  { %v10949_v46 = vpop.f32.mrf.mxu1  ;;  %v10140_v9 = vadd.f32 %v10055_v11, %v22570_v51 }
 0x5db   :  { %v11097_v59 = vadd.f32 %v11096_v58, %v20418_v22  ;;  %v11230_v13 = vadd.f32 %v11229_v24, %v11167_v36  ;;  %v20436_v26 = vadd.f32 %v10949_v46, %v10139_v20  ;;  %22571 = vst [vmem:[#allocation125_spill] sm:$0xff] %v20444_v56  ;;  %v10142_v58 = vadd.f32 %v13268_v55, %v22572_v53  ;;  %v10071_v53 = vpop.f32.mrf.mxu0 }
 0x5dc   :  { %v13348_v7 = vpop.f32.mrf.mxu1  ;;  %v11172_v29 = vmul.f32 %v20444_v56, %v20444_v56 }
 0x5dd   :  { %22568 = vst [vmem:[#allocation14_spill] sm:$0xff] %v20436_v26  ;;  %v11231_v63 = vadd.f32 %v11230_v13, %v11168_v57  ;;  %v11098_v37 = vadd.f32 %v11097_v59, %v20428_v60  ;;  %v11170_v2 = vmul.f32 %v20436_v26, %v20436_v26  ;;  %v10143_v57 = vadd.f32 %v10068_v3, %v22574_v38  ;;  %v22575_v3 = vld [vmem:[#allocation137_spill] sm:$0xff] }
 0x5de   :  { %v10952_v24 = vpop.f32.mrf.mxu1  ;;  %v20453_v60 = vadd.f32 %v13348_v7, %v10142_v58  ;;  %v10145_v51 = vadd.f32 %v13271_v33, %v22575_v3  ;;  %v22576_v7 = vld [vmem:[#allocation114_spill] sm:$0xff] }
 0x5df   :  { %v11099_v20 = vadd.f32 %v11098_v37, %v20436_v26  ;;  %v11232_v36 = vadd.f32 %v11231_v63, %v11169_v5  ;;  %v20450_v46 = vadd.f32 %v10952_v24, %v10140_v9  ;;  %v10144_v58 = vadd.f32 %v10071_v53, %v22576_v7 }
 0x5e0   :  { %v13351_v13 = vpop.f32.mrf.mxu1  ;;  %v11173_v24 = vmul.f32 %v20453_v60, %v20453_v60 }
 0x5e1   :  { %22573 = vst [vmem:[#allocation56_spill] sm:$0xff] %v20450_v46  ;;  %v11233_v59 = vadd.f32 %v11232_v36, %v11170_v2  ;;  %v11100_v11 = vadd.f32 %v11099_v20, %v20450_v46  ;;  %v11171_v55 = vmul.f32 %v20450_v46, %v20450_v46  ;;  %v22577_v36 = vld [vmem:[#allocation139_spill] sm:$0xff]  ;;  %v20469_v46 = vadd.f32 %v13351_v13, %v10145_v51 }
 0x5e2   :  { %v10965_v17 = vpop.f32.mrf.mxu1  ;;  %v10146_v38 = vadd.f32 %v13272_v47, %v22577_v36 }
 0x5e3   :  { %v11101_v5 = vadd.f32 %v11100_v11, %v20444_v56  ;;  %v11234_v63 = vadd.f32 %v11233_v59, %v11171_v55  ;;  %v20461_v37 = vadd.f32 %v10965_v17, %v10143_v57  ;;  %22578 = vst [vmem:[#allocation126_spill] sm:$0xff] %v20469_v46  ;;  %v11176_v47 = vmul.f32 %v20469_v46, %v20469_v46 }
 0x5e4   :  { %v13352_v9 = vpop.f32.mrf.mxu1 }
 0x5e5   :  { %v11235_v20 = vadd.f32 %v11234_v63, %v11172_v29  ;;  %v11102_v2 = vadd.f32 %v11101_v5, %v20453_v60  ;;  %v11174_v57 = vmul.f32 %v20461_v37, %v20461_v37  ;;  %v20476_v53 = vadd.f32 %v13352_v9, %v10146_v38 }
 0x5e6   :  { %v10968_v26 = vpop.f32.mrf.mxu1 }
 0x5e7   :  { %v11103_v59 = vadd.f32 %v11102_v2, %v20461_v37  ;;  %v11236_v33 = vadd.f32 %v11235_v20, %v11173_v24  ;;  %v20474_v11 = vadd.f32 %v10968_v26, %v10144_v58  ;;  %v11177_v63 = vmul.f32 %v20476_v53, %v20476_v53 }
 0x5e9   :  { %v11237_v55 = vadd.f32 %v11236_v33, %v11174_v57  ;;  %v11104_v17 = vadd.f32 %v11103_v59, %v20474_v11  ;;  %v11175_v29 = vmul.f32 %v20474_v11, %v20474_v11 }
 0x5eb   :  { %v11105_v13 = vadd.f32 %v11104_v17, %v20469_v46  ;;  %v11238_v5 = vadd.f32 %v11237_v55, %v11175_v29 }
 0x5ed   :  { %v11106_v26 = vadd.f32 %v11105_v13, %v20476_v53  ;;  %v11239_v3 = vadd.f32 %v11238_v5, %v11176_v47  ;;  %v11250_v47 = vld [vmem:[%s21260_s5] sm:$0x1] }
 0x5ef   :  { %v11107_v51 = vrot.slane %v11106_v26, 4  ;;  %v11240_v9 = vadd.f32 %v11239_v3, %v11177_v63  ;;  %v20493_v63 = vld [vmem:[%s21261_s6] sm:$0x1]  ;;  %v22579_v3 = vld [vmem:[#allocation28_spill] sm:$0xff] }
 0x5f1   :  { %v11108_v7 = vadd.f32 %v11107_v51, %v11106_v26  ;;  %v11241_v58 = vrot.slane %v11240_v9, 4 }
 0x5f3   :  { %v11109_v24 = vrot.slane %v11108_v7, 2  ;;  %v11242_v20 = vadd.f32 %v11241_v58, %v11240_v9  ;;  %v22581_v9 = vld [vmem:[#allocation33_spill] sm:$0xff]  ;;  %v22582_v58 = vld [vmem:[#allocation115_spill] sm:$0xff] }
 0x5f5   :  { %v11110_v2 = vadd.f32 %v11109_v24, %v11108_v7  ;;  %v11243_v36 = vrot.slane %v11242_v20, 2 }
 0x5f7   :  { %v11111_v38 = vrot.slane %v11110_v2, 1  ;;  %v11244_v59 = vadd.f32 %v11243_v36, %v11242_v20  ;;  %v22583_v20 = vld [vmem:[#allocation116_spill] sm:$0xff]  ;;  %v22584_v36 = vld [vmem:[#allocation53_spill] sm:$0xff] }
 0x5f9   :  { %v11112_v57 = vadd.f32 %v11111_v38, %v11110_v2  ;;  %v11245_v33 = vrot.slane %v11244_v59, 1 }
 0x5fb   :  { %v11113_v17 = vmul.f32 0.001953125, %v11112_v57  ;;  %v11246_v55 = vadd.f32 %v11245_v33, %v11244_v59  ;;  %v22585_v59 = vld [vmem:[#allocation117_spill] sm:$0xff] }
 0x5fd   :  { %v11247_v29 = vmul.f32 0.001953125, %v11246_v55  ;;  %v11248_v56 = vmul.f32 %v11113_v17, %v11113_v17  ;;  %v22586_v55 = vld [vmem:[#allocation54_spill] sm:$0xff] }
 0x5ff   :  { %v11249_v22 = vsub.f32 %v11247_v29, %v11248_v56  ;;  %v22580_v56 = vld [vmem:[#allocation51_spill] sm:$0xff] }
 0x601   :  { %v11251_v46 = vadd.f32 1e-05, %v11249_v22 }
 0x603   :  { %13564 = vrsqrt.f32 %v11251_v46 }
 0x610   :  { %v13565_v13 = vpop.eup %13564 }
 0x611   :  { %v11253_v5 = vmul.f32 %v13565_v13, %v11250_v47  ;;  %v22587_v47 = vld [vmem:[#allocation118_spill] sm:$0xff] }
 0x613   :  { %v20495_v26 = vmul.f32 %v11253_v5, %v11113_v17  ;;  %v20498_v51 = vrot.slane %v11253_v5, %v22579_v3 }
 0x615   :  { %v11256_v22 = vsub.f32 %v20493_v63, %v20495_v26  ;;  %v20504_v46 = vmul.f32 %v20498_v51, %v22580_v56  ;;  %v20508_v7 = vmul.f32 %v20498_v51, %v22581_v9  ;;  %v20512_v24 = vmul.f32 %v20498_v51, %v22582_v58  ;;  %v22588_v63 = vld [vmem:[#allocation55_spill] sm:$0xff]  ;;  %v22590_v58 = vld [vmem:[#allocation38_spill] sm:$0xff] }
 0x616   :  { %v20516_v2 = vmul.f32 %v20498_v51, %v22583_v20  ;;  %v20520_v38 = vmul.f32 %v20498_v51, %v22584_v36  ;;  %v20524_v57 = vmul.f32 %v20498_v51, %v22585_v59  ;;  %v20528_v33 = vmul.f32 %v20498_v51, %v20043_v45  ;;  %v22589_v26 = vld [vmem:[#allocation119_spill] sm:$0xff]  ;;  %v22591_v20 = vld [vmem:[#allocation120_spill] sm:$0xff] }
 0x617   :  { %v20532_v17 = vmul.f32 %v20498_v51, %v20056_v48  ;;  %v20536_v29 = vmul.f32 %v20498_v51, %v22586_v55  ;;  %v20540_v13 = vmul.f32 %v20498_v51, %v22587_v47  ;;  %v20544_v5 = vmul.f32 %v20498_v51, %v20075_v16  ;;  %v22592_v55 = vld [vmem:[#allocation9_spill] sm:$0xff] }
 0x618   :  { %v20548_v45 = vmul.f32 %v20498_v51, %v20088_v27  ;;  %v20552_v48 = vmul.f32 %v20498_v51, %v22588_v63  ;;  %v20556_v56 = vmul.f32 %v20498_v51, %v22589_v26  ;;  %v20560_v9 = vmul.f32 %v20498_v51, %v20107_v61  ;;  %v22593_v26 = vld [vmem:[#allocation44_spill] sm:$0xff] }
 0x619   :  { %v20564_v16 = vmul.f32 %v20498_v51, %v20120_v62  ;;  %v20568_v27 = vmul.f32 %v20498_v51, %v22590_v58  ;;  %v20572_v36 = vmul.f32 %v20498_v51, %v22591_v20  ;;  %v20576_v59 = vmul.f32 %v20498_v51, %v20139_v19 }
 0x61a   :  { %v20580_v61 = vmul.f32 %v20498_v51, %v20152_v32  ;;  %v20584_v62 = vmul.f32 %v20498_v51, %v20160_v30  ;;  %v20588_v47 = vmul.f32 %v20498_v51, %v22592_v55  ;;  %v20592_v63 = vmul.f32 %v20498_v51, %v20171_v35  ;;  %v22596_v55 = vld [vmem:[#allocation31_spill] sm:$0xff] }
 0x61b   :  { %v20596_v19 = vmul.f32 %v20498_v51, %v20184_v42  ;;  %v20600_v32 = vmul.f32 %v20498_v51, %v20192_v52  ;;  %v20604_v30 = vmul.f32 %v20498_v51, %v22593_v26  ;;  %v20608_v58 = vmul.f32 %v20498_v51, %v20203_v41  ;;  %v22599_v26 = vld [vmem:[#allocation121_spill] sm:$0xff] }
 0x61c   :  { %v20612_v35 = vmul.f32 %v20498_v51, %v20216_v23  ;;  %v20616_v42 = vmul.f32 %v20498_v51, %v20224_v25  ;;  %v20620_v52 = vmul.f32 %v20498_v51, %v20242_v50  ;;  %v20624_v20 = vmul.f32 %v20498_v51, %v20235_v14 }
 0x61d   :  { %v20628_v41 = vmul.f32 %v20498_v51, %v20248_v18  ;;  %v20632_v23 = vmul.f32 %v20498_v51, %v20256_v28  ;;  %v20636_v25 = vmul.f32 %v20498_v51, %v20274_v8  ;;  %v20640_v50 = vmul.f32 %v20498_v51, %v20267_v12 }
 0x61e   :  { %v20644_v14 = vmul.f32 %v20498_v51, %v20280_v40  ;;  %v20648_v18 = vmul.f32 %v20498_v51, %v20288_v39  ;;  %v20652_v28 = vmul.f32 %v20498_v51, %v20306_v43  ;;  %v20656_v8 = vmul.f32 %v20498_v51, %v20299_v54 }
 0x61f   :  { %v20660_v12 = vmul.f32 %v20498_v51, %v20312_v49  ;;  %v20664_v40 = vmul.f32 %v20498_v51, %v20320_v0  ;;  %v20668_v39 = vmul.f32 %v20498_v51, %v20338_v34  ;;  %v20672_v43 = vmul.f32 %v20498_v51, %v20331_v15 }
 0x620   :  { %v20676_v54 = vmul.f32 %v20498_v51, %v20344_v31  ;;  %v20680_v49 = vmul.f32 %v20498_v51, %v20352_v6  ;;  %v20684_v0 = vmul.f32 %v20498_v51, %v20368_v1  ;;  %v20688_v34 = vmul.f32 %v20498_v51, %v20361_v4 }
 0x621   :  { %v20692_v15 = vmul.f32 %v20498_v51, %v20374_v44  ;;  %v20696_v31 = vmul.f32 %v20498_v51, %v20382_v10  ;;  %v20700_v6 = vmul.f32 %v20498_v51, %v22596_v55  ;;  %v20704_v1 = vmul.f32 %v20498_v51, %v20391_v21 }
 0x622   :  { %22594 = vst [vmem:[#allocation57_spill] sm:$0xff] %v20688_v34  ;;  %v20708_v4 = vmul.f32 %v20498_v51, %v22599_v26  ;;  %v22601_v34 = vld [vmem:[#allocation29_spill] sm:$0xff]  ;;  %v20716_v10 = vmul.f32 %v20498_v51, %v20453_v60  ;;  %v20720_v55 = vmul.f32 %v20498_v51, %v20461_v37  ;;  %v20724_v21 = vmul.f32 %v20498_v51, %v20474_v11 }
 0x623   :  { %22595 = vst [vmem:[#allocation127_spill] sm:$0xff] %v20696_v31  ;;  %22597 = vst [vmem:[#allocation16_spill] sm:$0xff] %v20700_v6  ;;  %v20712_v44 = vmul.f32 %v20498_v51, %v22601_v34  ;;  %v20736_v60 = vmul.f32 %v20498_v51, %v20476_v53  ;;  %v20739_v37 = vrot.slane %v11256_v22, %v22579_v3 }
 0x624   :  { %22598 = vst [vmem:[#allocation128_spill] sm:$0xff] %v20704_v1  ;;  %22600 = vst [vmem:[#allocation18_spill] sm:$0xff] %v20708_v4  ;;  %v22606_v1 = vld [vmem:[#allocation126_spill] sm:$0xff]  ;;  %v22608_v4 = vld [vmem:[#allocation32_spill] sm:$0xff] }
 0x625   :  { %22602 = vst [vmem:[#allocation129_spill] sm:$0xff] %v20712_v44  ;;  %22603 = vst [vmem:[#allocation131_spill] sm:$0xff] %v20716_v10  ;;  %v20728_v26 = vmul.f32 %v20498_v51, %v22606_v1  ;;  %v11316_v34 = vmul.f32 %v20498_v51, %v22608_v4  ;;  %v22609_v44 = vld [vmem:[#allocation123_spill] sm:$0xff]  ;;  %v22613_v4 = vld [vmem:[#allocation125_spill] sm:$0xff]  ;;  %v20755_v53 = vadd.f32 %v20739_v37, %v20508_v7 }
 0x626   :  { %22604 = vst [vmem:[#allocation60_spill] sm:$0xff] %v20720_v55  ;;  %22605 = vst [vmem:[#allocation133_spill] sm:$0xff] %v20724_v21  ;;  %v11317_v6 = vmul.f32 %v20498_v51, %v22609_v44  ;;  %v22610_v55 = vld [vmem:[#allocation124_spill] sm:$0xff]  ;;  %v22611_v21 = vld [vmem:[#allocation14_spill] sm:$0xff]  ;;  %v11321_v31 = vmul.f32 %v20498_v51, %v22613_v4  ;;  %v20751_v44 = vadd.f32 %v20739_v37, %v20504_v46 }
 0x627   :  { %22607 = vst [vmem:[#allocation3_spill] sm:$0xff] %v20728_v26  ;;  %v11318_v11 = vmul.f32 %v20498_v51, %v22610_v55  ;;  %v11319_v1 = vmul.f32 %v20498_v51, %v22611_v21  ;;  %v22612_v26 = vld [vmem:[#allocation56_spill] sm:$0xff]  ;;  %v20759_v3 = vadd.f32 %v20739_v37, %v20512_v24  ;;  %v20763_v22 = vadd.f32 %v20739_v37, %v20516_v2 }
 0x628   :  { %v11320_v10 = vmul.f32 %v20498_v51, %v22612_v26  ;;  %v20767_v55 = vadd.f32 %v20739_v37, %v20520_v38  ;;  %v20771_v51 = vadd.f32 %v20739_v37, %v20524_v57  ;;  %v20775_v46 = vadd.f32 %v20739_v37, %v20528_v33 }
 0x629   :  { %v20779_v7 = vadd.f32 %v20739_v37, %v20532_v17  ;;  %v20783_v24 = vadd.f32 %v20739_v37, %v20536_v29  ;;  %v20787_v2 = vadd.f32 %v20739_v37, %v20540_v13  ;;  %v20791_v38 = vadd.f32 %v20739_v37, %v20544_v5 }
 0x62a   :  { %v20795_v57 = vadd.f32 %v20739_v37, %v20548_v45  ;;  %v20799_v33 = vadd.f32 %v20739_v37, %v20552_v48  ;;  %v20803_v17 = vadd.f32 %v20739_v37, %v20556_v56  ;;  %v20807_v29 = vadd.f32 %v20739_v37, %v20560_v9  ;;  %v22618_v21 = vld [vmem:[#allocation127_spill] sm:$0xff]  ;;  %v22619_v26 = vld [vmem:[#allocation16_spill] sm:$0xff] }
 0x62b   :  { %v20811_v13 = vadd.f32 %v20739_v37, %v20564_v16  ;;  %v20815_v5 = vadd.f32 %v20739_v37, %v20568_v27  ;;  %v20819_v45 = vadd.f32 %v20739_v37, %v20572_v36  ;;  %v20823_v48 = vadd.f32 %v20739_v37, %v20576_v59  ;;  %v22620_v4 = vld [vmem:[#allocation128_spill] sm:$0xff] }
 0x62c   :  { %v20827_v56 = vadd.f32 %v20739_v37, %v20580_v61  ;;  %v20831_v9 = vadd.f32 %v20739_v37, %v20584_v62  ;;  %v20835_v16 = vadd.f32 %v20739_v37, %v20588_v47  ;;  %v20839_v27 = vadd.f32 %v20739_v37, %v20592_v63 }
 0x62d   :  { %v20843_v36 = vadd.f32 %v20739_v37, %v20596_v19  ;;  %v20847_v59 = vadd.f32 %v20739_v37, %v20600_v32  ;;  %v20851_v61 = vadd.f32 %v20739_v37, %v20604_v30  ;;  %v20855_v62 = vadd.f32 %v20739_v37, %v20608_v58 }
 0x62e   :  { %v20859_v47 = vadd.f32 %v20739_v37, %v20612_v35  ;;  %v20863_v63 = vadd.f32 %v20739_v37, %v20616_v42  ;;  %v20867_v19 = vadd.f32 %v20739_v37, %v20620_v52  ;;  %v20871_v32 = vadd.f32 %v20739_v37, %v20624_v20 }
 0x62f   :  { %v20875_v30 = vadd.f32 %v20739_v37, %v20628_v41  ;;  %v20879_v58 = vadd.f32 %v20739_v37, %v20632_v23  ;;  %v20883_v35 = vadd.f32 %v20739_v37, %v20636_v25  ;;  %v20887_v42 = vadd.f32 %v20739_v37, %v20640_v50 }
 0x630   :  { %v20891_v52 = vadd.f32 %v20739_v37, %v20644_v14  ;;  %v20895_v20 = vadd.f32 %v20739_v37, %v20648_v18  ;;  %v20899_v41 = vadd.f32 %v20739_v37, %v20652_v28  ;;  %v20903_v23 = vadd.f32 %v20739_v37, %v20656_v8 }
 0x631   :  { %v20907_v25 = vadd.f32 %v20739_v37, %v20660_v12  ;;  %v20911_v50 = vadd.f32 %v20739_v37, %v20664_v40  ;;  %v20915_v14 = vadd.f32 %v20739_v37, %v20668_v39  ;;  %v20919_v18 = vadd.f32 %v20739_v37, %v20672_v43  ;;  %v22615_v40 = vld [vmem:[#allocation57_spill] sm:$0xff] }
 0x632   :  { %v20923_v28 = vadd.f32 %v20739_v37, %v20676_v54  ;;  %v20927_v8 = vadd.f32 %v20739_v37, %v20680_v49  ;;  %v20931_v12 = vadd.f32 %v20739_v37, %v20684_v0  ;;  %v20935_v39 = vadd.f32 %v20739_v37, %v22615_v40 }
 0x633   :  { %v20939_v43 = vadd.f32 %v20739_v37, %v20692_v15  ;;  %v20943_v54 = vadd.f32 %v20739_v37, %v22618_v21  ;;  %v20947_v49 = vadd.f32 %v20739_v37, %v22619_v26  ;;  %v20951_v0 = vadd.f32 %v20739_v37, %v22620_v4 }
 0x634   :  { %22614 = vst [vmem:[#allocation134_spill] sm:$0xff] %v20931_v12  ;;  %22616 = vst [vmem:[#allocation61_spill] sm:$0xff] %v20935_v39  ;;  %v22622_v12 = vld [vmem:[#allocation18_spill] sm:$0xff]  ;;  %v22623_v39 = vld [vmem:[#allocation129_spill] sm:$0xff]  ;;  %v20965_v21 = vadd.f32 %v20739_v37, %v11317_v6  ;;  %v20968_v26 = vadd.f32 %v20739_v37, %v11318_v11  ;;  %v20971_v4 = vadd.f32 %v20739_v37, %v11319_v1 }
 0x635   :  { %22617 = vst [vmem:[#allocation135_spill] sm:$0xff] %v20939_v43  ;;  %22621 = vst [vmem:[#allocation42_spill] sm:$0xff] %v20951_v0  ;;  %v20955_v40 = vadd.f32 %v20739_v37, %v22622_v12  ;;  %v20959_v15 = vadd.f32 %v20739_v37, %v22623_v39  ;;  %v20962_v43 = vadd.f32 %v20739_v37, %v11316_v34  ;;  %v22627_v39 = vld [vmem:[#allocation131_spill] sm:$0xff]  ;;  %v22629_v34 = vld [vmem:[#allocation60_spill] sm:$0xff] }
 0x636   :  { %22625 = vst [vmem:[#allocation62_spill] sm:$0xff] %v20965_v21  ;;  %22626 = vst [vmem:[#allocation136_spill] sm:$0xff] %v20971_v4  ;;  %v20974_v0 = vadd.f32 %v20739_v37, %v11320_v10  ;;  %v20977_v12 = vadd.f32 %v20739_v37, %v11321_v31  ;;  %v20985_v6 = vadd.f32 %v20739_v37, %v22629_v34  ;;  %v22631_v21 = vld [vmem:[#allocation133_spill] sm:$0xff]  ;;  %v22633_v1 = vld [vmem:[#allocation3_spill] sm:$0xff]  ;;  %v11397_v10 = vmax.f32 %v20751_v44, 0.0 }
 0x637   :  { %22624 = vst [vmem:[#allocation48_spill] sm:$0xff] %v20959_v15  ;;  %v20981_v15 = vadd.f32 %v20739_v37, %v22627_v39  ;;  %v20989_v11 = vadd.f32 %v20739_v37, %v22631_v21  ;;  %v20993_v4 = vadd.f32 %v20739_v37, %v22633_v1  ;;  %v20997_v31 = vadd.f32 %v20739_v37, %v20736_v60 }
 0x638   :  { %22630 = vst [vmem:[#allocation138_spill] sm:$0xff] %v20985_v6  ;;  %v11398_v39 = vmax.f32 %v20755_v53, 0.0  ;;  %v11400_v34 = vmax.f32 %v20763_v22, 0.0  ;;  %v11401_v6 = vmax.f32 %v20767_v55, 0.0  ;;  %v11402_v21 = vmax.f32 %v20771_v51, 0.0  ;;  %11461 = vst [vmem:[%s21262_s7] sm:$0xff] %v11397_v10 }
 0x639   :  { %22628 = vst [vmem:[#allocation63_spill] sm:$0xff] %v20981_v15  ;;  %22632 = vst [vmem:[#allocation45_spill] sm:$0xff] %v20989_v11  ;;  %v11399_v15 = vmax.f32 %v20759_v3, 0.0  ;;  %v11403_v11 = vmax.f32 %v20775_v46, 0.0  ;;  %v11404_v1 = vmax.f32 %v20779_v7, 0.0  ;;  %v11406_v60 = vmax.f32 %v20787_v2, 0.0 }
 0x63a   :  { %22634 = vst [vmem:[#allocation50_spill] sm:$0xff] %v20993_v4  ;;  %v11405_v4 = vmax.f32 %v20783_v24, 0.0  ;;  %v11407_v37 = vmax.f32 %v20791_v38, 0.0  ;;  %v11408_v44 = vmax.f32 %v20795_v57, 0.0  ;;  %11462 = vst [vmem:[%s21262_s7 + $0x8] sm:$0xff] %v11398_v39  ;;  %v11409_v53 = vmax.f32 %v20799_v33, 0.0 }
 0x63b   :  { %11463 = vst [vmem:[%s21262_s7 + $0x10] sm:$0xff] %v11399_v15  ;;  %11464 = vst [vmem:[%s21262_s7 + $0x18] sm:$0xff] %v11400_v34  ;;  %v11410_v3 = vmax.f32 %v20803_v17, 0.0  ;;  %v11411_v22 = vmax.f32 %v20807_v29, 0.0  ;;  %v11412_v55 = vmax.f32 %v20811_v13, 0.0  ;;  %v11413_v51 = vmax.f32 %v20815_v5, 0.0 }
 0x63c   :  { %11465 = vst [vmem:[%s21262_s7 + $0x20] sm:$0xff] %v11401_v6  ;;  %11466 = vst [vmem:[%s21262_s7 + $0x28] sm:$0xff] %v11402_v21  ;;  %v11414_v46 = vmax.f32 %v20819_v45, 0.0  ;;  %v11415_v7 = vmax.f32 %v20823_v48, 0.0  ;;  %v11416_v24 = vmax.f32 %v20827_v56, 0.0  ;;  %v11417_v2 = vmax.f32 %v20831_v9, 0.0 }
 0x63d   :  { %11467 = vst [vmem:[%s21262_s7 + $0x30] sm:$0xff] %v11403_v11  ;;  %11468 = vst [vmem:[%s21262_s7 + $0x38] sm:$0xff] %v11404_v1  ;;  %v11418_v38 = vmax.f32 %v20835_v16, 0.0  ;;  %v11419_v57 = vmax.f32 %v20839_v27, 0.0  ;;  %v11420_v33 = vmax.f32 %v20843_v36, 0.0  ;;  %v11421_v17 = vmax.f32 %v20847_v59, 0.0 }
 0x63e   :  { %11469 = vst [vmem:[%s21262_s7 + $0x40] sm:$0xff] %v11405_v4  ;;  %11470 = vst [vmem:[%s21262_s7 + $0x48] sm:$0xff] %v11406_v60  ;;  %v11422_v29 = vmax.f32 %v20851_v61, 0.0  ;;  %v11423_v13 = vmax.f32 %v20855_v62, 0.0  ;;  %v11424_v5 = vmax.f32 %v20859_v47, 0.0  ;;  %v11425_v45 = vmax.f32 %v20863_v63, 0.0 }
 0x63f   :  { %11471 = vst [vmem:[%s21262_s7 + $0x50] sm:$0xff] %v11407_v37  ;;  %11472 = vst [vmem:[%s21262_s7 + $0x58] sm:$0xff] %v11408_v44  ;;  %v11426_v48 = vmax.f32 %v20867_v19, 0.0  ;;  %v11427_v56 = vmax.f32 %v20871_v32, 0.0  ;;  %v11428_v9 = vmax.f32 %v20875_v30, 0.0  ;;  %v11429_v16 = vmax.f32 %v20879_v58, 0.0 }
 0x640   :  { %11473 = vst [vmem:[%s21262_s7 + $0x60] sm:$0xff] %v11409_v53  ;;  %11474 = vst [vmem:[%s21262_s7 + $0x68] sm:$0xff] %v11410_v3  ;;  %v11430_v27 = vmax.f32 %v20883_v35, 0.0  ;;  %v11431_v36 = vmax.f32 %v20887_v42, 0.0  ;;  %v11432_v59 = vmax.f32 %v20891_v52, 0.0  ;;  %v11433_v61 = vmax.f32 %v20895_v20, 0.0 }
 0x641   :  { %11475 = vst [vmem:[%s21262_s7 + $0x70] sm:$0xff] %v11411_v22  ;;  %11476 = vst [vmem:[%s21262_s7 + $0x78] sm:$0xff] %v11412_v55  ;;  %v11434_v62 = vmax.f32 %v20899_v41, 0.0  ;;  %v11435_v47 = vmax.f32 %v20903_v23, 0.0  ;;  %v11436_v63 = vmax.f32 %v20907_v25, 0.0  ;;  %v11437_v19 = vmax.f32 %v20911_v50, 0.0 }
 0x642   :  { %11477 = vst [vmem:[%s21262_s7 + $0x80] sm:$0xff] %v11413_v51  ;;  %11478 = vst [vmem:[%s21262_s7 + $0x88] sm:$0xff] %v11414_v46  ;;  %v11438_v32 = vmax.f32 %v20915_v14, 0.0  ;;  %v11439_v30 = vmax.f32 %v20919_v18, 0.0  ;;  %v11440_v58 = vmax.f32 %v20923_v28, 0.0  ;;  %v11441_v35 = vmax.f32 %v20927_v8, 0.0 }
 0x643   :  { %11479 = vst [vmem:[%s21262_s7 + $0x90] sm:$0xff] %v11415_v7  ;;  %11480 = vst [vmem:[%s21262_s7 + $0x98] sm:$0xff] %v11416_v24  ;;  %v22635_v42 = vld [vmem:[#allocation134_spill] sm:$0xff]  ;;  %v22636_v20 = vld [vmem:[#allocation61_spill] sm:$0xff]  ;;  %v11445_v50 = vmax.f32 %v20943_v54, 0.0  ;;  %v11446_v14 = vmax.f32 %v20947_v49, 0.0 }
 0x644   :  { %11481 = vst [vmem:[%s21262_s7 + $0xa0] sm:$0xff] %v11417_v2  ;;  %11482 = vst [vmem:[%s21262_s7 + $0xa8] sm:$0xff] %v11418_v38  ;;  %v11442_v52 = vmax.f32 %v22635_v42, 0.0  ;;  %v11443_v41 = vmax.f32 %v22636_v20, 0.0  ;;  %v22637_v23 = vld [vmem:[#allocation135_spill] sm:$0xff]  ;;  %v22638_v18 = vld [vmem:[#allocation42_spill] sm:$0xff] }
 0x645   :  { %11483 = vst [vmem:[%s21262_s7 + $0xb0] sm:$0xff] %v11419_v57  ;;  %11484 = vst [vmem:[%s21262_s7 + $0xb8] sm:$0xff] %v11420_v33  ;;  %v11444_v25 = vmax.f32 %v22637_v23, 0.0  ;;  %v11447_v28 = vmax.f32 %v22638_v18, 0.0  ;;  %v11448_v8 = vmax.f32 %v20955_v40, 0.0  ;;  %v22639_v54 = vld [vmem:[#allocation48_spill] sm:$0xff] }
 0x646   :  { %11485 = vst [vmem:[%s21262_s7 + $0xc0] sm:$0xff] %v11421_v17  ;;  %11486 = vst [vmem:[%s21262_s7 + $0xc8] sm:$0xff] %v11422_v29  ;;  %v11449_v49 = vmax.f32 %v22639_v54, 0.0  ;;  %v11450_v40 = vmax.f32 %v20962_v43, 0.0  ;;  %v22640_v15 = vld [vmem:[#allocation62_spill] sm:$0xff]  ;;  %v11452_v6 = vmax.f32 %v20968_v26, 0.0 }
 0x647   :  { %11487 = vst [vmem:[%s21262_s7 + $0xd0] sm:$0xff] %v11423_v13  ;;  %11488 = vst [vmem:[%s21262_s7 + $0xd8] sm:$0xff] %v11424_v5  ;;  %v11451_v4 = vmax.f32 %v22640_v15, 0.0  ;;  %v22641_v43 = vld [vmem:[#allocation136_spill] sm:$0xff]  ;;  %v11454_v26 = vmax.f32 %v20974_v0, 0.0  ;;  %v11455_v10 = vmax.f32 %v20977_v12, 0.0 }
 0x648   :  { %11489 = vst [vmem:[%s21262_s7 + $0xe0] sm:$0xff] %v11425_v45  ;;  %11490 = vst [vmem:[%s21262_s7 + $0xe8] sm:$0xff] %v11426_v48  ;;  %v11453_v11 = vmax.f32 %v22641_v43, 0.0  ;;  %v22642_v39 = vld [vmem:[#allocation63_spill] sm:$0xff]  ;;  %v22643_v0 = vld [vmem:[#allocation138_spill] sm:$0xff]  ;;  %v11460_v44 = vmax.f32 %v20997_v31, 0.0 }
 0x649   :  { %11491 = vst [vmem:[%s21262_s7 + $0xf0] sm:$0xff] %v11427_v56  ;;  %11492 = vst [vmem:[%s21262_s7 + $0xf8] sm:$0xff] %v11428_v9  ;;  %v11456_v34 = vmax.f32 %v22642_v39, 0.0  ;;  %v11457_v12 = vmax.f32 %v22643_v0, 0.0  ;;  %v22644_v21 = vld [vmem:[#allocation45_spill] sm:$0xff]  ;;  %v22645_v60 = vld [vmem:[#allocation50_spill] sm:$0xff] }
 0x64a   :  { %11493 = vst [vmem:[%s21262_s7 + $0x100] sm:$0xff] %v11429_v16  ;;  %11494 = vst [vmem:[%s21262_s7 + $0x108] sm:$0xff] %v11430_v27  ;;  %v11458_v1 = vmax.f32 %v22644_v21, 0.0  ;;  %v11459_v37 = vmax.f32 %v22645_v60, 0.0 }
 0x64b   :  { %11495 = vst [vmem:[%s21262_s7 + $0x110] sm:$0xff] %v11431_v36  ;;  %11496 = vst [vmem:[%s21262_s7 + $0x118] sm:$0xff] %v11432_v59 }
 0x64c   :  { %11497 = vst [vmem:[%s21262_s7 + $0x120] sm:$0xff] %v11433_v61  ;;  %11498 = vst [vmem:[%s21262_s7 + $0x128] sm:$0xff] %v11434_v62 }
 0x64d   :  { %11499 = vst [vmem:[%s21262_s7 + $0x130] sm:$0xff] %v11435_v47  ;;  %11500 = vst [vmem:[%s21262_s7 + $0x138] sm:$0xff] %v11436_v63 }
 0x64e   :  { %11501 = vst [vmem:[%s21262_s7 + $0x140] sm:$0xff] %v11437_v19  ;;  %11502 = vst [vmem:[%s21262_s7 + $0x148] sm:$0xff] %v11438_v32 }
 0x64f   :  { %11503 = vst [vmem:[%s21262_s7 + $0x150] sm:$0xff] %v11439_v30  ;;  %11504 = vst [vmem:[%s21262_s7 + $0x158] sm:$0xff] %v11440_v58 }
 0x650   :  { %11505 = vst [vmem:[%s21262_s7 + $0x160] sm:$0xff] %v11441_v35  ;;  %11506 = vst [vmem:[%s21262_s7 + $0x168] sm:$0xff] %v11442_v52 }
 0x651   :  { %11507 = vst [vmem:[%s21262_s7 + $0x170] sm:$0xff] %v11443_v41  ;;  %11508 = vst [vmem:[%s21262_s7 + $0x178] sm:$0xff] %v11444_v25 }
 0x652   :  { %11509 = vst [vmem:[%s21262_s7 + $0x180] sm:$0xff] %v11445_v50  ;;  %11510 = vst [vmem:[%s21262_s7 + $0x188] sm:$0xff] %v11446_v14 }
 0x653   :  { %11511 = vst [vmem:[%s21262_s7 + $0x190] sm:$0xff] %v11447_v28  ;;  %11512 = vst [vmem:[%s21262_s7 + $0x198] sm:$0xff] %v11448_v8 }
 0x654   :  { %11513 = vst [vmem:[%s21262_s7 + $0x1a0] sm:$0xff] %v11449_v49  ;;  %11514 = vst [vmem:[%s21262_s7 + $0x1a8] sm:$0xff] %v11450_v40 }
 0x655   :  { %11515 = vst [vmem:[%s21262_s7 + $0x1b0] sm:$0xff] %v11451_v4  ;;  %11516 = vst [vmem:[%s21262_s7 + $0x1b8] sm:$0xff] %v11452_v6 }
 0x656   :  { %11517 = vst [vmem:[%s21262_s7 + $0x1c0] sm:$0xff] %v11453_v11  ;;  %11518 = vst [vmem:[%s21262_s7 + $0x1c8] sm:$0xff] %v11454_v26 }
 0x657   :  { %11519 = vst [vmem:[%s21262_s7 + $0x1d0] sm:$0xff] %v11455_v10  ;;  %11520 = vst [vmem:[%s21262_s7 + $0x1d8] sm:$0xff] %v11456_v34 }
 0x658   :  { %11521 = vst [vmem:[%s21262_s7 + $0x1e0] sm:$0xff] %v11457_v12  ;;  %11522 = vst [vmem:[%s21262_s7 + $0x1e8] sm:$0xff] %v11458_v1 }
 0x659   :  { %11523 = vst [vmem:[%s21262_s7 + $0x1f0] sm:$0xff] %v11459_v37  ;;  %11524 = vst [vmem:[%s21262_s7 + $0x1f8] sm:$0xff] %v11460_v44 }

</bundles_post_ra>
